<compile_context>
chip_gen: v6e
topology: v6e:2x2x1
jax: 0.10.0
libtpu: 0.0.40
codegen_flags: <defaults>
</compile_context>

<pallas_src>
import jax
import jax.numpy as jnp
from jax.experimental import pallas as pl
from jax.experimental.pallas import tpu as pltpu

EPS = 1e-5
CP = 128          # lane-padded channel width carried through the kernel


# ----------------------------------------------------------------------------
# Pallas kernel: one grid step == `imgs_per_step` images, full block fused.
# ----------------------------------------------------------------------------
def _make_block_kernel(H, W, cp, halo, tm, imgs_per_step):
    M = H * W
    n_chunks = M // tm

    def tap_dot(src_ref, w_ref, r0, di, dj):
        off = halo + di * W + dj + r0                 # static offset
        t = (di + 1) * 3 + (dj + 1)
        patch = src_ref[pl.ds(off, tm), :]            # bf16, no per-tap cast
        return jnp.dot(patch, w_ref[t], preferred_element_type=jnp.float32)

    def conv_chunk(src_ref, w_ref, r0, mask_l, mask_r):
        # dj == -1 group: clean accumulate chain, one horizontal mask at end.
        acc_l = tap_dot(src_ref, w_ref, r0, -1, -1)
        acc_l = acc_l + tap_dot(src_ref, w_ref, r0, 0, -1)
        acc_l = acc_l + tap_dot(src_ref, w_ref, r0, 1, -1)
        acc = mask_l * acc_l
        # dj == +1 group.
        acc_r = tap_dot(src_ref, w_ref, r0, -1, 1)
        acc_r = acc_r + tap_dot(src_ref, w_ref, r0, 0, 1)
        acc_r = acc_r + tap_dot(src_ref, w_ref, r0, 1, 1)
        acc = acc + mask_r * acc_r
        # dj == 0 group: vertical OOB lands in zero halo rows -> no mask.
        acc = acc + tap_dot(src_ref, w_ref, r0, -1, 0)
        acc = acc + tap_dot(src_ref, w_ref, r0, 0, 0)
        acc = acc + tap_dot(src_ref, w_ref, r0, 1, 0)
        return acc

    def kernel(x_ref, w1_ref, w2_ref, bn_ref, o_ref, xp_ref, hp_ref):
        # Zero only the halo rows, every step (cheap, megacore-safe).
        zhalo = jnp.zeros((halo, cp), jnp.bfloat16)
        xp_ref[pl.ds(0, halo), :] = zhalo
        xp_ref[pl.ds(halo + M, halo), :] = zhalo
        hp_ref[pl.ds(0, halo), :] = zhalo
        hp_ref[pl.ds(halo + M, halo), :] = zhalo

        # Horizontal boundary masks (dj = +-1 taps only), generated in-kernel.
        # Column pattern has period W and tm % W == 0, so one (tm, cp) mask
        # serves every chunk of every image.
        row = jax.lax.broadcasted_iota(jnp.int32, (tm, cp), 0)
        left_bad = row == 0
        right_bad = row == (W - 1)
        for rr in range(1, tm // W):
            left_bad = left_bad | (row == rr * W)
            right_bad = right_bad | (row == rr * W + W - 1)
        mask_l = jnp.where(left_bad, 0.0, 1.0).astype(jnp.float32)
        mask_r = jnp.where(right_bad, 0.0, 1.0).astype(jnp.float32)

        s1 = bn_ref[pl.ds(0, 1), :]
        b1 = bn_ref[pl.ds(1, 1), :]
        s2 = bn_ref[pl.ds(2, 1), :]
        b2 = bn_ref[pl.ds(3, 1), :]

        for img in range(imgs_per_step):
            base = img * M

            # conv1 source: x already bf16 + option-A channel-shifted on host.
            xp_ref[pl.ds(halo, M), :] = x_ref[pl.ds(base, M), :]

            # conv1 + bn1 + relu, streamed per chunk into bf16 halo buffer.
            for c in range(n_chunks):
                r0 = c * tm
                acc = conv_chunk(xp_ref, w1_ref, r0, mask_l, mask_r)
                h = jnp.maximum(acc * s1 + b1, 0.0)
                hp_ref[pl.ds(halo + r0, tm), :] = h.astype(jnp.bfloat16)

            # conv2 + bn2 + shortcut add + relu, streamed per chunk to output
            # (f32, lane-dense 128-wide stores).
            for c in range(n_chunks):
                r0 = c * tm
                acc = conv_chunk(hp_ref, w2_ref, r0, mask_l, mask_r)
                y = acc * s2 + b2
                xv = x_ref[pl.ds(base + r0, tm), :].astype(jnp.float32)
                o_ref[pl.ds(base + r0, tm), :] = jnp.maximum(y + xv, 0.0)

    return kernel


# ----------------------------------------------------------------------------
# Host-side layout plumbing (constant-foldable under jit)
# ----------------------------------------------------------------------------
def _prep_conv_weight(w_oihw, cin_off, cp):
    # torch [Cout, Cin, 3, 3] -> [9, cp, cp] (per-tap [Cin, Cout]); valid Cin
    # rows placed at `cin_off`, valid Cout cols at 0, zeros elsewhere.
    cout, cin = w_oihw.shape[0], w_oihw.shape[1]
    w = jnp.transpose(w_oihw, (2, 3, 1, 0)).reshape(9, cin, cout)
    w = jnp.pad(w, ((0, 0), (cin_off, cp - cin - cin_off), (0, cp - cout)))
    return w.astype(jnp.bfloat16)


def _bn_table(bn1, bn2, cp):
    # eval-mode BN folded to scale/bias rows of one (8, cp) f32 table:
    # rows 0..3 = s1, b1, s2, b2; rows 4..7 padding for clean (8,128) tiling.
    def fold(bn):
        scale = bn["gamma"] / jnp.sqrt(bn["var"] + EPS)
        bias = bn["beta"] - bn["mean"] * scale
        c = scale.shape[0]
        return jnp.pad(scale, (0, cp - c)), jnp.pad(bias, (0, cp - c))

    s1, b1 = fold(bn1)
    s2, b2 = fold(bn2)
    z = jnp.zeros((cp,), jnp.float32)
    return jnp.stack([s1, b1, s2, b2, z, z, z, z]).astype(jnp.float32)


def _choose_chunk_rows(H, W):
    # Image rows per MXU chunk: keep the f32 accumulator around <= 8 vregs
    # (chunk_rows * W <= 64 when possible) so the 9-tap chain never spills.
    best = 1
    for rows in range(1, H + 1):
        if H % rows == 0 and rows * W <= 64:
            best = rows
    return best


def _choose_images_per_step(N):
    # Fewer, fatter grid steps amortize per-step overhead, but keep >= 2
    # steps so a v7x megacore can split the "parallel" axis across cores.
    best = 1
    for k in range(1, min(8, N) + 1):
        if N % k == 0 and (N // k >= 2 or N == 1):
            best = k
    return best


def pool_block_small_forward(x_nchw, params):
    N, in_planes, H, W = x_nchw.shape
    planes = params["conv1_w"].shape[0]
    assert params["conv1_w"].shape[1] == in_planes
    assert planes <= CP and in_planes <= planes
    assert (planes - in_planes) % 2 == 0
    M = H * W
    tm = _choose_chunk_rows(H, W) * W                 # chunk rows (flattened)
    assert M % 8 == 0 and tm % 8 == 0 and M % tm == 0
    k = _choose_images_per_step(N)
    pad_off = (planes - in_planes) // 2 if planes != in_planes else 0
    halo = ((W + 1 + 15) // 16) * 16                  # >= W+1, bf16-tile aligned

    w1 = _prep_conv_weight(params["conv1_w"], pad_off, CP)
    w2 = _prep_conv_weight(params["conv2_w"], 0, CP)
    bn_tab = _bn_table(params["bn1"], params["bn2"], CP)

    # NCHW -> NHWC bf16 (halves the activation HBM stream); valid channels
    # placed at the option-A zero-pad offset (conv1 weight rows shifted to
    # match) so the in-kernel shortcut is a plain element-wise add.
    x = jnp.transpose(x_nchw, (0, 2, 3, 1)).astype(jnp.bfloat16)
    x = jnp.pad(x, ((0, 0), (0, 0), (0, 0),
                    (pad_off, CP - in_planes - pad_off)))
    x2d = x.reshape(N * M, CP)

    out2d = pl.pallas_call(
        _make_block_kernel(H, W, CP, halo, tm, k),
        out_shape=jax.ShapeDtypeStruct((N * M, CP), jnp.float32),
        grid=(N // k,),
        in_specs=[
            pl.BlockSpec((k * M, CP), lambda n: (n, 0)),      # k images (bf16)
            pl.BlockSpec((9, CP, CP), lambda n: (0, 0, 0)),   # conv1 weights
            pl.BlockSpec((9, CP, CP), lambda n: (0, 0, 0)),   # conv2 weights
            pl.BlockSpec((8, CP), lambda n: (0, 0)),          # folded BN table
        ],
        out_specs=pl.BlockSpec((k * M, CP), lambda n: (n, 0)),
        scratch_shapes=[
            pltpu.VMEM((M + 2 * halo, CP), jnp.bfloat16),     # conv1 src (x)
            pltpu.VMEM((M + 2 * halo, CP), jnp.bfloat16),     # conv2 src (h)
        ],
        compiler_params=pltpu.CompilerParams(
            dimension_semantics=("parallel",)),
    )(x2d, w1, w2, bn_tab)

    out = out2d.reshape(N, H, W, CP)[..., :planes]
    return jnp.transpose(out, (0, 3, 1, 2))                   # back to NCHW


# ----------------------------------------------------------------------------
# Parameter init (deterministic) and pure-JAX reference for validation
# ----------------------------------------------------------------------------
def init_params(key, in_planes, planes):
    k1, k2 = jax.random.split(key)

    def bn_identity(c):
        return dict(gamma=jnp.ones((c,), jnp.float32),
                    beta=jnp.zeros((c,), jnp.float32),
                    mean=jnp.zeros((c,), jnp.float32),
                    var=jnp.ones((c,), jnp.float32))

    std1 = (2.0 / (in_planes * 9)) ** 0.5
    std2 = (2.0 / (planes * 9)) ** 0.5
    return dict(
        conv1_w=std1 * jax.random.normal(k1, (planes, in_planes, 3, 3),
                                         jnp.float32),
        conv2_w=std2 * jax.random.normal(k2, (planes, planes, 3, 3),
                                         jnp.float32),
        bn1=bn_identity(planes),
        bn2=bn_identity(planes),
    )


def reference_forward(x_nchw, params):
    def conv(x, w):
        return jax.lax.conv_general_dilated(
            x, w, window_strides=(1, 1), padding=((1, 1), (1, 1)),
            dimension_numbers=("NCHW", "OIHW", "NCHW"))

    def bn(x, p):
        scale = p["gamma"] / jnp.sqrt(p["var"] + EPS)
        bias = p["beta"] - p["mean"] * scale
        return x * scale[None, :, None, None] + bias[None, :, None, None]

    in_planes = x_nchw.shape[1]
    planes = params["conv1_w"].shape[0]
    out = jax.nn.relu(bn(conv(x_nchw, params["conv1_w"]), params["bn1"]))
    out = bn(conv(out, params["conv2_w"]), params["bn2"])
    if in_planes != planes:
        p = (planes - in_planes) // 2
        sc = jnp.pad(x_nchw, ((0, 0), (p, p), (0, 0), (0, 0)))
    else:
        sc = x_nchw
    return jax.nn.relu(out + sc)


if __name__ == "__main__":
    key = jax.random.PRNGKey(0)
    pkey, xkey = jax.random.split(key)
    IN_PLANES, PLANES = 16, 32
    N, H, W = 2, 16, 16

    params = init_params(pkey, IN_PLANES, PLANES)
    x = jax.random.normal(xkey, (N, IN_PLANES, H, W), jnp.float32)  # NCHW

    fwd = jax.jit(pool_block_small_forward)
    out = jax.block_until_ready(fwd(x, params))

    assert out.shape == (N, PLANES, H, W)
    assert bool(jnp.all(jnp.isfinite(out)))
    ref = reference_forward(x, params)
    err = float(jnp.max(jnp.abs(out - ref)))
    assert err < 0.2, f"mismatch vs reference: {err}"
    print("KERNEL_OK")
</pallas_src>

<mosaic_0001>
module attributes {stable_mosaic.version = 11 : i64} {
  func.func @kernel(%arg0: i32, %arg1: memref<256x128xbf16, #tpu.memory_space<vmem>>, %arg2: memref<9x128x128xbf16, #tpu.memory_space<vmem>>, %arg3: memref<9x128x128xbf16, #tpu.memory_space<vmem>>, %arg4: memref<8x128xf32, #tpu.memory_space<vmem>>, %arg5: memref<256x128xf32, #tpu.memory_space<vmem>>, %arg6: memref<320x128xbf16, #tpu.memory_space<vmem>>, %arg7: memref<320x128xbf16, #tpu.memory_space<vmem>>) attributes {dimension_semantics = [#tpu.dimension_semantics<parallel>], iteration_bounds = array<i64: 2>, scalar_prefetch = 0 : i64, scratch_operands = 2 : i64, tpu.core_type = #tpu.core_type<tc>, window_params = [{transform_indices = @transform_0, window_bounds = array<i64: 256, 128>}, {pipeline_mode = #tpu.pipeline_mode<synchronous>, transform_indices = @transform_1, window_bounds = array<i64: 9, 128, 128>}, {pipeline_mode = #tpu.pipeline_mode<synchronous>, transform_indices = @transform_2, window_bounds = array<i64: 9, 128, 128>}, {pipeline_mode = #tpu.pipeline_mode<synchronous>, transform_indices = @transform_3, window_bounds = array<i64: 8, 128>}, {transform_indices = @transform_4, window_bounds = array<i64: 256, 128>}]} {
    %cst = arith.constant 0.000000e+00 : bf16
    %0 = vector.broadcast %cst : bf16 to vector<32x128xbf16>
    %c0 = arith.constant 0 : index
    %c0_0 = arith.constant 0 : index
    %1 = vector.load %arg6[%c0, %c0_0] : memref<320x128xbf16, #tpu.memory_space<vmem>>, vector<32x128xbf16>
    tpu.vector_store %arg6[%c0, %c0_0], %0 {strides = array<i32>} : memref<320x128xbf16, #tpu.memory_space<vmem>>, vector<32x128xbf16>,
    %c288 = arith.constant 288 : index
    %c0_1 = arith.constant 0 : index
    %2 = vector.load %arg6[%c288, %c0_1] : memref<320x128xbf16, #tpu.memory_space<vmem>>, vector<32x128xbf16>
    tpu.vector_store %arg6[%c288, %c0_1], %0 {strides = array<i32>} : memref<320x128xbf16, #tpu.memory_space<vmem>>, vector<32x128xbf16>,
    %c0_2 = arith.constant 0 : index
    %c0_3 = arith.constant 0 : index
    %3 = vector.load %arg7[%c0_2, %c0_3] : memref<320x128xbf16, #tpu.memory_space<vmem>>, vector<32x128xbf16>
    tpu.vector_store %arg7[%c0_2, %c0_3], %0 {strides = array<i32>} : memref<320x128xbf16, #tpu.memory_space<vmem>>, vector<32x128xbf16>,
    %c288_4 = arith.constant 288 : index
    %c0_5 = arith.constant 0 : index
    %4 = vector.load %arg7[%c288_4, %c0_5] : memref<320x128xbf16, #tpu.memory_space<vmem>>, vector<32x128xbf16>
    tpu.vector_store %arg7[%c288_4, %c0_5], %0 {strides = array<i32>} : memref<320x128xbf16, #tpu.memory_space<vmem>>, vector<32x128xbf16>,
    %5 = tpu.iota {dimensions = array<i32: 0>} : vector<64x128xi32>
    %c0_i32 = arith.constant 0 : i32
    %6 = vector.broadcast %c0_i32 : i32 to vector<64x128xi32>
    %7 = arith.cmpi eq, %5, %6 : vector<64x128xi32>
    %c15_i32 = arith.constant 15 : i32
    %8 = vector.broadcast %c15_i32 : i32 to vector<64x128xi32>
    %9 = arith.cmpi eq, %5, %8 : vector<64x128xi32>
    %c16_i32 = arith.constant 16 : i32
    %10 = vector.broadcast %c16_i32 : i32 to vector<64x128xi32>
    %11 = arith.cmpi eq, %5, %10 : vector<64x128xi32>
    %12 = arith.ori %7, %11 : vector<64x128xi1>
    %c31_i32 = arith.constant 31 : i32
    %13 = vector.broadcast %c31_i32 : i32 to vector<64x128xi32>
    %14 = arith.cmpi eq, %5, %13 : vector<64x128xi32>
    %15 = arith.ori %9, %14 : vector<64x128xi1>
    %c32_i32 = arith.constant 32 : i32
    %16 = vector.broadcast %c32_i32 : i32 to vector<64x128xi32>
    %17 = arith.cmpi eq, %5, %16 : vector<64x128xi32>
    %18 = arith.ori %12, %17 : vector<64x128xi1>
    %c47_i32 = arith.constant 47 : i32
    %19 = vector.broadcast %c47_i32 : i32 to vector<64x128xi32>
    %20 = arith.cmpi eq, %5, %19 : vector<64x128xi32>
    %21 = arith.ori %15, %20 : vector<64x128xi1>
    %c48_i32 = arith.constant 48 : i32
    %22 = vector.broadcast %c48_i32 : i32 to vector<64x128xi32>
    %23 = arith.cmpi eq, %5, %22 : vector<64x128xi32>
    %24 = arith.ori %18, %23 : vector<64x128xi1>
    %c63_i32 = arith.constant 63 : i32
    %25 = vector.broadcast %c63_i32 : i32 to vector<64x128xi32>
    %26 = arith.cmpi eq, %5, %25 : vector<64x128xi32>
    %27 = arith.ori %21, %26 : vector<64x128xi1>
    %cst_6 = arith.constant 0.000000e+00 : f32
    %cst_7 = arith.constant 1.000000e+00 : f32
    %28 = vector.broadcast %cst_6 : f32 to vector<64x128xf32>
    %29 = vector.broadcast %cst_7 : f32 to vector<64x128xf32>
    %30 = arith.select %24, %28, %29 : vector<64x128xi1>, vector<64x128xf32>
    %cst_8 = arith.constant 0.000000e+00 : f32
    %cst_9 = arith.constant 1.000000e+00 : f32
    %31 = vector.broadcast %cst_8 : f32 to vector<64x128xf32>
    %32 = vector.broadcast %cst_9 : f32 to vector<64x128xf32>
    %33 = arith.select %27, %31, %32 : vector<64x128xi1>, vector<64x128xf32>
    %c0_10 = arith.constant 0 : index
    %c0_11 = arith.constant 0 : index
    %34 = vector.load %arg4[%c0_10, %c0_11] : memref<8x128xf32, #tpu.memory_space<vmem>>, vector<1x128xf32>
    %c1 = arith.constant 1 : index
    %c0_12 = arith.constant 0 : index
    %35 = vector.load %arg4[%c1, %c0_12] : memref<8x128xf32, #tpu.memory_space<vmem>>, vector<1x128xf32>
    %c2 = arith.constant 2 : index
    %c0_13 = arith.constant 0 : index
    %36 = vector.load %arg4[%c2, %c0_13] : memref<8x128xf32, #tpu.memory_space<vmem>>, vector<1x128xf32>
    %c3 = arith.constant 3 : index
    %c0_14 = arith.constant 0 : index
    %37 = vector.load %arg4[%c3, %c0_14] : memref<8x128xf32, #tpu.memory_space<vmem>>, vector<1x128xf32>
    %c0_15 = arith.constant 0 : index
    %c0_16 = arith.constant 0 : index
    %38 = vector.load %arg1[%c0_15, %c0_16] : memref<256x128xbf16, #tpu.memory_space<vmem>>, vector<256x128xbf16>
    %c32 = arith.constant 32 : index
    %c0_17 = arith.constant 0 : index
    %39 = vector.load %arg6[%c32, %c0_17] : memref<320x128xbf16, #tpu.memory_space<vmem>>, vector<256x128xbf16>
    tpu.vector_store %arg6[%c32, %c0_17], %38 {strides = array<i32>} : memref<320x128xbf16, #tpu.memory_space<vmem>>, vector<256x128xbf16>,
    %c15 = arith.constant 15 : index
    %c0_18 = arith.constant 0 : index
    %40 = vector.load %arg6[%c15, %c0_18] : memref<320x128xbf16, #tpu.memory_space<vmem>>, vector<64x128xbf16>
    %c0_19 = arith.constant 0 : index
    %c0_20 = arith.constant 0 : index
    %c0_21 = arith.constant 0 : index
    %41 = vector.load %arg2[%c0_19, %c0_20, %c0_21] : memref<9x128x128xbf16, #tpu.memory_space<vmem>>, vector<1x128x128xbf16>
    %42 = vector.shape_cast %41 : vector<1x128x128xbf16> to vector<128x128xbf16>
    %cst_22 = arith.constant dense<0.000000e+00> : vector<64x128xf32>
    %43 = tpu.matmul %40, %42, %cst_22 {dimension_numbers = #tpu.dot_dimension_numbers<[1], [0], [0], [1], [0, 0, 1, 1], [], []>} : vector<64x128xbf16>, vector<128x128xbf16>, vector<64x128xf32> -> vector<64x128xf32>
    %c31 = arith.constant 31 : index
    %c0_23 = arith.constant 0 : index
    %44 = vector.load %arg6[%c31, %c0_23] : memref<320x128xbf16, #tpu.memory_space<vmem>>, vector<64x128xbf16>
    %c3_24 = arith.constant 3 : index
    %c0_25 = arith.constant 0 : index
    %c0_26 = arith.constant 0 : index
    %45 = vector.load %arg2[%c3_24, %c0_25, %c0_26] : memref<9x128x128xbf16, #tpu.memory_space<vmem>>, vector<1x128x128xbf16>
    %46 = vector.shape_cast %45 : vector<1x128x128xbf16> to vector<128x128xbf16>
    %cst_27 = arith.constant dense<0.000000e+00> : vector<64x128xf32>
    %47 = tpu.matmul %44, %46, %cst_27 {dimension_numbers = #tpu.dot_dimension_numbers<[1], [0], [0], [1], [0, 0, 1, 1], [], []>} : vector<64x128xbf16>, vector<128x128xbf16>, vector<64x128xf32> -> vector<64x128xf32>
    %48 = arith.addf %43, %47 : vector<64x128xf32>
    %c47 = arith.constant 47 : index
    %c0_28 = arith.constant 0 : index
    %49 = vector.load %arg6[%c47, %c0_28] : memref<320x128xbf16, #tpu.memory_space<vmem>>, vector<64x128xbf16>
    %c6 = arith.constant 6 : index
    %c0_29 = arith.constant 0 : index
    %c0_30 = arith.constant 0 : index
    %50 = vector.load %arg2[%c6, %c0_29, %c0_30] : memref<9x128x128xbf16, #tpu.memory_space<vmem>>, vector<1x128x128xbf16>
    %51 = vector.shape_cast %50 : vector<1x128x128xbf16> to vector<128x128xbf16>
    %cst_31 = arith.constant dense<0.000000e+00> : vector<64x128xf32>
    %52 = tpu.matmul %49, %51, %cst_31 {dimension_numbers = #tpu.dot_dimension_numbers<[1], [0], [0], [1], [0, 0, 1, 1], [], []>} : vector<64x128xbf16>, vector<128x128xbf16>, vector<64x128xf32> -> vector<64x128xf32>
    %53 = arith.addf %48, %52 : vector<64x128xf32>
    %54 = arith.mulf %30, %53 : vector<64x128xf32>
    %c17 = arith.constant 17 : index
    %c0_32 = arith.constant 0 : index
    %55 = vector.load %arg6[%c17, %c0_32] : memref<320x128xbf16, #tpu.memory_space<vmem>>, vector<64x128xbf16>
    %c2_33 = arith.constant 2 : index
    %c0_34 = arith.constant 0 : index
    %c0_35 = arith.constant 0 : index
    %56 = vector.load %arg2[%c2_33, %c0_34, %c0_35] : memref<9x128x128xbf16, #tpu.memory_space<vmem>>, vector<1x128x128xbf16>
    %57 = vector.shape_cast %56 : vector<1x128x128xbf16> to vector<128x128xbf16>
    %cst_36 = arith.constant dense<0.000000e+00> : vector<64x128xf32>
    %58 = tpu.matmul %55, %57, %cst_36 {dimension_numbers = #tpu.dot_dimension_numbers<[1], [0], [0], [1], [0, 0, 1, 1], [], []>} : vector<64x128xbf16>, vector<128x128xbf16>, vector<64x128xf32> -> vector<64x128xf32>
    %c33 = arith.constant 33 : index
    %c0_37 = arith.constant 0 : index
    %59 = vector.load %arg6[%c33, %c0_37] : memref<320x128xbf16, #tpu.memory_space<vmem>>, vector<64x128xbf16>
    %c5 = arith.constant 5 : index
    %c0_38 = arith.constant 0 : index
    %c0_39 = arith.constant 0 : index
    %60 = vector.load %arg2[%c5, %c0_38, %c0_39] : memref<9x128x128xbf16, #tpu.memory_space<vmem>>, vector<1x128x128xbf16>
    %61 = vector.shape_cast %60 : vector<1x128x128xbf16> to vector<128x128xbf16>
    %cst_40 = arith.constant dense<0.000000e+00> : vector<64x128xf32>
    %62 = tpu.matmul %59, %61, %cst_40 {dimension_numbers = #tpu.dot_dimension_numbers<[1], [0], [0], [1], [0, 0, 1, 1], [], []>} : vector<64x128xbf16>, vector<128x128xbf16>, vector<64x128xf32> -> vector<64x128xf32>
    %63 = arith.addf %58, %62 : vector<64x128xf32>
    %c49 = arith.constant 49 : index
    %c0_41 = arith.constant 0 : index
    %64 = vector.load %arg6[%c49, %c0_41] : memref<320x128xbf16, #tpu.memory_space<vmem>>, vector<64x128xbf16>
    %c8 = arith.constant 8 : index
    %c0_42 = arith.constant 0 : index
    %c0_43 = arith.constant 0 : index
    %65 = vector.load %arg2[%c8, %c0_42, %c0_43] : memref<9x128x128xbf16, #tpu.memory_space<vmem>>, vector<1x128x128xbf16>
    %66 = vector.shape_cast %65 : vector<1x128x128xbf16> to vector<128x128xbf16>
    %cst_44 = arith.constant dense<0.000000e+00> : vector<64x128xf32>
    %67 = tpu.matmul %64, %66, %cst_44 {dimension_numbers = #tpu.dot_dimension_numbers<[1], [0], [0], [1], [0, 0, 1, 1], [], []>} : vector<64x128xbf16>, vector<128x128xbf16>, vector<64x128xf32> -> vector<64x128xf32>
    %68 = arith.addf %63, %67 : vector<64x128xf32>
    %69 = arith.mulf %33, %68 : vector<64x128xf32>
    %70 = arith.addf %54, %69 : vector<64x128xf32>
    %c16 = arith.constant 16 : index
    %c0_45 = arith.constant 0 : index
    %71 = vector.load %arg6[%c16, %c0_45] : memref<320x128xbf16, #tpu.memory_space<vmem>>, vector<64x128xbf16>
    %c1_46 = arith.constant 1 : index
    %c0_47 = arith.constant 0 : index
    %c0_48 = arith.constant 0 : index
    %72 = vector.load %arg2[%c1_46, %c0_47, %c0_48] : memref<9x128x128xbf16, #tpu.memory_space<vmem>>, vector<1x128x128xbf16>
    %73 = vector.shape_cast %72 : vector<1x128x128xbf16> to vector<128x128xbf16>
    %cst_49 = arith.constant dense<0.000000e+00> : vector<64x128xf32>
    %74 = tpu.matmul %71, %73, %cst_49 {dimension_numbers = #tpu.dot_dimension_numbers<[1], [0], [0], [1], [0, 0, 1, 1], [], []>} : vector<64x128xbf16>, vector<128x128xbf16>, vector<64x128xf32> -> vector<64x128xf32>
    %75 = arith.addf %70, %74 : vector<64x128xf32>
    %c32_50 = arith.constant 32 : index
    %c0_51 = arith.constant 0 : index
    %76 = vector.load %arg6[%c32_50, %c0_51] : memref<320x128xbf16, #tpu.memory_space<vmem>>, vector<64x128xbf16>
    %c4 = arith.constant 4 : index
    %c0_52 = arith.constant 0 : index
    %c0_53 = arith.constant 0 : index
    %77 = vector.load %arg2[%c4, %c0_52, %c0_53] : memref<9x128x128xbf16, #tpu.memory_space<vmem>>, vector<1x128x128xbf16>
    %78 = vector.shape_cast %77 : vector<1x128x128xbf16> to vector<128x128xbf16>
    %cst_54 = arith.constant dense<0.000000e+00> : vector<64x128xf32>
    %79 = tpu.matmul %76, %78, %cst_54 {dimension_numbers = #tpu.dot_dimension_numbers<[1], [0], [0], [1], [0, 0, 1, 1], [], []>} : vector<64x128xbf16>, vector<128x128xbf16>, vector<64x128xf32> -> vector<64x128xf32>
    %80 = arith.addf %75, %79 : vector<64x128xf32>
    %c48 = arith.constant 48 : index
    %c0_55 = arith.constant 0 : index
    %81 = vector.load %arg6[%c48, %c0_55] : memref<320x128xbf16, #tpu.memory_space<vmem>>, vector<64x128xbf16>
    %c7 = arith.constant 7 : index
    %c0_56 = arith.constant 0 : index
    %c0_57 = arith.constant 0 : index
    %82 = vector.load %arg2[%c7, %c0_56, %c0_57] : memref<9x128x128xbf16, #tpu.memory_space<vmem>>, vector<1x128x128xbf16>
    %83 = vector.shape_cast %82 : vector<1x128x128xbf16> to vector<128x128xbf16>
    %cst_58 = arith.constant dense<0.000000e+00> : vector<64x128xf32>
    %84 = tpu.matmul %81, %83, %cst_58 {dimension_numbers = #tpu.dot_dimension_numbers<[1], [0], [0], [1], [0, 0, 1, 1], [], []>} : vector<64x128xbf16>, vector<128x128xbf16>, vector<64x128xf32> -> vector<64x128xf32>
    %85 = arith.addf %80, %84 : vector<64x128xf32>
    %86 = vector.broadcast %34 : vector<1x128xf32> to vector<64x128xf32>
    %87 = arith.mulf %85, %86 : vector<64x128xf32>
    %88 = vector.broadcast %35 : vector<1x128xf32> to vector<64x128xf32>
    %89 = arith.addf %87, %88 : vector<64x128xf32>
    %cst_59 = arith.constant 0.000000e+00 : f32
    %90 = vector.broadcast %cst_59 : f32 to vector<64x128xf32>
    %91 = arith.maximumf %89, %90 : vector<64x128xf32>
    %92 = arith.truncf %91 : vector<64x128xf32> to vector<64x128xbf16>
    %c32_60 = arith.constant 32 : index
    %c0_61 = arith.constant 0 : index
    %93 = vector.load %arg7[%c32_60, %c0_61] : memref<320x128xbf16, #tpu.memory_space<vmem>>, vector<64x128xbf16>
    tpu.vector_store %arg7[%c32_60, %c0_61], %92 {strides = array<i32>} : memref<320x128xbf16, #tpu.memory_space<vmem>>, vector<64x128xbf16>,
    %c79 = arith.constant 79 : index
    %c0_62 = arith.constant 0 : index
    %94 = vector.load %arg6[%c79, %c0_62] : memref<320x128xbf16, #tpu.memory_space<vmem>>, vector<64x128xbf16>
    %c0_63 = arith.constant 0 : index
    %c0_64 = arith.constant 0 : index
    %c0_65 = arith.constant 0 : index
    %95 = vector.load %arg2[%c0_63, %c0_64, %c0_65] : memref<9x128x128xbf16, #tpu.memory_space<vmem>>, vector<1x128x128xbf16>
    %96 = vector.shape_cast %95 : vector<1x128x128xbf16> to vector<128x128xbf16>
    %cst_66 = arith.constant dense<0.000000e+00> : vector<64x128xf32>
    %97 = tpu.matmul %94, %96, %cst_66 {dimension_numbers = #tpu.dot_dimension_numbers<[1], [0], [0], [1], [0, 0, 1, 1], [], []>} : vector<64x128xbf16>, vector<128x128xbf16>, vector<64x128xf32> -> vector<64x128xf32>
    %c95 = arith.constant 95 : index
    %c0_67 = arith.constant 0 : index
    %98 = vector.load %arg6[%c95, %c0_67] : memref<320x128xbf16, #tpu.memory_space<vmem>>, vector<64x128xbf16>
    %c3_68 = arith.constant 3 : index
    %c0_69 = arith.constant 0 : index
    %c0_70 = arith.constant 0 : index
    %99 = vector.load %arg2[%c3_68, %c0_69, %c0_70] : memref<9x128x128xbf16, #tpu.memory_space<vmem>>, vector<1x128x128xbf16>
    %100 = vector.shape_cast %99 : vector<1x128x128xbf16> to vector<128x128xbf16>
    %cst_71 = arith.constant dense<0.000000e+00> : vector<64x128xf32>
    %101 = tpu.matmul %98, %100, %cst_71 {dimension_numbers = #tpu.dot_dimension_numbers<[1], [0], [0], [1], [0, 0, 1, 1], [], []>} : vector<64x128xbf16>, vector<128x128xbf16>, vector<64x128xf32> -> vector<64x128xf32>
    %102 = arith.addf %97, %101 : vector<64x128xf32>
    %c111 = arith.constant 111 : index
    %c0_72 = arith.constant 0 : index
    %103 = vector.load %arg6[%c111, %c0_72] : memref<320x128xbf16, #tpu.memory_space<vmem>>, vector<64x128xbf16>
    %c6_73 = arith.constant 6 : index
    %c0_74 = arith.constant 0 : index
    %c0_75 = arith.constant 0 : index
    %104 = vector.load %arg2[%c6_73, %c0_74, %c0_75] : memref<9x128x128xbf16, #tpu.memory_space<vmem>>, vector<1x128x128xbf16>
    %105 = vector.shape_cast %104 : vector<1x128x128xbf16> to vector<128x128xbf16>
    %cst_76 = arith.constant dense<0.000000e+00> : vector<64x128xf32>
    %106 = tpu.matmul %103, %105, %cst_76 {dimension_numbers = #tpu.dot_dimension_numbers<[1], [0], [0], [1], [0, 0, 1, 1], [], []>} : vector<64x128xbf16>, vector<128x128xbf16>, vector<64x128xf32> -> vector<64x128xf32>
    %107 = arith.addf %102, %106 : vector<64x128xf32>
    %108 = arith.mulf %30, %107 : vector<64x128xf32>
    %c81 = arith.constant 81 : index
    %c0_77 = arith.constant 0 : index
    %109 = vector.load %arg6[%c81, %c0_77] : memref<320x128xbf16, #tpu.memory_space<vmem>>, vector<64x128xbf16>
    %c2_78 = arith.constant 2 : index
    %c0_79 = arith.constant 0 : index
    %c0_80 = arith.constant 0 : index
    %110 = vector.load %arg2[%c2_78, %c0_79, %c0_80] : memref<9x128x128xbf16, #tpu.memory_space<vmem>>, vector<1x128x128xbf16>
    %111 = vector.shape_cast %110 : vector<1x128x128xbf16> to vector<128x128xbf16>
    %cst_81 = arith.constant dense<0.000000e+00> : vector<64x128xf32>
    %112 = tpu.matmul %109, %111, %cst_81 {dimension_numbers = #tpu.dot_dimension_numbers<[1], [0], [0], [1], [0, 0, 1, 1], [], []>} : vector<64x128xbf16>, vector<128x128xbf16>, vector<64x128xf32> -> vector<64x128xf32>
    %c97 = arith.constant 97 : index
    %c0_82 = arith.constant 0 : index
    %113 = vector.load %arg6[%c97, %c0_82] : memref<320x128xbf16, #tpu.memory_space<vmem>>, vector<64x128xbf16>
    %c5_83 = arith.constant 5 : index
    %c0_84 = arith.constant 0 : index
    %c0_85 = arith.constant 0 : index
    %114 = vector.load %arg2[%c5_83, %c0_84, %c0_85] : memref<9x128x128xbf16, #tpu.memory_space<vmem>>, vector<1x128x128xbf16>
    %115 = vector.shape_cast %114 : vector<1x128x128xbf16> to vector<128x128xbf16>
    %cst_86 = arith.constant dense<0.000000e+00> : vector<64x128xf32>
    %116 = tpu.matmul %113, %115, %cst_86 {dimension_numbers = #tpu.dot_dimension_numbers<[1], [0], [0], [1], [0, 0, 1, 1], [], []>} : vector<64x128xbf16>, vector<128x128xbf16>, vector<64x128xf32> -> vector<64x128xf32>
    %117 = arith.addf %112, %116 : vector<64x128xf32>
    %c113 = arith.constant 113 : index
    %c0_87 = arith.constant 0 : index
    %118 = vector.load %arg6[%c113, %c0_87] : memref<320x128xbf16, #tpu.memory_space<vmem>>, vector<64x128xbf16>
    %c8_88 = arith.constant 8 : index
    %c0_89 = arith.constant 0 : index
    %c0_90 = arith.constant 0 : index
    %119 = vector.load %arg2[%c8_88, %c0_89, %c0_90] : memref<9x128x128xbf16, #tpu.memory_space<vmem>>, vector<1x128x128xbf16>
    %120 = vector.shape_cast %119 : vector<1x128x128xbf16> to vector<128x128xbf16>
    %cst_91 = arith.constant dense<0.000000e+00> : vector<64x128xf32>
    %121 = tpu.matmul %118, %120, %cst_91 {dimension_numbers = #tpu.dot_dimension_numbers<[1], [0], [0], [1], [0, 0, 1, 1], [], []>} : vector<64x128xbf16>, vector<128x128xbf16>, vector<64x128xf32> -> vector<64x128xf32>
    %122 = arith.addf %117, %121 : vector<64x128xf32>
    %123 = arith.mulf %33, %122 : vector<64x128xf32>
    %124 = arith.addf %108, %123 : vector<64x128xf32>
    %c80 = arith.constant 80 : index
    %c0_92 = arith.constant 0 : index
    %125 = vector.load %arg6[%c80, %c0_92] : memref<320x128xbf16, #tpu.memory_space<vmem>>, vector<64x128xbf16>
    %c1_93 = arith.constant 1 : index
    %c0_94 = arith.constant 0 : index
    %c0_95 = arith.constant 0 : index
    %126 = vector.load %arg2[%c1_93, %c0_94, %c0_95] : memref<9x128x128xbf16, #tpu.memory_space<vmem>>, vector<1x128x128xbf16>
    %127 = vector.shape_cast %126 : vector<1x128x128xbf16> to vector<128x128xbf16>
    %cst_96 = arith.constant dense<0.000000e+00> : vector<64x128xf32>
    %128 = tpu.matmul %125, %127, %cst_96 {dimension_numbers = #tpu.dot_dimension_numbers<[1], [0], [0], [1], [0, 0, 1, 1], [], []>} : vector<64x128xbf16>, vector<128x128xbf16>, vector<64x128xf32> -> vector<64x128xf32>
    %129 = arith.addf %124, %128 : vector<64x128xf32>
    %c96 = arith.constant 96 : index
    %c0_97 = arith.constant 0 : index
    %130 = vector.load %arg6[%c96, %c0_97] : memref<320x128xbf16, #tpu.memory_space<vmem>>, vector<64x128xbf16>
    %c4_98 = arith.constant 4 : index
    %c0_99 = arith.constant 0 : index
    %c0_100 = arith.constant 0 : index
    %131 = vector.load %arg2[%c4_98, %c0_99, %c0_100] : memref<9x128x128xbf16, #tpu.memory_space<vmem>>, vector<1x128x128xbf16>
    %132 = vector.shape_cast %131 : vector<1x128x128xbf16> to vector<128x128xbf16>
    %cst_101 = arith.constant dense<0.000000e+00> : vector<64x128xf32>
    %133 = tpu.matmul %130, %132, %cst_101 {dimension_numbers = #tpu.dot_dimension_numbers<[1], [0], [0], [1], [0, 0, 1, 1], [], []>} : vector<64x128xbf16>, vector<128x128xbf16>, vector<64x128xf32> -> vector<64x128xf32>
    %134 = arith.addf %129, %133 : vector<64x128xf32>
    %c112 = arith.constant 112 : index
    %c0_102 = arith.constant 0 : index
    %135 = vector.load %arg6[%c112, %c0_102] : memref<320x128xbf16, #tpu.memory_space<vmem>>, vector<64x128xbf16>
    %c7_103 = arith.constant 7 : index
    %c0_104 = arith.constant 0 : index
    %c0_105 = arith.constant 0 : index
    %136 = vector.load %arg2[%c7_103, %c0_104, %c0_105] : memref<9x128x128xbf16, #tpu.memory_space<vmem>>, vector<1x128x128xbf16>
    %137 = vector.shape_cast %136 : vector<1x128x128xbf16> to vector<128x128xbf16>
    %cst_106 = arith.constant dense<0.000000e+00> : vector<64x128xf32>
    %138 = tpu.matmul %135, %137, %cst_106 {dimension_numbers = #tpu.dot_dimension_numbers<[1], [0], [0], [1], [0, 0, 1, 1], [], []>} : vector<64x128xbf16>, vector<128x128xbf16>, vector<64x128xf32> -> vector<64x128xf32>
    %139 = arith.addf %134, %138 : vector<64x128xf32>
    %140 = vector.broadcast %34 : vector<1x128xf32> to vector<64x128xf32>
    %141 = arith.mulf %139, %140 : vector<64x128xf32>
    %142 = vector.broadcast %35 : vector<1x128xf32> to vector<64x128xf32>
    %143 = arith.addf %141, %142 : vector<64x128xf32>
    %cst_107 = arith.constant 0.000000e+00 : f32
    %144 = vector.broadcast %cst_107 : f32 to vector<64x128xf32>
    %145 = arith.maximumf %143, %144 : vector<64x128xf32>
    %146 = arith.truncf %145 : vector<64x128xf32> to vector<64x128xbf16>
    %c96_108 = arith.constant 96 : index
    %c0_109 = arith.constant 0 : index
    %147 = vector.load %arg7[%c96_108, %c0_109] : memref<320x128xbf16, #tpu.memory_space<vmem>>, vector<64x128xbf16>
    tpu.vector_store %arg7[%c96_108, %c0_109], %146 {strides = array<i32>} : memref<320x128xbf16, #tpu.memory_space<vmem>>, vector<64x128xbf16>,
    %c143 = arith.constant 143 : index
    %c0_110 = arith.constant 0 : index
    %148 = vector.load %arg6[%c143, %c0_110] : memref<320x128xbf16, #tpu.memory_space<vmem>>, vector<64x128xbf16>
    %c0_111 = arith.constant 0 : index
    %c0_112 = arith.constant 0 : index
    %c0_113 = arith.constant 0 : index
    %149 = vector.load %arg2[%c0_111, %c0_112, %c0_113] : memref<9x128x128xbf16, #tpu.memory_space<vmem>>, vector<1x128x128xbf16>
    %150 = vector.shape_cast %149 : vector<1x128x128xbf16> to vector<128x128xbf16>
    %cst_114 = arith.constant dense<0.000000e+00> : vector<64x128xf32>
    %151 = tpu.matmul %148, %150, %cst_114 {dimension_numbers = #tpu.dot_dimension_numbers<[1], [0], [0], [1], [0, 0, 1, 1], [], []>} : vector<64x128xbf16>, vector<128x128xbf16>, vector<64x128xf32> -> vector<64x128xf32>
    %c159 = arith.constant 159 : index
    %c0_115 = arith.constant 0 : index
    %152 = vector.load %arg6[%c159, %c0_115] : memref<320x128xbf16, #tpu.memory_space<vmem>>, vector<64x128xbf16>
    %c3_116 = arith.constant 3 : index
    %c0_117 = arith.constant 0 : index
    %c0_118 = arith.constant 0 : index
    %153 = vector.load %arg2[%c3_116, %c0_117, %c0_118] : memref<9x128x128xbf16, #tpu.memory_space<vmem>>, vector<1x128x128xbf16>
    %154 = vector.shape_cast %153 : vector<1x128x128xbf16> to vector<128x128xbf16>
    %cst_119 = arith.constant dense<0.000000e+00> : vector<64x128xf32>
    %155 = tpu.matmul %152, %154, %cst_119 {dimension_numbers = #tpu.dot_dimension_numbers<[1], [0], [0], [1], [0, 0, 1, 1], [], []>} : vector<64x128xbf16>, vector<128x128xbf16>, vector<64x128xf32> -> vector<64x128xf32>
    %156 = arith.addf %151, %155 : vector<64x128xf32>
    %c175 = arith.constant 175 : index
    %c0_120 = arith.constant 0 : index
    %157 = vector.load %arg6[%c175, %c0_120] : memref<320x128xbf16, #tpu.memory_space<vmem>>, vector<64x128xbf16>
    %c6_121 = arith.constant 6 : index
    %c0_122 = arith.constant 0 : index
    %c0_123 = arith.constant 0 : index
    %158 = vector.load %arg2[%c6_121, %c0_122, %c0_123] : memref<9x128x128xbf16, #tpu.memory_space<vmem>>, vector<1x128x128xbf16>
    %159 = vector.shape_cast %158 : vector<1x128x128xbf16> to vector<128x128xbf16>
    %cst_124 = arith.constant dense<0.000000e+00> : vector<64x128xf32>
    %160 = tpu.matmul %157, %159, %cst_124 {dimension_numbers = #tpu.dot_dimension_numbers<[1], [0], [0], [1], [0, 0, 1, 1], [], []>} : vector<64x128xbf16>, vector<128x128xbf16>, vector<64x128xf32> -> vector<64x128xf32>
    %161 = arith.addf %156, %160 : vector<64x128xf32>
    %162 = arith.mulf %30, %161 : vector<64x128xf32>
    %c145 = arith.constant 145 : index
    %c0_125 = arith.constant 0 : index
    %163 = vector.load %arg6[%c145, %c0_125] : memref<320x128xbf16, #tpu.memory_space<vmem>>, vector<64x128xbf16>
    %c2_126 = arith.constant 2 : index
    %c0_127 = arith.constant 0 : index
    %c0_128 = arith.constant 0 : index
    %164 = vector.load %arg2[%c2_126, %c0_127, %c0_128] : memref<9x128x128xbf16, #tpu.memory_space<vmem>>, vector<1x128x128xbf16>
    %165 = vector.shape_cast %164 : vector<1x128x128xbf16> to vector<128x128xbf16>
    %cst_129 = arith.constant dense<0.000000e+00> : vector<64x128xf32>
    %166 = tpu.matmul %163, %165, %cst_129 {dimension_numbers = #tpu.dot_dimension_numbers<[1], [0], [0], [1], [0, 0, 1, 1], [], []>} : vector<64x128xbf16>, vector<128x128xbf16>, vector<64x128xf32> -> vector<64x128xf32>
    %c161 = arith.constant 161 : index
    %c0_130 = arith.constant 0 : index
    %167 = vector.load %arg6[%c161, %c0_130] : memref<320x128xbf16, #tpu.memory_space<vmem>>, vector<64x128xbf16>
    %c5_131 = arith.constant 5 : index
    %c0_132 = arith.constant 0 : index
    %c0_133 = arith.constant 0 : index
    %168 = vector.load %arg2[%c5_131, %c0_132, %c0_133] : memref<9x128x128xbf16, #tpu.memory_space<vmem>>, vector<1x128x128xbf16>
    %169 = vector.shape_cast %168 : vector<1x128x128xbf16> to vector<128x128xbf16>
    %cst_134 = arith.constant dense<0.000000e+00> : vector<64x128xf32>
    %170 = tpu.matmul %167, %169, %cst_134 {dimension_numbers = #tpu.dot_dimension_numbers<[1], [0], [0], [1], [0, 0, 1, 1], [], []>} : vector<64x128xbf16>, vector<128x128xbf16>, vector<64x128xf32> -> vector<64x128xf32>
    %171 = arith.addf %166, %170 : vector<64x128xf32>
    %c177 = arith.constant 177 : index
    %c0_135 = arith.constant 0 : index
    %172 = vector.load %arg6[%c177, %c0_135] : memref<320x128xbf16, #tpu.memory_space<vmem>>, vector<64x128xbf16>
    %c8_136 = arith.constant 8 : index
    %c0_137 = arith.constant 0 : index
    %c0_138 = arith.constant 0 : index
    %173 = vector.load %arg2[%c8_136, %c0_137, %c0_138] : memref<9x128x128xbf16, #tpu.memory_space<vmem>>, vector<1x128x128xbf16>
    %174 = vector.shape_cast %173 : vector<1x128x128xbf16> to vector<128x128xbf16>
    %cst_139 = arith.constant dense<0.000000e+00> : vector<64x128xf32>
    %175 = tpu.matmul %172, %174, %cst_139 {dimension_numbers = #tpu.dot_dimension_numbers<[1], [0], [0], [1], [0, 0, 1, 1], [], []>} : vector<64x128xbf16>, vector<128x128xbf16>, vector<64x128xf32> -> vector<64x128xf32>
    %176 = arith.addf %171, %175 : vector<64x128xf32>
    %177 = arith.mulf %33, %176 : vector<64x128xf32>
    %178 = arith.addf %162, %177 : vector<64x128xf32>
    %c144 = arith.constant 144 : index
    %c0_140 = arith.constant 0 : index
    %179 = vector.load %arg6[%c144, %c0_140] : memref<320x128xbf16, #tpu.memory_space<vmem>>, vector<64x128xbf16>
    %c1_141 = arith.constant 1 : index
    %c0_142 = arith.constant 0 : index
    %c0_143 = arith.constant 0 : index
    %180 = vector.load %arg2[%c1_141, %c0_142, %c0_143] : memref<9x128x128xbf16, #tpu.memory_space<vmem>>, vector<1x128x128xbf16>
    %181 = vector.shape_cast %180 : vector<1x128x128xbf16> to vector<128x128xbf16>
    %cst_144 = arith.constant dense<0.000000e+00> : vector<64x128xf32>
    %182 = tpu.matmul %179, %181, %cst_144 {dimension_numbers = #tpu.dot_dimension_numbers<[1], [0], [0], [1], [0, 0, 1, 1], [], []>} : vector<64x128xbf16>, vector<128x128xbf16>, vector<64x128xf32> -> vector<64x128xf32>
    %183 = arith.addf %178, %182 : vector<64x128xf32>
    %c160 = arith.constant 160 : index
    %c0_145 = arith.constant 0 : index
    %184 = vector.load %arg6[%c160, %c0_145] : memref<320x128xbf16, #tpu.memory_space<vmem>>, vector<64x128xbf16>
    %c4_146 = arith.constant 4 : index
    %c0_147 = arith.constant 0 : index
    %c0_148 = arith.constant 0 : index
    %185 = vector.load %arg2[%c4_146, %c0_147, %c0_148] : memref<9x128x128xbf16, #tpu.memory_space<vmem>>, vector<1x128x128xbf16>
    %186 = vector.shape_cast %185 : vector<1x128x128xbf16> to vector<128x128xbf16>
    %cst_149 = arith.constant dense<0.000000e+00> : vector<64x128xf32>
    %187 = tpu.matmul %184, %186, %cst_149 {dimension_numbers = #tpu.dot_dimension_numbers<[1], [0], [0], [1], [0, 0, 1, 1], [], []>} : vector<64x128xbf16>, vector<128x128xbf16>, vector<64x128xf32> -> vector<64x128xf32>
    %188 = arith.addf %183, %187 : vector<64x128xf32>
    %c176 = arith.constant 176 : index
    %c0_150 = arith.constant 0 : index
    %189 = vector.load %arg6[%c176, %c0_150] : memref<320x128xbf16, #tpu.memory_space<vmem>>, vector<64x128xbf16>
    %c7_151 = arith.constant 7 : index
    %c0_152 = arith.constant 0 : index
    %c0_153 = arith.constant 0 : index
    %190 = vector.load %arg2[%c7_151, %c0_152, %c0_153] : memref<9x128x128xbf16, #tpu.memory_space<vmem>>, vector<1x128x128xbf16>
    %191 = vector.shape_cast %190 : vector<1x128x128xbf16> to vector<128x128xbf16>
    %cst_154 = arith.constant dense<0.000000e+00> : vector<64x128xf32>
    %192 = tpu.matmul %189, %191, %cst_154 {dimension_numbers = #tpu.dot_dimension_numbers<[1], [0], [0], [1], [0, 0, 1, 1], [], []>} : vector<64x128xbf16>, vector<128x128xbf16>, vector<64x128xf32> -> vector<64x128xf32>
    %193 = arith.addf %188, %192 : vector<64x128xf32>
    %194 = vector.broadcast %34 : vector<1x128xf32> to vector<64x128xf32>
    %195 = arith.mulf %193, %194 : vector<64x128xf32>
    %196 = vector.broadcast %35 : vector<1x128xf32> to vector<64x128xf32>
    %197 = arith.addf %195, %196 : vector<64x128xf32>
    %cst_155 = arith.constant 0.000000e+00 : f32
    %198 = vector.broadcast %cst_155 : f32 to vector<64x128xf32>
    %199 = arith.maximumf %197, %198 : vector<64x128xf32>
    %200 = arith.truncf %199 : vector<64x128xf32> to vector<64x128xbf16>
    %c160_156 = arith.constant 160 : index
    %c0_157 = arith.constant 0 : index
    %201 = vector.load %arg7[%c160_156, %c0_157] : memref<320x128xbf16, #tpu.memory_space<vmem>>, vector<64x128xbf16>
    tpu.vector_store %arg7[%c160_156, %c0_157], %200 {strides = array<i32>} : memref<320x128xbf16, #tpu.memory_space<vmem>>, vector<64x128xbf16>,
    %c207 = arith.constant 207 : index
    %c0_158 = arith.constant 0 : index
    %202 = vector.load %arg6[%c207, %c0_158] : memref<320x128xbf16, #tpu.memory_space<vmem>>, vector<64x128xbf16>
    %c0_159 = arith.constant 0 : index
    %c0_160 = arith.constant 0 : index
    %c0_161 = arith.constant 0 : index
    %203 = vector.load %arg2[%c0_159, %c0_160, %c0_161] : memref<9x128x128xbf16, #tpu.memory_space<vmem>>, vector<1x128x128xbf16>
    %204 = vector.shape_cast %203 : vector<1x128x128xbf16> to vector<128x128xbf16>
    %cst_162 = arith.constant dense<0.000000e+00> : vector<64x128xf32>
    %205 = tpu.matmul %202, %204, %cst_162 {dimension_numbers = #tpu.dot_dimension_numbers<[1], [0], [0], [1], [0, 0, 1, 1], [], []>} : vector<64x128xbf16>, vector<128x128xbf16>, vector<64x128xf32> -> vector<64x128xf32>
    %c223 = arith.constant 223 : index
    %c0_163 = arith.constant 0 : index
    %206 = vector.load %arg6[%c223, %c0_163] : memref<320x128xbf16, #tpu.memory_space<vmem>>, vector<64x128xbf16>
    %c3_164 = arith.constant 3 : index
    %c0_165 = arith.constant 0 : index
    %c0_166 = arith.constant 0 : index
    %207 = vector.load %arg2[%c3_164, %c0_165, %c0_166] : memref<9x128x128xbf16, #tpu.memory_space<vmem>>, vector<1x128x128xbf16>
    %208 = vector.shape_cast %207 : vector<1x128x128xbf16> to vector<128x128xbf16>
    %cst_167 = arith.constant dense<0.000000e+00> : vector<64x128xf32>
    %209 = tpu.matmul %206, %208, %cst_167 {dimension_numbers = #tpu.dot_dimension_numbers<[1], [0], [0], [1], [0, 0, 1, 1], [], []>} : vector<64x128xbf16>, vector<128x128xbf16>, vector<64x128xf32> -> vector<64x128xf32>
    %210 = arith.addf %205, %209 : vector<64x128xf32>
    %c239 = arith.constant 239 : index
    %c0_168 = arith.constant 0 : index
    %211 = vector.load %arg6[%c239, %c0_168] : memref<320x128xbf16, #tpu.memory_space<vmem>>, vector<64x128xbf16>
    %c6_169 = arith.constant 6 : index
    %c0_170 = arith.constant 0 : index
    %c0_171 = arith.constant 0 : index
    %212 = vector.load %arg2[%c6_169, %c0_170, %c0_171] : memref<9x128x128xbf16, #tpu.memory_space<vmem>>, vector<1x128x128xbf16>
    %213 = vector.shape_cast %212 : vector<1x128x128xbf16> to vector<128x128xbf16>
    %cst_172 = arith.constant dense<0.000000e+00> : vector<64x128xf32>
    %214 = tpu.matmul %211, %213, %cst_172 {dimension_numbers = #tpu.dot_dimension_numbers<[1], [0], [0], [1], [0, 0, 1, 1], [], []>} : vector<64x128xbf16>, vector<128x128xbf16>, vector<64x128xf32> -> vector<64x128xf32>
    %215 = arith.addf %210, %214 : vector<64x128xf32>
    %216 = arith.mulf %30, %215 : vector<64x128xf32>
    %c209 = arith.constant 209 : index
    %c0_173 = arith.constant 0 : index
    %217 = vector.load %arg6[%c209, %c0_173] : memref<320x128xbf16, #tpu.memory_space<vmem>>, vector<64x128xbf16>
    %c2_174 = arith.constant 2 : index
    %c0_175 = arith.constant 0 : index
    %c0_176 = arith.constant 0 : index
    %218 = vector.load %arg2[%c2_174, %c0_175, %c0_176] : memref<9x128x128xbf16, #tpu.memory_space<vmem>>, vector<1x128x128xbf16>
    %219 = vector.shape_cast %218 : vector<1x128x128xbf16> to vector<128x128xbf16>
    %cst_177 = arith.constant dense<0.000000e+00> : vector<64x128xf32>
    %220 = tpu.matmul %217, %219, %cst_177 {dimension_numbers = #tpu.dot_dimension_numbers<[1], [0], [0], [1], [0, 0, 1, 1], [], []>} : vector<64x128xbf16>, vector<128x128xbf16>, vector<64x128xf32> -> vector<64x128xf32>
    %c225 = arith.constant 225 : index
    %c0_178 = arith.constant 0 : index
    %221 = vector.load %arg6[%c225, %c0_178] : memref<320x128xbf16, #tpu.memory_space<vmem>>, vector<64x128xbf16>
    %c5_179 = arith.constant 5 : index
    %c0_180 = arith.constant 0 : index
    %c0_181 = arith.constant 0 : index
    %222 = vector.load %arg2[%c5_179, %c0_180, %c0_181] : memref<9x128x128xbf16, #tpu.memory_space<vmem>>, vector<1x128x128xbf16>
    %223 = vector.shape_cast %222 : vector<1x128x128xbf16> to vector<128x128xbf16>
    %cst_182 = arith.constant dense<0.000000e+00> : vector<64x128xf32>
    %224 = tpu.matmul %221, %223, %cst_182 {dimension_numbers = #tpu.dot_dimension_numbers<[1], [0], [0], [1], [0, 0, 1, 1], [], []>} : vector<64x128xbf16>, vector<128x128xbf16>, vector<64x128xf32> -> vector<64x128xf32>
    %225 = arith.addf %220, %224 : vector<64x128xf32>
    %c241 = arith.constant 241 : index
    %c0_183 = arith.constant 0 : index
    %226 = vector.load %arg6[%c241, %c0_183] : memref<320x128xbf16, #tpu.memory_space<vmem>>, vector<64x128xbf16>
    %c8_184 = arith.constant 8 : index
    %c0_185 = arith.constant 0 : index
    %c0_186 = arith.constant 0 : index
    %227 = vector.load %arg2[%c8_184, %c0_185, %c0_186] : memref<9x128x128xbf16, #tpu.memory_space<vmem>>, vector<1x128x128xbf16>
    %228 = vector.shape_cast %227 : vector<1x128x128xbf16> to vector<128x128xbf16>
    %cst_187 = arith.constant dense<0.000000e+00> : vector<64x128xf32>
    %229 = tpu.matmul %226, %228, %cst_187 {dimension_numbers = #tpu.dot_dimension_numbers<[1], [0], [0], [1], [0, 0, 1, 1], [], []>} : vector<64x128xbf16>, vector<128x128xbf16>, vector<64x128xf32> -> vector<64x128xf32>
    %230 = arith.addf %225, %229 : vector<64x128xf32>
    %231 = arith.mulf %33, %230 : vector<64x128xf32>
    %232 = arith.addf %216, %231 : vector<64x128xf32>
    %c208 = arith.constant 208 : index
    %c0_188 = arith.constant 0 : index
    %233 = vector.load %arg6[%c208, %c0_188] : memref<320x128xbf16, #tpu.memory_space<vmem>>, vector<64x128xbf16>
    %c1_189 = arith.constant 1 : index
    %c0_190 = arith.constant 0 : index
    %c0_191 = arith.constant 0 : index
    %234 = vector.load %arg2[%c1_189, %c0_190, %c0_191] : memref<9x128x128xbf16, #tpu.memory_space<vmem>>, vector<1x128x128xbf16>
    %235 = vector.shape_cast %234 : vector<1x128x128xbf16> to vector<128x128xbf16>
    %cst_192 = arith.constant dense<0.000000e+00> : vector<64x128xf32>
    %236 = tpu.matmul %233, %235, %cst_192 {dimension_numbers = #tpu.dot_dimension_numbers<[1], [0], [0], [1], [0, 0, 1, 1], [], []>} : vector<64x128xbf16>, vector<128x128xbf16>, vector<64x128xf32> -> vector<64x128xf32>
    %237 = arith.addf %232, %236 : vector<64x128xf32>
    %c224 = arith.constant 224 : index
    %c0_193 = arith.constant 0 : index
    %238 = vector.load %arg6[%c224, %c0_193] : memref<320x128xbf16, #tpu.memory_space<vmem>>, vector<64x128xbf16>
    %c4_194 = arith.constant 4 : index
    %c0_195 = arith.constant 0 : index
    %c0_196 = arith.constant 0 : index
    %239 = vector.load %arg2[%c4_194, %c0_195, %c0_196] : memref<9x128x128xbf16, #tpu.memory_space<vmem>>, vector<1x128x128xbf16>
    %240 = vector.shape_cast %239 : vector<1x128x128xbf16> to vector<128x128xbf16>
    %cst_197 = arith.constant dense<0.000000e+00> : vector<64x128xf32>
    %241 = tpu.matmul %238, %240, %cst_197 {dimension_numbers = #tpu.dot_dimension_numbers<[1], [0], [0], [1], [0, 0, 1, 1], [], []>} : vector<64x128xbf16>, vector<128x128xbf16>, vector<64x128xf32> -> vector<64x128xf32>
    %242 = arith.addf %237, %241 : vector<64x128xf32>
    %c240 = arith.constant 240 : index
    %c0_198 = arith.constant 0 : index
    %243 = vector.load %arg6[%c240, %c0_198] : memref<320x128xbf16, #tpu.memory_space<vmem>>, vector<64x128xbf16>
    %c7_199 = arith.constant 7 : index
    %c0_200 = arith.constant 0 : index
    %c0_201 = arith.constant 0 : index
    %244 = vector.load %arg2[%c7_199, %c0_200, %c0_201] : memref<9x128x128xbf16, #tpu.memory_space<vmem>>, vector<1x128x128xbf16>
    %245 = vector.shape_cast %244 : vector<1x128x128xbf16> to vector<128x128xbf16>
    %cst_202 = arith.constant dense<0.000000e+00> : vector<64x128xf32>
    %246 = tpu.matmul %243, %245, %cst_202 {dimension_numbers = #tpu.dot_dimension_numbers<[1], [0], [0], [1], [0, 0, 1, 1], [], []>} : vector<64x128xbf16>, vector<128x128xbf16>, vector<64x128xf32> -> vector<64x128xf32>
    %247 = arith.addf %242, %246 : vector<64x128xf32>
    %248 = vector.broadcast %34 : vector<1x128xf32> to vector<64x128xf32>
    %249 = arith.mulf %247, %248 : vector<64x128xf32>
    %250 = vector.broadcast %35 : vector<1x128xf32> to vector<64x128xf32>
    %251 = arith.addf %249, %250 : vector<64x128xf32>
    %cst_203 = arith.constant 0.000000e+00 : f32
    %252 = vector.broadcast %cst_203 : f32 to vector<64x128xf32>
    %253 = arith.maximumf %251, %252 : vector<64x128xf32>
    %254 = arith.truncf %253 : vector<64x128xf32> to vector<64x128xbf16>
    %c224_204 = arith.constant 224 : index
    %c0_205 = arith.constant 0 : index
    %255 = vector.load %arg7[%c224_204, %c0_205] : memref<320x128xbf16, #tpu.memory_space<vmem>>, vector<64x128xbf16>
    tpu.vector_store %arg7[%c224_204, %c0_205], %254 {strides = array<i32>} : memref<320x128xbf16, #tpu.memory_space<vmem>>, vector<64x128xbf16>,
    %c15_206 = arith.constant 15 : index
    %c0_207 = arith.constant 0 : index
    %256 = vector.load %arg7[%c15_206, %c0_207] : memref<320x128xbf16, #tpu.memory_space<vmem>>, vector<64x128xbf16>
    %c0_208 = arith.constant 0 : index
    %c0_209 = arith.constant 0 : index
    %c0_210 = arith.constant 0 : index
    %257 = vector.load %arg3[%c0_208, %c0_209, %c0_210] : memref<9x128x128xbf16, #tpu.memory_space<vmem>>, vector<1x128x128xbf16>
    %258 = vector.shape_cast %257 : vector<1x128x128xbf16> to vector<128x128xbf16>
    %cst_211 = arith.constant dense<0.000000e+00> : vector<64x128xf32>
    %259 = tpu.matmul %256, %258, %cst_211 {dimension_numbers = #tpu.dot_dimension_numbers<[1], [0], [0], [1], [0, 0, 1, 1], [], []>} : vector<64x128xbf16>, vector<128x128xbf16>, vector<64x128xf32> -> vector<64x128xf32>
    %c31_212 = arith.constant 31 : index
    %c0_213 = arith.constant 0 : index
    %260 = vector.load %arg7[%c31_212, %c0_213] : memref<320x128xbf16, #tpu.memory_space<vmem>>, vector<64x128xbf16>
    %c3_214 = arith.constant 3 : index
    %c0_215 = arith.constant 0 : index
    %c0_216 = arith.constant 0 : index
    %261 = vector.load %arg3[%c3_214, %c0_215, %c0_216] : memref<9x128x128xbf16, #tpu.memory_space<vmem>>, vector<1x128x128xbf16>
    %262 = vector.shape_cast %261 : vector<1x128x128xbf16> to vector<128x128xbf16>
    %cst_217 = arith.constant dense<0.000000e+00> : vector<64x128xf32>
    %263 = tpu.matmul %260, %262, %cst_217 {dimension_numbers = #tpu.dot_dimension_numbers<[1], [0], [0], [1], [0, 0, 1, 1], [], []>} : vector<64x128xbf16>, vector<128x128xbf16>, vector<64x128xf32> -> vector<64x128xf32>
    %264 = arith.addf %259, %263 : vector<64x128xf32>
    %c47_218 = arith.constant 47 : index
    %c0_219 = arith.constant 0 : index
    %265 = vector.load %arg7[%c47_218, %c0_219] : memref<320x128xbf16, #tpu.memory_space<vmem>>, vector<64x128xbf16>
    %c6_220 = arith.constant 6 : index
    %c0_221 = arith.constant 0 : index
    %c0_222 = arith.constant 0 : index
    %266 = vector.load %arg3[%c6_220, %c0_221, %c0_222] : memref<9x128x128xbf16, #tpu.memory_space<vmem>>, vector<1x128x128xbf16>
    %267 = vector.shape_cast %266 : vector<1x128x128xbf16> to vector<128x128xbf16>
    %cst_223 = arith.constant dense<0.000000e+00> : vector<64x128xf32>
    %268 = tpu.matmul %265, %267, %cst_223 {dimension_numbers = #tpu.dot_dimension_numbers<[1], [0], [0], [1], [0, 0, 1, 1], [], []>} : vector<64x128xbf16>, vector<128x128xbf16>, vector<64x128xf32> -> vector<64x128xf32>
    %269 = arith.addf %264, %268 : vector<64x128xf32>
    %270 = arith.mulf %30, %269 : vector<64x128xf32>
    %c17_224 = arith.constant 17 : index
    %c0_225 = arith.constant 0 : index
    %271 = vector.load %arg7[%c17_224, %c0_225] : memref<320x128xbf16, #tpu.memory_space<vmem>>, vector<64x128xbf16>
    %c2_226 = arith.constant 2 : index
    %c0_227 = arith.constant 0 : index
    %c0_228 = arith.constant 0 : index
    %272 = vector.load %arg3[%c2_226, %c0_227, %c0_228] : memref<9x128x128xbf16, #tpu.memory_space<vmem>>, vector<1x128x128xbf16>
    %273 = vector.shape_cast %272 : vector<1x128x128xbf16> to vector<128x128xbf16>
    %cst_229 = arith.constant dense<0.000000e+00> : vector<64x128xf32>
    %274 = tpu.matmul %271, %273, %cst_229 {dimension_numbers = #tpu.dot_dimension_numbers<[1], [0], [0], [1], [0, 0, 1, 1], [], []>} : vector<64x128xbf16>, vector<128x128xbf16>, vector<64x128xf32> -> vector<64x128xf32>
    %c33_230 = arith.constant 33 : index
    %c0_231 = arith.constant 0 : index
    %275 = vector.load %arg7[%c33_230, %c0_231] : memref<320x128xbf16, #tpu.memory_space<vmem>>, vector<64x128xbf16>
    %c5_232 = arith.constant 5 : index
    %c0_233 = arith.constant 0 : index
    %c0_234 = arith.constant 0 : index
    %276 = vector.load %arg3[%c5_232, %c0_233, %c0_234] : memref<9x128x128xbf16, #tpu.memory_space<vmem>>, vector<1x128x128xbf16>
    %277 = vector.shape_cast %276 : vector<1x128x128xbf16> to vector<128x128xbf16>
    %cst_235 = arith.constant dense<0.000000e+00> : vector<64x128xf32>
    %278 = tpu.matmul %275, %277, %cst_235 {dimension_numbers = #tpu.dot_dimension_numbers<[1], [0], [0], [1], [0, 0, 1, 1], [], []>} : vector<64x128xbf16>, vector<128x128xbf16>, vector<64x128xf32> -> vector<64x128xf32>
    %279 = arith.addf %274, %278 : vector<64x128xf32>
    %c49_236 = arith.constant 49 : index
    %c0_237 = arith.constant 0 : index
    %280 = vector.load %arg7[%c49_236, %c0_237] : memref<320x128xbf16, #tpu.memory_space<vmem>>, vector<64x128xbf16>
    %c8_238 = arith.constant 8 : index
    %c0_239 = arith.constant 0 : index
    %c0_240 = arith.constant 0 : index
    %281 = vector.load %arg3[%c8_238, %c0_239, %c0_240] : memref<9x128x128xbf16, #tpu.memory_space<vmem>>, vector<1x128x128xbf16>
    %282 = vector.shape_cast %281 : vector<1x128x128xbf16> to vector<128x128xbf16>
    %cst_241 = arith.constant dense<0.000000e+00> : vector<64x128xf32>
    %283 = tpu.matmul %280, %282, %cst_241 {dimension_numbers = #tpu.dot_dimension_numbers<[1], [0], [0], [1], [0, 0, 1, 1], [], []>} : vector<64x128xbf16>, vector<128x128xbf16>, vector<64x128xf32> -> vector<64x128xf32>
    %284 = arith.addf %279, %283 : vector<64x128xf32>
    %285 = arith.mulf %33, %284 : vector<64x128xf32>
    %286 = arith.addf %270, %285 : vector<64x128xf32>
    %c16_242 = arith.constant 16 : index
    %c0_243 = arith.constant 0 : index
    %287 = vector.load %arg7[%c16_242, %c0_243] : memref<320x128xbf16, #tpu.memory_space<vmem>>, vector<64x128xbf16>
    %c1_244 = arith.constant 1 : index
    %c0_245 = arith.constant 0 : index
    %c0_246 = arith.constant 0 : index
    %288 = vector.load %arg3[%c1_244, %c0_245, %c0_246] : memref<9x128x128xbf16, #tpu.memory_space<vmem>>, vector<1x128x128xbf16>
    %289 = vector.shape_cast %288 : vector<1x128x128xbf16> to vector<128x128xbf16>
    %cst_247 = arith.constant dense<0.000000e+00> : vector<64x128xf32>
    %290 = tpu.matmul %287, %289, %cst_247 {dimension_numbers = #tpu.dot_dimension_numbers<[1], [0], [0], [1], [0, 0, 1, 1], [], []>} : vector<64x128xbf16>, vector<128x128xbf16>, vector<64x128xf32> -> vector<64x128xf32>
    %291 = arith.addf %286, %290 : vector<64x128xf32>
    %c32_248 = arith.constant 32 : index
    %c0_249 = arith.constant 0 : index
    %292 = vector.load %arg7[%c32_248, %c0_249] : memref<320x128xbf16, #tpu.memory_space<vmem>>, vector<64x128xbf16>
    %c4_250 = arith.constant 4 : index
    %c0_251 = arith.constant 0 : index
    %c0_252 = arith.constant 0 : index
    %293 = vector.load %arg3[%c4_250, %c0_251, %c0_252] : memref<9x128x128xbf16, #tpu.memory_space<vmem>>, vector<1x128x128xbf16>
    %294 = vector.shape_cast %293 : vector<1x128x128xbf16> to vector<128x128xbf16>
    %cst_253 = arith.constant dense<0.000000e+00> : vector<64x128xf32>
    %295 = tpu.matmul %292, %294, %cst_253 {dimension_numbers = #tpu.dot_dimension_numbers<[1], [0], [0], [1], [0, 0, 1, 1], [], []>} : vector<64x128xbf16>, vector<128x128xbf16>, vector<64x128xf32> -> vector<64x128xf32>
    %296 = arith.addf %291, %295 : vector<64x128xf32>
    %c48_254 = arith.constant 48 : index
    %c0_255 = arith.constant 0 : index
    %297 = vector.load %arg7[%c48_254, %c0_255] : memref<320x128xbf16, #tpu.memory_space<vmem>>, vector<64x128xbf16>
    %c7_256 = arith.constant 7 : index
    %c0_257 = arith.constant 0 : index
    %c0_258 = arith.constant 0 : index
    %298 = vector.load %arg3[%c7_256, %c0_257, %c0_258] : memref<9x128x128xbf16, #tpu.memory_space<vmem>>, vector<1x128x128xbf16>
    %299 = vector.shape_cast %298 : vector<1x128x128xbf16> to vector<128x128xbf16>
    %cst_259 = arith.constant dense<0.000000e+00> : vector<64x128xf32>
    %300 = tpu.matmul %297, %299, %cst_259 {dimension_numbers = #tpu.dot_dimension_numbers<[1], [0], [0], [1], [0, 0, 1, 1], [], []>} : vector<64x128xbf16>, vector<128x128xbf16>, vector<64x128xf32> -> vector<64x128xf32>
    %301 = arith.addf %296, %300 : vector<64x128xf32>
    %302 = vector.broadcast %36 : vector<1x128xf32> to vector<64x128xf32>
    %303 = arith.mulf %301, %302 : vector<64x128xf32>
    %304 = vector.broadcast %37 : vector<1x128xf32> to vector<64x128xf32>
    %305 = arith.addf %303, %304 : vector<64x128xf32>
    %c0_260 = arith.constant 0 : index
    %c0_261 = arith.constant 0 : index
    %306 = vector.load %arg1[%c0_260, %c0_261] : memref<256x128xbf16, #tpu.memory_space<vmem>>, vector<64x128xbf16>
    %307 = arith.extf %306 : vector<64x128xbf16> to vector<64x128xf32>
    %308 = arith.addf %305, %307 : vector<64x128xf32>
    %cst_262 = arith.constant 0.000000e+00 : f32
    %309 = vector.broadcast %cst_262 : f32 to vector<64x128xf32>
    %310 = arith.maximumf %308, %309 : vector<64x128xf32>
    %c0_263 = arith.constant 0 : index
    %c0_264 = arith.constant 0 : index
    %311 = vector.load %arg5[%c0_263, %c0_264] : memref<256x128xf32, #tpu.memory_space<vmem>>, vector<64x128xf32>
    tpu.vector_store %arg5[%c0_263, %c0_264], %310 {strides = array<i32>} : memref<256x128xf32, #tpu.memory_space<vmem>>, vector<64x128xf32>,
    %c79_265 = arith.constant 79 : index
    %c0_266 = arith.constant 0 : index
    %312 = vector.load %arg7[%c79_265, %c0_266] : memref<320x128xbf16, #tpu.memory_space<vmem>>, vector<64x128xbf16>
    %c0_267 = arith.constant 0 : index
    %c0_268 = arith.constant 0 : index
    %c0_269 = arith.constant 0 : index
    %313 = vector.load %arg3[%c0_267, %c0_268, %c0_269] : memref<9x128x128xbf16, #tpu.memory_space<vmem>>, vector<1x128x128xbf16>
    %314 = vector.shape_cast %313 : vector<1x128x128xbf16> to vector<128x128xbf16>
    %cst_270 = arith.constant dense<0.000000e+00> : vector<64x128xf32>
    %315 = tpu.matmul %312, %314, %cst_270 {dimension_numbers = #tpu.dot_dimension_numbers<[1], [0], [0], [1], [0, 0, 1, 1], [], []>} : vector<64x128xbf16>, vector<128x128xbf16>, vector<64x128xf32> -> vector<64x128xf32>
    %c95_271 = arith.constant 95 : index
    %c0_272 = arith.constant 0 : index
    %316 = vector.load %arg7[%c95_271, %c0_272] : memref<320x128xbf16, #tpu.memory_space<vmem>>, vector<64x128xbf16>
    %c3_273 = arith.constant 3 : index
    %c0_274 = arith.constant 0 : index
    %c0_275 = arith.constant 0 : index
    %317 = vector.load %arg3[%c3_273, %c0_274, %c0_275] : memref<9x128x128xbf16, #tpu.memory_space<vmem>>, vector<1x128x128xbf16>
    %318 = vector.shape_cast %317 : vector<1x128x128xbf16> to vector<128x128xbf16>
    %cst_276 = arith.constant dense<0.000000e+00> : vector<64x128xf32>
    %319 = tpu.matmul %316, %318, %cst_276 {dimension_numbers = #tpu.dot_dimension_numbers<[1], [0], [0], [1], [0, 0, 1, 1], [], []>} : vector<64x128xbf16>, vector<128x128xbf16>, vector<64x128xf32> -> vector<64x128xf32>
    %320 = arith.addf %315, %319 : vector<64x128xf32>
    %c111_277 = arith.constant 111 : index
    %c0_278 = arith.constant 0 : index
    %321 = vector.load %arg7[%c111_277, %c0_278] : memref<320x128xbf16, #tpu.memory_space<vmem>>, vector<64x128xbf16>
    %c6_279 = arith.constant 6 : index
    %c0_280 = arith.constant 0 : index
    %c0_281 = arith.constant 0 : index
    %322 = vector.load %arg3[%c6_279, %c0_280, %c0_281] : memref<9x128x128xbf16, #tpu.memory_space<vmem>>, vector<1x128x128xbf16>
    %323 = vector.shape_cast %322 : vector<1x128x128xbf16> to vector<128x128xbf16>
    %cst_282 = arith.constant dense<0.000000e+00> : vector<64x128xf32>
    %324 = tpu.matmul %321, %323, %cst_282 {dimension_numbers = #tpu.dot_dimension_numbers<[1], [0], [0], [1], [0, 0, 1, 1], [], []>} : vector<64x128xbf16>, vector<128x128xbf16>, vector<64x128xf32> -> vector<64x128xf32>
    %325 = arith.addf %320, %324 : vector<64x128xf32>
    %326 = arith.mulf %30, %325 : vector<64x128xf32>
    %c81_283 = arith.constant 81 : index
    %c0_284 = arith.constant 0 : index
    %327 = vector.load %arg7[%c81_283, %c0_284] : memref<320x128xbf16, #tpu.memory_space<vmem>>, vector<64x128xbf16>
    %c2_285 = arith.constant 2 : index
    %c0_286 = arith.constant 0 : index
    %c0_287 = arith.constant 0 : index
    %328 = vector.load %arg3[%c2_285, %c0_286, %c0_287] : memref<9x128x128xbf16, #tpu.memory_space<vmem>>, vector<1x128x128xbf16>
    %329 = vector.shape_cast %328 : vector<1x128x128xbf16> to vector<128x128xbf16>
    %cst_288 = arith.constant dense<0.000000e+00> : vector<64x128xf32>
    %330 = tpu.matmul %327, %329, %cst_288 {dimension_numbers = #tpu.dot_dimension_numbers<[1], [0], [0], [1], [0, 0, 1, 1], [], []>} : vector<64x128xbf16>, vector<128x128xbf16>, vector<64x128xf32> -> vector<64x128xf32>
    %c97_289 = arith.constant 97 : index
    %c0_290 = arith.constant 0 : index
    %331 = vector.load %arg7[%c97_289, %c0_290] : memref<320x128xbf16, #tpu.memory_space<vmem>>, vector<64x128xbf16>
    %c5_291 = arith.constant 5 : index
    %c0_292 = arith.constant 0 : index
    %c0_293 = arith.constant 0 : index
    %332 = vector.load %arg3[%c5_291, %c0_292, %c0_293] : memref<9x128x128xbf16, #tpu.memory_space<vmem>>, vector<1x128x128xbf16>
    %333 = vector.shape_cast %332 : vector<1x128x128xbf16> to vector<128x128xbf16>
    %cst_294 = arith.constant dense<0.000000e+00> : vector<64x128xf32>
    %334 = tpu.matmul %331, %333, %cst_294 {dimension_numbers = #tpu.dot_dimension_numbers<[1], [0], [0], [1], [0, 0, 1, 1], [], []>} : vector<64x128xbf16>, vector<128x128xbf16>, vector<64x128xf32> -> vector<64x128xf32>
    %335 = arith.addf %330, %334 : vector<64x128xf32>
    %c113_295 = arith.constant 113 : index
    %c0_296 = arith.constant 0 : index
    %336 = vector.load %arg7[%c113_295, %c0_296] : memref<320x128xbf16, #tpu.memory_space<vmem>>, vector<64x128xbf16>
    %c8_297 = arith.constant 8 : index
    %c0_298 = arith.constant 0 : index
    %c0_299 = arith.constant 0 : index
    %337 = vector.load %arg3[%c8_297, %c0_298, %c0_299] : memref<9x128x128xbf16, #tpu.memory_space<vmem>>, vector<1x128x128xbf16>
    %338 = vector.shape_cast %337 : vector<1x128x128xbf16> to vector<128x128xbf16>
    %cst_300 = arith.constant dense<0.000000e+00> : vector<64x128xf32>
    %339 = tpu.matmul %336, %338, %cst_300 {dimension_numbers = #tpu.dot_dimension_numbers<[1], [0], [0], [1], [0, 0, 1, 1], [], []>} : vector<64x128xbf16>, vector<128x128xbf16>, vector<64x128xf32> -> vector<64x128xf32>
    %340 = arith.addf %335, %339 : vector<64x128xf32>
    %341 = arith.mulf %33, %340 : vector<64x128xf32>
    %342 = arith.addf %326, %341 : vector<64x128xf32>
    %c80_301 = arith.constant 80 : index
    %c0_302 = arith.constant 0 : index
    %343 = vector.load %arg7[%c80_301, %c0_302] : memref<320x128xbf16, #tpu.memory_space<vmem>>, vector<64x128xbf16>
    %c1_303 = arith.constant 1 : index
    %c0_304 = arith.constant 0 : index
    %c0_305 = arith.constant 0 : index
    %344 = vector.load %arg3[%c1_303, %c0_304, %c0_305] : memref<9x128x128xbf16, #tpu.memory_space<vmem>>, vector<1x128x128xbf16>
    %345 = vector.shape_cast %344 : vector<1x128x128xbf16> to vector<128x128xbf16>
    %cst_306 = arith.constant dense<0.000000e+00> : vector<64x128xf32>
    %346 = tpu.matmul %343, %345, %cst_306 {dimension_numbers = #tpu.dot_dimension_numbers<[1], [0], [0], [1], [0, 0, 1, 1], [], []>} : vector<64x128xbf16>, vector<128x128xbf16>, vector<64x128xf32> -> vector<64x128xf32>
    %347 = arith.addf %342, %346 : vector<64x128xf32>
    %c96_307 = arith.constant 96 : index
    %c0_308 = arith.constant 0 : index
    %348 = vector.load %arg7[%c96_307, %c0_308] : memref<320x128xbf16, #tpu.memory_space<vmem>>, vector<64x128xbf16>
    %c4_309 = arith.constant 4 : index
    %c0_310 = arith.constant 0 : index
    %c0_311 = arith.constant 0 : index
    %349 = vector.load %arg3[%c4_309, %c0_310, %c0_311] : memref<9x128x128xbf16, #tpu.memory_space<vmem>>, vector<1x128x128xbf16>
    %350 = vector.shape_cast %349 : vector<1x128x128xbf16> to vector<128x128xbf16>
    %cst_312 = arith.constant dense<0.000000e+00> : vector<64x128xf32>
    %351 = tpu.matmul %348, %350, %cst_312 {dimension_numbers = #tpu.dot_dimension_numbers<[1], [0], [0], [1], [0, 0, 1, 1], [], []>} : vector<64x128xbf16>, vector<128x128xbf16>, vector<64x128xf32> -> vector<64x128xf32>
    %352 = arith.addf %347, %351 : vector<64x128xf32>
    %c112_313 = arith.constant 112 : index
    %c0_314 = arith.constant 0 : index
    %353 = vector.load %arg7[%c112_313, %c0_314] : memref<320x128xbf16, #tpu.memory_space<vmem>>, vector<64x128xbf16>
    %c7_315 = arith.constant 7 : index
    %c0_316 = arith.constant 0 : index
    %c0_317 = arith.constant 0 : index
    %354 = vector.load %arg3[%c7_315, %c0_316, %c0_317] : memref<9x128x128xbf16, #tpu.memory_space<vmem>>, vector<1x128x128xbf16>
    %355 = vector.shape_cast %354 : vector<1x128x128xbf16> to vector<128x128xbf16>
    %cst_318 = arith.constant dense<0.000000e+00> : vector<64x128xf32>
    %356 = tpu.matmul %353, %355, %cst_318 {dimension_numbers = #tpu.dot_dimension_numbers<[1], [0], [0], [1], [0, 0, 1, 1], [], []>} : vector<64x128xbf16>, vector<128x128xbf16>, vector<64x128xf32> -> vector<64x128xf32>
    %357 = arith.addf %352, %356 : vector<64x128xf32>
    %358 = vector.broadcast %36 : vector<1x128xf32> to vector<64x128xf32>
    %359 = arith.mulf %357, %358 : vector<64x128xf32>
    %360 = vector.broadcast %37 : vector<1x128xf32> to vector<64x128xf32>
    %361 = arith.addf %359, %360 : vector<64x128xf32>
    %c64 = arith.constant 64 : index
    %c0_319 = arith.constant 0 : index
    %362 = vector.load %arg1[%c64, %c0_319] : memref<256x128xbf16, #tpu.memory_space<vmem>>, vector<64x128xbf16>
    %363 = arith.extf %362 : vector<64x128xbf16> to vector<64x128xf32>
    %364 = arith.addf %361, %363 : vector<64x128xf32>
    %cst_320 = arith.constant 0.000000e+00 : f32
    %365 = vector.broadcast %cst_320 : f32 to vector<64x128xf32>
    %366 = arith.maximumf %364, %365 : vector<64x128xf32>
    %c64_321 = arith.constant 64 : index
    %c0_322 = arith.constant 0 : index
    %367 = vector.load %arg5[%c64_321, %c0_322] : memref<256x128xf32, #tpu.memory_space<vmem>>, vector<64x128xf32>
    tpu.vector_store %arg5[%c64_321, %c0_322], %366 {strides = array<i32>} : memref<256x128xf32, #tpu.memory_space<vmem>>, vector<64x128xf32>,
    %c143_323 = arith.constant 143 : index
    %c0_324 = arith.constant 0 : index
    %368 = vector.load %arg7[%c143_323, %c0_324] : memref<320x128xbf16, #tpu.memory_space<vmem>>, vector<64x128xbf16>
    %c0_325 = arith.constant 0 : index
    %c0_326 = arith.constant 0 : index
    %c0_327 = arith.constant 0 : index
    %369 = vector.load %arg3[%c0_325, %c0_326, %c0_327] : memref<9x128x128xbf16, #tpu.memory_space<vmem>>, vector<1x128x128xbf16>
    %370 = vector.shape_cast %369 : vector<1x128x128xbf16> to vector<128x128xbf16>
    %cst_328 = arith.constant dense<0.000000e+00> : vector<64x128xf32>
    %371 = tpu.matmul %368, %370, %cst_328 {dimension_numbers = #tpu.dot_dimension_numbers<[1], [0], [0], [1], [0, 0, 1, 1], [], []>} : vector<64x128xbf16>, vector<128x128xbf16>, vector<64x128xf32> -> vector<64x128xf32>
    %c159_329 = arith.constant 159 : index
    %c0_330 = arith.constant 0 : index
    %372 = vector.load %arg7[%c159_329, %c0_330] : memref<320x128xbf16, #tpu.memory_space<vmem>>, vector<64x128xbf16>
    %c3_331 = arith.constant 3 : index
    %c0_332 = arith.constant 0 : index
    %c0_333 = arith.constant 0 : index
    %373 = vector.load %arg3[%c3_331, %c0_332, %c0_333] : memref<9x128x128xbf16, #tpu.memory_space<vmem>>, vector<1x128x128xbf16>
    %374 = vector.shape_cast %373 : vector<1x128x128xbf16> to vector<128x128xbf16>
    %cst_334 = arith.constant dense<0.000000e+00> : vector<64x128xf32>
    %375 = tpu.matmul %372, %374, %cst_334 {dimension_numbers = #tpu.dot_dimension_numbers<[1], [0], [0], [1], [0, 0, 1, 1], [], []>} : vector<64x128xbf16>, vector<128x128xbf16>, vector<64x128xf32> -> vector<64x128xf32>
    %376 = arith.addf %371, %375 : vector<64x128xf32>
    %c175_335 = arith.constant 175 : index
    %c0_336 = arith.constant 0 : index
    %377 = vector.load %arg7[%c175_335, %c0_336] : memref<320x128xbf16, #tpu.memory_space<vmem>>, vector<64x128xbf16>
    %c6_337 = arith.constant 6 : index
    %c0_338 = arith.constant 0 : index
    %c0_339 = arith.constant 0 : index
    %378 = vector.load %arg3[%c6_337, %c0_338, %c0_339] : memref<9x128x128xbf16, #tpu.memory_space<vmem>>, vector<1x128x128xbf16>
    %379 = vector.shape_cast %378 : vector<1x128x128xbf16> to vector<128x128xbf16>
    %cst_340 = arith.constant dense<0.000000e+00> : vector<64x128xf32>
    %380 = tpu.matmul %377, %379, %cst_340 {dimension_numbers = #tpu.dot_dimension_numbers<[1], [0], [0], [1], [0, 0, 1, 1], [], []>} : vector<64x128xbf16>, vector<128x128xbf16>, vector<64x128xf32> -> vector<64x128xf32>
    %381 = arith.addf %376, %380 : vector<64x128xf32>
    %382 = arith.mulf %30, %381 : vector<64x128xf32>
    %c145_341 = arith.constant 145 : index
    %c0_342 = arith.constant 0 : index
    %383 = vector.load %arg7[%c145_341, %c0_342] : memref<320x128xbf16, #tpu.memory_space<vmem>>, vector<64x128xbf16>
    %c2_343 = arith.constant 2 : index
    %c0_344 = arith.constant 0 : index
    %c0_345 = arith.constant 0 : index
    %384 = vector.load %arg3[%c2_343, %c0_344, %c0_345] : memref<9x128x128xbf16, #tpu.memory_space<vmem>>, vector<1x128x128xbf16>
    %385 = vector.shape_cast %384 : vector<1x128x128xbf16> to vector<128x128xbf16>
    %cst_346 = arith.constant dense<0.000000e+00> : vector<64x128xf32>
    %386 = tpu.matmul %383, %385, %cst_346 {dimension_numbers = #tpu.dot_dimension_numbers<[1], [0], [0], [1], [0, 0, 1, 1], [], []>} : vector<64x128xbf16>, vector<128x128xbf16>, vector<64x128xf32> -> vector<64x128xf32>
    %c161_347 = arith.constant 161 : index
    %c0_348 = arith.constant 0 : index
    %387 = vector.load %arg7[%c161_347, %c0_348] : memref<320x128xbf16, #tpu.memory_space<vmem>>, vector<64x128xbf16>
    %c5_349 = arith.constant 5 : index
    %c0_350 = arith.constant 0 : index
    %c0_351 = arith.constant 0 : index
    %388 = vector.load %arg3[%c5_349, %c0_350, %c0_351] : memref<9x128x128xbf16, #tpu.memory_space<vmem>>, vector<1x128x128xbf16>
    %389 = vector.shape_cast %388 : vector<1x128x128xbf16> to vector<128x128xbf16>
    %cst_352 = arith.constant dense<0.000000e+00> : vector<64x128xf32>
    %390 = tpu.matmul %387, %389, %cst_352 {dimension_numbers = #tpu.dot_dimension_numbers<[1], [0], [0], [1], [0, 0, 1, 1], [], []>} : vector<64x128xbf16>, vector<128x128xbf16>, vector<64x128xf32> -> vector<64x128xf32>
    %391 = arith.addf %386, %390 : vector<64x128xf32>
    %c177_353 = arith.constant 177 : index
    %c0_354 = arith.constant 0 : index
    %392 = vector.load %arg7[%c177_353, %c0_354] : memref<320x128xbf16, #tpu.memory_space<vmem>>, vector<64x128xbf16>
    %c8_355 = arith.constant 8 : index
    %c0_356 = arith.constant 0 : index
    %c0_357 = arith.constant 0 : index
    %393 = vector.load %arg3[%c8_355, %c0_356, %c0_357] : memref<9x128x128xbf16, #tpu.memory_space<vmem>>, vector<1x128x128xbf16>
    %394 = vector.shape_cast %393 : vector<1x128x128xbf16> to vector<128x128xbf16>
    %cst_358 = arith.constant dense<0.000000e+00> : vector<64x128xf32>
    %395 = tpu.matmul %392, %394, %cst_358 {dimension_numbers = #tpu.dot_dimension_numbers<[1], [0], [0], [1], [0, 0, 1, 1], [], []>} : vector<64x128xbf16>, vector<128x128xbf16>, vector<64x128xf32> -> vector<64x128xf32>
    %396 = arith.addf %391, %395 : vector<64x128xf32>
    %397 = arith.mulf %33, %396 : vector<64x128xf32>
    %398 = arith.addf %382, %397 : vector<64x128xf32>
    %c144_359 = arith.constant 144 : index
    %c0_360 = arith.constant 0 : index
    %399 = vector.load %arg7[%c144_359, %c0_360] : memref<320x128xbf16, #tpu.memory_space<vmem>>, vector<64x128xbf16>
    %c1_361 = arith.constant 1 : index
    %c0_362 = arith.constant 0 : index
    %c0_363 = arith.constant 0 : index
    %400 = vector.load %arg3[%c1_361, %c0_362, %c0_363] : memref<9x128x128xbf16, #tpu.memory_space<vmem>>, vector<1x128x128xbf16>
    %401 = vector.shape_cast %400 : vector<1x128x128xbf16> to vector<128x128xbf16>
    %cst_364 = arith.constant dense<0.000000e+00> : vector<64x128xf32>
    %402 = tpu.matmul %399, %401, %cst_364 {dimension_numbers = #tpu.dot_dimension_numbers<[1], [0], [0], [1], [0, 0, 1, 1], [], []>} : vector<64x128xbf16>, vector<128x128xbf16>, vector<64x128xf32> -> vector<64x128xf32>
    %403 = arith.addf %398, %402 : vector<64x128xf32>
    %c160_365 = arith.constant 160 : index
    %c0_366 = arith.constant 0 : index
    %404 = vector.load %arg7[%c160_365, %c0_366] : memref<320x128xbf16, #tpu.memory_space<vmem>>, vector<64x128xbf16>
    %c4_367 = arith.constant 4 : index
    %c0_368 = arith.constant 0 : index
    %c0_369 = arith.constant 0 : index
    %405 = vector.load %arg3[%c4_367, %c0_368, %c0_369] : memref<9x128x128xbf16, #tpu.memory_space<vmem>>, vector<1x128x128xbf16>
    %406 = vector.shape_cast %405 : vector<1x128x128xbf16> to vector<128x128xbf16>
    %cst_370 = arith.constant dense<0.000000e+00> : vector<64x128xf32>
    %407 = tpu.matmul %404, %406, %cst_370 {dimension_numbers = #tpu.dot_dimension_numbers<[1], [0], [0], [1], [0, 0, 1, 1], [], []>} : vector<64x128xbf16>, vector<128x128xbf16>, vector<64x128xf32> -> vector<64x128xf32>
    %408 = arith.addf %403, %407 : vector<64x128xf32>
    %c176_371 = arith.constant 176 : index
    %c0_372 = arith.constant 0 : index
    %409 = vector.load %arg7[%c176_371, %c0_372] : memref<320x128xbf16, #tpu.memory_space<vmem>>, vector<64x128xbf16>
    %c7_373 = arith.constant 7 : index
    %c0_374 = arith.constant 0 : index
    %c0_375 = arith.constant 0 : index
    %410 = vector.load %arg3[%c7_373, %c0_374, %c0_375] : memref<9x128x128xbf16, #tpu.memory_space<vmem>>, vector<1x128x128xbf16>
    %411 = vector.shape_cast %410 : vector<1x128x128xbf16> to vector<128x128xbf16>
    %cst_376 = arith.constant dense<0.000000e+00> : vector<64x128xf32>
    %412 = tpu.matmul %409, %411, %cst_376 {dimension_numbers = #tpu.dot_dimension_numbers<[1], [0], [0], [1], [0, 0, 1, 1], [], []>} : vector<64x128xbf16>, vector<128x128xbf16>, vector<64x128xf32> -> vector<64x128xf32>
    %413 = arith.addf %408, %412 : vector<64x128xf32>
    %414 = vector.broadcast %36 : vector<1x128xf32> to vector<64x128xf32>
    %415 = arith.mulf %413, %414 : vector<64x128xf32>
    %416 = vector.broadcast %37 : vector<1x128xf32> to vector<64x128xf32>
    %417 = arith.addf %415, %416 : vector<64x128xf32>
    %c128 = arith.constant 128 : index
    %c0_377 = arith.constant 0 : index
    %418 = vector.load %arg1[%c128, %c0_377] : memref<256x128xbf16, #tpu.memory_space<vmem>>, vector<64x128xbf16>
    %419 = arith.extf %418 : vector<64x128xbf16> to vector<64x128xf32>
    %420 = arith.addf %417, %419 : vector<64x128xf32>
    %cst_378 = arith.constant 0.000000e+00 : f32
    %421 = vector.broadcast %cst_378 : f32 to vector<64x128xf32>
    %422 = arith.maximumf %420, %421 : vector<64x128xf32>
    %c128_379 = arith.constant 128 : index
    %c0_380 = arith.constant 0 : index
    %423 = vector.load %arg5[%c128_379, %c0_380] : memref<256x128xf32, #tpu.memory_space<vmem>>, vector<64x128xf32>
    tpu.vector_store %arg5[%c128_379, %c0_380], %422 {strides = array<i32>} : memref<256x128xf32, #tpu.memory_space<vmem>>, vector<64x128xf32>,
    %c207_381 = arith.constant 207 : index
    %c0_382 = arith.constant 0 : index
    %424 = vector.load %arg7[%c207_381, %c0_382] : memref<320x128xbf16, #tpu.memory_space<vmem>>, vector<64x128xbf16>
    %c0_383 = arith.constant 0 : index
    %c0_384 = arith.constant 0 : index
    %c0_385 = arith.constant 0 : index
    %425 = vector.load %arg3[%c0_383, %c0_384, %c0_385] : memref<9x128x128xbf16, #tpu.memory_space<vmem>>, vector<1x128x128xbf16>
    %426 = vector.shape_cast %425 : vector<1x128x128xbf16> to vector<128x128xbf16>
    %cst_386 = arith.constant dense<0.000000e+00> : vector<64x128xf32>
    %427 = tpu.matmul %424, %426, %cst_386 {dimension_numbers = #tpu.dot_dimension_numbers<[1], [0], [0], [1], [0, 0, 1, 1], [], []>} : vector<64x128xbf16>, vector<128x128xbf16>, vector<64x128xf32> -> vector<64x128xf32>
    %c223_387 = arith.constant 223 : index
    %c0_388 = arith.constant 0 : index
    %428 = vector.load %arg7[%c223_387, %c0_388] : memref<320x128xbf16, #tpu.memory_space<vmem>>, vector<64x128xbf16>
    %c3_389 = arith.constant 3 : index
    %c0_390 = arith.constant 0 : index
    %c0_391 = arith.constant 0 : index
    %429 = vector.load %arg3[%c3_389, %c0_390, %c0_391] : memref<9x128x128xbf16, #tpu.memory_space<vmem>>, vector<1x128x128xbf16>
    %430 = vector.shape_cast %429 : vector<1x128x128xbf16> to vector<128x128xbf16>
    %cst_392 = arith.constant dense<0.000000e+00> : vector<64x128xf32>
    %431 = tpu.matmul %428, %430, %cst_392 {dimension_numbers = #tpu.dot_dimension_numbers<[1], [0], [0], [1], [0, 0, 1, 1], [], []>} : vector<64x128xbf16>, vector<128x128xbf16>, vector<64x128xf32> -> vector<64x128xf32>
    %432 = arith.addf %427, %431 : vector<64x128xf32>
    %c239_393 = arith.constant 239 : index
    %c0_394 = arith.constant 0 : index
    %433 = vector.load %arg7[%c239_393, %c0_394] : memref<320x128xbf16, #tpu.memory_space<vmem>>, vector<64x128xbf16>
    %c6_395 = arith.constant 6 : index
    %c0_396 = arith.constant 0 : index
    %c0_397 = arith.constant 0 : index
    %434 = vector.load %arg3[%c6_395, %c0_396, %c0_397] : memref<9x128x128xbf16, #tpu.memory_space<vmem>>, vector<1x128x128xbf16>
    %435 = vector.shape_cast %434 : vector<1x128x128xbf16> to vector<128x128xbf16>
    %cst_398 = arith.constant dense<0.000000e+00> : vector<64x128xf32>
    %436 = tpu.matmul %433, %435, %cst_398 {dimension_numbers = #tpu.dot_dimension_numbers<[1], [0], [0], [1], [0, 0, 1, 1], [], []>} : vector<64x128xbf16>, vector<128x128xbf16>, vector<64x128xf32> -> vector<64x128xf32>
    %437 = arith.addf %432, %436 : vector<64x128xf32>
    %438 = arith.mulf %30, %437 : vector<64x128xf32>
    %c209_399 = arith.constant 209 : index
    %c0_400 = arith.constant 0 : index
    %439 = vector.load %arg7[%c209_399, %c0_400] : memref<320x128xbf16, #tpu.memory_space<vmem>>, vector<64x128xbf16>
    %c2_401 = arith.constant 2 : index
    %c0_402 = arith.constant 0 : index
    %c0_403 = arith.constant 0 : index
    %440 = vector.load %arg3[%c2_401, %c0_402, %c0_403] : memref<9x128x128xbf16, #tpu.memory_space<vmem>>, vector<1x128x128xbf16>
    %441 = vector.shape_cast %440 : vector<1x128x128xbf16> to vector<128x128xbf16>
    %cst_404 = arith.constant dense<0.000000e+00> : vector<64x128xf32>
    %442 = tpu.matmul %439, %441, %cst_404 {dimension_numbers = #tpu.dot_dimension_numbers<[1], [0], [0], [1], [0, 0, 1, 1], [], []>} : vector<64x128xbf16>, vector<128x128xbf16>, vector<64x128xf32> -> vector<64x128xf32>
    %c225_405 = arith.constant 225 : index
    %c0_406 = arith.constant 0 : index
    %443 = vector.load %arg7[%c225_405, %c0_406] : memref<320x128xbf16, #tpu.memory_space<vmem>>, vector<64x128xbf16>
    %c5_407 = arith.constant 5 : index
    %c0_408 = arith.constant 0 : index
    %c0_409 = arith.constant 0 : index
    %444 = vector.load %arg3[%c5_407, %c0_408, %c0_409] : memref<9x128x128xbf16, #tpu.memory_space<vmem>>, vector<1x128x128xbf16>
    %445 = vector.shape_cast %444 : vector<1x128x128xbf16> to vector<128x128xbf16>
    %cst_410 = arith.constant dense<0.000000e+00> : vector<64x128xf32>
    %446 = tpu.matmul %443, %445, %cst_410 {dimension_numbers = #tpu.dot_dimension_numbers<[1], [0], [0], [1], [0, 0, 1, 1], [], []>} : vector<64x128xbf16>, vector<128x128xbf16>, vector<64x128xf32> -> vector<64x128xf32>
    %447 = arith.addf %442, %446 : vector<64x128xf32>
    %c241_411 = arith.constant 241 : index
    %c0_412 = arith.constant 0 : index
    %448 = vector.load %arg7[%c241_411, %c0_412] : memref<320x128xbf16, #tpu.memory_space<vmem>>, vector<64x128xbf16>
    %c8_413 = arith.constant 8 : index
    %c0_414 = arith.constant 0 : index
    %c0_415 = arith.constant 0 : index
    %449 = vector.load %arg3[%c8_413, %c0_414, %c0_415] : memref<9x128x128xbf16, #tpu.memory_space<vmem>>, vector<1x128x128xbf16>
    %450 = vector.shape_cast %449 : vector<1x128x128xbf16> to vector<128x128xbf16>
    %cst_416 = arith.constant dense<0.000000e+00> : vector<64x128xf32>
    %451 = tpu.matmul %448, %450, %cst_416 {dimension_numbers = #tpu.dot_dimension_numbers<[1], [0], [0], [1], [0, 0, 1, 1], [], []>} : vector<64x128xbf16>, vector<128x128xbf16>, vector<64x128xf32> -> vector<64x128xf32>
    %452 = arith.addf %447, %451 : vector<64x128xf32>
    %453 = arith.mulf %33, %452 : vector<64x128xf32>
    %454 = arith.addf %438, %453 : vector<64x128xf32>
    %c208_417 = arith.constant 208 : index
    %c0_418 = arith.constant 0 : index
    %455 = vector.load %arg7[%c208_417, %c0_418] : memref<320x128xbf16, #tpu.memory_space<vmem>>, vector<64x128xbf16>
    %c1_419 = arith.constant 1 : index
    %c0_420 = arith.constant 0 : index
    %c0_421 = arith.constant 0 : index
    %456 = vector.load %arg3[%c1_419, %c0_420, %c0_421] : memref<9x128x128xbf16, #tpu.memory_space<vmem>>, vector<1x128x128xbf16>
    %457 = vector.shape_cast %456 : vector<1x128x128xbf16> to vector<128x128xbf16>
    %cst_422 = arith.constant dense<0.000000e+00> : vector<64x128xf32>
    %458 = tpu.matmul %455, %457, %cst_422 {dimension_numbers = #tpu.dot_dimension_numbers<[1], [0], [0], [1], [0, 0, 1, 1], [], []>} : vector<64x128xbf16>, vector<128x128xbf16>, vector<64x128xf32> -> vector<64x128xf32>
    %459 = arith.addf %454, %458 : vector<64x128xf32>
    %c224_423 = arith.constant 224 : index
    %c0_424 = arith.constant 0 : index
    %460 = vector.load %arg7[%c224_423, %c0_424] : memref<320x128xbf16, #tpu.memory_space<vmem>>, vector<64x128xbf16>
    %c4_425 = arith.constant 4 : index
    %c0_426 = arith.constant 0 : index
    %c0_427 = arith.constant 0 : index
    %461 = vector.load %arg3[%c4_425, %c0_426, %c0_427] : memref<9x128x128xbf16, #tpu.memory_space<vmem>>, vector<1x128x128xbf16>
    %462 = vector.shape_cast %461 : vector<1x128x128xbf16> to vector<128x128xbf16>
    %cst_428 = arith.constant dense<0.000000e+00> : vector<64x128xf32>
    %463 = tpu.matmul %460, %462, %cst_428 {dimension_numbers = #tpu.dot_dimension_numbers<[1], [0], [0], [1], [0, 0, 1, 1], [], []>} : vector<64x128xbf16>, vector<128x128xbf16>, vector<64x128xf32> -> vector<64x128xf32>
    %464 = arith.addf %459, %463 : vector<64x128xf32>
    %c240_429 = arith.constant 240 : index
    %c0_430 = arith.constant 0 : index
    %465 = vector.load %arg7[%c240_429, %c0_430] : memref<320x128xbf16, #tpu.memory_space<vmem>>, vector<64x128xbf16>
    %c7_431 = arith.constant 7 : index
    %c0_432 = arith.constant 0 : index
    %c0_433 = arith.constant 0 : index
    %466 = vector.load %arg3[%c7_431, %c0_432, %c0_433] : memref<9x128x128xbf16, #tpu.memory_space<vmem>>, vector<1x128x128xbf16>
    %467 = vector.shape_cast %466 : vector<1x128x128xbf16> to vector<128x128xbf16>
    %cst_434 = arith.constant dense<0.000000e+00> : vector<64x128xf32>
    %468 = tpu.matmul %465, %467, %cst_434 {dimension_numbers = #tpu.dot_dimension_numbers<[1], [0], [0], [1], [0, 0, 1, 1], [], []>} : vector<64x128xbf16>, vector<128x128xbf16>, vector<64x128xf32> -> vector<64x128xf32>
    %469 = arith.addf %464, %468 : vector<64x128xf32>
    %470 = vector.broadcast %36 : vector<1x128xf32> to vector<64x128xf32>
    %471 = arith.mulf %469, %470 : vector<64x128xf32>
    %472 = vector.broadcast %37 : vector<1x128xf32> to vector<64x128xf32>
    %473 = arith.addf %471, %472 : vector<64x128xf32>
    %c192 = arith.constant 192 : index
    %c0_435 = arith.constant 0 : index
    %474 = vector.load %arg1[%c192, %c0_435] : memref<256x128xbf16, #tpu.memory_space<vmem>>, vector<64x128xbf16>
    %475 = arith.extf %474 : vector<64x128xbf16> to vector<64x128xf32>
    %476 = arith.addf %473, %475 : vector<64x128xf32>
    %cst_436 = arith.constant 0.000000e+00 : f32
    %477 = vector.broadcast %cst_436 : f32 to vector<64x128xf32>
    %478 = arith.maximumf %476, %477 : vector<64x128xf32>
    %c192_437 = arith.constant 192 : index
    %c0_438 = arith.constant 0 : index
    %479 = vector.load %arg5[%c192_437, %c0_438] : memref<256x128xf32, #tpu.memory_space<vmem>>, vector<64x128xf32>
    tpu.vector_store %arg5[%c192_437, %c0_438], %478 {strides = array<i32>} : memref<256x128xf32, #tpu.memory_space<vmem>>, vector<64x128xf32>,
    return
  }
  func.func @transform_0(%arg0: i32) -> (i32, i32) {
    %c0_i32 = arith.constant 0 : i32
    %c0_i32_0 = arith.constant 0 : i32
    return %arg0, %c0_i32 : i32, i32
  }
  func.func @transform_1(%arg0: i32) -> (i32, i32, i32) {
    %c0_i32 = arith.constant 0 : i32
    %c0_i32_0 = arith.constant 0 : i32
    %c0_i32_1 = arith.constant 0 : i32
    %c0_i32_2 = arith.constant 0 : i32
    return %c0_i32, %c0_i32_0, %c0_i32_1 : i32, i32, i32
  }
  func.func @transform_2(%arg0: i32) -> (i32, i32, i32) {
    %c0_i32 = arith.constant 0 : i32
    %c0_i32_0 = arith.constant 0 : i32
    %c0_i32_1 = arith.constant 0 : i32
    %c0_i32_2 = arith.constant 0 : i32
    return %c0_i32, %c0_i32_0, %c0_i32_1 : i32, i32, i32
  }
  func.func @transform_3(%arg0: i32) -> (i32, i32) {
    %c0_i32 = arith.constant 0 : i32
    %c0_i32_0 = arith.constant 0 : i32
    %c0_i32_1 = arith.constant 0 : i32
    return %c0_i32, %c0_i32_0 : i32, i32
  }
  func.func @transform_4(%arg0: i32) -> (i32, i32) {
    %c0_i32 = arith.constant 0 : i32
    %c0_i32_0 = arith.constant 0 : i32
    return %arg0, %c0_i32 : i32, i32
  }
}

</mosaic_0001>

<bundles_post_ra>
// kernel: pool_block_small_forward.1
= control target key start
LH: loop header
LB: loop body
LE: loop exit
PB: predicated region body
PF: predicated region fallthrough
CT: control target
= control target key end

     0   :  { %s19614_s15 = smov 0   ;;  %s24286_s0 = inlined_call_operand.vmem [shape: bf16[512,128], index: 0, kind: input, shape index: {}]   ;;  %s24287_s1 = inlined_call_operand.vmem [shape: bf16[9,128,128], index: 1, kind: input, shape index: {}]   ;;  %s24288_s2 = inlined_call_operand.vmem [shape: bf16[9,128,128], index: 2, kind: input, shape index: {}]   ;;  %s24289_s3 = inlined_call_operand.vmem [shape: f32[8,128], index: 3, kind: input, shape index: {}]   ;;  %s24290_s4 = inlined_call_operand.vmem [shape: f32[512,128], index: 4, kind: output, shape index: {}]  }
   0x1 LB: > { %s13913_s16 = sadd.s32 4294967295, %s19585_s15   ;;  %p13917_p0 = scmp.ge.s32.totalorder %s19585_s15, 1  ;;  %s19585_s15 = sphi %s19614_s15, %s14_s15  }
   0x2   : > { %p163_p1 = scmp.lt.s32.totalorder %s19585_s15, 3 }
   0x4   : > { %p164_p2 = pnand %p13917_p0, %p163_p1 }
   0x6   : > { %167 = sbr.rel (%p164_p2) target bundleno = 1402 (0x57a), region = 36 }
   0xb   : > { %v18641_v0 = vld [vmem:[%s24287_s1 + $0xf8] sm:$0xff]   ;;  %s13918_s19 = sshll.u32 %s13913_s16, 5  ;;  %v18643_v2 = vld [vmem:[%s24287_s1 + $0xf0] sm:$0xff]   ;;  %v19587_v4 = vmov 0   ;;  %v18645_v5 = vld [vmem:[%s24287_s1 + $0xe8] sm:$0xff]  }
   0xc   : > { %v18642_v1 = vld [vmem:[%s24287_s1 + $0x38] sm:$0xff]   ;;  %p190_p3 = scmp.lt.s32.totalorder %s13918_s19, 63  ;;  %16903 = vmatprep.subr.bf16.mxu0 %v18641_v0  ;;  %v18644_v3 = vld [vmem:[%s24287_s1 + $0x30] sm:$0xff]   ;;  %205 = vst [vmem:[#allocation2 + $0xc] sm:$0xf] %v19587_v4  ;;  %v18646_v6 = vld [vmem:[%s24287_s1 + $0x28] sm:$0xff]  }
   0xd   : > { %16927 = vmatprep.subr.bf16.mxu1 %v18642_v1  ;;  %16904 = vmatpush3.bf16.msra.mxu0 %v18641_v0  ;;  %203 = vst [vmem:[#allocation2 + $0x4] sm:$0xf] %v19587_v4  ;;  %204 = vst [vmem:[#allocation2 + $0x8] sm:$0xf] %v19587_v4  ;;  %v18647_v7 = vld [vmem:[%s24287_s1 + $0xe0] sm:$0xff]   ;;  %v18649_v9 = vld [vmem:[%s24287_s1 + $0xd8] sm:$0xff]  }
   0xe   : > { %206 = vst [vmem:[#allocation2 + $0x90] sm:$0xf] %v19587_v4  ;;  %207 = vst [vmem:[#allocation2 + $0x94] sm:$0xf] %v19587_v4  ;;  %16928 = vmatpush3.bf16.msra.mxu1 %v18642_v1  ;;  %16905 = vmatprep.subr.bf16.mxu0 %v18643_v2  ;;  %s24799_s19 = smov (!%p190_p3, %s13918_s19), 63  ;;  %v18648_v8 = vld [vmem:[%s24287_s1 + $0x20] sm:$0xff]  }
   0xf   : > { %208 = vst [vmem:[#allocation2 + $0x98] sm:$0xf] %v19587_v4  ;;  %211 = vst [vmem:[#allocation3 + $0x4] sm:$0xf] %v19587_v4  ;;  %16929 = vmatprep.subr.bf16.mxu1 %v18644_v3  ;;  %s13919_s8 = sshll.u32 %s24799_s19, 2  ;;  %v18650_v10 = vld [vmem:[%s24287_s1 + $0x18] sm:$0xff]  }
  0x10   : > { %212 = vst [vmem:[#allocation3 + $0x8] sm:$0xf] %v19587_v4  ;;  %213 = vst [vmem:[#allocation3 + $0xc] sm:$0xf] %v19587_v4  ;;  %s19659_s16 = scalar_lea.vmem %s24286_s0, %s13919_s8  ;;  %v18651_v11 = vld [vmem:[%s24287_s1 + $0xd0] sm:$0xff]   ;;  %v18653_v21 = vld [vmem:[%s24287_s1 + $0xc8] sm:$0xff]  }
  0x11   : > { %214 = vst [vmem:[#allocation3 + $0x90] sm:$0xf] %v19587_v4  ;;  %215 = vst [vmem:[#allocation3 + $0x94] sm:$0xf] %v19587_v4  ;;  %16906 = vmatpush3.bf16.msra.mxu0 %v18643_v2  ;;  %v18652_v12 = vld [vmem:[%s24287_s1 + $0x10] sm:$0xff]   ;;  %v359_v13 = vld [vmem:[%s19659_s16] sm:$0xff]  }
  0x12   : > { %216 = vst [vmem:[#allocation3 + $0x98] sm:$0xf] %v19587_v4  ;;  %16930 = vmatpush3.bf16.msra.mxu1 %v18644_v3  ;;  %16907 = vmatprep.subr.bf16.mxu0 %v18645_v5  ;;  %v361_v14 = vld [vmem:[%s19659_s16 + $0x8] sm:$0xff]   ;;  %391 = vst [vmem:[#allocation2 + $0x10] sm:$0xff] %v359_v13   ;;  %v363_v19 = vld [vmem:[%s19659_s16 + $0x10] sm:$0xff]   ;;  %s13921_s30 = sshll.u32 %s24799_s19, 3 }
  0x13   : > { %16931 = vmatprep.subr.bf16.mxu1 %v18646_v6  ;;  %393 = vst [vmem:[#allocation2 + $0x18] sm:$0xff] %v361_v14   ;;  %v19671_v17 = vld [vmem:[#allocation2 + $0xc] sm:$0xf]  ;;  %395 = vst [vmem:[#allocation2 + $0x20] sm:$0xff] %v363_v19   ;;  %v18655_v25 = vld [vmem:[%s24287_s1 + $0xc0] sm:$0xff]   ;;  %s23314_s10 = scalar_lea.vmem %s24290_s4, %s13921_s30 }
  0x14   : > { %v423_v15 = vld [vmem:[#allocation2 + $0x4] sm:$0x8]  ;;  %v19669_v16 = vld [vmem:[#allocation2 + $0x8] sm:$0xf]  ;;  %v448_v26 = vld [vmem:[#allocation2 + $0xc] sm:$0x8] }
  0x15   : > { %16908 = vmatpush3.bf16.msra.mxu0 %v18645_v5  ;;  %v13951_v18 = vcombine.low %v423_v15, %v19669_v16  ;;  %v14091_v20 = vcombine.low %v19669_v16, %v19671_v17  ;;  %v18654_v22 = vld [vmem:[%s24287_s1 + $0x8] sm:$0xff]   ;;  %v18656_v32 = vld [vmem:[%s24287_s1] sm:$0xff]   ;;  %vm491_vm0 = vsmask.f32 4352  ;;  %v18661_v48 = vld [vmem:[%s24287_s1 + $0x1b8] sm:$0xff]  }
  0x16   : > { %16932 = vmatpush3.bf16.msra.mxu1 %v18646_v6  ;;  %16909 = vmatprep.subr.bf16.mxu0 %v18647_v7  ;;  %v18662_v49 = vld [vmem:[%s24287_s1 + $0x178] sm:$0xff]   ;;  %v18666_v13 = vld [vmem:[%s24287_s1 + $0x168] sm:$0xff]   ;;  %vm1100_vm1 = vsmask.f32 7424 }
  0x17   : > { %16933 = vmatprep.subr.bf16.mxu1 %v18648_v8  ;;  %v663_v23 = vshrl.u32 %v13951_v18, 16  ;;  %v666_v24 = vshll.u32 %v13951_v18, 16  ;;  %v365_v63 = vld [vmem:[%s19659_s16 + $0x18] sm:$0xff]   ;;  %v18726_v16 = vld [vmem:[%s24287_s1 + $0x108] sm:$0xff]  }
  0x18   : > { %397 = vst [vmem:[#allocation2 + $0x28] sm:$0xff] %v365_v63  }
  0x19   : > { %16910 = vmatpush3.bf16.msra.mxu0 %v18647_v7  ;;  %v665_v27 = vrot.slane %v663_v23, 3  ;;  %v668_v28 = vrot.slane %v666_v24, 4  ;;  %v426_v29 = vld [vmem:[#allocation2 + $0x10] sm:$0xf]  ;;  %v427_v30 = vld [vmem:[#allocation2 + $0x14] sm:$0xf] }
  0x1a   : > { %16934 = vmatpush3.bf16.msra.mxu1 %v18648_v8  ;;  %16911 = vmatprep.subr.bf16.mxu0 %v18649_v9  ;;  %v428_v31 = vld [vmem:[#allocation2 + $0x18] sm:$0xf]  ;;  %v429_v33 = vld [vmem:[#allocation2 + $0x1c] sm:$0xf]  ;;  %v13938_v34 = vcombine.low %v448_v26, %v426_v29  ;;  %v13952_v36 = vcombine.low %v19671_v17, %v426_v29  ;;  %v19690_v37 = vcombine.low %v426_v29, %v427_v30  ;;  %v430_v39 = vld [vmem:[#allocation2 + $0x20] sm:$0xf] }
  0x1b   : > { %16935 = vmatprep.subr.bf16.mxu1 %v18650_v10  ;;  %v13939_v35 = vcombine.low %v427_v30, %v428_v31  ;;  %v19692_v38 = vcombine.low %v428_v31, %v429_v33  ;;  %v669_v44 = vor.u32 %v668_v28, %v665_v27  ;;  %v13940_v47 = vcombine.low %v429_v33, %v430_v39  ;;  %v431_v0 = vld [vmem:[#allocation2 + $0x24] sm:$0xf]  ;;  %v18664_v7 = vld [vmem:[%s24287_s1 + $0x170] sm:$0xff]   ;;  %v19726_v23 = vld [vmem:[#allocation2 + $0x20] sm:$0xf] }
  0x1c   : > { %v493_v40 = vshrl.u32 %v13938_v34, 16  ;;  %v496_v41 = vshll.u32 %v13938_v34, 16  ;;  %v671_v45 = vshrl.u32 %v13952_v36, 16  ;;  %v674_v46 = vshll.u32 %v13952_v36, 16  ;;  %v18663_v8 = vld [vmem:[%s24287_s1 + $0x1b0] sm:$0xff]   ;;  %v18667_v33 = vld [vmem:[%s24287_s1 + $0x1a0] sm:$0xff]  }
  0x1d   : > { %16912 = vmatpush3.bf16.msra.mxu0 %v18649_v9  ;;  %v501_v42 = vshrl.u32 %v13939_v35, 16  ;;  %v504_v43 = vshll.u32 %v13939_v35, 16  ;;  %v510_v56 = vshrl.u32 %v13940_v47, 16  ;;  %v513_v57 = vshll.u32 %v13940_v47, 16  ;;  %v805_v18 = vld [vmem:[#allocation2 + $0x14] sm:$0x8] }
  0x1e   : > { %16936 = vmatpush3.bf16.msra.mxu1 %v18650_v10  ;;  %16913 = vmatprep.subr.bf16.mxu0 %v18651_v11  ;;  %v495_v50 = vrot.slane %v493_v40, 3  ;;  %v498_v51 = vrot.slane %v496_v41, 4  ;;  %v673_v54 = vrot.slane %v671_v45, 3  ;;  %v676_v55 = vrot.slane %v674_v46, 4  ;;  %v18668_v34 = vld [vmem:[%s24287_s1 + $0x160] sm:$0xff]   ;;  %v18682_v45 = vld [vmem:[#allocation2 + $0x10] sm:$0xff]  }
  0x1f   : > { %16937 = vmatprep.subr.bf16.mxu1 %v18652_v12  ;;  %v503_v52 = vrot.slane %v501_v42, 3  ;;  %v506_v53 = vrot.slane %v504_v43, 4  ;;  %v512_v61 = vrot.slane %v510_v56, 3  ;;  %v515_v62 = vrot.slane %v513_v57, 4  ;;  %v19728_v24 = vld [vmem:[#allocation2 + $0x28] sm:$0xf] }
  0x20   : > { %v499_v58 = vor.u32 %v498_v51, %v495_v50  ;;  %v677_v60 = vor.u32 %v676_v55, %v673_v54  ;;  %v13953_v2 = vcombine.low %v431_v0, %v431_v0  ;;  %v19702_v3 = vcombine.low %v430_v39, %v431_v0  ;;  %v19750_v46 = vld [vmem:[#allocation2 + $0x18] sm:$0xff]   ;;  %v19755_v56 = vld [vmem:[#allocation2 + $0x24] sm:$0xf]  ;;  %v18725_v17 = vld [vmem:[%s24287_s1 + $0x48] sm:$0xff]  }
  0x21   : > { %16914 = vmatpush3.bf16.msra.mxu0 %v18651_v11  ;;  %v507_v59 = vor.u32 %v506_v53, %v503_v52  ;;  %v19705_v5 = vor.u32 %v515_v62, %v512_v61  ;;  %v13941_v29 = vcombine.low %v431_v0, %v19728_v24  ;;  %v18669_v51 = vld [vmem:[%s24287_s1 + $0x198] sm:$0xff]   ;;  %v19762_v61 = vld [vmem:[#allocation2 + $0x28] sm:$0xf]  ;;  %v1104_v0 = vshll.u32 %v18682_v45, 16 }
  0x22   : > { %16938 = vmatpush3.bf16.msra.mxu1 %v18652_v12  ;;  %16915 = vmatprep.subr.bf16.mxu0 %v18653_v21  ;;  %v678_v4 = vsel %vm491_vm0, %v669_v44, %v677_v60  ;;  %v681_v9 = vshrl.u32 %v13953_v2, 16  ;;  %v684_v10 = vshll.u32 %v13953_v2, 16  ;;  %v18665_v12 = vld [vmem:[%s24287_s1 + $0x1a8] sm:$0xff]   ;;  %v18670_v57 = vld [vmem:[%s24287_s1 + $0x158] sm:$0xff]   ;;  %v19765_v2 = vld [vmem:[#allocation2 + $0x20] sm:$0xff]  }
  0x23   : > { %16939 = vmatprep.subr.bf16.mxu1 %v18654_v22  ;;  %v508_v1 = vsel %vm491_vm0, %v499_v58, %v507_v59  ;;  %v679_v6 = vsel %vm491_vm0, %v677_v60, %v507_v59  ;;  %16943 = vmatprep.mubr.bf16.mxu1 %v678_v4  ;;  %v517_v11 = vsel %vm491_vm0, %v507_v59, %v19705_v5  ;;  %v519_v41 = vshrl.u32 %v13941_v29, 16 }
  0x24   : > { %16919 = vmatprep.mubr.bf16.mxu0 %v508_v1  ;;  %v683_v14 = vrot.slane %v681_v9, 3  ;;  %v686_v15 = vrot.slane %v684_v10, 4  ;;  %v522_v42 = vshll.u32 %v13941_v29, 16  ;;  %v1102_v60 = vshrl.u32 %v18682_v45, 16  ;;  %v18675_v9 = vld [vmem:[%s24287_s1 + $0x150] sm:$0xff]  }
  0x25   : > { %16916 = vmatpush3.bf16.msra.mxu0 %v18653_v21  ;;  %v19722_v21 = vld [vmem:[#allocation2 + $0x18] sm:$0xf]  ;;  %v521_v52 = vrot.slane %v519_v41, 3  ;;  %v1109_v1 = vshll.u32 %v19750_v46, 16  ;;  %v18698_v41 = vld [vmem:[#allocation2 + $0x28] sm:$0xff]  }
  0x26   : > { %16940 = vmatpush3.bf16.msra.mxu1 %v18654_v22  ;;  %16917 = vmatprep.subr.bf16.mxu0 %v18655_v25  ;;  %v687_v19 = vor.u32 %v686_v15, %v683_v14  ;;  %v19724_v22 = vld [vmem:[#allocation2 + $0x1c] sm:$0xf]  ;;  %v13978_v26 = vcombine.low %v805_v18, %v19722_v21  ;;  %v524_v53 = vrot.slane %v522_v42, 4  ;;  %v18677_v14 = vld [vmem:[%s24287_s1 + $0x148] sm:$0xff]   ;;  %v1117_v15 = vshll.u32 %v19765_v2, 16  ;;  %v367_v18 = vld [vmem:[%s19659_s16 + $0x20] sm:$0xff]  }
  0x27   : > { %16941 = vmatprep.subr.bf16.mxu1 %v18656_v32  ;;  %v13979_v27 = vcombine.low %v19724_v22, %v19726_v23  ;;  %v14144_v28 = vcombine.low %v19722_v21, %v19724_v22  ;;  %399 = vst [vmem:[#allocation2 + $0x30] sm:$0xff] %v367_v18   ;;  %v1121_v42 = vshrl.u32 %v19765_v2, 16  ;;  %v18692_v18 = vld [vmem:[%s24287_s1 + $0xa8] sm:$0xff]  }
  0x28   : > { %v688_v31 = vsel %vm491_vm0, %v19705_v5, %v687_v19  ;;  %v855_v35 = vshrl.u32 %v13978_v26, 16  ;;  %v858_v36 = vshll.u32 %v13978_v26, 16  ;;  %v525_v62 = vor.u32 %v524_v53, %v521_v52  ;;  %v19790_v19 = vld [vmem:[#allocation2 + $0x2c] sm:$0xf]  ;;  %v18687_v52 = vld [vmem:[%s24287_s1 + $0x238] sm:$0xff]  }
  0x29   : > { %16918 = vmatpush3.bf16.msra.mxu0 %v18655_v25  ;;  %v19730_v25 = vld [vmem:[#allocation2 + $0x2c] sm:$0xf]  ;;  %v863_v39 = vshrl.u32 %v13979_v27, 16  ;;  %v866_v40 = vshll.u32 %v13979_v27, 16 }
  0x2a   : > { %16942 = vmatpush3.bf16.msra.mxu1 %v18656_v32  ;;  %16951 = vmatprep.subr.bf16.mxu0 %v18661_v48  ;;  %v13942_v30 = vcombine.low %v19730_v25, %v19730_v25  ;;  %v14119_v32 = vcombine.low %v19728_v24, %v19730_v25  ;;  %v857_v47 = vrot.slane %v855_v35, 3  ;;  %v526_v4 = vsel %vm491_vm0, %v19705_v5, %v525_v62  ;;  %v18679_v35 = vld [vmem:[%s24287_s1 + $0x140] sm:$0xff]  }
  0x2b   : > { %16975 = vmatprep.subr.bf16.mxu1 %v18662_v49  ;;  %v868_v50 = vrot.slane %v866_v40, 4  ;;  %v14145_v5 = vcombine.low %v19726_v23, %v19755_v56  ;;  %v18757_v23 = vld [vmem:[%s24287_s1 + $0x28] sm:$0xff]  }
  0x2c   : > { %16920 = vmatmul.mubr.bf16.vlgmr.msra.gmra.mxu0 %v517_v11  ;;  %v528_v43 = vshrl.u32 %v13942_v30, 16  ;;  %v531_v44 = vshll.u32 %v13942_v30, 16  ;;  %v14146_v30 = vcombine.low %v19762_v61, %v19790_v19 }
  0x2d   : > { %16944 = vmatmul.mubr.bf16.vlgmr.msra.gmra.mxu1 %v679_v6  ;;  %16952 = vmatpush3.bf16.msra.mxu0 %v18661_v48  ;;  %v860_v48 = vrot.slane %v858_v36, 4  ;;  %v1119_v36 = vrot.slane %v1117_v15, 1 }
  0x2e   : > { %16976 = vmatpush3.bf16.msra.mxu1 %v18662_v49  ;;  %16953 = vmatprep.subr.bf16.mxu0 %v18663_v8  ;;  %v865_v49 = vrot.slane %v863_v39, 3  ;;  %v530_v54 = vrot.slane %v528_v43, 3  ;;  %v533_v55 = vrot.slane %v531_v44, 4  ;;  %v19809_v44 = vld [vmem:[#allocation2 + $0x30] sm:$0xf] }
  0x2f   : > { %16977 = vmatprep.subr.bf16.mxu1 %v18664_v7  ;;  %16947 = vmatprep.mubr.bf16.mxu1 %v517_v11  ;;  %v861_v58 = vor.u32 %v860_v48, %v857_v47  ;;  %v13980_v11 = vcombine.low %v19755_v56, %v19762_v61  ;;  %v19811_v45 = vld [vmem:[#allocation2 + $0x34] sm:$0xf]  ;;  %v13981_v47 = vcombine.low %v19790_v19, %v19809_v44  ;;  %v18701_v53 = vld [vmem:[#allocation2 + $0x30] ss:$0 sps:$4 sm:$0x11]   ;;  %v18759_v61 = vld [vmem:[%s24287_s1 + $0x20] sm:$0xff]  }
  0x30   : > { %v19760_v59 = vor.u32 %v868_v50, %v865_v49  ;;  %v534_v63 = vor.u32 %v533_v55, %v530_v54  ;;  %16923 = vmatprep.mubr.bf16.mxu0 %v526_v4  ;;  %v13982_v48 = vcombine.low %v19811_v45, %v19811_v45  ;;  %v1125_v49 = vshll.u32 %v18698_v41, 16  ;;  %v18760_v19 = vld [vmem:[%s24287_s1 + $0x1a0] sm:$0xff]  }
  0x31   : > { %16954 = vmatpush3.bf16.msra.mxu0 %v18663_v8  ;;  %v1111_v8 = vrot.slane %v1109_v1, 1  ;;  %v872_v27 = vshrl.u32 %v13980_v11, 16  ;;  %v875_v29 = vshll.u32 %v13980_v11, 16  ;;  %v14147_v50 = vcombine.low %v19809_v44, %v19811_v45  ;;  %v18689_v1 = vld [vmem:[%s24287_s1 + $0x230] sm:$0xff]  }
  0x32   : > { %16978 = vmatpush3.bf16.msra.mxu1 %v18664_v7  ;;  %16955 = vmatprep.subr.bf16.mxu0 %v18665_v12  ;;  %v535_v6 = vsel %vm491_vm0, %v525_v62, %v534_v63  ;;  %v19770_v7 = vrot.slane %v1104_v0, 1  ;;  %v870_v10 = vsel %vm491_vm0, %v861_v58, %v19760_v59  ;;  %v881_v54 = vshrl.u32 %v13981_v47, 16  ;;  %v18688_v11 = vld [vmem:[%s24287_s1 + $0xb0] sm:$0xff]  }
  0x33   : > { %16979 = vmatprep.subr.bf16.mxu1 %v18666_v13  ;;  %v874_v39 = vrot.slane %v872_v27, 3  ;;  %v877_v40 = vrot.slane %v875_v29, 4  ;;  %v884_v55 = vshll.u32 %v13981_v47, 16  ;;  %v893_v58 = vshll.u32 %v13982_v48, 16  ;;  %v18706_v29 = vld [vmem:[#allocation2 + $0x8] sm:$0xff]   ;;  %v18765_v45 = vld [vmem:[%s24287_s1 + $0x190] sm:$0xff]  }
  0x34   : > { %16924 = vmatmul.mubr.bf16.gmra.mxu0 %v535_v6  ;;  %v1129_v62 = vshrl.u32 %v18698_v41, 16  ;;  %v1133_v63 = vshll.u32 %v18701_v53, 16  ;;  %v883_v2 = vrot.slane %v881_v54, 3  ;;  %v19831_v6 = vor.u32 %v1121_v42, %v1119_v36 }
  0x35   : > { %16948 = vmatmul.mubr.bf16.gmra.mxu1 %v688_v31  ;;  %16956 = vmatpush3.bf16.msra.mxu0 %v18665_v12  ;;  %v18674_v12 = vld [vmem:[%s24287_s1 + $0x190] sm:$0xff]   ;;  %v18676_v31 = vld [vmem:[%s24287_s1 + $0x188] sm:$0xff]   ;;  %v886_v4 = vrot.slane %v884_v55, 4  ;;  %v18696_v55 = vld [vmem:[%s24287_s1 + $0x98] sm:$0xff]  }
  0x36   : > { %16980 = vmatpush3.bf16.msra.mxu1 %v18666_v13  ;;  %16957 = vmatprep.subr.bf16.mxu0 %v18667_v33  ;;  %v1107_v13 = vor.u32 %v19770_v7, %v1102_v60  ;;  %v1127_v60 = vrot.slane %v1125_v49, 1  ;;  %v1135_v15 = vrot.slane %v1133_v63, 1  ;;  %v18709_v63 = vld [vmem:[#allocation2 + $0x28] sm:$0xff]  }
  0x37   : > { %16981 = vmatprep.subr.bf16.mxu1 %v18668_v34  ;;  %16967 = vmatprep.mubr.bf16.mxu0 %v870_v10  ;;  %v895_v10 = vrot.slane %v893_v58, 4 }
  0x38   : > { %v19793_v26 = vsel %vm1100_vm1, %v1107_v13, %v1111_v8  ;;  %v18693_v13 = vld [vmem:[%s24287_s1 + $0x228] sm:$0xff]   ;;  %v1128_v27 = vsel %vm1100_vm1, %v19831_v6, %v1127_v60 }
  0x39   : > { %16958 = vmatpush3.bf16.msra.mxu0 %v18667_v33  ;;  %16991 = vmatprep.mubr.bf16.mxu1 %v19793_v26  ;;  %v1113_v33 = vshrl.u32 %v19750_v46, 16  ;;  %v18686_v46 = vld [vmem:[%s24287_s1 + $0xb8] sm:$0xff]  }
  0x3a   : > { %16982 = vmatpush3.bf16.msra.mxu1 %v18668_v34  ;;  %16959 = vmatprep.subr.bf16.mxu0 %v18669_v51  ;;  %v18678_v34 = vld [vmem:[%s24287_s1 + $0x180] sm:$0xff]  }
  0x3b   : > { %16983 = vmatprep.subr.bf16.mxu1 %v18670_v57  ;;  %v1115_v43 = vor.u32 %v1113_v33, %v1111_v8  ;;  %v1263_v33 = vshrl.u32 %v18706_v29, 16 }
  0x3d   : > { %16960 = vmatpush3.bf16.msra.mxu0 %v18669_v51  ;;  %v878_v51 = vor.u32 %v877_v40, %v874_v39  ;;  %v19826_v0 = vsel %vm1100_vm1, %v1115_v43, %v1119_v36  ;;  %v18708_v36 = vld [vmem:[#allocation2 + $0x20] sm:$0xff]  }
  0x3e   : > { %16984 = vmatpush3.bf16.msra.mxu1 %v18670_v57  ;;  %16961 = vmatprep.subr.bf16.mxu0 %v18674_v12  ;;  %v890_v57 = vshrl.u32 %v13982_v48, 16  ;;  %v1447_v43 = vshll.u32 %v18708_v36, 16  ;;  %v18695_v48 = vld [vmem:[%s24287_s1 + $0x220] sm:$0xff]  }
  0x3f   : > { %16985 = vmatprep.subr.bf16.mxu1 %v18675_v9  ;;  %v879_v8 = vsel %vm491_vm0, %v19760_v59, %v878_v51 }
  0x41   : > { %16962 = vmatpush3.bf16.msra.mxu0 %v18674_v12  ;;  %v887_v12 = vor.u32 %v886_v4, %v883_v2  ;;  %v18702_v2 = vld [vmem:[%s24287_s1 + $0x88] sm:$0xff]   ;;  %v1455_v4 = vshll.u32 %v18709_v63, 16 }
  0x42   : > { %16986 = vmatpush3.bf16.msra.mxu1 %v18675_v9  ;;  %16963 = vmatprep.subr.bf16.mxu0 %v18676_v31  ;;  %v892_v9 = vrot.slane %v890_v57, 3  ;;  %v18697_v57 = vld [vmem:[%s24287_s1 + $0x218] sm:$0xff]  }
  0x43   : > { %16987 = vmatprep.subr.bf16.mxu1 %v18677_v14  ;;  %v888_v59 = vsel %vm491_vm0, %v878_v51, %v887_v12 }
  0x45   : > { %16964 = vmatpush3.bf16.msra.mxu0 %v18676_v31  ;;  %v896_v31 = vor.u32 %v895_v10, %v892_v9  ;;  %v1451_v9 = vshrl.u32 %v18708_v36, 16  ;;  %v18717_v10 = vld [vmem:[#allocation2 + $0x30] sm:$0xff]  }
  0x46   : > { %16988 = vmatpush3.bf16.msra.mxu1 %v18677_v14  ;;  %16965 = vmatprep.subr.bf16.mxu0 %v18678_v34  ;;  %v1131_v14 = vor.u32 %v1129_v62, %v1127_v60  ;;  %v369_v60 = vld [vmem:[%s19659_s16 + $0x28] sm:$0xff]   ;;  %v18699_v62 = vld [vmem:[%s24287_s1 + $0x90] sm:$0xff]  }
  0x47   : > { %16989 = vmatprep.subr.bf16.mxu1 %v18679_v35  ;;  %v897_v47 = vsel %vm491_vm0, %v887_v12, %v896_v31  ;;  %401 = vst [vmem:[#allocation2 + $0x38] sm:$0xff] %v369_v60   ;;  %v1467_v31 = vshrl.u32 %v18717_v10, 16  ;;  %v2124_v60 = vld [vmem:[#allocation2 + $0x34] sm:$0xf] }
  0x48   : > { %v1136_v39 = vsel %vm1100_vm1, %v1131_v14, %v1135_v15  ;;  %v18714_v14 = vld [vmem:[#allocation2 + $0x28] ss:$0 sps:$4 sm:$0x11]  }
  0x49   : > { %16966 = vmatpush3.bf16.msra.mxu0 %v18678_v34  ;;  %v1265_v34 = vshll.u32 %v18706_v29, 16  ;;  %v18710_v29 = vld [vmem:[%s24287_s1 + $0x78] sm:$0xff]  }
  0x4a   : > { %16990 = vmatpush3.bf16.msra.mxu1 %v18679_v35  ;;  %16999 = vmatprep.subr.bf16.mxu0 %v18686_v46  ;;  %v18707_v35 = vld [vmem:[#allocation2 + $0x18] sm:$0xff]  }
  0x4b   : > { %17023 = vmatprep.subr.bf16.mxu1 %v18687_v52  ;;  %v1267_v40 = vrot.slane %v1265_v34, 1  ;;  %v1440_v41 = vshrl.u32 %v18707_v35, 16  ;;  %v1442_v42 = vshll.u32 %v18707_v35, 16 }
  0x4c   : > { %16968 = vmatmul.mubr.bf16.vlgmr.msra.gmra.mxu0 %v879_v8  ;;  %v18705_v8 = vld [vmem:[%s24287_s1 + $0x200] sm:$0xff]  }
  0x4d   : > { %16992 = vmatmul.mubr.bf16.vlgmr.msra.gmra.mxu1 %v19826_v0  ;;  %17000 = vmatpush3.bf16.msra.mxu0 %v18686_v46  ;;  %v18694_v46 = vld [vmem:[%s24287_s1 + $0xa0] sm:$0xff]   ;;  %v1268_v49 = vor.u32 %v1267_v40, %v1263_v33  ;;  %v1444_v51 = vrot.slane %v1442_v42, 1  ;;  %v1271_v40 = vshll.u32 %v18714_v14, 16  ;;  %v18734_v14 = vld [vmem:[%s24287_s1 + $0xf0] sm:$0xff]  }
  0x4e   : > { %17024 = vmatpush3.bf16.msra.mxu1 %v18687_v52  ;;  %17001 = vmatprep.subr.bf16.mxu0 %v18688_v11  ;;  %v1449_v52 = vrot.slane %v1447_v43, 1  ;;  %v18718_v12 = vld [vmem:[#allocation2 + $0x38] ss:$0 sps:$4 sm:$0x11]  }
  0x4f   : > { %17025 = vmatprep.subr.bf16.mxu1 %v18689_v1  ;;  %16971 = vmatprep.mubr.bf16.mxu0 %v888_v59  ;;  %v1269_v53 = vsel %vm1100_vm1, %v1268_v49, %v19770_v7  ;;  %v1445_v54 = vor.u32 %v1444_v51, %v1440_v41  ;;  %v18700_v7 = vld [vmem:[%s24287_s1 + $0x210] sm:$0xff]   ;;  %v1459_v59 = vshrl.u32 %v18709_v63, 16  ;;  %v1471_v36 = vshll.u32 %v18718_v12, 16  ;;  %v2145_v63 = vld [vmem:[#allocation2 + $0x2c] sm:$0x8] }
  0x50   : > { %16995 = vmatprep.mubr.bf16.mxu1 %v1128_v27  ;;  %v1453_v15 = vor.u32 %v1451_v9, %v1449_v52  ;;  %v18711_v27 = vld [vmem:[%s24287_s1 + $0x138] sm:$0xff]   ;;  %v18712_v41 = vld [vmem:[%s24287_s1 + $0x70] sm:$0xff]  }
  0x51   : > { %17002 = vmatpush3.bf16.msra.mxu0 %v18688_v11  ;;  %v1450_v58 = vsel %vm1100_vm1, %v1445_v54, %v1449_v52  ;;  %v18704_v11 = vld [vmem:[%s24287_s1 + $0x80] sm:$0xff]   ;;  %v18721_v54 = vld [vmem:[%s24287_s1 + $0x58] sm:$0xff]  }
  0x52   : > { %17026 = vmatpush3.bf16.msra.mxu1 %v18689_v1  ;;  %17003 = vmatprep.subr.bf16.mxu0 %v18692_v18  ;;  %v18703_v1 = vld [vmem:[%s24287_s1 + $0x208] sm:$0xff]   ;;  %v18720_v52 = vld [vmem:[%s24287_s1 + $0x120] sm:$0xff]   ;;  %v18731_v9 = vld [vmem:[%s24287_s1 + $0x1f8] sm:$0xff]  }
  0x53   : > { %17027 = vmatprep.subr.bf16.mxu1 %v18693_v13 }
  0x54   : > { %16972 = vmatmul.mubr.bf16.gmra.mxu0 %v897_v47  ;;  %v1473_v47 = vrot.slane %v1471_v36, 1  ;;  %v18735_v36 = vld [vmem:[%s24287_s1 + $0x1e8] sm:$0xff]  }
  0x55   : > { %16996 = vmatmul.mubr.bf16.gmra.mxu1 %v1136_v39  ;;  %17004 = vmatpush3.bf16.msra.mxu0 %v18692_v18  ;;  %v1463_v18 = vshll.u32 %v18717_v10, 16  ;;  %v18713_v39 = vld [vmem:[%s24287_s1 + $0x130] sm:$0xff]  }
  0x56   : > { %17028 = vmatpush3.bf16.msra.mxu1 %v18693_v13  ;;  %17005 = vmatprep.subr.bf16.mxu0 %v18694_v46  ;;  %v1457_v13 = vrot.slane %v1455_v4, 1 }
  0x57   : > { %17029 = vmatprep.subr.bf16.mxu1 %v18695_v48  ;;  %17015 = vmatprep.mubr.bf16.mxu0 %v1269_v53  ;;  %v1465_v35 = vrot.slane %v1463_v18, 1  ;;  %v371_v53 = vld [vmem:[%s19659_s16 + $0x30] sm:$0xff]  }
  0x58   : > { %17039 = vmatprep.mubr.bf16.mxu1 %v1450_v58  ;;  %v1458_v33 = vsel %vm1100_vm1, %v1453_v15, %v1457_v13  ;;  %v1461_v34 = vor.u32 %v1459_v59, %v1457_v13  ;;  %403 = vst [vmem:[#allocation2 + $0x40] sm:$0xff] %v371_v53   ;;  %v19941_v58 = vld [vmem:[#allocation2 + $0x30] sm:$0xf]  ;;  %v19957_v15 = vld [vmem:[#allocation2 + $0x28] sm:$0xf] }
  0x59   : > { %17006 = vmatpush3.bf16.msra.mxu0 %v18694_v46  ;;  %v1469_v43 = vor.u32 %v1467_v31, %v1465_v35  ;;  %v1273_v46 = vrot.slane %v1271_v40, 1  ;;  %v19959_v59 = vld [vmem:[#allocation2 + $0x2c] sm:$0xf]  ;;  %v18733_v18 = vld [vmem:[%s24287_s1 + $0x1f0] sm:$0xff]   ;;  %v2120_v53 = vld [vmem:[#allocation2 + $0x24] sm:$0x8] }
  0x5a   : > { %17030 = vmatpush3.bf16.msra.mxu1 %v18695_v48  ;;  %17007 = vmatprep.subr.bf16.mxu0 %v18696_v55  ;;  %v1466_v42 = vsel %vm1100_vm1, %v1461_v34, %v1465_v35  ;;  %v18716_v48 = vld [vmem:[%s24287_s1 + $0x128] sm:$0xff]  }
  0x5b   : > { %17031 = vmatprep.subr.bf16.mxu1 %v18697_v57  ;;  %v1474_v49 = vsel %vm1100_vm1, %v1469_v43, %v1473_v47  ;;  %v1274_v51 = vsel %vm1100_vm1, %v19831_v6, %v1273_v46  ;;  %v18722_v6 = vld [vmem:[%s24287_s1 + $0x118] sm:$0xff]   ;;  %v18736_v35 = vld [vmem:[%s24287_s1 + $0xe8] sm:$0xff]   ;;  %v375_v47 = vld [vmem:[%s19659_s16 + $0x40] sm:$0xff]   ;;  %v19992_v46 = vcombine.low %v19941_v58, %v2124_v60 }
  0x5c   : > { %407 = vst [vmem:[#allocation2 + $0x50] sm:$0xff] %v375_v47   ;;  %v18754_v47 = vld [vmem:[%s24287_s1 + $0x30] sm:$0xff]  }
  0x5d   : > { %17008 = vmatpush3.bf16.msra.mxu0 %v18696_v55  ;;  %v18724_v55 = vld [vmem:[%s24287_s1 + $0x110] sm:$0xff]  }
  0x5e   : > { %17032 = vmatpush3.bf16.msra.mxu1 %v18697_v57  ;;  %17009 = vmatprep.subr.bf16.mxu0 %v18699_v62  ;;  %v18723_v57 = vld [vmem:[%s24287_s1 + $0x50] sm:$0xff]  }
  0x5f   : > { %17033 = vmatprep.subr.bf16.mxu1 %v18700_v7 }
  0x61   : > { %17010 = vmatpush3.bf16.msra.mxu0 %v18699_v62  ;;  %v2125_v62 = vld [vmem:[#allocation2 + $0x38] sm:$0xf] }
  0x62   : > { %17034 = vmatpush3.bf16.msra.mxu1 %v18700_v7  ;;  %17011 = vmatprep.subr.bf16.mxu0 %v18702_v2  ;;  %v373_v7 = vld [vmem:[%s19659_s16 + $0x38] sm:$0xff]   ;;  %v14183_v4 = vcombine.low %v2124_v60, %v2125_v62 }
  0x63   : > { %17035 = vmatprep.subr.bf16.mxu1 %v18703_v1  ;;  %405 = vst [vmem:[#allocation2 + $0x48] sm:$0xff] %v373_v7  }
  0x64   : > { %v2196_v12 = vshrl.u32 %v14183_v4, 16  ;;  %v2199_v13 = vshll.u32 %v14183_v4, 16 }
  0x65   : > { %17012 = vmatpush3.bf16.msra.mxu0 %v18702_v2  ;;  %v14182_v2 = vcombine.low %v2145_v63, %v19941_v58  ;;  %v20033_v63 = vld [vmem:[#allocation2 + $0x3c] sm:$0xf] }
  0x66   : > { %17036 = vmatpush3.bf16.msra.mxu1 %v18703_v1  ;;  %17013 = vmatprep.subr.bf16.mxu0 %v18704_v11  ;;  %v18727_v1 = vld [vmem:[%s24287_s1 + $0x40] sm:$0xff]   ;;  %v2201_v34 = vrot.slane %v2199_v13, 4 }
  0x67   : > { %17037 = vmatprep.subr.bf16.mxu1 %v18705_v8  ;;  %v2188_v10 = vshrl.u32 %v14182_v2, 16 }
  0x69   : > { %17014 = vmatpush3.bf16.msra.mxu0 %v18704_v11  ;;  %v2191_v11 = vshll.u32 %v14182_v2, 16  ;;  %v18746_v2 = vld [vmem:[%s24287_s1 + $0xc0] sm:$0xff]  }
  0x6a   : > { %17038 = vmatpush3.bf16.msra.mxu1 %v18705_v8  ;;  %17047 = vmatprep.subr.bf16.mxu0 %v18710_v29  ;;  %v18732_v8 = vld [vmem:[%s24287_s1 + $0xf8] sm:$0xff]   ;;  %v20018_v22 = vld [vmem:[#allocation2 + $0x4c] sm:$0xf] }
  0x6b   : > { %17071 = vmatprep.subr.bf16.mxu1 %v18711_v27  ;;  %v2193_v31 = vrot.slane %v2191_v11, 4 }
  0x6c   : > { %17016 = vmatmul.mubr.bf16.vlgmr.msra.gmra.mxu0 %v19793_v26  ;;  %v18715_v26 = vld [vmem:[%s24287_s1 + $0x68] sm:$0xff]  }
  0x6d   : > { %17040 = vmatmul.mubr.bf16.vlgmr.msra.gmra.mxu1 %v1458_v33  ;;  %17048 = vmatpush3.bf16.msra.mxu0 %v18710_v29  ;;  %v2190_v29 = vrot.slane %v2188_v10, 3  ;;  %v2198_v33 = vrot.slane %v2196_v12, 3 }
  0x6e   : > { %17072 = vmatpush3.bf16.msra.mxu1 %v18711_v27  ;;  %17049 = vmatprep.subr.bf16.mxu0 %v18712_v41  ;;  %v14335_v27 = vcombine.low %v19957_v15, %v19959_v59 }
  0x6f   : > { %17073 = vmatprep.subr.bf16.mxu1 %v18713_v39  ;;  %17019 = vmatprep.mubr.bf16.mxu0 %v19826_v0  ;;  %v18719_v0 = vld [vmem:[%s24287_s1 + $0x60] sm:$0xff]   ;;  %v2194_v40 = vor.u32 %v2193_v31, %v2190_v29 }
  0x70   : > { %17043 = vmatprep.mubr.bf16.mxu1 %v1466_v42  ;;  %v2127_v42 = vld [vmem:[#allocation2 + $0x40] sm:$0xf] }
  0x71   : > { %17050 = vmatpush3.bf16.msra.mxu0 %v18712_v41  ;;  %v19982_v41 = vor.u32 %v2201_v34, %v2198_v33  ;;  %v18753_v33 = vld [vmem:[%s24287_s1 + $0x1b8] sm:$0xff]  }
  0x72   : > { %17074 = vmatpush3.bf16.msra.mxu1 %v18713_v39  ;;  %17051 = vmatprep.subr.bf16.mxu0 %v18715_v26  ;;  %v18738_v39 = vld [vmem:[%s24287_s1 + $0xe0] sm:$0xff]  }
  0x73   : > { %17075 = vmatprep.subr.bf16.mxu1 %v18716_v48  ;;  %v2203_v43 = vsel %vm491_vm0, %v2194_v40, %v19982_v41 }
  0x74   : > { %17020 = vmatmul.mubr.bf16.gmra.mxu0 %v1274_v51  ;;  %v18741_v51 = vld [vmem:[%s24287_s1 + $0x1d0] sm:$0xff]  }
  0x75   : > { %17044 = vmatmul.mubr.bf16.gmra.mxu1 %v1474_v49  ;;  %17052 = vmatpush3.bf16.msra.mxu0 %v18715_v26  ;;  %v19997_v49 = vld [vmem:[#allocation2 + $0x44] sm:$0xf] }
  0x76   : > { %17076 = vmatpush3.bf16.msra.mxu1 %v18716_v48  ;;  %17053 = vmatprep.subr.bf16.mxu0 %v18719_v0  ;;  %v18740_v48 = vld [vmem:[%s24287_s1 + $0xd8] sm:$0xff]   ;;  %v20008_v25 = vcombine.low %v2127_v42, %v19997_v49 }
  0x77   : > { %17077 = vmatprep.subr.bf16.mxu1 %v18720_v52  ;;  %17063 = vmatprep.mubr.bf16.mxu0 %v14091_v20  ;;  %v18728_v20 = vld [vmem:[%s24287_s1 + $0x100] sm:$0xff]  }
  0x78   : > { %17087 = vmatprep.mubr.bf16.mxu1 %v19690_v37 }
  0x79   : > { %17054 = vmatpush3.bf16.msra.mxu0 %v18719_v0 }
  0x7a   : > { %17078 = vmatpush3.bf16.msra.mxu1 %v18720_v52  ;;  %17055 = vmatprep.subr.bf16.mxu0 %v18721_v54  ;;  %v20016_v52 = vld [vmem:[#allocation2 + $0x48] sm:$0xf] }
  0x7b   : > { %17079 = vmatprep.subr.bf16.mxu1 %v18722_v6 }
  0x7d   : > { %17056 = vmatpush3.bf16.msra.mxu0 %v18721_v54  ;;  %v18744_v54 = vld [vmem:[%s24287_s1 + $0xc8] sm:$0xff]  }
  0x7e   : > { %17080 = vmatpush3.bf16.msra.mxu1 %v18722_v6  ;;  %17057 = vmatprep.subr.bf16.mxu0 %v18723_v57  ;;  %v18743_v6 = vld [vmem:[%s24287_s1 + $0x1c8] sm:$0xff]  }
  0x7f   : > { %17081 = vmatprep.subr.bf16.mxu1 %v18724_v55 }
  0x81   : > { %17058 = vmatpush3.bf16.msra.mxu0 %v18723_v57 }
  0x82   : > { %17082 = vmatpush3.bf16.msra.mxu1 %v18724_v55  ;;  %17059 = vmatprep.subr.bf16.mxu0 %v18725_v17 }
  0x83   : > { %17083 = vmatprep.subr.bf16.mxu1 %v18726_v16 }
  0x85   : > { %17060 = vmatpush3.bf16.msra.mxu0 %v18725_v17  ;;  %v14195_v17 = vcombine.low %v2120_v53, %v19957_v15  ;;  %v18815_v15 = vld [vmem:[%s24287_s1 + $0x48] sm:$0xff]  }
  0x86   : > { %17084 = vmatpush3.bf16.msra.mxu1 %v18726_v16  ;;  %17061 = vmatprep.subr.bf16.mxu0 %v18727_v1  ;;  %v14186_v16 = vcombine.low %v20018_v22, %v20018_v22 }
  0x87   : > { %17085 = vmatprep.subr.bf16.mxu1 %v18728_v20  ;;  %v2358_v11 = vshrl.u32 %v14195_v17, 16  ;;  %v2361_v31 = vshll.u32 %v14195_v17, 16 }
  0x88   : > { %v2223_v4 = vshrl.u32 %v14186_v16, 16  ;;  %v2226_v10 = vshll.u32 %v14186_v16, 16 }
  0x89   : > { %17062 = vmatpush3.bf16.msra.mxu0 %v18727_v1  ;;  %v18745_v1 = vld [vmem:[%s24287_s1 + $0x1c0] sm:$0xff]  }
  0x8a   : > { %17086 = vmatpush3.bf16.msra.mxu1 %v18728_v20  ;;  %17095 = vmatprep.subr.bf16.mxu0 %v18731_v9  ;;  %v2500_v20 = vld [vmem:[#allocation2 + $0x34] sm:$0x8] }
  0x8b   : > { %17119 = vmatprep.subr.bf16.mxu1 %v18732_v8 }
  0x8c   : > { %17064 = vmatmul.mubr.bf16.vlgmr.msra.gmra.mxu0 %v19690_v37  ;;  %v18737_v37 = vld [vmem:[%s24287_s1 + $0x1e0] sm:$0xff]  }
  0x8d   : > { %17088 = vmatmul.mubr.bf16.vlgmr.msra.gmra.mxu1 %v19692_v38  ;;  %17096 = vmatpush3.bf16.msra.mxu0 %v18731_v9  ;;  %v20043_v9 = vld [vmem:[#allocation2 + $0x40] sm:$0xf] }
  0x8e   : > { %17120 = vmatpush3.bf16.msra.mxu1 %v18732_v8  ;;  %17097 = vmatprep.subr.bf16.mxu0 %v18733_v18  ;;  %v14196_v8 = vcombine.low %v19959_v59, %v19941_v58  ;;  %v14223_v58 = vcombine.low %v20033_v63, %v20043_v9  ;;  %v18821_v59 = vld [vmem:[#allocation2 + $0x48] sm:$0xff]  }
  0x8f   : > { %17121 = vmatprep.subr.bf16.mxu1 %v18734_v14  ;;  %17067 = vmatprep.mubr.bf16.mxu0 %v19692_v38  ;;  %v2126_v38 = vld [vmem:[#allocation2 + $0x3c] sm:$0xf] }
  0x90   : > { %17091 = vmatprep.mubr.bf16.mxu1 %v19702_v3  ;;  %v14184_v26 = vcombine.low %v2126_v38, %v2127_v42  ;;  %v19999_v24 = vcombine.low %v2125_v62, %v2126_v38  ;;  %v20031_v62 = vld [vmem:[#allocation2 + $0x38] sm:$0xf]  ;;  %v2366_v34 = vshrl.u32 %v14196_v8, 16 }
  0x91   : > { %17098 = vmatpush3.bf16.msra.mxu0 %v18733_v18  ;;  %v14222_v13 = vcombine.low %v2500_v20, %v20031_v62  ;;  %v18758_v20 = vld [vmem:[%s24287_s1 + $0x1a8] sm:$0xff]  }
  0x92   : > { %17122 = vmatpush3.bf16.msra.mxu1 %v18734_v14  ;;  %17099 = vmatprep.subr.bf16.mxu0 %v18735_v36  ;;  %v2205_v0 = vshrl.u32 %v14184_v26, 16  ;;  %v2208_v21 = vshll.u32 %v14184_v26, 16  ;;  %v18752_v14 = vld [vmem:[%s24287_s1 + $0x38] sm:$0xff]  }
  0x93   : > { %17123 = vmatprep.subr.bf16.mxu1 %v18736_v35  ;;  %v2549_v38 = vshrl.u32 %v14222_v13, 16  ;;  %v2552_v42 = vshll.u32 %v14222_v13, 16 }
  0x94   : > { %17068 = vmatmul.mubr.bf16.gmra.mxu0 %v19702_v3  ;;  %v18739_v3 = vld [vmem:[%s24287_s1 + $0x1d8] sm:$0xff]   ;;  %v2207_v55 = vrot.slane %v2205_v0, 3  ;;  %v2210_v57 = vrot.slane %v2208_v21, 4  ;;  %v14388_v0 = vcombine.low %v20031_v62, %v20033_v63  ;;  %v2368_v21 = vrot.slane %v2366_v34, 3  ;;  %v18836_v62 = vld [vmem:[%s24287_s1 + $0x1d0] sm:$0xff]  }
  0x95   : > { %17092 = vmatmul.mubr.bf16.gmra.mxu1 %v14119_v32  ;;  %17100 = vmatpush3.bf16.msra.mxu0 %v18735_v36  ;;  %v18742_v32 = vld [vmem:[%s24287_s1 + $0xd0] sm:$0xff]   ;;  %v2228_v36 = vrot.slane %v2226_v10, 4 }
  0x96   : > { %17124 = vmatpush3.bf16.msra.mxu1 %v18736_v35  ;;  %17101 = vmatprep.subr.bf16.mxu0 %v18737_v37  ;;  %v20045_v12 = vor.u32 %v2210_v57, %v2207_v55  ;;  %v2225_v35 = vrot.slane %v2223_v4, 3  ;;  %v20107_v10 = vld [vmem:[#allocation2 + $0x50] sm:$0xf] }
  0x97   : > { %17125 = vmatprep.subr.bf16.mxu1 %v18738_v39  ;;  %17111 = vmatprep.mubr.bf16.mxu0 %v14144_v28  ;;  %v14185_v28 = vcombine.low %v19997_v49, %v20016_v52 }
  0x98   : > { %17135 = vmatprep.mubr.bf16.mxu1 %v2203_v43  ;;  %v20059_v40 = vsel %vm491_vm0, %v19982_v41, %v20045_v12  ;;  %v20061_v43 = vld [vmem:[#allocation2 + $0x44] sm:$0xf]  ;;  %v2229_v57 = vor.u32 %v2228_v36, %v2225_v35  ;;  %v18768_v36 = vld [vmem:[%s24287_s1 + $0x188] sm:$0xff]  }
  0x99   : > { %17102 = vmatpush3.bf16.msra.mxu0 %v18737_v37  ;;  %v2214_v60 = vshrl.u32 %v14185_v28, 16  ;;  %v2217_v7 = vshll.u32 %v14185_v28, 16  ;;  %v2360_v37 = vrot.slane %v2358_v11, 3  ;;  %v20109_v11 = vld [vmem:[#allocation2 + $0x54] sm:$0xf] }
  0x9a   : > { %17126 = vmatpush3.bf16.msra.mxu1 %v18738_v39  ;;  %17103 = vmatprep.subr.bf16.mxu0 %v18739_v3  ;;  %v2369_v39 = vshll.u32 %v14196_v8, 16 }
  0x9b   : > { %17127 = vmatprep.subr.bf16.mxu1 %v18740_v48  ;;  %v2216_v18 = vrot.slane %v2214_v60, 3  ;;  %v2219_v29 = vrot.slane %v2217_v7, 4 }
  0x9c   : > { %v2371_v28 = vrot.slane %v2369_v39, 4 }
  0x9d   : > { %17104 = vmatpush3.bf16.msra.mxu0 %v18739_v3  ;;  %v2220_v26 = vor.u32 %v2219_v29, %v2216_v18  ;;  %v2363_v3 = vrot.slane %v2361_v31, 4  ;;  %v18762_v29 = vld [vmem:[%s24287_s1 + $0x198] sm:$0xff]  }
  0x9e   : > { %17128 = vmatpush3.bf16.msra.mxu1 %v18740_v48  ;;  %17105 = vmatprep.subr.bf16.mxu0 %v18741_v51  ;;  %v18755_v48 = vld [vmem:[%s24287_s1 + $0x1b0] sm:$0xff]   ;;  %v18761_v31 = vld [vmem:[%s24287_s1 + $0x18] sm:$0xff]  }
  0x9f   : > { %17129 = vmatprep.subr.bf16.mxu1 %v18742_v32  ;;  %v2221_v55 = vsel %vm491_vm0, %v20045_v12, %v2220_v26  ;;  %v2364_v56 = vor.u32 %v2363_v3, %v2360_v37  ;;  %v2230_v60 = vsel %vm491_vm0, %v2220_v26, %v2229_v57  ;;  %v14226_v37 = vcombine.low %v20109_v11, %v20109_v11  ;;  %v18769_v26 = vld [vmem:[%s24287_s1] sm:$0xff]  }
  0xa1   : > { %17106 = vmatpush3.bf16.msra.mxu0 %v18741_v51  ;;  %v2560_v51 = vshll.u32 %v14223_v58, 16 }
  0xa2   : > { %17130 = vmatpush3.bf16.msra.mxu1 %v18742_v32  ;;  %17107 = vmatprep.subr.bf16.mxu0 %v18743_v6  ;;  %v2557_v32 = vshrl.u32 %v14223_v58, 16  ;;  %v14197_v58 = vcombine.low %v19997_v49, %v19997_v49  ;;  %v18767_v49 = vld [vmem:[%s24287_s1 + $0x8] sm:$0xff]  }
  0xa3   : > { %17131 = vmatprep.subr.bf16.mxu1 %v18744_v54  ;;  %v2562_v17 = vrot.slane %v2560_v51, 4  ;;  %v2584_v51 = vshrl.u32 %v14226_v37, 16 }
  0xa4   : > { %v2559_v16 = vrot.slane %v2557_v32, 3  ;;  %v2376_v39 = vshrl.u32 %v14197_v58, 16 }
  0xa5   : > { %17108 = vmatpush3.bf16.msra.mxu0 %v18743_v6  ;;  %v2551_v6 = vrot.slane %v2549_v38, 3  ;;  %v2379_v38 = vshll.u32 %v14197_v58, 16 }
  0xa6   : > { %17132 = vmatpush3.bf16.msra.mxu1 %v18744_v54  ;;  %17109 = vmatprep.subr.bf16.mxu0 %v18745_v1  ;;  %v2554_v54 = vrot.slane %v2552_v42, 4 }
  0xa7   : > { %17133 = vmatprep.subr.bf16.mxu1 %v18746_v2 }
  0xa8   : > { %v2555_v7 = vor.u32 %v2554_v54, %v2551_v6  ;;  %v18795_v6 = vld [vmem:[#allocation2 + $0x30] sm:$0xff]   ;;  %v377_v54 = vld [vmem:[%s19659_s16 + $0x48] sm:$0xf] }
  0xa9   : > { %17110 = vmatpush3.bf16.msra.mxu0 %v18745_v1  ;;  %v20091_v1 = vor.u32 %v2562_v17, %v2559_v16  ;;  %409 = vst [vmem:[#allocation2 + $0x58] sm:$0xf] %v377_v54  ;;  %v18797_v16 = vld [vmem:[#allocation2 + $0x28] sm:$0xff]   ;;  %v18777_v17 = vld [vmem:[%s24287_s1 + $0xb8] sm:$0xff]   ;;  %v18798_v54 = vld [vmem:[#allocation2 + $0x40] sm:$0xff]  }
  0xaa   : > { %17134 = vmatpush3.bf16.msra.mxu1 %v18746_v2  ;;  %17143 = vmatprep.subr.bf16.mxu0 %v18752_v14  ;;  %v20101_v2 = vld [vmem:[#allocation2 + $0x4c] sm:$0xf] }
  0xab   : > { %17167 = vmatprep.subr.bf16.mxu1 %v18753_v33 }
  0xac   : > { %17112 = vmatmul.mubr.bf16.vlgmr.msra.gmra.mxu0 %v14145_v5  ;;  %v20088_v5 = vor.u32 %v2371_v28, %v2368_v21  ;;  %v2587_v21 = vshll.u32 %v14226_v37, 16  ;;  %v18781_v37 = vld [vmem:[%s24287_s1 + $0x168] sm:$0xff]  }
  0xad   : > { %17136 = vmatmul.mubr.bf16.vlgmr.msra.gmra.mxu1 %v20059_v40  ;;  %17144 = vmatpush3.bf16.msra.mxu0 %v18752_v14  ;;  %v2564_v14 = vsel %vm491_vm0, %v2555_v7, %v20091_v1  ;;  %v2795_v7 = vshll.u32 %v18795_v6, 16 }
  0xae   : > { %17168 = vmatpush3.bf16.msra.mxu1 %v18753_v33  ;;  %17145 = vmatprep.subr.bf16.mxu0 %v18754_v47  ;;  %v2373_v8 = vsel %vm491_vm0, %v2364_v56, %v20088_v5  ;;  %v14225_v33 = vcombine.low %v20101_v2, %v20107_v10  ;;  %v2586_v56 = vrot.slane %v2584_v51, 3  ;;  %v18790_v51 = vld [vmem:[%s24287_s1 + $0x90] sm:$0xff]  }
  0xaf   : > { %17169 = vmatprep.subr.bf16.mxu1 %v18755_v48  ;;  %17115 = vmatprep.mubr.bf16.mxu0 %v14146_v30  ;;  %v20099_v30 = vld [vmem:[#allocation2 + $0x48] sm:$0xf] }
  0xb0   : > { %17139 = vmatprep.mubr.bf16.mxu1 %v2221_v55  ;;  %v14224_v44 = vcombine.low %v20061_v43, %v20099_v30  ;;  %v2575_v42 = vshrl.u32 %v14225_v33, 16  ;;  %v2578_v32 = vshll.u32 %v14225_v33, 16  ;;  %v2954_v33 = vshrl.u32 %v18797_v16, 16 }
  0xb1   : > { %17146 = vmatpush3.bf16.msra.mxu0 %v18754_v47  ;;  %v18770_v47 = vld [vmem:[%s24287_s1 + $0x180] sm:$0xff]  }
  0xb2   : > { %17170 = vmatpush3.bf16.msra.mxu1 %v18755_v48  ;;  %17147 = vmatprep.subr.bf16.mxu0 %v18757_v23  ;;  %v2566_v34 = vshrl.u32 %v14224_v44, 16  ;;  %v2569_v35 = vshll.u32 %v14224_v44, 16  ;;  %v2577_v28 = vrot.slane %v2575_v42, 3  ;;  %v2580_v57 = vrot.slane %v2578_v32, 4  ;;  %v18787_v32 = vld [vmem:[%s24287_s1 + $0x158] sm:$0xff]  }
  0xb3   : > { %17171 = vmatprep.subr.bf16.mxu1 %v18758_v20  ;;  %v2381_v44 = vrot.slane %v2379_v38, 4 }
  0xb4   : > { %17116 = vmatmul.mubr.bf16.gmra.mxu0 %v14147_v50  ;;  %v18764_v50 = vld [vmem:[%s24287_s1 + $0x10] sm:$0xff]   ;;  %v2568_v48 = vrot.slane %v2566_v34, 3  ;;  %v2571_v3 = vrot.slane %v2569_v35, 4 }
  0xb5   : > { %17140 = vmatmul.mubr.bf16.gmra.mxu1 %v2230_v60  ;;  %17148 = vmatpush3.bf16.msra.mxu0 %v18757_v23  ;;  %v18776_v23 = vld [vmem:[%s24287_s1 + $0x178] sm:$0xff]  }
  0xb6   : > { %17172 = vmatpush3.bf16.msra.mxu1 %v18758_v20  ;;  %17149 = vmatprep.subr.bf16.mxu0 %v18759_v61  ;;  %v2572_v55 = vor.u32 %v2571_v3, %v2568_v48  ;;  %v2378_v20 = vrot.slane %v2376_v39, 3  ;;  %v20159_v60 = vld [vmem:[#allocation2 + $0x38] sm:$0xff]   ;;  %v18785_v48 = vld [vmem:[%s24287_s1 + $0x160] sm:$0xff]  }
  0xb7   : > { %17173 = vmatprep.subr.bf16.mxu1 %v18760_v19  ;;  %17159 = vmatprep.mubr.bf16.mxu0 %v2373_v8  ;;  %v2589_v8 = vrot.slane %v2587_v21, 4  ;;  %v2800_v58 = vshll.u32 %v20159_v60, 16  ;;  %v18789_v21 = vld [vmem:[%s24287_s1 + $0x150] sm:$0xff]  }
  0xb8   : > { %17183 = vmatprep.mubr.bf16.mxu1 %v2564_v14  ;;  %v2956_v14 = vshll.u32 %v18797_v16, 16  ;;  %v2382_v35 = vor.u32 %v2381_v44, %v2378_v20  ;;  %v2804_v16 = vshrl.u32 %v20159_v60, 16  ;;  %v378_v20 = vld [vmem:[%s19659_s16 + $0x4c] sm:$0xff]   ;;  %v18800_v60 = vld [vmem:[%s24287_s1 + $0x78] sm:$0xff]  }
  0xb9   : > { %17150 = vmatpush3.bf16.msra.mxu0 %v18759_v61  ;;  %v2573_v61 = vsel %vm491_vm0, %v20091_v1, %v2572_v55  ;;  %v2793_v1 = vshrl.u32 %v18795_v6, 16  ;;  %v2802_v39 = vrot.slane %v2800_v58, 1  ;;  %v18792_v6 = vld [vmem:[%s24287_s1 + $0x88] sm:$0xff]   ;;  %410 = vst [vmem:[#allocation2 + $0x5c] sm:$0xff] %v378_v20  }
  0xba   : > { %17174 = vmatpush3.bf16.msra.mxu1 %v18760_v19  ;;  %17151 = vmatprep.subr.bf16.mxu0 %v18761_v31  ;;  %v2581_v19 = vor.u32 %v2580_v57, %v2577_v28  ;;  %v2958_v34 = vrot.slane %v2956_v14, 1  ;;  %v18791_v28 = vld [vmem:[%s24287_s1 + $0x148] sm:$0xff]   ;;  %v18794_v57 = vld [vmem:[%s24287_s1 + $0x80] sm:$0xff]  }
  0xbb   : > { %17175 = vmatprep.subr.bf16.mxu1 %v18762_v29  ;;  %v2806_v14 = vor.u32 %v2804_v16, %v2802_v39  ;;  %v18807_v16 = vld [vmem:[%s24287_s1 + $0x218] sm:$0xff]  }
  0xbc   : > { %v2959_v42 = vor.u32 %v2958_v34, %v2954_v33  ;;  %v18802_v33 = vld [vmem:[%s24287_s1 + $0x70] sm:$0xff]  }
  0xbd   : > { %17152 = vmatpush3.bf16.msra.mxu0 %v18761_v31  ;;  %v18779_v31 = vld [vmem:[%s24287_s1 + $0xb0] sm:$0xff]  }
  0xbe   : > { %17176 = vmatpush3.bf16.msra.mxu1 %v18762_v29  ;;  %17153 = vmatprep.subr.bf16.mxu0 %v18764_v50  ;;  %v2374_v29 = vsel %vm491_vm0, %v20088_v5, %v19982_v41  ;;  %v2582_v41 = vsel %vm491_vm0, %v2572_v55, %v2581_v19  ;;  %v2590_v5 = vor.u32 %v2589_v8, %v2586_v56  ;;  %v18809_v55 = vld [vmem:[#allocation2 + $0x48] sm:$0xff]  }
  0xbf   : > { %17177 = vmatprep.subr.bf16.mxu1 %v18765_v45  ;;  %v2816_v56 = vshll.u32 %v18809_v55, 16  ;;  %v18811_v8 = vld [vmem:[#allocation2 + $0x48] ss:$0 sps:$4 sm:$0x11]   ;;  %v2820_v34 = vshrl.u32 %v18809_v55, 16  ;;  %v18808_v55 = vld [vmem:[%s24287_s1 + $0x58] sm:$0xff]  }
  0xc0   : > { %v2591_v38 = vsel %vm491_vm0, %v2581_v19, %v2590_v5  ;;  %v18810_v19 = vld [vmem:[#allocation2 + $0x50] ss:$0 sps:$4 sm:$0x11]  }
  0xc1   : > { %17154 = vmatpush3.bf16.msra.mxu0 %v18764_v50  ;;  %v2797_v50 = vrot.slane %v2795_v7, 1  ;;  %v18818_v7 = vld [vmem:[#allocation2 + $0x38] sm:$0xff]   ;;  %v2818_v44 = vrot.slane %v2816_v56, 1  ;;  %v2824_v58 = vshll.u32 %v18810_v19, 16  ;;  %v18814_v56 = vld [vmem:[%s24287_s1 + $0x208] sm:$0xff]  }
  0xc2   : > { %17178 = vmatpush3.bf16.msra.mxu1 %v18765_v45  ;;  %17155 = vmatprep.subr.bf16.mxu0 %v18767_v49  ;;  %v18778_v45 = vld [vmem:[%s24287_s1 + $0x170] sm:$0xff]  }
  0xc3   : > { %17179 = vmatprep.subr.bf16.mxu1 %v18768_v36  ;;  %v2960_v3 = vsel %vm1100_vm1, %v2959_v42, %v2797_v50  ;;  %v2826_v42 = vrot.slane %v2824_v58, 1  ;;  %v18823_v58 = vld [vmem:[%s24287_s1 + $0x138] sm:$0xff]  }
  0xc5   : > { %17156 = vmatpush3.bf16.msra.mxu0 %v18767_v49  ;;  %v2798_v49 = vor.u32 %v2797_v50, %v2793_v1  ;;  %v3132_v1 = vshll.u32 %v18818_v7, 16 }
  0xc6   : > { %17180 = vmatpush3.bf16.msra.mxu1 %v18768_v36  ;;  %17157 = vmatprep.subr.bf16.mxu0 %v18769_v26  ;;  %v18782_v36 = vld [vmem:[%s24287_s1 + $0xa8] sm:$0xff]  }
  0xc7   : > { %17181 = vmatprep.subr.bf16.mxu1 %v18770_v47 }
  0xc9   : > { %17158 = vmatpush3.bf16.msra.mxu0 %v18769_v26  ;;  %v2803_v26 = vsel %vm1100_vm1, %v2798_v49, %v2802_v39  ;;  %v3134_v49 = vrot.slane %v3132_v1, 1  ;;  %v384_v1 = vld [vmem:[%s19659_s16 + $0x64] sm:$0xff]  }
  0xca   : > { %17182 = vmatpush3.bf16.msra.mxu1 %v18770_v47  ;;  %17191 = vmatprep.subr.bf16.mxu0 %v18776_v23  ;;  %v2383_v47 = vsel %vm491_vm0, %v20045_v12, %v2382_v35  ;;  %v18788_v12 = vld [vmem:[%s24287_s1 + $0x98] sm:$0xff]   ;;  %v18801_v35 = vld [vmem:[%s24287_s1 + $0x230] sm:$0xff]   ;;  %416 = vst [vmem:[#allocation2 + $0x74] sm:$0xff] %v384_v1  }
  0xcb   : > { %17215 = vmatprep.subr.bf16.mxu1 %v18777_v17 }
  0xcc   : > { %17160 = vmatmul.mubr.bf16.vlgmr.msra.gmra.mxu0 %v2374_v29 }
  0xcd   : > { %17184 = vmatmul.mubr.bf16.vlgmr.msra.gmra.mxu1 %v2573_v61  ;;  %17192 = vmatpush3.bf16.msra.mxu0 %v18776_v23  ;;  %v18793_v23 = vld [vmem:[%s24287_s1 + $0x140] sm:$0xff]   ;;  %v2812_v61 = vshrl.u32 %v18798_v54, 16 }
  0xce   : > { %17216 = vmatpush3.bf16.msra.mxu1 %v18777_v17  ;;  %17193 = vmatprep.subr.bf16.mxu0 %v18778_v45  ;;  %v2808_v17 = vshll.u32 %v18798_v54, 16 }
  0xcf   : > { %17217 = vmatprep.subr.bf16.mxu1 %v18779_v31  ;;  %17163 = vmatprep.mubr.bf16.mxu0 %v20059_v40  ;;  %v18786_v40 = vld [vmem:[%s24287_s1 + $0xa0] sm:$0xff]  }
  0xd0   : > { %17187 = vmatprep.mubr.bf16.mxu1 %v2582_v41  ;;  %v2810_v29 = vrot.slane %v2808_v17, 1  ;;  %v2962_v41 = vshll.u32 %v18811_v8, 16  ;;  %v18813_v17 = vld [vmem:[%s24287_s1 + $0x50] sm:$0xff]   ;;  %v3145_v8 = vshll.u32 %v18821_v59, 16 }
  0xd1   : > { %17194 = vmatpush3.bf16.msra.mxu0 %v18778_v45  ;;  %v20224_v45 = vld [vmem:[#allocation2 + $0x40] sm:$0xff]  }
  0xd2   : > { %17218 = vmatpush3.bf16.msra.mxu1 %v18779_v31  ;;  %17195 = vmatprep.subr.bf16.mxu0 %v18781_v37  ;;  %v18799_v31 = vld [vmem:[%s24287_s1 + $0x238] sm:$0xff]   ;;  %v2814_v50 = vor.u32 %v2812_v61, %v2810_v29  ;;  %v2811_v5 = vsel %vm1100_vm1, %v2806_v14, %v2810_v29  ;;  %v3137_v39 = vshll.u32 %v20224_v45, 16  ;;  %v18817_v61 = vld [vmem:[%s24287_s1 + $0x40] sm:$0xff]   ;;  %v3141_v19 = vshrl.u32 %v20224_v45, 16 }
  0xd3   : > { %17219 = vmatprep.subr.bf16.mxu1 %v18782_v36  ;;  %v18816_v29 = vld [vmem:[%s24287_s1 + $0x200] sm:$0xff]   ;;  %v18824_v45 = vld [vmem:[%s24287_s1 + $0x1f8] sm:$0xff]  }
  0xd4   : > { %17164 = vmatmul.mubr.bf16.gmra.mxu0 %v2383_v47  ;;  %v2964_v47 = vrot.slane %v2962_v41, 1 }
  0xd5   : > { %17188 = vmatmul.mubr.bf16.gmra.mxu1 %v2591_v38  ;;  %17196 = vmatpush3.bf16.msra.mxu0 %v18781_v37  ;;  %v2819_v37 = vsel %vm1100_vm1, %v2814_v50, %v2818_v44  ;;  %v18804_v38 = vld [vmem:[%s24287_s1 + $0x68] sm:$0xff]  }
  0xd6   : > { %17220 = vmatpush3.bf16.msra.mxu1 %v18782_v36  ;;  %17197 = vmatprep.subr.bf16.mxu0 %v18785_v48  ;;  %v3130_v36 = vshrl.u32 %v18818_v7, 16  ;;  %v18827_v7 = vld [vmem:[#allocation2 + $0x50] sm:$0xff]  }
  0xd7   : > { %17221 = vmatprep.subr.bf16.mxu1 %v18786_v40  ;;  %17207 = vmatprep.mubr.bf16.mxu0 %v2803_v26 }
  0xd8   : > { %17231 = vmatprep.mubr.bf16.mxu1 %v2960_v3  ;;  %v382_v3 = vld [vmem:[%s19659_s16 + $0x5c] sm:$0xff]  }
  0xd9   : > { %17198 = vmatpush3.bf16.msra.mxu0 %v18785_v48  ;;  %v18803_v48 = vld [vmem:[%s24287_s1 + $0x228] sm:$0xff]   ;;  %414 = vst [vmem:[#allocation2 + $0x6c] sm:$0xff] %v382_v3  }
  0xda   : > { %17222 = vmatpush3.bf16.msra.mxu1 %v18786_v40  ;;  %17199 = vmatprep.subr.bf16.mxu0 %v18787_v32  ;;  %v2822_v40 = vor.u32 %v2820_v34, %v2818_v44  ;;  %v3153_v44 = vshll.u32 %v18827_v7, 16 }
  0xdb   : > { %17223 = vmatprep.subr.bf16.mxu1 %v18788_v12 }
  0xdd   : > { %17200 = vmatpush3.bf16.msra.mxu0 %v18787_v32  ;;  %v3139_v32 = vrot.slane %v3137_v39, 1 }
  0xde   : > { %17224 = vmatpush3.bf16.msra.mxu1 %v18788_v12  ;;  %17201 = vmatprep.subr.bf16.mxu0 %v18789_v21  ;;  %v3135_v12 = vor.u32 %v3134_v49, %v3130_v36 }
  0xdf   : > { %17225 = vmatprep.subr.bf16.mxu1 %v18790_v51  ;;  %v3143_v41 = vor.u32 %v3141_v19, %v3139_v32  ;;  %v18834_v19 = vld [vmem:[%s24287_s1 + $0x1d8] sm:$0xff]  }
  0xe0   : > { %v3140_v54 = vsel %vm1100_vm1, %v3135_v12, %v3139_v32 }
  0xe1   : > { %17202 = vmatpush3.bf16.msra.mxu0 %v18789_v21  ;;  %v18806_v21 = vld [vmem:[%s24287_s1 + $0x60] sm:$0xff]  }
  0xe2   : > { %17226 = vmatpush3.bf16.msra.mxu1 %v18790_v51  ;;  %17203 = vmatprep.subr.bf16.mxu0 %v18791_v28  ;;  %v2965_v51 = vsel %vm1100_vm1, %v2814_v50, %v2964_v47  ;;  %v3157_v47 = vshrl.u32 %v18827_v7, 16 }
  0xe3   : > { %17227 = vmatprep.subr.bf16.mxu1 %v18792_v6 }
  0xe5   : > { %17204 = vmatpush3.bf16.msra.mxu0 %v18791_v28  ;;  %v2827_v28 = vsel %vm1100_vm1, %v2822_v40, %v2826_v42  ;;  %v18826_v42 = vld [vmem:[%s24287_s1 + $0x1f0] sm:$0xff]  }
  0xe6   : > { %17228 = vmatpush3.bf16.msra.mxu1 %v18792_v6  ;;  %17205 = vmatprep.subr.bf16.mxu0 %v18793_v23  ;;  %v18805_v6 = vld [vmem:[%s24287_s1 + $0x220] sm:$0xff]  }
  0xe7   : > { %17229 = vmatprep.subr.bf16.mxu1 %v18794_v57 }
  0xe9   : > { %17206 = vmatpush3.bf16.msra.mxu0 %v18793_v23  ;;  %v18812_v23 = vld [vmem:[%s24287_s1 + $0x210] sm:$0xff]  }
  0xea   : > { %17230 = vmatpush3.bf16.msra.mxu1 %v18794_v57  ;;  %17239 = vmatprep.subr.bf16.mxu0 %v18799_v31 }
  0xeb   : > { %17263 = vmatprep.subr.bf16.mxu1 %v18800_v60 }
  0xec   : > { %17208 = vmatmul.mubr.bf16.vlgmr.msra.gmra.mxu0 %v2811_v5  ;;  %v20255_v57 = vpop.f32.mrf.mxu0 }
  0xed   : > { %17232 = vmatmul.mubr.bf16.vlgmr.msra.gmra.mxu1 %v2803_v26  ;;  %17240 = vmatpush3.bf16.msra.mxu0 %v18799_v31  ;;  %v380_v26 = vld [vmem:[%s19659_s16 + $0x54] sm:$0xff]   ;;  %v3149_v31 = vshrl.u32 %v18821_v59, 16  ;;  %v20297_v34 = vpop.f32.mrf.mxu1 }
  0xee   : > { %17264 = vmatpush3.bf16.msra.mxu1 %v18800_v60  ;;  %17241 = vmatprep.subr.bf16.mxu0 %v18801_v35  ;;  %412 = vst [vmem:[#allocation2 + $0x64] sm:$0xff] %v380_v26   ;;  %v20266_v20 = vpop.f32.mrf.mxu0  ;;  %v218_v60 = vlaneseq }
  0xef   : > { %17265 = vmatprep.subr.bf16.mxu1 %v18802_v33  ;;  %17211 = vmatprep.mubr.bf16.mxu0 %v2819_v37  ;;  %v3155_v37 = vrot.slane %v3153_v44, 1 }
  0xf0   : > { %17235 = vmatprep.mubr.bf16.mxu1 %v2811_v5  ;;  %v3147_v5 = vrot.slane %v3145_v8, 1 }
  0xf1   : > { %17242 = vmatpush3.bf16.msra.mxu0 %v18801_v35  ;;  %v20299_v35 = vshrl.u32 %v218_v60, 7  ;;  %v3159_v12 = vor.u32 %v3157_v47, %v3155_v37  ;;  %v18833_v60 = vld [vmem:[%s24287_s1 + $0x118] sm:$0xff]  }
  0xf2   : > { %17266 = vmatpush3.bf16.msra.mxu1 %v18802_v33  ;;  %17243 = vmatprep.subr.bf16.mxu0 %v18803_v48  ;;  %v18828_v33 = vld [vmem:[#allocation2 + $0x58] ss:$0 sps:$4 sm:$0x11]   ;;  %v3151_v36 = vor.u32 %v3149_v31, %v3147_v5  ;;  %v3148_v39 = vsel %vm1100_vm1, %v3143_v41, %v3147_v5  ;;  %v24291_v31 = vmov 1.0   ;;  %v3803_v41 = vld [vmem:[#allocation2 + $0x54] sm:$0xf] }
  0xf3   : > { %17267 = vmatprep.subr.bf16.mxu1 %v18804_v38  ;;  %v3161_v40 = vshll.u32 %v18828_v33, 16  ;;  %vm227_vm3 = vcmp.eq.s32.totalorder %v20299_v35, 0  ;;  %v222_v7 = vadd.s32 24, %v20299_v35  ;;  %v220_v8 = vadd.s32 8, %v20299_v35  ;;  %v18838_v5 = vld [vmem:[%s24287_s1 + $0x1c8] sm:$0xff]  }
  0xf4   : > { %17212 = vmatmul.mubr.bf16.gmra.mxu0 %v2827_v28  ;;  %v3156_v26 = vsel %vm1100_vm1, %v3151_v36, %v3155_v37  ;;  %v18829_v28 = vld [vmem:[%s24287_s1 + $0x128] sm:$0xff]   ;;  %v20366_v1 = vsel %vm227_vm3, 0.0, %v24291_v31  ;;  %v3802_v33 = vld [vmem:[#allocation2 + $0x50] sm:$0xf]  ;;  %v3804_v37 = vld [vmem:[#allocation2 + $0x58] sm:$0xf] }
  0xf5   : > { %17236 = vmatmul.mubr.bf16.gmra.mxu1 %v2965_v51  ;;  %17244 = vmatpush3.bf16.msra.mxu0 %v18803_v48  ;;  %v20310_v48 = vpop.f32.mrf.mxu1  ;;  %v3163_v32 = vrot.slane %v3161_v40, 1  ;;  %v18830_v51 = vld [vmem:[%s24287_s1 + $0x1e8] sm:$0xff]   ;;  %24365 = vst [vmem:[#allocation4_spill] sm:$0xff] %v20366_v1  ;;  %vm262_vm6 = vcmp.eq.s32.totalorder %v222_v7, 31  ;;  %vm236_vm7 = vcmp.eq.s32.totalorder %v220_v8, 15  ;;  %v18839_v7 = vld [vmem:[%s24287_s1 + $0x100] sm:$0xff]  }
  0xf6   : > { %17268 = vmatpush3.bf16.msra.mxu1 %v18804_v38  ;;  %17245 = vmatprep.subr.bf16.mxu0 %v18805_v6  ;;  %v18825_v38 = vld [vmem:[%s24287_s1 + $0x130] sm:$0xff]   ;;  %v18837_v36 = vld [vmem:[%s24287_s1 + $0x108] sm:$0xff]  }
  0xf7   : > { %17269 = vmatprep.subr.bf16.mxu1 %v18806_v21  ;;  %17255 = vmatprep.mubr.bf16.mxu0 %v3140_v54  ;;  %v3800_v40 = vld [vmem:[#allocation2 + $0x48] sm:$0xf] }
  0xf8   : > { %17279 = vmatprep.mubr.bf16.mxu1 %v14335_v27  ;;  %v20274_v27 = vpop.f32.mrf.mxu0 }
  0xf9   : > { %17246 = vmatpush3.bf16.msra.mxu0 %v18805_v6  ;;  %v20323_v6 = vpop.f32.mrf.mxu1 }
  0xfa   : > { %17270 = vmatpush3.bf16.msra.mxu1 %v18806_v21  ;;  %17247 = vmatprep.subr.bf16.mxu0 %v18807_v16  ;;  %v20283_v14 = vpop.f32.mrf.mxu0  ;;  %v221_v21 = vadd.s32 16, %v20299_v35 }
  0xfb   : > { %17271 = vmatprep.subr.bf16.mxu1 %v18808_v55  ;;  %v20338_v59 = vpop.f32.mrf.mxu1 }
  0xfc   : > { %v20289_v50 = vpop.f32.mrf.mxu0  ;;  %vm245_vm2 = vcmp.eq.s32.totalorder %v221_v21, 16  ;;  %v20405_v21 = vsel %vm236_vm7, 0.0, %v24291_v31 }
  0xfd   : > { %17248 = vmatpush3.bf16.msra.mxu0 %v18807_v16  ;;  %v18832_v16 = vld [vmem:[%s24287_s1 + $0x1e0] sm:$0xff]   ;;  %v20358_v44 = vsel %vm245_vm2, 0.0, %v24291_v31  ;;  %24370 = vst [vmem:[#allocation9_spill] sm:$0xff] %v20405_v21 }
  0xfe   : > { %17272 = vmatpush3.bf16.msra.mxu1 %v18808_v55  ;;  %17249 = vmatprep.subr.bf16.mxu0 %v18812_v23  ;;  %v20301_v49 = vpop.f32.mrf.mxu0  ;;  %v225_v55 = vadd.s32 48, %v20299_v35 }
  0xff   : > { %17273 = vmatprep.subr.bf16.mxu1 %v18813_v17 }
 0x100   : > { %v20314_v3 = vpop.f32.mrf.mxu0  ;;  %vm313_vm4 = vcmp.eq.s32.totalorder %v225_v55, 48 }
 0x101   : > { %17250 = vmatpush3.bf16.msra.mxu0 %v18812_v23 }
 0x102   : > { %17274 = vmatpush3.bf16.msra.mxu1 %v18813_v17  ;;  %17251 = vmatprep.subr.bf16.mxu0 %v18814_v56  ;;  %v20326_v54 = vpop.f32.mrf.mxu0  ;;  %v3164_v17 = vsel %vm1100_vm1, %v3159_v12, %v3163_v32  ;;  %v3801_v12 = vld [vmem:[#allocation2 + $0x4c] sm:$0xf] }
 0x103   : > { %17275 = vmatprep.subr.bf16.mxu1 %v18815_v15 }
 0x105   : > { %17252 = vmatpush3.bf16.msra.mxu0 %v18814_v56  ;;  %v223_v56 = vadd.s32 32, %v20299_v35 }
 0x106   : > { %17276 = vmatpush3.bf16.msra.mxu1 %v18815_v15  ;;  %17253 = vmatprep.subr.bf16.mxu0 %v18816_v29  ;;  %v18831_v15 = vld [vmem:[%s24287_s1 + $0x120] sm:$0xff]  }
 0x107   : > { %17277 = vmatprep.subr.bf16.mxu1 %v18817_v61  ;;  %vm279_vm5 = vcmp.eq.s32.totalorder %v223_v56, 32 }
 0x108   : > { %v20397_v32 = vsel %vm279_vm5, 0.0, %v24291_v31 }
 0x109   : > { %17254 = vmatpush3.bf16.msra.mxu0 %v18816_v29  ;;  %24368 = vst [vmem:[#allocation7_spill] sm:$0xff] %v20397_v32  ;;  %v24374_v32 = vcombine.low %v20043_v9, %v20061_v43  ;;  %v24375_v9 = vmov 1.0  }
 0x10a   : > { %17278 = vmatpush3.bf16.msra.mxu1 %v18817_v61  ;;  %17287 = vmatprep.subr.bf16.mxu0 %v18823_v58  ;;  %v20344_v61 = vpop.f32.mrf.mxu1 }
 0x10b   : > { %17311 = vmatprep.subr.bf16.mxu1 %v18824_v45 }
 0x10c   : > { %17256 = vmatmul.mubr.bf16.vlgmr.msra.gmra.mxu0 %v3148_v39  ;;  %v20333_v23 = vpop.f32.mrf.mxu0  ;;  %v3824_v39 = vld [vmem:[#allocation2 + $0x4c] sm:$0x8] }
 0x10d   : > { %17280 = vmatmul.mubr.bf16.vlgmr.msra.gmra.mxu1 %v19992_v46  ;;  %17288 = vmatpush3.bf16.msra.mxu0 %v18823_v58  ;;  %v20370_v58 = vsel %vm313_vm4, 0.0, %v24291_v31 }
 0x10e   : > { %17312 = vmatpush3.bf16.msra.mxu1 %v18824_v45  ;;  %17289 = vmatprep.subr.bf16.mxu0 %v18825_v38  ;;  %v20350_v29 = vpop.f32.mrf.mxu0  ;;  %24366 = vst [vmem:[#allocation5_spill] sm:$0xff] %v20370_v58  ;;  %v20383_v45 = vadd.s32 56, %v20299_v35 }
 0x10f   : > { %17313 = vmatprep.subr.bf16.mxu1 %v18826_v42  ;;  %17259 = vmatprep.mubr.bf16.mxu0 %v3156_v26  ;;  %v14425_v26 = vcombine.low %v3803_v41, %v3804_v37 }
 0x110   : > { %17283 = vmatprep.mubr.bf16.mxu1 %v19999_v24  ;;  %v20377_v63 = vpop.f32.mrf.mxu0  ;;  %vm330_vm8 = vcmp.eq.s32.totalorder %v20383_v45, 63 }
 0x111   : > { %17290 = vmatpush3.bf16.msra.mxu0 %v18825_v38  ;;  %v20456_v43 = vsel %vm330_vm8, 0.0, %v24375_v9 }
 0x112   : > { %17314 = vmatpush3.bf16.msra.mxu1 %v18826_v42  ;;  %17291 = vmatprep.subr.bf16.mxu0 %v18829_v28  ;;  %v3799_v42 = vld [vmem:[#allocation2 + $0x44] sm:$0x8]  ;;  %v20393_v47 = vpop.f32.mrf.mxu0  ;;  %24376 = vst [vmem:[#allocation13_spill] sm:$0xff] %v20456_v43 }
 0x113   : > { %17315 = vmatprep.subr.bf16.mxu1 %v18830_v51  ;;  %24367 = vst [vmem:[#allocation6_spill] sm:$0xff] %v20393_v47 }
 0x114   : > { %17260 = vmatmul.mubr.bf16.gmra.mxu0 %v3164_v17  ;;  %v20413_v17 = vadd.s32 40, %v20299_v35  ;;  %v20415_v56 = vpop.f32.mrf.mxu0  ;;  %v3878_v35 = vshll.u32 %v14425_v26, 16 }
 0x115   : > { %17284 = vmatmul.mubr.bf16.gmra.mxu1 %v20008_v25  ;;  %17292 = vmatpush3.bf16.msra.mxu0 %v18829_v28  ;;  %v14424_v28 = vcombine.low %v3824_v39, %v3802_v33  ;;  %24371 = vst [vmem:[#allocation10_spill] sm:$0xff] %v20415_v56 }
 0x116   : > { %17316 = vmatpush3.bf16.msra.mxu1 %v18830_v51  ;;  %17293 = vmatprep.subr.bf16.mxu0 %v18831_v15  ;;  %v20401_v51 = vsel %vm262_vm6, 0.0, %v24291_v31  ;;  %v3880_v18 = vrot.slane %v3878_v35, 4  ;;  %vm296_vm9 = vcmp.eq.s32.totalorder %v20413_v17, 47 }
 0x117   : > { %17317 = vmatprep.subr.bf16.mxu1 %v18832_v16  ;;  %17303 = vmatprep.mubr.bf16.mxu0 %v19992_v46  ;;  %v20372_v46 = vpop.f32.mrf.mxu1  ;;  %24369 = vst [vmem:[#allocation8_spill] sm:$0xff] %v20401_v51  ;;  %v3867_v41 = vshrl.u32 %v14424_v28, 16  ;;  %v3870_v37 = vshll.u32 %v14424_v28, 16  ;;  %v3806_v28 = vld [vmem:[#allocation2 + $0x60] sm:$0xf] }
 0x118   : > { %17327 = vmatprep.mubr.bf16.mxu1 %v14388_v0  ;;  %v18835_v0 = vld [vmem:[%s24287_s1 + $0x110] sm:$0xff]  }
 0x119   : > { %17294 = vmatpush3.bf16.msra.mxu0 %v18831_v15  ;;  %v20391_v38 = vpop.f32.mrf.mxu1  ;;  %v14437_v15 = vcombine.low %v3799_v42, %v3800_v40  ;;  %v3872_v31 = vrot.slane %v3870_v37, 4 }
 0x11a   : > { %17318 = vmatpush3.bf16.msra.mxu1 %v18832_v16  ;;  %17295 = vmatprep.subr.bf16.mxu0 %v18833_v60  ;;  %v18840_v16 = vld [vmem:[%s24287_s1 + $0x1c0] sm:$0xff]  }
 0x11b   : > { %17319 = vmatprep.subr.bf16.mxu1 %v18834_v19  ;;  %v20407_v55 = vpop.f32.mrf.mxu1  ;;  %v4037_v39 = vshrl.u32 %v14437_v15, 16  ;;  %v4040_v42 = vshll.u32 %v14437_v15, 16 }
 0x11d   : > { %17296 = vmatpush3.bf16.msra.mxu0 %v18833_v60  ;;  %v20421_v8 = vpop.f32.mrf.mxu1  ;;  %v18844_v60 = vld [vmem:[%s24287_s1 + $0x38] sm:$0xff]   ;;  %v4042_v58 = vrot.slane %v4040_v42, 4 }
 0x11e   : > { %17320 = vmatpush3.bf16.msra.mxu1 %v18834_v19  ;;  %17297 = vmatprep.subr.bf16.mxu0 %v18835_v0  ;;  %v14438_v19 = vcombine.low %v3801_v12, %v3802_v33  ;;  %v20429_v33 = vpop.f32.mrf.mxu0 }
 0x11f   : > { %17321 = vmatprep.subr.bf16.mxu1 %v18836_v62  ;;  %24372 = vst [vmem:[#allocation11_spill] sm:$0xff] %v20429_v33  ;;  %v20431_v4 = vpop.f32.mrf.mxu1 }
 0x120   : > { %v4045_v40 = vshrl.u32 %v14438_v19, 16  ;;  %v4048_v12 = vshll.u32 %v14438_v19, 16  ;;  %v20439_v13 = vpop.f32.mrf.mxu0  ;;  %v3869_v19 = vrot.slane %v3867_v41, 3  ;;  %v18848_v41 = vld [vmem:[%s24287_s1 + $0x28] sm:$0xff]  }
 0x121   : > { %17298 = vmatpush3.bf16.msra.mxu0 %v18835_v0  ;;  %v18843_v0 = vld [vmem:[%s24287_s1 + $0xf8] sm:$0xff]   ;;  %24373 = vst [vmem:[#allocation12_spill] sm:$0xff] %v20439_v13  ;;  %v20441_v53 = vpop.f32.mrf.mxu1 }
 0x122   : > { %17322 = vmatpush3.bf16.msra.mxu1 %v18836_v62  ;;  %17299 = vmatprep.subr.bf16.mxu0 %v18837_v36  ;;  %v3875_v62 = vshrl.u32 %v14425_v26, 16  ;;  %v3805_v26 = vld [vmem:[#allocation2 + $0x5c] sm:$0xf]  ;;  %v4050_v35 = vrot.slane %v4048_v12, 4  ;;  %v3873_v37 = vor.u32 %v3872_v31, %v3869_v19  ;;  %v20502_v19 = vld [vmem:[#allocation2 + $0x6c] sm:$0xf] }
 0x123   : > { %17323 = vmatprep.subr.bf16.mxu1 %v18838_v5  ;;  %v14426_v47 = vcombine.low %v3805_v26, %v3806_v28  ;;  %v18853_v31 = vld [vmem:[%s24287_s1 + $0x18] sm:$0xff]   ;;  %24384 = vst [vmem:[#allocation18_spill] sm:$0xff] %v20502_v19 }
 0x124   : > { %v3877_v15 = vrot.slane %v3875_v62, 3  ;;  %v4047_v62 = vrot.slane %v4045_v40, 3 }
 0x125   : > { %17300 = vmatpush3.bf16.msra.mxu0 %v18837_v36  ;;  %v18845_v36 = vld [vmem:[%s24287_s1 + $0xf0] sm:$0xff]   ;;  %v3884_v45 = vshrl.u32 %v14426_v47, 16  ;;  %v3887_v42 = vshll.u32 %v14426_v47, 16 }
 0x126   : > { %17324 = vmatpush3.bf16.msra.mxu1 %v18838_v5  ;;  %17301 = vmatprep.subr.bf16.mxu0 %v18839_v7  ;;  %v18846_v5 = vld [vmem:[%s24287_s1 + $0x30] sm:$0xff]   ;;  %v20476_v26 = vor.u32 %v4050_v35, %v4047_v62 }
 0x127   : > { %17325 = vmatprep.subr.bf16.mxu1 %v18840_v16 }
 0x129   : > { %17302 = vmatpush3.bf16.msra.mxu0 %v18839_v7  ;;  %v18847_v7 = vld [vmem:[%s24287_s1 + $0xe8] sm:$0xff]  }
 0x12a   : > { %17326 = vmatpush3.bf16.msra.mxu1 %v18840_v16  ;;  %17335 = vmatprep.subr.bf16.mxu0 %v18843_v0  ;;  %v4039_v16 = vrot.slane %v4037_v39, 3  ;;  %v20469_v39 = vor.u32 %v3880_v18, %v3877_v15  ;;  %v24380_v18 = vcombine.low %v20107_v10, %v20109_v11  ;;  %v18852_v10 = vld [vmem:[%s24287_s1 + $0xd8] sm:$0xff]  }
 0x12b   : > { %17359 = vmatprep.subr.bf16.mxu1 %v18844_v60 }
 0x12c   : > { %17304 = vmatmul.mubr.bf16.vlgmr.msra.gmra.mxu0 %v19999_v24  ;;  %v20461_v24 = vpop.f32.mrf.mxu1  ;;  %v4043_v12 = vor.u32 %v4042_v58, %v4039_v16  ;;  %v3882_v47 = vsel %vm491_vm0, %v3873_v37, %v20469_v39  ;;  %v20488_v58 = vld [vmem:[#allocation2 + $0x68] sm:$0xf]  ;;  %v3807_v16 = vld [vmem:[#allocation2 + $0x64] sm:$0xf] }
 0x12d   : > { %17328 = vmatmul.mubr.bf16.vlgmr.msra.gmra.mxu1 %v24374_v32  ;;  %17336 = vmatpush3.bf16.msra.mxu0 %v18843_v0  ;;  %v20458_v32 = vpop.f32.mrf.mxu0  ;;  %v18851_v0 = vld [vmem:[%s24287_s1 + $0x20] sm:$0xff]   ;;  %24381 = vst [vmem:[#allocation16_spill] sm:$0xff] %v20488_v58  ;;  %v14427_v37 = vcombine.low %v3807_v16, %v20488_v58  ;;  %v14439_v58 = vcombine.low %v3807_v16, %v3807_v16  ;;  %v20543_v16 = vsel %vm296_vm9, 0.0, %v24375_v9 }
 0x12e   : > { %17360 = vmatpush3.bf16.msra.mxu1 %v18844_v60  ;;  %24377 = vst [vmem:[#allocation14_spill] sm:$0xff] %v20458_v32  ;;  %17337 = vmatprep.subr.bf16.mxu0 %v18845_v36  ;;  %v24378_v60 = vcombine.low %v20099_v30, %v20101_v2  ;;  %v20478_v30 = vpop.f32.mrf.mxu1  ;;  %v4179_v2 = vld [vmem:[#allocation2 + $0x54] sm:$0x8]  ;;  %v4052_v11 = vsel %vm491_vm0, %v4043_v12, %v20476_v26  ;;  %v3889_v12 = vrot.slane %v3887_v42, 4  ;;  %24388 = vst [vmem:[#allocation22_spill] sm:$0xff] %v20543_v16 }
 0x12f   : > { %17361 = vmatprep.subr.bf16.mxu1 %v18846_v5  ;;  %17307 = vmatprep.mubr.bf16.mxu0 %v20008_v25  ;;  %v20471_v40 = vpop.f32.mrf.mxu0  ;;  %v18850_v25 = vld [vmem:[%s24287_s1 + $0xe0] sm:$0xff]   ;;  %24379 = vst [vmem:[#allocation15_spill] sm:$0xff] %v20478_v30 }
 0x130   : > { %17331 = vmatprep.mubr.bf16.mxu1 %v24378_v60  ;;  %v20500_v15 = vpop.f32.mrf.mxu1  ;;  %v3886_v60 = vrot.slane %v3884_v45, 3  ;;  %v18856_v45 = vld [vmem:[%s24287_s1 + $0xc8] sm:$0xff]  }
 0x131   : > { %17338 = vmatpush3.bf16.msra.mxu0 %v18845_v36  ;;  %v20490_v28 = vpop.f32.mrf.mxu0  ;;  %v24382_v36 = vcombine.low %v20016_v52, %v20018_v22  ;;  %24383 = vst [vmem:[#allocation17_spill] sm:$0xff] %v20500_v15  ;;  %v3893_v52 = vshrl.u32 %v14427_v37, 16  ;;  %v20557_v15 = vld [vmem:[#allocation2 + $0x58] sm:$0xff]  }
 0x132   : > { %17362 = vmatpush3.bf16.msra.mxu1 %v18846_v5  ;;  %17339 = vmatprep.subr.bf16.mxu0 %v18847_v7  ;;  %v4180_v5 = vld [vmem:[#allocation2 + $0x58] sm:$0xf]  ;;  %v20512_v35 = vpop.f32.mrf.mxu1  ;;  %v3890_v33 = vor.u32 %v3889_v12, %v3886_v60  ;;  %v4053_v60 = vsel %vm491_vm0, %v20476_v26, %v20469_v39  ;;  %v18867_v12 = vld [vmem:[%s24287_s1 + $0x1b0] sm:$0xff]   ;;  %v18870_v26 = vld [vmem:[%s24287_s1 + $0x168] sm:$0xff]  }
 0x133   : > { %17363 = vmatprep.subr.bf16.mxu1 %v18848_v41  ;;  %v14464_v62 = vcombine.low %v4179_v2, %v4180_v5  ;;  %v20507_v22 = vpop.f32.mrf.mxu0  ;;  %24385 = vst [vmem:[#allocation19_spill] sm:$0xff] %v20512_v35  ;;  %v4181_v2 = vld [vmem:[#allocation2 + $0x5c] sm:$0xf] }
 0x134   : > { %17308 = vmatmul.mubr.bf16.gmra.mxu0 %v24382_v36  ;;  %v386_v36 = vld [vmem:[%s19659_s16 + $0x6c] sm:$0xff]   ;;  %v20529_v42 = vpop.f32.mrf.mxu1 }
 0x135   : > { %17332 = vmatmul.mubr.bf16.gmra.mxu1 %v24380_v18  ;;  %17340 = vmatpush3.bf16.msra.mxu0 %v18847_v7  ;;  %v18854_v7 = vld [vmem:[%s24287_s1 + $0xd0] sm:$0xff]   ;;  %v4182_v18 = vld [vmem:[#allocation2 + $0x60] sm:$0xf]  ;;  %v4231_v5 = vshll.u32 %v14464_v62, 16  ;;  %418 = vst [vmem:[#allocation2 + $0x7c] sm:$0xff] %v386_v36   ;;  %24386 = vst [vmem:[#allocation20_spill] sm:$0xff] %v20529_v42 }
 0x136   : > { %17364 = vmatpush3.bf16.msra.mxu1 %v18848_v41  ;;  %17341 = vmatprep.subr.bf16.mxu0 %v18850_v25  ;;  %v18855_v41 = vld [vmem:[%s24287_s1 + $0x10] sm:$0xff]   ;;  %v14465_v13 = vcombine.low %v4181_v2, %v4182_v18  ;;  %v3895_v42 = vrot.slane %v3893_v52, 3 }
 0x137   : > { %17365 = vmatprep.subr.bf16.mxu1 %v18851_v0  ;;  %17351 = vmatprep.mubr.bf16.mxu0 %v3882_v47  ;;  %v4228_v47 = vshrl.u32 %v14464_v62, 16  ;;  %v20531_v62 = vpop.f32.mrf.mxu1  ;;  %v20538_v36 = vld [vmem:[#allocation2 + $0x50] sm:$0xff]   ;;  %v20550_v18 = vrot.slane %v4231_v5, 4 }
 0x138   : > { %17375 = vmatprep.mubr.bf16.mxu1 %v4052_v11  ;;  %v20524_v11 = vpop.f32.mrf.mxu0  ;;  %v4236_v9 = vshrl.u32 %v14465_v13, 16  ;;  %v4239_v16 = vshll.u32 %v14465_v13, 16  ;;  %v4472_v35 = vshrl.u32 %v20538_v36, 16 }
 0x139   : > { %17342 = vmatpush3.bf16.msra.mxu0 %v18850_v25  ;;  %v18857_v25 = vld [vmem:[%s24287_s1 + $0x8] sm:$0xff]   ;;  %v20548_v2 = vrot.slane %v4228_v47, 3 }
 0x13a   : > { %17366 = vmatpush3.bf16.msra.mxu1 %v18851_v0  ;;  %17343 = vmatprep.subr.bf16.mxu0 %v18852_v10  ;;  %v14428_v0 = vcombine.low %v20502_v19, %v20502_v19  ;;  %v3896_v19 = vshll.u32 %v14427_v37, 16  ;;  %v20536_v21 = vpop.f32.mrf.mxu0  ;;  %v18858_v37 = vld [vmem:[%s24287_s1 + $0xc0] sm:$0xff]   ;;  %v4238_v30 = vrot.slane %v4236_v9, 3 }
 0x13b   : > { %17367 = vmatprep.subr.bf16.mxu1 %v18853_v31  ;;  %24387 = vst [vmem:[#allocation21_spill] sm:$0xff] %v20536_v21 }
 0x13c   : > { %v3902_v32 = vshrl.u32 %v14428_v0, 16  ;;  %v3905_v43 = vshll.u32 %v14428_v0, 16  ;;  %v4058_v0 = vshll.u32 %v14439_v58, 16  ;;  %v3898_v17 = vrot.slane %v3896_v19, 4  ;;  %v20559_v51 = vpop.f32.mrf.mxu0 }
 0x13d   : > { %17344 = vmatpush3.bf16.msra.mxu0 %v18852_v10  ;;  %v4055_v10 = vshrl.u32 %v14439_v58, 16  ;;  %24390 = vst [vmem:[#allocation24_spill] sm:$0xff] %v20559_v51  ;;  %v18865_v58 = vld [vmem:[%s24287_s1 + $0x1b8] sm:$0xff]   ;;  %v4474_v19 = vshll.u32 %v20538_v36, 16  ;;  %v4183_v51 = vld [vmem:[#allocation2 + $0x64] sm:$0xf] }
 0x13e   : > { %17368 = vmatpush3.bf16.msra.mxu1 %v18853_v31  ;;  %17345 = vmatprep.subr.bf16.mxu0 %v18854_v7  ;;  %v18859_v31 = vld [vmem:[%s24287_s1] sm:$0xff]   ;;  %v20564_v47 = vrot.slane %v3902_v32, 3  ;;  %v20566_v5 = vrot.slane %v3905_v43, 4  ;;  %v4060_v13 = vrot.slane %v4058_v0, 4  ;;  %v18868_v32 = vld [vmem:[%s24287_s1 + $0x170] sm:$0xff]   ;;  %v3899_v43 = vor.u32 %v3898_v17, %v3895_v42  ;;  %v20575_v56 = vpop.f32.mrf.mxu0 }
 0x13f   : > { %17369 = vmatprep.subr.bf16.mxu1 %v18855_v41  ;;  %v4057_v52 = vrot.slane %v4055_v10, 3  ;;  %24391 = vst [vmem:[#allocation25_spill] sm:$0xff] %v20575_v56  ;;  %v5481_v10 = vld [vmem:[#allocation2 + $0x70] sm:$0xf]  ;;  %v5482_v36 = vld [vmem:[#allocation2 + $0x74] sm:$0xf]  ;;  %v3891_v0 = vsel %vm491_vm0, %v20469_v39, %v3890_v33 }
 0x140   : > { %v20585_v42 = vrot.slane %v4474_v19, 1  ;;  %v4185_v56 = vld [vmem:[#allocation2 + $0x6c] sm:$0xf]  ;;  %v4186_v39 = vld [vmem:[#allocation2 + $0x70] sm:$0xf] }
 0x141   : > { %17346 = vmatpush3.bf16.msra.mxu0 %v18854_v7  ;;  %v20552_v7 = vpop.f32.mrf.mxu1  ;;  %v18869_v19 = vld [vmem:[%s24287_s1 + $0x1a8] sm:$0xff]  }
 0x142   : > { %17370 = vmatpush3.bf16.msra.mxu1 %v18855_v41  ;;  %17347 = vmatprep.subr.bf16.mxu0 %v18856_v45  ;;  %24389 = vst [vmem:[#allocation23_spill] sm:$0xff] %v20552_v7  ;;  %v18866_v41 = vld [vmem:[%s24287_s1 + $0x178] sm:$0xff]   ;;  %24392 = vst [vmem:[#allocation26_spill] sm:$0xff] %v20585_v42  ;;  %v20596_v7 = vpop.f32.mrf.mxu0 }
 0x143   : > { %17371 = vmatprep.subr.bf16.mxu1 %v18857_v25  ;;  %v20570_v21 = vpop.f32.mrf.mxu1 }
 0x145   : > { %17348 = vmatpush3.bf16.msra.mxu0 %v18856_v45  ;;  %v4241_v45 = vrot.slane %v4239_v16, 4  ;;  %v4479_v16 = vshll.u32 %v20557_v15, 16  ;;  %v20590_v17 = vpop.f32.mrf.mxu1 }
 0x146   : > { %17372 = vmatpush3.bf16.msra.mxu1 %v18857_v25  ;;  %17349 = vmatprep.subr.bf16.mxu0 %v18858_v37  ;;  %v4184_v25 = vld [vmem:[#allocation2 + $0x68] sm:$0xf] }
 0x147   : > { %17373 = vmatprep.subr.bf16.mxu1 %v18859_v31  ;;  %v14466_v9 = vcombine.low %v4183_v51, %v4184_v25  ;;  %v20609_v25 = vor.u32 %v4241_v45, %v4238_v30  ;;  %v390_v45 = vld [vmem:[%s19659_s16 + $0x7c] sm:$0xf] }
 0x148   : > { %422 = vst [vmem:[#allocation2 + $0x8c] sm:$0xf] %v390_v45 }
 0x149   : > { %17350 = vmatpush3.bf16.msra.mxu0 %v18858_v37  ;;  %v3900_v37 = vsel %vm491_vm0, %v3890_v33, %v3899_v43 }
 0x14a   : > { %17374 = vmatpush3.bf16.msra.mxu1 %v18859_v31  ;;  %v20588_v31 = vcombine.low %v5481_v10, %v5482_v36  ;;  %17383 = vmatprep.subr.bf16.mxu0 %v18865_v58  ;;  %v4061_v10 = vor.u32 %v4060_v13, %v4057_v52  ;;  %v20601_v36 = vpop.f32.mrf.mxu1  ;;  %v18872_v52 = vld [vmem:[%s24287_s1 + $0x160] sm:$0xff]  }
 0x14b   : > { %17407 = vmatprep.subr.bf16.mxu1 %v18866_v41  ;;  %24394 = vst [vmem:[#allocation28_spill] sm:$0xff] %v20601_v36  ;;  %v388_v36 = vld [vmem:[%s19659_s16 + $0x74] sm:$0xff]  }
 0x14c   : > { %24393 = vst [vmem:[#allocation27_spill] sm:$0xff] %v20588_v31  ;;  %17352 = vmatmul.mubr.bf16.vlgmr.msra.gmra.mxu0 %v3891_v0  ;;  %v20605_v51 = vpop.f32.mrf.mxu0  ;;  %v4187_v31 = vld [vmem:[#allocation2 + $0x74] sm:$0xf]  ;;  %v4062_v30 = vsel %vm491_vm0, %v3890_v33, %v4061_v10  ;;  %420 = vst [vmem:[#allocation2 + $0x84] sm:$0xff] %v388_v36   ;;  %v18874_v33 = vld [vmem:[%s24287_s1 + $0x158] sm:$0xff]  }
 0x14d   : > { %17376 = vmatmul.mubr.bf16.vlgmr.msra.gmra.mxu1 %v4053_v60  ;;  %17384 = vmatpush3.bf16.msra.mxu0 %v18865_v58  ;;  %v3908_v60 = vor.u32 %v20566_v5, %v20564_v47  ;;  %v20614_v58 = vrot.slane %v4479_v16, 1  ;;  %v4245_v47 = vshrl.u32 %v14466_v9, 16  ;;  %v14467_v5 = vcombine.low %v4185_v56, %v4186_v39  ;;  %v20627_v56 = vld [vmem:[#allocation2 + $0x60] sm:$0xff]   ;;  %v20636_v10 = vld [vmem:[#allocation2 + $0x68] sm:$0xff]  }
 0x14e   : > { %17408 = vmatpush3.bf16.msra.mxu1 %v18866_v41  ;;  %17385 = vmatprep.subr.bf16.mxu0 %v18867_v12  ;;  %v4234_v41 = vor.u32 %v20550_v18, %v20548_v2  ;;  %v18871_v2 = vld [vmem:[%s24287_s1 + $0x1a0] sm:$0xff]   ;;  %v4477_v18 = vor.u32 %v20585_v42, %v4472_v35  ;;  %v4495_v13 = vshll.u32 %v20636_v10, 16 }
 0x14f   : > { %17409 = vmatprep.subr.bf16.mxu1 %v18868_v32  ;;  %17355 = vmatprep.mubr.bf16.mxu0 %v3900_v37  ;;  %v3909_v16 = vsel %vm491_vm0, %v3899_v43, %v3908_v60  ;;  %v4248_v37 = vshll.u32 %v14466_v9, 16  ;;  %v4254_v39 = vshrl.u32 %v14467_v5, 16  ;;  %v18873_v43 = vld [vmem:[%s24287_s1 + $0x198] sm:$0xff]   ;;  %v14468_v60 = vcombine.low %v4187_v31, %v4187_v31  ;;  %v18878_v31 = vld [vmem:[%s24287_s1 + $0x190] sm:$0xff]  }
 0x150   : > { %17379 = vmatprep.mubr.bf16.mxu1 %v3891_v0  ;;  %v20624_v0 = vpop.f32.mrf.mxu1  ;;  %v4243_v35 = vsel %vm491_vm0, %v4234_v41, %v20609_v25  ;;  %v20643_v36 = vsel %vm1100_vm1, %v4477_v18, %v20614_v58  ;;  %v4247_v41 = vrot.slane %v4245_v47, 3  ;;  %v4487_v18 = vshll.u32 %v20627_v56, 16 }
 0x151   : > { %17386 = vmatpush3.bf16.msra.mxu0 %v18867_v12  ;;  %v4257_v12 = vshll.u32 %v14467_v5, 16  ;;  %v4250_v5 = vrot.slane %v4248_v37, 4  ;;  %v4256_v45 = vrot.slane %v4254_v39, 3  ;;  %v783_v47 = vadd.f32 %v20297_v34, %v20255_v57 }
 0x152   : > { %17410 = vmatpush3.bf16.msra.mxu1 %v18868_v32  ;;  %v20629_v32 = vpop.f32.mrf.mxu0  ;;  %17387 = vmatprep.subr.bf16.mxu0 %v18869_v19  ;;  %v786_v37 = vadd.f32 %v20323_v6, %v20274_v27  ;;  %v4266_v34 = vshll.u32 %v14468_v60, 16  ;;  %v18880_v27 = vld [vmem:[%s24287_s1 + $0x188] sm:$0xff]  }
 0x153   : > { %17411 = vmatprep.subr.bf16.mxu1 %v18870_v26  ;;  %v4251_v6 = vor.u32 %v4250_v5, %v4247_v41  ;;  %v20723_v41 = vadd.f32 %v20407_v55, %v20326_v54  ;;  %v18883_v54 = vld [vmem:[%s24287_s1 + $0x140] sm:$0xff]  }
 0x154   : > { %17356 = vmatmul.mubr.bf16.gmra.mxu0 %v3909_v16  ;;  %v20647_v9 = vpop.f32.mrf.mxu0  ;;  %v4263_v16 = vshrl.u32 %v14468_v60, 16  ;;  %v24410_v55 = vld [vmem:[#allocation28_spill] sm:$0xff] }
 0x155   : > { %17380 = vmatmul.mubr.bf16.gmra.mxu1 %v4062_v30  ;;  %v20645_v30 = vpop.f32.mrf.mxu1  ;;  %17388 = vmatpush3.bf16.msra.mxu0 %v18869_v19  ;;  %v4259_v19 = vrot.slane %v4257_v12, 4  ;;  %v791_v12 = vadd.f32 %v20372_v46, %v20301_v49  ;;  %v1017_v49 = vadd.f32 %v20333_v23, %v783_v47  ;;  %v1371_v46 = vadd.f32 %v20507_v22, %v20441_v53 }
 0x156   : > { %17412 = vmatpush3.bf16.msra.mxu1 %v18870_v26  ;;  %17389 = vmatprep.subr.bf16.mxu0 %v18871_v2  ;;  %v18879_v26 = vld [vmem:[%s24287_s1 + $0x150] sm:$0xff]   ;;  %v20667_v39 = vpop.f32.mrf.mxu0  ;;  %v4497_v53 = vrot.slane %v4495_v13, 1  ;;  %v1360_v22 = vadd.f32 %v20490_v28, %v20431_v4  ;;  %v20727_v13 = vsel %vm491_vm0, %v20609_v25, %v4251_v6 }
 0x157   : > { %17413 = vmatprep.subr.bf16.mxu1 %v18872_v52  ;;  %17399 = vmatprep.mubr.bf16.mxu0 %v4243_v35  ;;  %v4491_v35 = vshrl.u32 %v20627_v56, 16  ;;  %v20659_v42 = vpop.f32.mrf.mxu1  ;;  %v20671_v56 = vadd.f32 %v20338_v59, %v20283_v14  ;;  %v24395_v14 = vshrl.u32 %v20557_v15, 16  ;;  %v4489_v59 = vrot.slane %v4487_v18, 1 }
 0x158   : > { %17423 = vmatprep.mubr.bf16.mxu1 %v20643_v36  ;;  %v4499_v15 = vshrl.u32 %v20636_v10, 16  ;;  %v20703_v60 = vpop.f32.mrf.mxu0  ;;  %v1363_v10 = vadd.f32 %v20524_v11, %v20461_v24  ;;  %v1025_v28 = vmul.f32 %v1017_v49, %v20358_v44  ;;  %v1595_v5 = vadd.f32 %v20570_v21, %v1371_v46  ;;  %v24402_v46 = vld [vmem:[#allocation11_spill] sm:$0xff] }
 0x159   : > { %17390 = vmatpush3.bf16.msra.mxu0 %v18871_v2  ;;  %v799_v2 = vadd.f32 %v20344_v61, %v20289_v50  ;;  %v20677_v57 = vpop.f32.mrf.mxu1  ;;  %v20687_v50 = vor.u32 %v4259_v19, %v4256_v45  ;;  %v1368_v61 = vadd.f32 %v20471_v40, %v20421_v8  ;;  %v20705_v8 = vor.u32 %v4491_v35, %v4489_v59  ;;  %v20707_v40 = vld [vmem:[#allocation2 + $0x48] sm:$0xff]  }
 0x15a   : > { %17414 = vmatpush3.bf16.msra.mxu1 %v18872_v52  ;;  %v775_v52 = vadd.f32 %v20310_v48, %v20266_v20  ;;  %17391 = vmatprep.subr.bf16.mxu0 %v18873_v43  ;;  %v20679_v20 = vld [vmem:[#allocation2 + $0x70] ss:$0 sps:$4 sm:$0x11]   ;;  %v4485_v48 = vor.u32 %v24395_v14, %v20614_v58  ;;  %v20700_v58 = vadd.f32 %v20391_v38, %v20314_v3  ;;  %v20715_v3 = vrot.slane %v4263_v16, 3  ;;  %v20745_v18 = vpop.f32.mrf.mxu0  ;;  %v24399_v14 = vld [vmem:[#allocation21_spill] sm:$0xff] }
 0x15b   : > { %17415 = vmatprep.subr.bf16.mxu1 %v18874_v33  ;;  %v20717_v38 = vrot.slane %v4266_v34, 4  ;;  %v20734_v24 = vsel %vm491_vm0, %v4251_v6, %v20687_v50  ;;  %v1594_v11 = vadd.f32 %v20531_v62, %v1368_v61  ;;  %v18882_v62 = vld [vmem:[%s24287_s1 + $0x180] sm:$0xff]   ;;  %v20752_v21 = vsel %vm1100_vm1, %v20705_v8, %v4497_v53  ;;  %v24398_v34 = vld [vmem:[#allocation15_spill] sm:$0xff] }
 0x15c   : > { %v1015_v23 = vadd.f32 %v20350_v29, %v775_v52  ;;  %v20719_v29 = vld [vmem:[#allocation2 + $0x58] sm:$0xff]   ;;  %v20730_v4 = vsel %vm1100_vm1, %v4485_v48, %v4489_v59  ;;  %v4635_v45 = vshll.u32 %v20707_v40, 16  ;;  %v1593_v16 = vadd.f32 %v20590_v17, %v1363_v10  ;;  %v24397_v52 = vld [vmem:[#allocation10_spill] sm:$0xff]  ;;  %v24401_v59 = vld [vmem:[#allocation25_spill] sm:$0xff] }
 0x15d   : > { %17392 = vmatpush3.bf16.msra.mxu0 %v18873_v43  ;;  %v20713_v43 = vpop.f32.mrf.mxu1  ;;  %v4811_v47 = vshll.u32 %v20719_v29, 16  ;;  %v1384_v48 = vadd.f32 %v24399_v14, %v24398_v34  ;;  %v24400_v6 = vld [vmem:[#allocation19_spill] sm:$0xff]  ;;  %v20767_v61 = vor.u32 %v4499_v15, %v4497_v53  ;;  %v1019_v17 = vadd.f32 %v24402_v46, %v791_v12  ;;  %v24404_v34 = vld [vmem:[#allocation17_spill] sm:$0xff]  ;;  %v24405_v14 = vld [vmem:[#allocation24_spill] sm:$0xff]  ;;  %v20781_v12 = vpop.f32.mrf.mxu0 }
 0x15e   : > { %17416 = vmatpush3.bf16.msra.mxu1 %v18874_v33  ;;  %v18881_v33 = vld [vmem:[%s24287_s1 + $0x148] sm:$0xff]   ;;  %17393 = vmatprep.subr.bf16.mxu0 %v18878_v31  ;;  %v1023_v25 = vmul.f32 %v1015_v23, %v20366_v1  ;;  %v1387_v49 = vadd.f32 %v24401_v59, %v24400_v6  ;;  %v24403_v23 = vld [vmem:[#allocation8_spill] sm:$0xff]  ;;  %v1610_v10 = vadd.f32 %v1594_v11, %v1025_v28  ;;  %v4637_v28 = vrot.slane %v4635_v45, 1 }
 0x15f   : > { %17417 = vmatprep.subr.bf16.mxu1 %v18879_v26  ;;  %v20757_v35 = vpop.f32.mrf.mxu1  ;;  %v24406_v15 = vld [vmem:[#allocation20_spill] sm:$0xff]  ;;  %v4809_v11 = vshrl.u32 %v20719_v29, 16 }
 0x160   : > { %v1379_v53 = vadd.f32 %v20596_v7, %v24406_v15  ;;  %v1756_v6 = vadd.f32 %v20605_v51, %v1610_v10  ;;  %v24408_v7 = vld [vmem:[#allocation6_spill] sm:$0xff]  ;;  %v24409_v15 = vld [vmem:[#allocation5_spill] sm:$0xff]  ;;  %v1599_v1 = vadd.f32 %v20645_v30, %v1387_v49  ;;  %v20796_v45 = vld [vmem:[#allocation2 + $0x80] sm:$0xf] }
 0x161   : > { %17394 = vmatpush3.bf16.msra.mxu0 %v18878_v31  ;;  %v24396_v31 = vld [vmem:[#allocation23_spill] sm:$0xff]  ;;  %v20789_v46 = vpop.f32.mrf.mxu1  ;;  %v20798_v29 = vld [vmem:[#allocation2 + $0x84] sm:$0xf] }
 0x162   : > { %17418 = vmatpush3.bf16.msra.mxu1 %v18879_v26  ;;  %v1018_v26 = vadd.f32 %v20377_v63, %v786_v37  ;;  %17395 = vmatprep.subr.bf16.mxu0 %v18880_v27  ;;  %v1592_v19 = vadd.f32 %v24396_v31, %v1360_v22  ;;  %v1021_v37 = vadd.f32 %v24397_v52, %v799_v2  ;;  %v18891_v2 = vld [vmem:[%s24287_s1 + $0x238] sm:$0xff]   ;;  %v4633_v31 = vshrl.u32 %v20707_v40, 16  ;;  %v20775_v52 = vld [vmem:[#allocation2 + $0x60] sm:$0xff]  }
 0x163   : > { %17419 = vmatprep.subr.bf16.mxu1 %v18881_v33  ;;  %v1603_v22 = vmul.f32 %v1595_v5, %v24403_v23  ;;  %v24407_v5 = vld [vmem:[#allocation9_spill] sm:$0xff]  ;;  %v1598_v23 = vadd.f32 %v24410_v55, %v1384_v48  ;;  %24411 = vst [vmem:[#allocation23_spill] sm:$0xff] %v20796_v45  ;;  %24412 = vst [vmem:[#allocation10_spill] sm:$0xff] %v20798_v29  ;;  %v18892_v48 = vld [vmem:[%s24287_s1 + $0xb0] sm:$0xff]   ;;  %v1896_v49 = vadd.f32 %v20677_v57, %v1756_v6 }
 0x164   : > { %v1601_v40 = vmul.f32 %v1593_v16, %v24407_v5  ;;  %v1608_v59 = vadd.f32 %v1592_v19, %v1023_v25  ;;  %v1029_v63 = vmul.f32 %v1021_v37, %v24409_v15  ;;  %v17093_v19 = vpop.f32.mrf.mxu1  ;;  %v4816_v16 = vshll.u32 %v20775_v52, 16 }
 0x165   : > { %17396 = vmatpush3.bf16.msra.mxu0 %v18880_v27  ;;  %v18890_v27 = vld [vmem:[%s24287_s1 + $0xb8] sm:$0xff]   ;;  %v1611_v25 = vadd.f32 %v1603_v22, %v1018_v26  ;;  %v1597_v26 = vadd.f32 %v20659_v42, %v1379_v53  ;;  %v20824_v42 = vld [vmem:[%s24289_s3] ss:$0 sm:$0xff]  ;;  %v24416_v57 = vshll.u32 %v20679_v20, 16  ;;  %v24417_v20 = vld [vmem:[#allocation22_spill] sm:$0xff] }
 0x166   : > { %17420 = vmatpush3.bf16.msra.mxu1 %v18881_v33  ;;  %v1376_v33 = vadd.f32 %v24405_v14, %v24404_v34  ;;  %17397 = vmatprep.subr.bf16.mxu0 %v18882_v62  ;;  %v4813_v34 = vrot.slane %v4811_v47, 1  ;;  %v1016_v14 = vadd.f32 %v24408_v7, %v20671_v56  ;;  %v1754_v51 = vadd.f32 %v20629_v32, %v1608_v59  ;;  %v18893_v56 = vld [vmem:[%s24287_s1 + $0x230] sm:$0xff]   ;;  %v24414_v47 = vld [vmem:[#allocation12_spill] sm:$0xff] }
 0x167   : > { %17421 = vmatprep.subr.bf16.mxu1 %v18883_v54  ;;  %v1022_v37 = vadd.f32 %v24414_v47, %v20700_v58  ;;  %v1757_v22 = vadd.f32 %v20647_v9, %v1611_v25  ;;  %v24415_v58 = vld [vmem:[#allocation13_spill] sm:$0xff]  ;;  %v4505_v53 = vrot.slane %v24416_v57, 1  ;;  %v24418_v7 = vor.u32 %v20717_v38, %v20715_v3 }
 0x168   : > { %v1596_v32 = vadd.f32 %v20624_v0, %v1376_v33  ;;  %v1609_v10 = vadd.f32 %v1601_v40, %v1016_v14  ;;  %v1607_v59 = vmul.f32 %v1599_v1, %v24415_v58  ;;  %v1614_v0 = vadd.f32 %v1598_v23, %v1029_v63  ;;  %v18896_v63 = vld [vmem:[%s24287_s1 + $0xa8] sm:$0xff]  }
 0x169   : > { %17398 = vmatpush3.bf16.msra.mxu0 %v18882_v62  ;;  %v20812_v62 = vpop.f32.mrf.mxu0  ;;  %v4814_v9 = vor.u32 %v4813_v34, %v4809_v11  ;;  %v1894_v40 = vadd.f32 %v20713_v43, %v1754_v51  ;;  %v20837_v23 = vrot.slane %v4816_v16, 1  ;;  %v4270_v14 = vsel %vm491_vm0, %v20687_v50, %v24418_v7 }
 0x16a   : > { %17422 = vmatpush3.bf16.msra.mxu1 %v18883_v54  ;;  %v24413_v54 = vld [vmem:[#allocation7_spill] sm:$0xff]  ;;  %17431 = vmatprep.subr.bf16.mxu0 %v18890_v27  ;;  %v1760_v43 = vadd.f32 %v20703_v60, %v1614_v0  ;;  %v24419_v60 = vld [vmem:[#allocation14_spill] sm:$0xff]  ;;  %v1615_v16 = vadd.f32 %v1607_v59, %v1022_v37  ;;  %v4506_v3 = vsel %vm1100_vm1, %v20767_v61, %v4505_v53  ;;  %v18898_v61 = vld [vmem:[%s24287_s1 + $0xa0] sm:$0xff]  }
 0x16b   : > { %17455 = vmatprep.subr.bf16.mxu1 %v18891_v2  ;;  %v1027_v55 = vmul.f32 %v1019_v17, %v24413_v54  ;;  %v4638_v17 = vor.u32 %v4637_v28, %v4633_v31  ;;  %v1755_v31 = vadd.f32 %v20667_v39, %v1609_v10  ;;  %v1879_v28 = vpop.f32.mrf.mxu1  ;;  %v1020_v51 = vadd.f32 %v24419_v60, %v20723_v41  ;;  %v18899_v41 = vld [vmem:[%s24287_s1 + $0x220] sm:$0xff]   ;;  %v18901_v53 = vld [vmem:[%s24287_s1 + $0x218] sm:$0xff]  }
 0x16c   : > { %v17113_v33 = vpop.f32.mrf.mxu0  ;;  %17400 = vmatmul.mubr.bf16.vlgmr.msra.gmra.mxu0 %v20727_v13  ;;  %v18897_v13 = vld [vmem:[%s24287_s1 + $0x228] sm:$0xff]  }
 0x16d   : > { %17424 = vmatmul.mubr.bf16.vlgmr.msra.gmra.mxu1 %v20730_v4  ;;  %v2042_v1 = vadd.f32 %v17113_v33, %v1896_v49  ;;  %17432 = vmatpush3.bf16.msra.mxu0 %v18890_v27  ;;  %v1612_v11 = vadd.f32 %v1596_v32, %v1027_v55  ;;  %v1897_v27 = vadd.f32 %v20757_v35, %v1757_v22  ;;  %v17094_v38 = vpop.f32.mrf.mxu1 }
 0x16e   : > { %17456 = vmatpush3.bf16.msra.mxu1 %v18891_v2  ;;  %v1605_v2 = vmul.f32 %v1597_v26, %v24417_v20  ;;  %v2009_v39 = vpop.f32.mrf.mxu0  ;;  %17433 = vmatprep.subr.bf16.mxu0 %v18892_v48  ;;  %v1895_v50 = vadd.f32 %v20789_v46, %v1755_v31  ;;  %v4819_v32 = vsel %vm1100_vm1, %v4814_v9, %v20837_v23  ;;  %v18948_v20 = vld [vmem:[%s24287_s1 + $0xc8] sm:$0xff]  }
 0x16f   : > { %17457 = vmatprep.subr.bf16.mxu1 %v18893_v56  ;;  %17403 = vmatprep.mubr.bf16.mxu0 %v20734_v24  ;;  %v2054_v6 = vmul.f32 %v20824_v42, %v2042_v1  ;;  %v2040_v34 = vadd.f32 %v2009_v39, %v1894_v40  ;;  %v1758_v25 = vadd.f32 %v20745_v18, %v1612_v11  ;;  %v20856_v24 = vld [vmem:[%s24289_s3 + $0x1] ss:$0 sm:$0xff]  ;;  %v18903_v39 = vld [vmem:[%s24287_s1 + $0x90] sm:$0xff]  }
 0x170   : > { %17427 = vmatprep.mubr.bf16.mxu1 %v20752_v21  ;;  %v17114_v35 = vpop.f32.mrf.mxu0  ;;  %v1900_v18 = vadd.f32 %v17093_v19, %v1760_v43  ;;  %v1613_v47 = vadd.f32 %v1605_v2, %v1020_v51  ;;  %v1761_v26 = vadd.f32 %v20781_v12, %v1615_v16  ;;  %v18913_v16 = vld [vmem:[#allocation2 + $0x68] sm:$0xff]  }
 0x171   : > { %v2052_v21 = vmul.f32 %v20824_v42, %v2040_v34  ;;  %v2043_v55 = vadd.f32 %v17114_v35, %v1897_v27  ;;  %17434 = vmatpush3.bf16.msra.mxu0 %v18892_v48  ;;  %v2066_v48 = vadd.f32 %v20856_v24, %v2054_v6  ;;  %v1898_v22 = vadd.f32 %v1879_v28, %v1758_v25 }
 0x172   : > { %17458 = vmatpush3.bf16.msra.mxu1 %v18893_v56  ;;  %v2012_v37 = vpop.f32.mrf.mxu0  ;;  %17435 = vmatprep.subr.bf16.mxu0 %v18896_v63  ;;  %v24420_v56 = vld [vmem:[#allocation26_spill] sm:$0xff]  ;;  %v1759_v10 = vadd.f32 %v20812_v62, %v1613_v47  ;;  %v18900_v62 = vld [vmem:[%s24287_s1 + $0x98] sm:$0xff]  }
 0x173   : > { %17459 = vmatprep.subr.bf16.mxu1 %v18897_v13  ;;  %v4639_v46 = vsel %vm1100_vm1, %v4638_v17, %v24420_v56  ;;  %v2055_v49 = vmul.f32 %v20824_v42, %v2043_v55  ;;  %v2041_v19 = vadd.f32 %v2012_v37, %v1895_v50  ;;  %v2064_v59 = vadd.f32 %v20856_v24, %v2052_v21  ;;  %v1882_v17 = vpop.f32.mrf.mxu1  ;;  %v18906_v50 = vld [vmem:[%s24287_s1 + $0x88] sm:$0xff]   ;;  %v18909_v37 = vld [vmem:[%s24287_s1 + $0x200] sm:$0xff]  }
 0x174   : > { %v17117_v0 = vpop.f32.mrf.mxu0  ;;  %17404 = vmatmul.mubr.bf16.gmra.mxu0 %v4270_v14  ;;  %v2074_v40 = vmax.f32 %v2066_v48, 0.0  ;;  %v1899_v2 = vadd.f32 %v1882_v17, %v1759_v10  ;;  %v4824_v56 = vshll.u32 %v18913_v16, 16  ;;  %v18918_v10 = vld [vmem:[#allocation2 + $0x68] ss:$0 sps:$4 sm:$0x11]   ;;  %v4828_v17 = vshrl.u32 %v18913_v16, 16 }
 0x175   : > { %17428 = vmatmul.mubr.bf16.gmra.mxu1 %v4506_v3  ;;  %v2067_v33 = vadd.f32 %v20856_v24, %v2055_v49  ;;  %v2053_v57 = vmul.f32 %v20824_v42, %v2041_v19  ;;  %v2046_v12 = vadd.f32 %v17117_v0, %v1900_v18  ;;  %17436 = vmatpush3.bf16.msra.mxu0 %v18896_v63  ;;  %v18904_v63 = vld [vmem:[%s24287_s1 + $0x210] sm:$0xff]   ;;  %v2072_v27 = vmax.f32 %v2064_v59, 0.0 }
 0x176   : > { %17460 = vmatpush3.bf16.msra.mxu1 %v18897_v13  ;;  %v2025_v9 = vpop.f32.mrf.mxu0  ;;  %17437 = vmatprep.subr.bf16.mxu0 %v18898_v61  ;;  %v1901_v13 = vadd.f32 %v17094_v38, %v1761_v26  ;;  %v20899_v38 = vpop.f32.mrf.mxu1  ;;  %v18908_v26 = vld [vmem:[%s24287_s1 + $0x80] sm:$0xff]   ;;  %v4826_v0 = vrot.slane %v4824_v56, 1 }
 0x177   : > { %17461 = vmatprep.subr.bf16.mxu1 %v18899_v41  ;;  %17447 = vmatprep.mubr.bf16.mxu0 %v4639_v46  ;;  %v2075_v31 = vmax.f32 %v2067_v33, 0.0  ;;  %v2065_v28 = vadd.f32 %v20856_v24, %v2053_v57  ;;  %v2044_v1 = vadd.f32 %v2025_v9, %v1898_v22  ;;  %v2058_v43 = vmul.f32 %v20824_v42, %v2046_v12  ;;  %v18921_v46 = vld [vmem:[#allocation2 + $0x70] sm:$0xff]   ;;  %v18915_v12 = vld [vmem:[%s24287_s1 + $0x138] sm:$0xff]  }
 0x178   : > { %17471 = vmatprep.mubr.bf16.mxu1 %v4819_v32  ;;  %v17118_v11 = vpop.f32.mrf.mxu0  ;;  %v20915_v48 = vpop.f32.mrf.mxu1  ;;  %v4832_v33 = vshll.u32 %v18921_v46, 16  ;;  %v4641_v9 = vshll.u32 %v18918_v10, 16  ;;  %v18930_v10 = vld [vmem:[%s24287_s1 + $0x108] sm:$0xff]  }
 0x179   : > { %v15872_v6 = vpack.c.bf16 %v2075_v31, %v2074_v40  ;;  %v2073_v34 = vmax.f32 %v2065_v28, 0.0  ;;  %v2056_v7 = vmul.f32 %v20824_v42, %v2044_v1  ;;  %17438 = vmatpush3.bf16.msra.mxu0 %v18898_v61  ;;  %v2047_v14 = vadd.f32 %v17118_v11, %v1901_v13  ;;  %v18917_v40 = vld [vmem:[%s24287_s1 + $0x130] sm:$0xff]   ;;  %v18920_v11 = vld [vmem:[%s24287_s1 + $0x128] sm:$0xff]  }
 0x17a   : > { %17462 = vmatpush3.bf16.msra.mxu1 %v18899_v41  ;;  %v2028_v60 = vpop.f32.mrf.mxu0  ;;  %17439 = vmatprep.subr.bf16.mxu0 %v18900_v62  ;;  %v2070_v35 = vadd.f32 %v20856_v24, %v2058_v43  ;;  %v18907_v41 = vld [vmem:[%s24287_s1 + $0x208] sm:$0xff]   ;;  %v4820_v61 = vshrl.u32 %v20775_v52, 16  ;;  %v18922_v52 = vld [vmem:[#allocation2 + $0x78] ss:$0 sps:$4 sm:$0x11]   ;;  %v20918_v57 = vpop.f32.mrf.mxu1  ;;  %v4830_v31 = vor.u32 %v4828_v17, %v4826_v0  ;;  %v4834_v28 = vrot.slane %v4832_v33, 1 }
 0x17b   : > { %17463 = vmatprep.subr.bf16.mxu1 %v18901_v53  ;;  %16009 = vst [vmem:[#allocation3 + $0x18] sm:$0xff] %v15872_v6   ;;  %v15867_v51 = vpack.c.bf16 %v2073_v34, %v2072_v27  ;;  %v2045_v25 = vadd.f32 %v2028_v60, %v1899_v2  ;;  %v2059_v3 = vmul.f32 %v20824_v42, %v2047_v14  ;;  %v4836_v1 = vshrl.u32 %v18921_v46, 16  ;;  %v18916_v13 = vld [vmem:[%s24287_s1 + $0x70] sm:$0xff]   ;;  %v18919_v27 = vld [vmem:[%s24287_s1 + $0x68] sm:$0xff]   ;;  %v18923_v60 = vld [vmem:[%s24287_s1 + $0x60] sm:$0xff]  }
 0x17c   : > { %v2068_v21 = vadd.f32 %v20856_v24, %v2056_v7  ;;  %v4822_v59 = vor.u32 %v4820_v61, %v20837_v23  ;;  %v4643_v43 = vrot.slane %v4641_v9, 1  ;;  %v4835_v6 = vsel %vm1100_vm1, %v4830_v31, %v4834_v28  ;;  %v5503_v17 = vld [vmem:[#allocation2 + $0x6c] sm:$0x8]  ;;  %v21006_v9 = vld [vmem:[#allocation2 + $0x70] sm:$0xf] }
 0x17d   : > { %16008 = vst [vmem:[#allocation3 + $0x10] sm:$0xff] %v15867_v51   ;;  %v2057_v55 = vmul.f32 %v20824_v42, %v2045_v25  ;;  %17440 = vmatpush3.bf16.msra.mxu0 %v18900_v62  ;;  %v2071_v18 = vadd.f32 %v20856_v24, %v2059_v3  ;;  %v2078_v42 = vmax.f32 %v2070_v35, 0.0  ;;  %v4840_v62 = vshll.u32 %v18922_v52, 16  ;;  %v19474_v25 = vld [vmem:[#allocation2 + $0x4c] sm:$0xf] }
 0x17e   : > { %17464 = vmatpush3.bf16.msra.mxu1 %v18901_v53  ;;  %17441 = vmatprep.subr.bf16.mxu0 %v18903_v39  ;;  %v2076_v49 = vmax.f32 %v2068_v21, 0.0  ;;  %v18914_v53 = vld [vmem:[%s24287_s1 + $0x78] sm:$0xff]   ;;  %v4827_v23 = vsel %vm1100_vm1, %v4822_v59, %v4826_v0  ;;  %v4838_v34 = vor.u32 %v4836_v1, %v4834_v28  ;;  %v4644_v51 = vsel %vm1100_vm1, %v20705_v8, %v4643_v43  ;;  %v19476_v21 = vld [vmem:[#allocation2 + $0x50] sm:$0xf]  ;;  %v18929_v52 = vld [vmem:[%s24287_s1 + $0x48] sm:$0xff]  }
 0x17f   : > { %17465 = vmatprep.subr.bf16.mxu1 %v18904_v63  ;;  %v2069_v47 = vadd.f32 %v20856_v24, %v2057_v55  ;;  %v2079_v32 = vmax.f32 %v2071_v18, 0.0  ;;  %v18926_v8 = vld [vmem:[%s24287_s1 + $0x118] sm:$0xff]  }
 0x180   : > { %v5483_v59 = vld [vmem:[#allocation2 + $0x78] sm:$0xf]  ;;  %v5484_v43 = vld [vmem:[#allocation2 + $0x7c] sm:$0xf] }
 0x181   : > { %v2077_v19 = vmax.f32 %v2069_v47, 0.0  ;;  %17442 = vmatpush3.bf16.msra.mxu0 %v18903_v39  ;;  %v15882_v24 = vpack.c.bf16 %v2079_v32, %v2078_v42  ;;  %v4842_v39 = vrot.slane %v4840_v62, 1  ;;  %v18925_v47 = vld [vmem:[%s24287_s1 + $0x58] sm:$0xff]   ;;  %v14666_v62 = vcombine.low %v5503_v17, %v21006_v9 }
 0x182   : > { %17466 = vmatpush3.bf16.msra.mxu1 %v18904_v63  ;;  %17443 = vmatprep.subr.bf16.mxu0 %v18906_v50  ;;  %v20930_v63 = vpop.f32.mrf.mxu1  ;;  %v7163_v18 = vld [vmem:[#allocation3 + $0x1c] sm:$0xf] }
 0x183   : > { %17467 = vmatprep.subr.bf16.mxu1 %v18907_v41  ;;  %v15877_v22 = vpack.c.bf16 %v2077_v19, %v2076_v49  ;;  %16011 = vst [vmem:[#allocation3 + $0x28] sm:$0xff] %v15882_v24   ;;  %v4843_v14 = vsel %vm1100_vm1, %v4838_v34, %v4842_v39  ;;  %v18927_v49 = vld [vmem:[%s24287_s1 + $0x50] sm:$0xff]   ;;  %v18935_v28 = vld [vmem:[%s24287_s1 + $0x1f8] sm:$0xff]   ;;  %v5546_v39 = vshrl.u32 %v14666_v62, 16 }
 0x184   : > { %v20935_v2 = vpop.f32.mrf.mxu1  ;;  %v7160_v46 = vld [vmem:[#allocation3 + $0x10] sm:$0xf]  ;;  %v7161_v42 = vld [vmem:[#allocation3 + $0x14] sm:$0xf]  ;;  %v18936_v1 = vld [vmem:[%s24287_s1 + $0xf8] sm:$0xff]  }
 0x185   : > { %16010 = vst [vmem:[#allocation3 + $0x20] sm:$0xff] %v15877_v22   ;;  %17444 = vmatpush3.bf16.msra.mxu0 %v18906_v50  ;;  %v19475_v50 = vld [vmem:[#allocation2 + $0x54] sm:$0xf]  ;;  %v20984_v19 = vcombine.low %v7160_v46, %v7161_v42  ;;  %v19481_v42 = vld [vmem:[#allocation2 + $0x60] sm:$0xf]  ;;  %v5548_v17 = vrot.slane %v5546_v39, 3 }
 0x186   : > { %17468 = vmatpush3.bf16.msra.mxu1 %v18907_v41  ;;  %17445 = vmatprep.subr.bf16.mxu0 %v18908_v26  ;;  %v20946_v7 = vpop.f32.mrf.mxu1  ;;  %v20961_v55 = vcombine.low %v19476_v21, %v19475_v50  ;;  %v7162_v41 = vld [vmem:[#allocation3 + $0x18] sm:$0xf]  ;;  %v18938_v21 = vld [vmem:[%s24287_s1 + $0xf0] sm:$0xff]  }
 0x187   : > { %17469 = vmatprep.subr.bf16.mxu1 %v18909_v37  ;;  %24424 = vst [vmem:[#allocation25_spill] sm:$0xff] %v20984_v19 }
 0x188   : > { %v20957_v35 = vpop.f32.mrf.mxu1 }
 0x189   : > { %17446 = vmatpush3.bf16.msra.mxu0 %v18908_v26  ;;  %24421 = vst [vmem:[#allocation15_spill] sm:$0xff] %v20957_v35  ;;  %v18928_v26 = vld [vmem:[%s24287_s1 + $0x110] sm:$0xff]  }
 0x18a   : > { %17470 = vmatpush3.bf16.msra.mxu1 %v18909_v37  ;;  %17479 = vmatprep.subr.bf16.mxu0 %v18914_v53  ;;  %v20969_v37 = vcombine.low %v7162_v41, %v7163_v18  ;;  %v20971_v61 = vpop.f32.mrf.mxu1  ;;  %v18937_v18 = vld [vmem:[%s24287_s1 + $0x1f0] sm:$0xff]   ;;  %v21095_v30 = vld [vmem:[#allocation3 + $0x28] sm:$0xf] }
 0x18b   : > { %17503 = vmatprep.subr.bf16.mxu1 %v18915_v12  ;;  %24423 = vst [vmem:[#allocation19_spill] sm:$0xff] %v20971_v61  ;;  %24436 = vst [vmem:[#allocation26_spill] sm:$0xff] %v21095_v30 }
 0x18c   : > { %17448 = vmatmul.mubr.bf16.vlgmr.msra.gmra.mxu0 %v20643_v36  ;;  %v18924_v36 = vld [vmem:[%s24287_s1 + $0x120] sm:$0xff]   ;;  %v20959_v3 = vpop.f32.mrf.mxu0  ;;  %24422 = vst [vmem:[#allocation21_spill] sm:$0xff] %v20969_v37  ;;  %v21100_v37 = vld [vmem:[#allocation3 + $0x2c] sm:$0xf] }
 0x18d   : > { %17472 = vmatmul.mubr.bf16.vlgmr.msra.gmra.mxu1 %v4827_v23  ;;  %17480 = vmatpush3.bf16.msra.mxu0 %v18914_v53  ;;  %v20976_v32 = vpop.f32.mrf.mxu1  ;;  %v18931_v53 = vld [vmem:[%s24287_s1 + $0x40] sm:$0xff]   ;;  %v19478_v23 = vld [vmem:[#allocation2 + $0x74] sm:$0xf] }
 0x18e   : > { %17504 = vmatpush3.bf16.msra.mxu1 %v18915_v12  ;;  %17481 = vmatprep.subr.bf16.mxu0 %v18916_v13  ;;  %v20973_v56 = vpop.f32.mrf.mxu0  ;;  %v18932_v12 = vld [vmem:[%s24287_s1 + $0x100] sm:$0xff]  }
 0x18f   : > { %17505 = vmatprep.subr.bf16.mxu1 %v18917_v40  ;;  %17451 = vmatprep.mubr.bf16.mxu0 %v20730_v4  ;;  %v19473_v4 = vld [vmem:[#allocation2 + $0x48] sm:$0xf]  ;;  %v20988_v22 = vpop.f32.mrf.mxu1  ;;  %v7164_v50 = vld [vmem:[#allocation3 + $0x20] sm:$0xf]  ;;  %v7165_v41 = vld [vmem:[#allocation3 + $0x24] sm:$0xf] }
 0x190   : > { %17475 = vmatprep.mubr.bf16.mxu1 %v4835_v6  ;;  %v14577_v16 = vcombine.low %v19473_v4, %v19474_v25  ;;  %v20986_v24 = vpop.f32.mrf.mxu0  ;;  %v21023_v25 = vld [vmem:[#allocation2 + $0x84] sm:$0xf] }
 0x191   : > { %17482 = vmatpush3.bf16.msra.mxu0 %v18916_v13  ;;  %v20998_v33 = vpop.f32.mrf.mxu1 }
 0x192   : > { %17506 = vmatpush3.bf16.msra.mxu1 %v18917_v40  ;;  %17483 = vmatprep.subr.bf16.mxu0 %v18919_v27  ;;  %v20996_v0 = vpop.f32.mrf.mxu0  ;;  %v14667_v40 = vcombine.low %v19478_v23, %v5483_v59  ;;  %v21036_v59 = vcombine.low %v7164_v50, %v7165_v41  ;;  %v18940_v23 = vld [vmem:[%s24287_s1 + $0xe8] sm:$0xff]   ;;  %v18941_v41 = vld [vmem:[%s24287_s1 + $0x1e0] sm:$0xff]  }
 0x193   : > { %17507 = vmatprep.subr.bf16.mxu1 %v18920_v11  ;;  %v21017_v13 = vpop.f32.mrf.mxu1 }
 0x194   : > { %17452 = vmatmul.mubr.bf16.gmra.mxu0 %v4644_v51  ;;  %v21009_v31 = vpop.f32.mrf.mxu0  ;;  %v5554_v6 = vshrl.u32 %v14667_v40, 16  ;;  %v5557_v34 = vshll.u32 %v14667_v40, 16  ;;  %v19480_v51 = vld [vmem:[#allocation2 + $0x5c] sm:$0xf]  ;;  %24427 = vst [vmem:[#allocation24_spill] sm:$0xff] %v21036_v59  ;;  %v18939_v40 = vld [vmem:[%s24287_s1 + $0x1e8] sm:$0xff]  }
 0x195   : > { %17476 = vmatmul.mubr.bf16.gmra.mxu1 %v4843_v14  ;;  %17484 = vmatpush3.bf16.msra.mxu0 %v18919_v27  ;;  %v5549_v27 = vshll.u32 %v14666_v62, 16  ;;  %v21021_v14 = vpop.f32.mrf.mxu1  ;;  %v18945_v59 = vld [vmem:[%s24287_s1 + $0x1d0] sm:$0xff]  }
 0x196   : > { %17508 = vmatpush3.bf16.msra.mxu1 %v18920_v11  ;;  %17485 = vmatprep.subr.bf16.mxu0 %v18923_v60  ;;  %v5485_v11 = vld [vmem:[#allocation2 + $0x80] sm:$0xf]  ;;  %v5559_v62 = vrot.slane %v5557_v34, 4 }
 0x197   : > { %17509 = vmatprep.subr.bf16.mxu1 %v18924_v36  ;;  %17495 = vmatprep.mubr.bf16.mxu0 %v14577_v16  ;;  %v5504_v16 = vld [vmem:[#allocation2 + $0x88] sm:$0xf]  ;;  %v21033_v46 = vpop.f32.mrf.mxu1 }
 0x198   : > { %17519 = vmatprep.mubr.bf16.mxu1 %v20961_v55  ;;  %24426 = vst [vmem:[#allocation17_spill] sm:$0xff] %v21033_v46  ;;  %v5865_v46 = vld [vmem:[#allocation2 + $0x90] sm:$0xf] }
 0x199   : > { %17486 = vmatpush3.bf16.msra.mxu0 %v18923_v60  ;;  %v19479_v60 = vld [vmem:[#allocation2 + $0x58] sm:$0xf]  ;;  %v21049_v39 = vpop.f32.mrf.mxu1 }
 0x19a   : > { %17510 = vmatpush3.bf16.msra.mxu1 %v18924_v36  ;;  %17487 = vmatprep.subr.bf16.mxu0 %v18925_v47  ;;  %v21019_v36 = vpop.f32.mrf.mxu0  ;;  %v14579_v4 = vcombine.low %v19479_v60, %v19480_v51  ;;  %24429 = vst [vmem:[#allocation6_spill] sm:$0xff] %v21049_v39  ;;  %v18942_v51 = vld [vmem:[%s24287_s1 + $0xe0] sm:$0xff]  }
 0x19b   : > { %17511 = vmatprep.subr.bf16.mxu1 %v18926_v8 }
 0x19d   : > { %17488 = vmatpush3.bf16.msra.mxu0 %v18925_v47  ;;  %v21031_v47 = vpop.f32.mrf.mxu0 }
 0x19e   : > { %17512 = vmatpush3.bf16.msra.mxu1 %v18926_v8  ;;  %17489 = vmatprep.subr.bf16.mxu0 %v18927_v49  ;;  %v14668_v8 = vcombine.low %v5484_v43, %v5485_v11  ;;  %24425 = vst [vmem:[#allocation11_spill] sm:$0xff] %v21031_v47 }
 0x19f   : > { %17513 = vmatprep.subr.bf16.mxu1 %v18928_v26 }
 0x1a0   : > { %v5563_v43 = vshrl.u32 %v14668_v8, 16  ;;  %v5566_v11 = vshll.u32 %v14668_v8, 16 }
 0x1a1   : > { %17490 = vmatpush3.bf16.msra.mxu0 %v18927_v49 }
 0x1a2   : > { %17514 = vmatpush3.bf16.msra.mxu1 %v18928_v26  ;;  %17491 = vmatprep.subr.bf16.mxu0 %v18929_v52  ;;  %v19482_v26 = vld [vmem:[#allocation2 + $0x64] sm:$0xf]  ;;  %v21063_v8 = vrot.slane %v5566_v11, 4  ;;  %v5479_v11 = vld [vmem:[#allocation2 + $0x68] sm:$0xf] }
 0x1a3   : > { %17515 = vmatprep.subr.bf16.mxu1 %v18930_v10  ;;  %v14580_v49 = vcombine.low %v19481_v42, %v19482_v26  ;;  %v21067_v26 = vpop.f32.mrf.mxu1 }
 0x1a4   : > { %24430 = vst [vmem:[#allocation28_spill] sm:$0xff] %v21067_v26 }
 0x1a5   : > { %17492 = vmatpush3.bf16.msra.mxu0 %v18929_v52  ;;  %v5505_v52 = vld [vmem:[#allocation2 + $0x8c] sm:$0xf] }
 0x1a6   : > { %17516 = vmatpush3.bf16.msra.mxu1 %v18930_v10  ;;  %17493 = vmatprep.subr.bf16.mxu0 %v18931_v53  ;;  %v14669_v10 = vcombine.low %v21023_v25, %v5504_v16  ;;  %v19484_v16 = vld [vmem:[#allocation2 + $0x5c] sm:$0xf] }
 0x1a7   : > { %17517 = vmatprep.subr.bf16.mxu1 %v18932_v12 }
 0x1a9   : > { %17494 = vmatpush3.bf16.msra.mxu0 %v18931_v53  ;;  %v5556_v53 = vrot.slane %v5554_v6, 3 }
 0x1aa   : > { %17518 = vmatpush3.bf16.msra.mxu1 %v18932_v12  ;;  %17527 = vmatprep.subr.bf16.mxu0 %v18935_v28  ;;  %v5551_v12 = vrot.slane %v5549_v27, 4  ;;  %v5575_v27 = vshll.u32 %v14669_v10, 16 }
 0x1ab   : > { %17551 = vmatprep.subr.bf16.mxu1 %v18936_v1  ;;  %v21051_v34 = vor.u32 %v5559_v62, %v5556_v53 }
 0x1ac   : > { %17496 = vmatmul.mubr.bf16.vlgmr.msra.gmra.mxu0 %v20961_v55  ;;  %v21045_v55 = vcombine.low %v5505_v52, %v5505_v52  ;;  %v5552_v6 = vor.u32 %v5551_v12, %v5548_v17  ;;  %v24432_v52 = vld [vmem:[#allocation18_spill] sm:$0xff]  ;;  %v18944_v12 = vld [vmem:[%s24287_s1 + $0xd8] sm:$0xff]   ;;  %v21077_v62 = vrot.slane %v5575_v27, 4 }
 0x1ad   : > { %17520 = vmatmul.mubr.bf16.vlgmr.msra.gmra.mxu1 %v14579_v4  ;;  %17528 = vmatpush3.bf16.msra.mxu0 %v18935_v28  ;;  %v5572_v28 = vshrl.u32 %v14669_v10, 16  ;;  %v24431_v10 = vld [vmem:[#allocation16_spill] sm:$0xff] }
 0x1ae   : > { %17552 = vmatpush3.bf16.msra.mxu1 %v18936_v1  ;;  %17529 = vmatprep.subr.bf16.mxu0 %v18937_v18  ;;  %v21047_v1 = vpop.f32.mrf.mxu0  ;;  %v5581_v42 = vshrl.u32 %v21045_v55, 16  ;;  %v24433_v17 = vcombine.low %v24431_v10, %v24432_v52  ;;  %v21084_v10 = vld [vmem:[#allocation3 + $0x20] sm:$0xf]  ;;  %v21086_v52 = vld [vmem:[#allocation3 + $0x24] sm:$0xf]  ;;  %24437 = vst [vmem:[#allocation16_spill] sm:$0xff] %v21100_v37 }
 0x1af   : > { %17553 = vmatprep.subr.bf16.mxu1 %v18938_v21  ;;  %17499 = vmatprep.mubr.bf16.mxu0 %v14579_v4  ;;  %24428 = vst [vmem:[#allocation20_spill] sm:$0xff] %v21047_v1  ;;  %v19483_v4 = vld [vmem:[#allocation2 + $0x58] sm:$0xf]  ;;  %v21075_v53 = vrot.slane %v5572_v28, 3  ;;  %24434 = vst [vmem:[#allocation12_spill] sm:$0xff] %v21084_v10  ;;  %v21088_v28 = vpop.f32.mrf.mxu1 }
 0x1b0   : > { %17523 = vmatprep.mubr.bf16.mxu1 %v14580_v49  ;;  %v21053_v60 = vpop.f32.mrf.mxu0  ;;  %v14630_v50 = vcombine.low %v19483_v4, %v19484_v16  ;;  %v5561_v4 = vsel %vm491_vm0, %v5552_v6, %v21051_v34  ;;  %v5480_v16 = vld [vmem:[#allocation2 + $0x6c] sm:$0xf]  ;;  %24435 = vst [vmem:[#allocation14_spill] sm:$0xff] %v21086_v52  ;;  %v5859_v6 = vld [vmem:[#allocation2 + $0x78] sm:$0xf]  ;;  %v21113_v19 = vrot.slane %v5581_v42, 3 }
 0x1b1   : > { %17530 = vmatpush3.bf16.msra.mxu0 %v18937_v18  ;;  %v5584_v18 = vshll.u32 %v21045_v55, 16  ;;  %v18943_v55 = vld [vmem:[%s24287_s1 + $0x1d8] sm:$0xff]   ;;  %v18950_v42 = vld [vmem:[%s24287_s1 + $0xc0] sm:$0xff]  }
 0x1b2   : > { %17554 = vmatpush3.bf16.msra.mxu1 %v18938_v21  ;;  %17531 = vmatprep.subr.bf16.mxu0 %v18939_v40  ;;  %v21061_v21 = vrot.slane %v5563_v43, 3  ;;  %v5478_v43 = vld [vmem:[#allocation2 + $0x64] sm:$0x8]  ;;  %v21090_v27 = vpop.f32.mrf.mxu0  ;;  %v5860_v10 = vld [vmem:[#allocation2 + $0x7c] sm:$0xf] }
 0x1b3   : > { %17555 = vmatprep.subr.bf16.mxu1 %v18940_v23 }
 0x1b4   : > { %17500 = vmatmul.mubr.bf16.gmra.mxu0 %v14580_v49  ;;  %v14679_v49 = vcombine.low %v5478_v43, %v5479_v11  ;;  %v21106_v43 = vpop.f32.mrf.mxu1  ;;  %v21108_v11 = vpop.f32.mrf.mxu0 }
 0x1b5   : > { %17524 = vmatmul.mubr.bf16.gmra.mxu1 %v24433_v17  ;;  %17532 = vmatpush3.bf16.msra.mxu0 %v18939_v40  ;;  %v18946_v17 = vld [vmem:[%s24287_s1 + $0xd0] sm:$0xff]   ;;  %v21102_v40 = vld [vmem:[#allocation3 + $0x18] sm:$0xf] }
 0x1b6   : > { %17556 = vmatpush3.bf16.msra.mxu1 %v18940_v23  ;;  %17533 = vmatprep.subr.bf16.mxu0 %v18941_v41  ;;  %v5858_v23 = vld [vmem:[#allocation2 + $0x74] sm:$0x8]  ;;  %24438 = vst [vmem:[#allocation18_spill] sm:$0xff] %v21102_v40  ;;  %v5716_v29 = vshrl.u32 %v14679_v49, 16  ;;  %v5719_v52 = vshll.u32 %v14679_v49, 16 }
 0x1b7   : > { %17557 = vmatprep.subr.bf16.mxu1 %v18942_v51  ;;  %17543 = vmatprep.mubr.bf16.mxu0 %v14630_v50  ;;  %v14706_v26 = vcombine.low %v5858_v23, %v5859_v6  ;;  %v21118_v50 = vrot.slane %v5584_v18, 4  ;;  %v21129_v23 = vpop.f32.mrf.mxu0  ;;  %v5863_v6 = vld [vmem:[#allocation2 + $0x88] sm:$0xf]  ;;  %v19485_v40 = vld [vmem:[#allocation2 + $0x84] sm:$0xf] }
 0x1b8   : > { %17567 = vmatprep.mubr.bf16.mxu1 %v5561_v4  ;;  %v14680_v4 = vcombine.low %v5480_v16, %v21006_v9  ;;  %v18947_v9 = vld [vmem:[%s24287_s1 + $0x1c8] sm:$0xff]   ;;  %v21127_v16 = vpop.f32.mrf.mxu1  ;;  %v21131_v58 = vrot.slane %v5716_v29, 3  ;;  %v21144_v29 = vrot.slane %v5719_v52, 4  ;;  %v14708_v30 = vcombine.low %v19485_v40, %v5863_v6 }
 0x1b9   : > { %17534 = vmatpush3.bf16.msra.mxu0 %v18941_v41  ;;  %v5907_v41 = vshrl.u32 %v14706_v26, 16  ;;  %v21134_v37 = vpop.f32.mrf.mxu0 }
 0x1ba   : > { %17558 = vmatpush3.bf16.msra.mxu1 %v18942_v51  ;;  %v21111_v51 = vld [vmem:[#allocation3 + $0x1c] sm:$0xf]  ;;  %17535 = vmatprep.subr.bf16.mxu0 %v18943_v55  ;;  %v5724_v18 = vshrl.u32 %v14680_v4, 16  ;;  %v5727_v49 = vshll.u32 %v14680_v4, 16  ;;  %v5910_v4 = vshll.u32 %v14706_v26, 16  ;;  %v5927_v6 = vshll.u32 %v14708_v30, 16 }
 0x1bb   : > { %17559 = vmatprep.subr.bf16.mxu1 %v18944_v12  ;;  %24439 = vst [vmem:[#allocation29_spill] sm:$0xff] %v21111_v51  ;;  %v21142_v51 = vpop.f32.mrf.mxu1  ;;  %v21148_v1 = vpop.f32.mrf.mxu0  ;;  %v21153_v54 = vrot.slane %v5907_v41, 3  ;;  %v18957_v26 = vld [vmem:[%s24287_s1 + $0x38] sm:$0xff]  }
 0x1bc   : > { %24440 = vst [vmem:[#allocation30_spill] sm:$0xff] %v21148_v1  ;;  %v5729_v61 = vrot.slane %v5727_v49, 4  ;;  %v21162_v52 = vrot.slane %v5910_v4, 4  ;;  %v19489_v1 = vld [vmem:[#allocation2 + $0x6c] sm:$0xf] }
 0x1bd   : > { %17536 = vmatpush3.bf16.msra.mxu0 %v18943_v55  ;;  %v18949_v55 = vld [vmem:[%s24287_s1 + $0x1c0] sm:$0xff]   ;;  %v21146_v39 = vpop.f32.mrf.mxu1  ;;  %v21166_v41 = vpop.f32.mrf.mxu0 }
 0x1be   : > { %17560 = vmatpush3.bf16.msra.mxu1 %v18944_v12  ;;  %17537 = vmatprep.subr.bf16.mxu0 %v18945_v59  ;;  %v14707_v12 = vcombine.low %v5860_v10, %v20796_v45  ;;  %v5726_v10 = vrot.slane %v5724_v18, 3  ;;  %v5924_v18 = vshrl.u32 %v14708_v30, 16  ;;  %24442 = vst [vmem:[#allocation32_spill] sm:$0xff] %v21166_v41  ;;  %v18959_v30 = vld [vmem:[%s24287_s1 + $0x30] sm:$0xff]  }
 0x1bf   : > { %17561 = vmatprep.subr.bf16.mxu1 %v18946_v17  ;;  %v21164_v49 = vpop.f32.mrf.mxu1  ;;  %v21183_v35 = vpop.f32.mrf.mxu0  ;;  %v19491_v41 = vld [vmem:[#allocation2 + $0x74] sm:$0xf] }
 0x1c0   : > { %v5915_v45 = vshrl.u32 %v14707_v12, 16  ;;  %v5918_v40 = vshll.u32 %v14707_v12, 16  ;;  %24441 = vst [vmem:[#allocation31_spill] sm:$0xff] %v21164_v49  ;;  %v5578_v12 = vor.u32 %v21077_v62, %v21075_v53  ;;  %24445 = vst [vmem:[#allocation35_spill] sm:$0xff] %v21183_v35  ;;  %v18963_v53 = vld [vmem:[%s24287_s1 + $0x1a8] sm:$0xff]   ;;  %v21189_v62 = vrot.slane %v5924_v18, 3 }
 0x1c1   : > { %17538 = vmatpush3.bf16.msra.mxu0 %v18945_v59  ;;  %v21157_v59 = vor.u32 %v21063_v8, %v21061_v21  ;;  %v19486_v21 = vld [vmem:[#allocation2 + $0x60] sm:$0xf]  ;;  %v19487_v8 = vld [vmem:[#allocation2 + $0x64] sm:$0xf]  ;;  %v21181_v47 = vpop.f32.mrf.mxu1 }
 0x1c2   : > { %17562 = vmatpush3.bf16.msra.mxu1 %v18946_v17  ;;  %17539 = vmatprep.subr.bf16.mxu0 %v18947_v9  ;;  %v18958_v17 = vld [vmem:[%s24287_s1 + $0x1b8] sm:$0xff]   ;;  %v14631_v15 = vcombine.low %v19486_v21, %v19487_v8  ;;  %v5917_v4 = vrot.slane %v5915_v45, 3  ;;  %v5920_v49 = vrot.slane %v5918_v40, 4  ;;  %v5864_v8 = vld [vmem:[#allocation2 + $0x8c] sm:$0xf]  ;;  %24444 = vst [vmem:[#allocation34_spill] sm:$0xff] %v21181_v47 }
 0x1c3   : > { %17563 = vmatprep.subr.bf16.mxu1 %v18948_v20  ;;  %v21191_v45 = vrot.slane %v5927_v6, 4  ;;  %v18962_v40 = vld [vmem:[%s24287_s1 + $0x28] sm:$0xff]   ;;  %v18965_v6 = vld [vmem:[%s24287_s1 + $0x1a0] sm:$0xff]  }
 0x1c5   : > { %17540 = vmatpush3.bf16.msra.mxu0 %v18947_v9  ;;  %v21174_v9 = vsel %vm491_vm0, %v21051_v34, %v21157_v59 }
 0x1c6   : > { %17564 = vmatpush3.bf16.msra.mxu1 %v18948_v20  ;;  %17541 = vmatprep.subr.bf16.mxu0 %v18949_v55  ;;  %v18960_v20 = vld [vmem:[%s24287_s1 + $0x1b0] sm:$0xff]   ;;  %24443 = vst [vmem:[#allocation33_spill] sm:$0xff] %v21174_v9 }
 0x1c7   : > { %17565 = vmatprep.subr.bf16.mxu1 %v18950_v42 }
 0x1c9   : > { %17542 = vmatpush3.bf16.msra.mxu0 %v18949_v55  ;;  %v14681_v55 = vcombine.low %v21023_v25, %v21023_v25  ;;  %v21206_v25 = vor.u32 %v5729_v61, %v5726_v10  ;;  %v5921_v10 = vor.u32 %v5920_v49, %v5917_v4  ;;  %v21234_v4 = vld [vmem:[#allocation2 + $0x70] sm:$0xff]  }
 0x1ca   : > { %17566 = vmatpush3.bf16.msra.mxu1 %v18950_v42  ;;  %17575 = vmatprep.subr.bf16.mxu0 %v18957_v26  ;;  %v19488_v42 = vld [vmem:[#allocation2 + $0x68] sm:$0xf] }
 0x1cb   : > { %17599 = vmatprep.subr.bf16.mxu1 %v18958_v17  ;;  %v14632_v21 = vcombine.low %v19488_v42, %v19489_v1  ;;  %v5866_v1 = vld [vmem:[#allocation2 + $0x94] sm:$0xf]  ;;  %v5579_v42 = vsel %vm491_vm0, %v21157_v59, %v5578_v12  ;;  %v5734_v35 = vshrl.u32 %v14681_v55, 16 }
 0x1cc   : > { %17544 = vmatmul.mubr.bf16.vlgmr.msra.gmra.mxu0 %v14631_v15  ;;  %v21202_v18 = vpop.f32.mrf.mxu0  ;;  %v5722_v15 = vor.u32 %v21144_v29, %v21131_v58  ;;  %v14710_v47 = vcombine.low %v5866_v1, %v5866_v1  ;;  %v18964_v58 = vld [vmem:[%s24287_s1 + $0x20] sm:$0xff]   ;;  %v5913_v29 = vor.u32 %v21162_v52, %v21153_v54  ;;  %v18966_v54 = vld [vmem:[%s24287_s1 + $0x18] sm:$0xff]   ;;  %v18969_v1 = vld [vmem:[%s24287_s1 + $0x10] sm:$0xff]  }
 0x1cd   : > { %17568 = vmatmul.mubr.bf16.vlgmr.msra.gmra.mxu1 %v21174_v9  ;;  %v5587_v9 = vor.u32 %v21118_v50, %v21113_v19  ;;  %17576 = vmatpush3.bf16.msra.mxu0 %v18957_v26  ;;  %v5737_v19 = vshll.u32 %v14681_v55, 16  ;;  %v14709_v50 = vcombine.low %v5864_v8, %v5865_v46  ;;  %v19490_v26 = vld [vmem:[#allocation2 + $0x70] sm:$0xf]  ;;  %v18967_v52 = vld [vmem:[%s24287_s1 + $0x198] sm:$0xff]  }
 0x1ce   : > { %17600 = vmatpush3.bf16.msra.mxu1 %v18958_v17  ;;  %17577 = vmatprep.subr.bf16.mxu0 %v18959_v30  ;;  %v21208_v17 = vpop.f32.mrf.mxu1  ;;  %v5731_v46 = vsel %vm491_vm0, %v5722_v15, %v21206_v25  ;;  %v5942_v8 = vshrl.u32 %v14710_v47, 16  ;;  %v5945_v55 = vshll.u32 %v14710_v47, 16  ;;  %v5922_v49 = vsel %vm491_vm0, %v5913_v29, %v5921_v10  ;;  %v18972_v29 = vld [vmem:[%s24287_s1 + $0x8] sm:$0xff]  }
 0x1cf   : > { %17601 = vmatprep.subr.bf16.mxu1 %v18960_v20  ;;  %17547 = vmatprep.mubr.bf16.mxu0 %v14632_v21  ;;  %24446 = vst [vmem:[#allocation36_spill] sm:$0xff] %v21208_v17  ;;  %v14633_v21 = vcombine.low %v19490_v26, %v19491_v41  ;;  %v5588_v61 = vsel %vm491_vm0, %v5578_v12, %v5587_v9  ;;  %v5933_v41 = vshrl.u32 %v14709_v50, 16  ;;  %v5736_v47 = vrot.slane %v5734_v35, 3 }
 0x1d0   : > { %17571 = vmatprep.mubr.bf16.mxu1 %v5579_v42  ;;  %v21219_v17 = vpop.f32.mrf.mxu1  ;;  %v21221_v42 = vpop.f32.mrf.mxu0  ;;  %v5739_v12 = vrot.slane %v5737_v19, 4  ;;  %v21246_v19 = vrot.slane %v5942_v8, 3  ;;  %v2478_v8 = vadd.f32 %v20959_v3, %v20899_v38  ;;  %v18974_v38 = vld [vmem:[%s24287_s1] sm:$0xff]  }
 0x1d1   : > { %17578 = vmatpush3.bf16.msra.mxu0 %v18959_v30  ;;  %v5935_v26 = vrot.slane %v5933_v41, 3  ;;  %v6153_v41 = vshll.u32 %v21234_v4, 16 }
 0x1d2   : > { %17602 = vmatpush3.bf16.msra.mxu1 %v18960_v20  ;;  %17579 = vmatprep.subr.bf16.mxu0 %v18962_v40  ;;  %v5936_v20 = vshll.u32 %v14709_v50, 16  ;;  %v21232_v9 = vpop.f32.mrf.mxu1  ;;  %v17258_v30 = vpop.f32.mrf.mxu0 }
 0x1d3   : > { %17603 = vmatprep.subr.bf16.mxu1 %v18963_v53 }
 0x1d4   : > { %17548 = vmatmul.mubr.bf16.gmra.mxu0 %v14633_v21  ;;  %v21241_v15 = vpop.f32.mrf.mxu1  ;;  %v3254_v50 = vpop.f32.mrf.mxu0  ;;  %v5938_v35 = vrot.slane %v5936_v20, 4  ;;  %v5947_v21 = vrot.slane %v5945_v55, 4 }
 0x1d5   : > { %17572 = vmatmul.mubr.bf16.gmra.mxu1 %v5588_v61  ;;  %17580 = vmatpush3.bf16.msra.mxu0 %v18962_v40  ;;  %v18970_v40 = vld [vmem:[%s24287_s1 + $0x190] sm:$0xff]   ;;  %v18973_v61 = vld [vmem:[%s24287_s1 + $0x188] sm:$0xff]  }
 0x1d6   : > { %17604 = vmatpush3.bf16.msra.mxu1 %v18963_v53  ;;  %17581 = vmatprep.subr.bf16.mxu0 %v18964_v58  ;;  %v21236_v53 = vld [vmem:[#allocation2 + $0x68] sm:$0xff]   ;;  %v21262_v55 = vpop.f32.mrf.mxu1 }
 0x1d7   : > { %17605 = vmatprep.subr.bf16.mxu1 %v18965_v6  ;;  %17591 = vmatprep.mubr.bf16.mxu0 %v5731_v46  ;;  %v5740_v46 = vor.u32 %v5739_v12, %v5736_v47  ;;  %v6314_v20 = vshll.u32 %v21236_v53, 16 }
 0x1d8   : > { %17615 = vmatprep.mubr.bf16.mxu1 %v5922_v49  ;;  %v21264_v49 = vpop.f32.mrf.mxu0 }
 0x1d9   : > { %17582 = vmatpush3.bf16.msra.mxu0 %v18964_v58  ;;  %v5930_v58 = vor.u32 %v21191_v45, %v21189_v62  ;;  %v2470_v62 = vadd.f32 %v20973_v56, %v20915_v48  ;;  %v21268_v45 = vpop.f32.mrf.mxu1  ;;  %v21283_v3 = vsel %vm491_vm0, %v21157_v59, %v5740_v46  ;;  %v5939_v48 = vor.u32 %v5938_v35, %v5935_v26  ;;  %v18975_v59 = vld [vmem:[%s24287_s1 + $0x180] sm:$0xff]  }
 0x1da   : > { %17606 = vmatpush3.bf16.msra.mxu1 %v18965_v6  ;;  %17583 = vmatprep.subr.bf16.mxu0 %v18966_v54  ;;  %v21248_v6 = vld [vmem:[#allocation2 + $0x78] sm:$0xff]   ;;  %v6151_v56 = vshrl.u32 %v21234_v4, 16  ;;  %v21292_v12 = vpop.f32.mrf.mxu0  ;;  %v3054_v4 = vadd.f32 %v21142_v51, %v21129_v23  ;;  %v2481_v46 = vadd.f32 %v20986_v24, %v20918_v57  ;;  %v2473_v51 = vadd.f32 %v20996_v0, %v20930_v63 }
 0x1db   : > { %17607 = vmatprep.subr.bf16.mxu1 %v18967_v52  ;;  %v21276_v47 = vsel %vm491_vm0, %v5921_v10, %v5930_v58  ;;  %v3062_v10 = vadd.f32 %v21127_v16, %v21108_v11  ;;  %v2709_v11 = vadd.f32 %v20988_v22, %v2470_v62  ;;  %v3051_v16 = vadd.f32 %v21106_v43, %v21090_v27  ;;  %v21307_v35 = vpop.f32.mrf.mxu1  ;;  %v18983_v57 = vld [vmem:[%s24287_s1 + $0xb8] sm:$0xff]  }
 0x1dc   : > { %v2494_v23 = vadd.f32 %v21009_v31, %v20935_v2  ;;  %v17262_v43 = vpop.f32.mrf.mxu0  ;;  %v5940_v63 = vsel %vm491_vm0, %v5930_v58, %v5939_v48  ;;  %v2486_v2 = vadd.f32 %v21019_v36, %v20946_v7  ;;  %v18982_v24 = vld [vmem:[%s24287_s1 + $0x178] sm:$0xff]   ;;  %v18985_v7 = vld [vmem:[%s24287_s1 + $0xb0] sm:$0xff]   ;;  %v2712_v58 = vadd.f32 %v20998_v33, %v2481_v46 }
 0x1dd   : > { %17584 = vmatpush3.bf16.msra.mxu0 %v18966_v54  ;;  %v6158_v54 = vshll.u32 %v21248_v6, 16  ;;  %v3285_v26 = vadd.f32 %v17258_v30, %v3062_v10  ;;  %v3282_v27 = vadd.f32 %v21221_v42, %v3051_v16  ;;  %v24447_v30 = vld [vmem:[#allocation4_spill] sm:$0xff]  ;;  %v3075_v62 = vadd.f32 %v21146_v39, %v21134_v37 }
 0x1de   : > { %17608 = vmatpush3.bf16.msra.mxu1 %v18967_v52  ;;  %17585 = vmatprep.subr.bf16.mxu0 %v18969_v1  ;;  %v21273_v52 = vsel %vm491_vm0, %v21206_v25, %v21051_v34  ;;  %v2711_v34 = vadd.f32 %v20976_v32, %v2478_v8  ;;  %v3059_v25 = vadd.f32 %v21088_v28, %v21053_v60  ;;  %v6312_v60 = vshrl.u32 %v21236_v53, 16  ;;  %v18984_v8 = vld [vmem:[%s24287_s1 + $0x170] sm:$0xff]   ;;  %v24457_v16 = vld [vmem:[#allocation36_spill] sm:$0xff] }
 0x1df   : > { %17609 = vmatprep.subr.bf16.mxu1 %v18970_v40  ;;  %v5948_v32 = vor.u32 %v5947_v21, %v21246_v19  ;;  %v6316_v28 = vrot.slane %v6314_v20, 1  ;;  %v3283_v53 = vadd.f32 %v3254_v50, %v3054_v4  ;;  %v21334_v42 = vrot.slane %v6158_v54, 1  ;;  %v24448_v21 = vld [vmem:[#allocation8_spill] sm:$0xff] }
 0x1e0   : > { %v2719_v22 = vmul.f32 %v2711_v34, %v20358_v44  ;;  %v2717_v50 = vmul.f32 %v2709_v11, %v24447_v30  ;;  %v24456_v11 = vld [vmem:[#allocation35_spill] sm:$0xff] }
 0x1e1   : > { %17586 = vmatpush3.bf16.msra.mxu0 %v18969_v1  ;;  %v3284_v1 = vadd.f32 %v21202_v18, %v3059_v25  ;;  %v21317_v18 = vpop.f32.mrf.mxu1  ;;  %v21329_v0 = vsel %vm491_vm0, %v5939_v48, %v5948_v32  ;;  %v21341_v36 = vor.u32 %v6316_v28, %v6312_v60  ;;  %v3291_v20 = vmul.f32 %v3283_v53, %v24407_v5  ;;  %v24449_v48 = vld [vmem:[#allocation32_spill] sm:$0xff]  ;;  %v3270_v25 = vpop.f32.mrf.mxu0  ;;  %v24454_v32 = vld [vmem:[#allocation30_spill] sm:$0xff]  ;;  %v24455_v60 = vld [vmem:[#allocation31_spill] sm:$0xff] }
 0x1e2   : > { %17610 = vmatpush3.bf16.msra.mxu1 %v18970_v40  ;;  %v21297_v40 = vrot.slane %v6153_v41, 1  ;;  %17587 = vmatprep.subr.bf16.mxu0 %v18972_v29  ;;  %v2715_v41 = vadd.f32 %v21021_v14, %v2494_v23  ;;  %v3298_v34 = vadd.f32 %v3282_v27, %v2717_v50  ;;  %v24452_v14 = vld [vmem:[#allocation11_spill] sm:$0xff]  ;;  %v3067_v28 = vadd.f32 %v24455_v60, %v24454_v32 }
 0x1e3   : > { %17611 = vmatprep.subr.bf16.mxu1 %v18973_v61  ;;  %v3300_v19 = vadd.f32 %v3284_v1, %v2719_v22  ;;  %v21354_v33 = vpop.f32.mrf.mxu1  ;;  %v3070_v37 = vadd.f32 %v24457_v16, %v24456_v11  ;;  %v24466_v11 = vld [vmem:[#allocation28_spill] sm:$0xff] }
 0x1e4   : > { %v21332_v31 = vor.u32 %v21297_v40, %v6151_v56  ;;  %v24450_v56 = vld [vmem:[#allocation34_spill] sm:$0xff]  ;;  %v3286_v53 = vadd.f32 %v21292_v12, %v3067_v28  ;;  %v24460_v12 = vld [vmem:[#allocation19_spill] sm:$0xff] }
 0x1e5   : > { %17588 = vmatpush3.bf16.msra.mxu0 %v18972_v29  ;;  %v2710_v29 = vadd.f32 %v21017_v13, %v2473_v51  ;;  %v3078_v54 = vadd.f32 %v24450_v56, %v24449_v48  ;;  %v24451_v13 = vld [vmem:[#allocation15_spill] sm:$0xff]  ;;  %v3445_v39 = vadd.f32 %v21219_v17, %v3300_v19  ;;  %v18988_v51 = vld [vmem:[%s24287_s1 + $0xa8] sm:$0xff]   ;;  %v3287_v22 = vadd.f32 %v3270_v25, %v3070_v37 }
 0x1e6   : > { %17612 = vmatpush3.bf16.msra.mxu1 %v18973_v61  ;;  %17589 = vmatprep.subr.bf16.mxu0 %v18974_v38  ;;  %v3293_v61 = vmul.f32 %v3285_v26, %v24448_v21  ;;  %v2497_v10 = vadd.f32 %v24452_v14, %v24451_v13  ;;  %v3288_v26 = vadd.f32 %v21264_v49, %v3075_v62  ;;  %v18987_v17 = vld [vmem:[%s24287_s1 + $0x168] sm:$0xff]   ;;  %v24459_v19 = vld [vmem:[#allocation7_spill] sm:$0xff]  ;;  %v24465_v14 = vld [vmem:[#allocation22_spill] sm:$0xff] }
 0x1e7   : > { %17613 = vmatprep.subr.bf16.mxu1 %v18975_v59  ;;  %v3289_v46 = vadd.f32 %v17262_v43, %v3078_v54  ;;  %v3299_v23 = vadd.f32 %v3291_v20, %v2710_v29  ;;  %v24458_v49 = vld [vmem:[#allocation5_spill] sm:$0xff]  ;;  %v24462_v20 = vld [vmem:[#allocation6_spill] sm:$0xff] }
 0x1e8   : > { %v3301_v1 = vadd.f32 %v3293_v61, %v2712_v58  ;;  %v2723_v43 = vmul.f32 %v2715_v41, %v24458_v49  ;;  %v24461_v58 = vld [vmem:[#allocation20_spill] sm:$0xff]  ;;  %v24463_v62 = vld [vmem:[#allocation33_spill] sm:$0xff] }
 0x1e9   : > { %17590 = vmatpush3.bf16.msra.mxu0 %v18974_v38  ;;  %v2489_v29 = vadd.f32 %v24461_v58, %v24460_v12  ;;  %v24464_v41 = vld [vmem:[#allocation13_spill] sm:$0xff]  ;;  %v3444_v25 = vadd.f32 %v21262_v55, %v3299_v23 }
 0x1ea   : > { %17614 = vmatpush3.bf16.msra.mxu1 %v18975_v59  ;;  %v24453_v59 = vld [vmem:[#allocation17_spill] sm:$0xff]  ;;  %17623 = vmatprep.subr.bf16.mxu0 %v18982_v24  ;;  %v3446_v48 = vadd.f32 %v21241_v15, %v3301_v1  ;;  %v3297_v56 = vmul.f32 %v3289_v46, %v24464_v41  ;;  %v3304_v13 = vadd.f32 %v3288_v26, %v2723_v43  ;;  %v18991_v15 = vld [vmem:[%s24287_s1 + $0x160] sm:$0xff]  }
 0x1eb   : > { %17647 = vmatprep.subr.bf16.mxu1 %v18983_v57  ;;  %v2713_v4 = vadd.f32 %v24453_v59, %v2486_v2  ;;  %v2714_v16 = vadd.f32 %v24466_v11, %v2489_v29 }
 0x1ec   : > { %v17305_v27 = vpop.f32.mrf.mxu0  ;;  %17592 = vmatmul.mubr.bf16.vlgmr.msra.gmra.mxu0 %v21273_v52  ;;  %v2716_v52 = vadd.f32 %v24462_v20, %v2497_v10  ;;  %v3295_v10 = vmul.f32 %v3287_v22, %v24465_v14  ;;  %v3449_v23 = vadd.f32 %v21268_v45, %v3304_v13  ;;  %v24493_v14 = vld [vmem:[#allocation10_spill] sm:$0xff] }
 0x1ed   : > { %v17329_v38 = vpop.f32.mrf.mxu1  ;;  %17616 = vmatmul.mubr.bf16.vlgmr.msra.gmra.mxu1 %v21276_v47  ;;  %v3443_v47 = vadd.f32 %v21232_v9, %v3298_v34  ;;  %v3584_v2 = vadd.f32 %v17305_v27, %v3445_v39  ;;  %17624 = vmatpush3.bf16.msra.mxu0 %v18982_v24  ;;  %v2721_v61 = vmul.f32 %v2713_v4, %v24459_v19  ;;  %v18992_v34 = vld [vmem:[%s24287_s1 + $0xa0] sm:$0xff]   ;;  %v19509_v19 = vld [vmem:[#allocation2 + $0x88] sm:$0xf] }
 0x1ee   : > { %17648 = vmatpush3.bf16.msra.mxu1 %v18983_v57  ;;  %v3551_v57 = vpop.f32.mrf.mxu0  ;;  %17625 = vmatprep.subr.bf16.mxu0 %v18984_v8  ;;  %v6318_v39 = vsel %vm1100_vm1, %v21341_v36, %v21297_v40  ;;  %v3305_v1 = vadd.f32 %v3297_v56, %v2716_v52  ;;  %v21416_v40 = vld [vmem:[#allocation3 + $0x28] sm:$0xf]  ;;  %v21418_v36 = vld [vmem:[#allocation3 + $0x2c] sm:$0xf] }
 0x1ef   : > { %v3696_v50 = vpop.f32.mrf.mxu1  ;;  %17649 = vmatprep.subr.bf16.mxu1 %v18985_v7  ;;  %17595 = vmatprep.mubr.bf16.mxu0 %v24463_v62  ;;  %v3729_v9 = vadd.f32 %v17329_v38, %v3584_v2  ;;  %v3582_v54 = vadd.f32 %v3551_v57, %v3443_v47  ;;  %v3302_v59 = vadd.f32 %v3286_v53, %v2721_v61  ;;  %v18993_v2 = vld [vmem:[%s24287_s1 + $0x158] sm:$0xff]  }
 0x1f0   : > { %17619 = vmatprep.mubr.bf16.mxu1 %v5940_v63  ;;  %v17306_v4 = vpop.f32.mrf.mxu0  ;;  %v21394_v63 = vld [vmem:[%s24289_s3] ss:$0 sm:$0xff]  ;;  %v3303_v53 = vadd.f32 %v3295_v10, %v2714_v16  ;;  %24467 = vst [vmem:[#allocation32_spill] sm:$0xff] %v21416_v40  ;;  %24468 = vst [vmem:[#allocation34_spill] sm:$0xff] %v21418_v36  ;;  %v19049_v40 = vld [vmem:[%s24288_s2 + $0xf0] sm:$0xff]  }
 0x1f1   : > { %v17330_v24 = vpop.f32.mrf.mxu1  ;;  %v3737_v32 = vmul.f32 %v21394_v63, %v3729_v9  ;;  %v3727_v60 = vadd.f32 %v3696_v50, %v3582_v54  ;;  %v3585_v28 = vadd.f32 %v17306_v4, %v3446_v48  ;;  %17626 = vmatpush3.bf16.msra.mxu0 %v18984_v8 }
 0x1f2   : > { %17650 = vmatpush3.bf16.msra.mxu1 %v18985_v7  ;;  %v3554_v37 = vpop.f32.mrf.mxu0  ;;  %17627 = vmatprep.subr.bf16.mxu0 %v18987_v17  ;;  %v21401_v7 = vsel %vm1100_vm1, %v21332_v31, %v21334_v42  ;;  %v21412_v31 = vld [vmem:[%s24289_s3 + $0x1] ss:$0 sm:$0xff]  ;;  %v3448_v52 = vadd.f32 %v21354_v33, %v3303_v53 }
 0x1f3   : > { %v3699_v55 = vpop.f32.mrf.mxu1  ;;  %17651 = vmatprep.subr.bf16.mxu1 %v18988_v51  ;;  %v3735_v26 = vmul.f32 %v21394_v63, %v3727_v60  ;;  %v3730_v46 = vadd.f32 %v17330_v24, %v3585_v28  ;;  %v3583_v8 = vadd.f32 %v3554_v37, %v3444_v25  ;;  %v3745_v22 = vadd.f32 %v21412_v31, %v3737_v32  ;;  %v18996_v25 = vld [vmem:[%s24287_s1 + $0x90] sm:$0xff]   ;;  %v21445_v28 = vld [vmem:[#allocation2 + $0x88] sm:$0xff]  }
 0x1f4   : > { %v17309_v27 = vpop.f32.mrf.mxu0  ;;  %17596 = vmatmul.mubr.bf16.gmra.mxu0 %v21283_v3  ;;  %v18994_v3 = vld [vmem:[%s24287_s1 + $0x98] sm:$0xff]   ;;  %v18998_v37 = vld [vmem:[%s24287_s1 + $0x88] sm:$0xff]  }
 0x1f5   : > { %v17333_v38 = vpop.f32.mrf.mxu1  ;;  %17620 = vmatmul.mubr.bf16.gmra.mxu1 %v21329_v0  ;;  %v3447_v0 = vadd.f32 %v21307_v35, %v3302_v59  ;;  %v3738_v45 = vmul.f32 %v21394_v63, %v3730_v46  ;;  %v3728_v43 = vadd.f32 %v3699_v55, %v3583_v8  ;;  %17628 = vmatpush3.bf16.msra.mxu0 %v18987_v17  ;;  %v3753_v57 = vmax.f32 %v3745_v22, 0.0  ;;  %v19004_v59 = vld [vmem:[#allocation2 + $0x80] sm:$0xff]  }
 0x1f6   : > { %17652 = vmatpush3.bf16.msra.mxu1 %v18988_v51  ;;  %v3743_v51 = vadd.f32 %v21412_v31, %v3735_v26  ;;  %v3588_v50 = vadd.f32 %v17309_v27, %v3449_v23  ;;  %v3567_v61 = vpop.f32.mrf.mxu0  ;;  %17629 = vmatprep.subr.bf16.mxu0 %v18991_v15  ;;  %v3450_v17 = vadd.f32 %v21317_v18, %v3305_v1  ;;  %v18995_v18 = vld [vmem:[%s24287_s1 + $0x150] sm:$0xff]   ;;  %v18997_v26 = vld [vmem:[%s24287_s1 + $0x148] sm:$0xff]   ;;  %v6162_v46 = vshrl.u32 %v21248_v6, 16  ;;  %v19000_v23 = vld [vmem:[%s24287_s1 + $0x80] sm:$0xff]  }
 0x1f7   : > { %v3712_v47 = vpop.f32.mrf.mxu1  ;;  %17653 = vmatprep.subr.bf16.mxu1 %v18992_v34  ;;  %17639 = vmatprep.mubr.bf16.mxu0 %v21401_v7  ;;  %v3746_v12 = vadd.f32 %v21412_v31, %v3738_v45  ;;  %v3736_v58 = vmul.f32 %v21394_v63, %v3728_v43  ;;  %v3586_v29 = vadd.f32 %v3567_v61, %v3447_v0  ;;  %v6166_v53 = vshll.u32 %v19004_v59, 16  ;;  %v18999_v0 = vld [vmem:[%s24287_s1 + $0x140] sm:$0xff]  }
 0x1f8   : > { %17663 = vmatprep.mubr.bf16.mxu1 %v6318_v39  ;;  %v3733_v62 = vadd.f32 %v17333_v38, %v3588_v50  ;;  %v17310_v48 = vpop.f32.mrf.mxu0  ;;  %v3751_v33 = vmax.f32 %v3743_v51, 0.0  ;;  %v6174_v22 = vshll.u32 %v21445_v28, 16  ;;  %v6170_v43 = vshrl.u32 %v19004_v59, 16  ;;  %v19017_v50 = vld [vmem:[#allocation2 + $0x88] ss:$0 sps:$4 sm:$0x11]  }
 0x1f9   : > { %v17334_v20 = vpop.f32.mrf.mxu1  ;;  %v3754_v56 = vmax.f32 %v3746_v12, 0.0  ;;  %v3744_v9 = vadd.f32 %v21412_v31, %v3736_v58  ;;  %v3589_v54 = vadd.f32 %v17310_v48, %v3450_v17  ;;  %v3731_v24 = vadd.f32 %v3712_v47, %v3586_v29  ;;  %17630 = vmatpush3.bf16.msra.mxu0 %v18991_v15  ;;  %v19024_v47 = vld [vmem:[#allocation2 + $0x78] sm:$0xff]   ;;  %v19016_v58 = vld [vmem:[#allocation2 + $0x90] ss:$0 sps:$4 sm:$0x11]  }
 0x1fa   : > { %17654 = vmatpush3.bf16.msra.mxu1 %v18992_v34  ;;  %v3741_v13 = vmul.f32 %v21394_v63, %v3733_v62  ;;  %v3570_v10 = vpop.f32.mrf.mxu0  ;;  %17631 = vmatprep.subr.bf16.mxu0 %v18993_v2  ;;  %v6164_v17 = vor.u32 %v6162_v46, %v21334_v42  ;;  %v6168_v12 = vrot.slane %v6166_v53, 1  ;;  %v19005_v29 = vld [vmem:[%s24287_s1 + $0x238] sm:$0xff]   ;;  %v19011_v46 = vld [vmem:[%s24287_s1 + $0x220] sm:$0xff]  }
 0x1fb   : > { %17655 = vmatprep.subr.bf16.mxu1 %v18994_v3  ;;  %v3715_v34 = vpop.f32.mrf.mxu1  ;;  %v15892_v4 = vpack.c.bf16 %v3754_v56, %v3753_v57  ;;  %v3752_v32 = vmax.f32 %v3744_v9, 0.0  ;;  %v3739_v15 = vmul.f32 %v21394_v63, %v3731_v24  ;;  %v3587_v60 = vadd.f32 %v3570_v10, %v3448_v52  ;;  %v21474_v52 = vld [vmem:[#allocation2 + $0x80] sm:$0xff]   ;;  %v19008_v24 = vld [vmem:[%s24287_s1 + $0x70] sm:$0xff]  }
 0x1fc   : > { %v3734_v55 = vadd.f32 %v17334_v20, %v3589_v54  ;;  %v3749_v39 = vadd.f32 %v21412_v31, %v3741_v13  ;;  %v6176_v20 = vrot.slane %v6174_v22, 1  ;;  %v6490_v57 = vshll.u32 %v19024_v47, 16  ;;  %v19014_v22 = vld [vmem:[%s24287_s1 + $0x58] sm:$0xff]   ;;  %v19036_v9 = vld [vmem:[%s24287_s1 + $0x120] sm:$0xff]  }
 0x1fd   : > { %16013 = vst [vmem:[#allocation3 + $0x38] sm:$0xff] %v15892_v4   ;;  %v15887_v11 = vpack.c.bf16 %v3752_v32, %v3751_v33  ;;  %v3732_v16 = vadd.f32 %v3715_v34, %v3587_v60  ;;  %17632 = vmatpush3.bf16.msra.mxu0 %v18993_v2  ;;  %v3747_v8 = vadd.f32 %v21412_v31, %v3739_v15  ;;  %v6320_v56 = vshll.u32 %v19017_v50, 16  ;;  %v19007_v33 = vld [vmem:[%s24287_s1 + $0x230] sm:$0xff]   ;;  %v19010_v32 = vld [vmem:[%s24287_s1 + $0x68] sm:$0xff]  }
 0x1fe   : > { %17656 = vmatpush3.bf16.msra.mxu1 %v18994_v3  ;;  %v3742_v1 = vmul.f32 %v21394_v63, %v3734_v55  ;;  %17633 = vmatprep.subr.bf16.mxu0 %v18995_v18  ;;  %v3757_v45 = vmax.f32 %v3749_v39, 0.0  ;;  %v6172_v42 = vor.u32 %v6170_v43, %v6168_v12  ;;  %v6169_v54 = vsel %vm1100_vm1, %v6164_v17, %v6168_v12  ;;  %v19012_v39 = vld [vmem:[%s24287_s1 + $0x60] sm:$0xff]   ;;  %v19027_v50 = vld [vmem:[#allocation2 + $0x88] sm:$0xff]  }
 0x1ff   : > { %17657 = vmatprep.subr.bf16.mxu1 %v18996_v25  ;;  %16012 = vst [vmem:[#allocation3 + $0x30] sm:$0xff] %v15887_v11   ;;  %v3740_v38 = vmul.f32 %v21394_v63, %v3732_v16  ;;  %v3755_v2 = vmax.f32 %v3747_v8, 0.0  ;;  %v6488_v10 = vshrl.u32 %v19024_v47, 16  ;;  %v6492_v34 = vrot.slane %v6490_v57, 1  ;;  %v19023_v57 = vld [vmem:[%s24287_s1 + $0x40] sm:$0xff]  }
 0x200   : > { %v3750_v27 = vadd.f32 %v21412_v31, %v3742_v1  ;;  %v6177_v13 = vsel %vm1100_vm1, %v6172_v42, %v6176_v20  ;;  %v6495_v59 = vshll.u32 %v21474_v52, 16  ;;  %v6322_v4 = vrot.slane %v6320_v56, 1 }
 0x201   : > { %v3748_v6 = vadd.f32 %v21412_v31, %v3740_v38  ;;  %17634 = vmatpush3.bf16.msra.mxu0 %v18995_v18  ;;  %v19006_v31 = vld [vmem:[%s24287_s1 + $0x78] sm:$0xff]   ;;  %v6178_v18 = vshrl.u32 %v21445_v28, 16  ;;  %v6493_v11 = vor.u32 %v6492_v34, %v6488_v10  ;;  %v19494_v38 = vld [vmem:[#allocation2 + $0x68] sm:$0xf] }
 0x202   : > { %17658 = vmatpush3.bf16.msra.mxu1 %v18996_v25  ;;  %v3758_v63 = vmax.f32 %v3750_v27, 0.0  ;;  %17635 = vmatprep.subr.bf16.mxu0 %v18997_v26  ;;  %v6182_v25 = vshll.u32 %v19016_v58, 16  ;;  %v21499_v16 = vrot.slane %v6495_v59, 1  ;;  %v6507_v59 = vshrl.u32 %v19027_v50, 16 }
 0x203   : > { %17659 = vmatprep.subr.bf16.mxu1 %v18998_v37  ;;  %v3756_v3 = vmax.f32 %v3748_v6, 0.0  ;;  %v6180_v15 = vor.u32 %v6178_v18, %v6176_v20  ;;  %v19018_v6 = vld [vmem:[%s24287_s1 + $0x210] sm:$0xff]   ;;  %v19033_v18 = vld [vmem:[#allocation2 + $0x98] ss:$0 sps:$4 sm:$0x11]  }
 0x204   : > { %v15902_v51 = vpack.c.bf16 %v3758_v63, %v3757_v45  ;;  %v6184_v60 = vrot.slane %v6182_v25, 1  ;;  %v6498_v8 = vsel %vm1100_vm1, %v6493_v11, %v21499_v16  ;;  %v19019_v45 = vld [vmem:[%s24287_s1 + $0x50] sm:$0xff]   ;;  %v8849_v17 = vld [vmem:[#allocation3 + $0x38] sm:$0xf]  ;;  %v8850_v58 = vld [vmem:[#allocation3 + $0x3c] sm:$0xf] }
 0x205   : > { %v15897_v61 = vpack.c.bf16 %v3756_v3, %v3755_v2  ;;  %17636 = vmatpush3.bf16.msra.mxu0 %v18997_v26  ;;  %v21533_v2 = vld [vmem:[#allocation3 + $0x8] sm:$0xff]   ;;  %v21560_v10 = vcombine.low %v8849_v17, %v8850_v58  ;;  %v19497_v17 = vld [vmem:[#allocation3 + $0x14] sm:$0xf] }
 0x206   : > { %17660 = vmatpush3.bf16.msra.mxu1 %v18998_v37  ;;  %16015 = vst [vmem:[#allocation3 + $0x48] sm:$0xff] %v15902_v51   ;;  %17637 = vmatprep.subr.bf16.mxu0 %v18999_v0  ;;  %v21476_v62 = vld [vmem:[#allocation3 + $0x30] sm:$0xf]  ;;  %v21478_v48 = vld [vmem:[#allocation3 + $0x34] sm:$0xf]  ;;  %v6323_v37 = vsel %vm1100_vm1, %v6172_v42, %v6322_v4  ;;  %v6185_v1 = vsel %vm1100_vm1, %v6180_v15, %v6184_v60  ;;  %v19020_v3 = vld [vmem:[%s24287_s1 + $0x208] sm:$0xff]  }
 0x207   : > { %17661 = vmatprep.subr.bf16.mxu1 %v19000_v23  ;;  %24469 = vst [vmem:[#allocation15_spill] sm:$0xff] %v21476_v62  ;;  %16014 = vst [vmem:[#allocation3 + $0x40] sm:$0xff] %v15897_v61   ;;  %v8847_v28 = vld [vmem:[#allocation3 + $0x30] sm:$0xf]  ;;  %v8848_v55 = vld [vmem:[#allocation3 + $0x34] sm:$0xf] }
 0x208   : > { %24470 = vst [vmem:[#allocation11_spill] sm:$0xff] %v21478_v48  ;;  %v21506_v26 = vcombine.low %v8847_v28, %v8848_v55  ;;  %v19021_v51 = vld [vmem:[%s24287_s1 + $0x48] sm:$0xff]   ;;  %v21541_v61 = vld [vmem:[#allocation2 + $0x90] sm:$0xff]   ;;  %v7997_v56 = vshll.u32 %v21533_v2, 16  ;;  %24474 = vst [vmem:[#allocation35_spill] sm:$0xff] %v21560_v10 }
 0x209   : > { %17638 = vmatpush3.bf16.msra.mxu0 %v18999_v0  ;;  %v19013_v0 = vld [vmem:[%s24287_s1 + $0x218] sm:$0xff]   ;;  %v21550_v42 = vld [vmem:[#allocation3 + $0x10] sm:$0xff]   ;;  %v19054_v48 = vld [vmem:[%s24288_s2 + $0x28] sm:$0xff]  }
 0x20a   : > { %17662 = vmatpush3.bf16.msra.mxu1 %v19000_v23  ;;  %17671 = vmatprep.subr.bf16.mxu0 %v19005_v29  ;;  %24471 = vst [vmem:[#allocation17_spill] sm:$0xff] %v21506_v26  ;;  %v19495_v23 = vld [vmem:[#allocation2 + $0x6c] sm:$0xf]  ;;  %v21569_v15 = vld [vmem:[#allocation3 + $0x3c] sm:$0xf] }
 0x20b   : > { %17695 = vmatprep.subr.bf16.mxu1 %v19006_v31  ;;  %v14819_v53 = vcombine.low %v19494_v38, %v19495_v23  ;;  %24477 = vst [vmem:[#allocation20_spill] sm:$0xff] %v21569_v15  ;;  %v19029_v28 = vld [vmem:[%s24287_s1 + $0x1f8] sm:$0xff]   ;;  %v19031_v38 = vld [vmem:[%s24287_s1 + $0x1f0] sm:$0xff]   ;;  %v21704_v15 = vld [vmem:[#allocation3 + $0x20] sm:$0xff]  }
 0x20c   : > { %17640 = vmatmul.mubr.bf16.vlgmr.msra.gmra.mxu0 %v6169_v54  ;;  %v21516_v27 = vpop.f32.mrf.mxu0  ;;  %v19504_v4 = vld [vmem:[#allocation2 + $0x7c] sm:$0xf]  ;;  %v19508_v26 = vld [vmem:[#allocation3 + $0x28] sm:$0xf] }
 0x20d   : > { %17664 = vmatmul.mubr.bf16.vlgmr.msra.gmra.mxu1 %v21401_v7  ;;  %17672 = vmatpush3.bf16.msra.mxu0 %v19005_v29  ;;  %v19009_v7 = vld [vmem:[%s24287_s1 + $0x228] sm:$0xff]  }
 0x20e   : > { %17696 = vmatpush3.bf16.msra.mxu1 %v19006_v31  ;;  %17673 = vmatprep.subr.bf16.mxu0 %v19007_v33  ;;  %v21527_v63 = vld [vmem:[#allocation3 + $0x40] sm:$0xf]  ;;  %v21529_v43 = vpop.f32.mrf.mxu0  ;;  %v21531_v47 = vld [vmem:[#allocation3 + $0x44] sm:$0xf]  ;;  %v21575_v55 = vld [vmem:[#allocation3 + $0x48] sm:$0xf] }
 0x20f   : > { %17697 = vmatprep.subr.bf16.mxu1 %v19008_v24  ;;  %17643 = vmatprep.mubr.bf16.mxu0 %v6177_v13  ;;  %24472 = vst [vmem:[#allocation30_spill] sm:$0xff] %v21527_v63  ;;  %24473 = vst [vmem:[#allocation31_spill] sm:$0xff] %v21531_v47  ;;  %v8851_v29 = vld [vmem:[#allocation3 + $0x40] sm:$0xf]  ;;  %v8852_v20 = vld [vmem:[#allocation3 + $0x44] sm:$0xf] }
 0x210   : > { %17667 = vmatprep.mubr.bf16.mxu1 %v6169_v54  ;;  %v21545_v31 = vpop.f32.mrf.mxu0  ;;  %v6499_v54 = vshrl.u32 %v21474_v52, 16  ;;  %v6511_v13 = vshll.u32 %v21541_v61, 16  ;;  %v21562_v34 = vcombine.low %v8851_v29, %v8852_v20  ;;  %v21567_v52 = vld [vmem:[#allocation3 + $0x38] sm:$0xf]  ;;  %24478 = vst [vmem:[#allocation6_spill] sm:$0xff] %v21575_v55 }
 0x211   : > { %17674 = vmatpush3.bf16.msra.mxu0 %v19007_v33  ;;  %v19022_v33 = vld [vmem:[%s24287_s1 + $0x200] sm:$0xff]   ;;  %24476 = vst [vmem:[#allocation19_spill] sm:$0xff] %v21567_v52  ;;  %v21577_v11 = vld [vmem:[#allocation3 + $0x4c] sm:$0xf]  ;;  %v24481_v20 = vld [vmem:[#allocation27_spill] sm:$0xff] }
 0x212   : > { %17698 = vmatpush3.bf16.msra.mxu1 %v19008_v24  ;;  %17675 = vmatprep.subr.bf16.mxu0 %v19009_v7  ;;  %v6503_v24 = vshll.u32 %v19027_v50, 16  ;;  %v21554_v25 = vpop.f32.mrf.mxu0  ;;  %24475 = vst [vmem:[#allocation36_spill] sm:$0xff] %v21562_v34  ;;  %v6501_v60 = vor.u32 %v6499_v54, %v21499_v16  ;;  %24479 = vst [vmem:[#allocation33_spill] sm:$0xff] %v21577_v11  ;;  %v21585_v16 = vpop.f32.mrf.mxu1  ;;  %v19499_v54 = vld [vmem:[#allocation2 + $0x7c] sm:$0xf] }
 0x213   : > { %17699 = vmatprep.subr.bf16.mxu1 %v19010_v32  ;;  %v19047_v52 = vld [vmem:[%s24288_s2 + $0xf8] sm:$0xff]  }
 0x214   : > { %17644 = vmatmul.mubr.bf16.gmra.mxu0 %v6185_v1  ;;  %v7182_v1 = vld [vmem:[#allocation3 + $0xc] sm:$0x8]  ;;  %v21605_v29 = vpop.f32.mrf.mxu1 }
 0x215   : > { %17668 = vmatmul.mubr.bf16.gmra.mxu1 %v6323_v37  ;;  %17676 = vmatpush3.bf16.msra.mxu0 %v19009_v7  ;;  %v6505_v7 = vrot.slane %v6503_v24, 1  ;;  %v19028_v37 = vld [vmem:[%s24287_s1 + $0x138] sm:$0xff]  }
 0x216   : > { %17700 = vmatpush3.bf16.msra.mxu1 %v19010_v32  ;;  %17677 = vmatprep.subr.bf16.mxu0 %v19011_v46  ;;  %v21565_v32 = vpop.f32.mrf.mxu0 }
 0x217   : > { %17701 = vmatprep.subr.bf16.mxu1 %v19012_v39  ;;  %17687 = vmatprep.mubr.bf16.mxu0 %v6498_v8  ;;  %v21583_v8 = vrot.slane %v7997_v56, 1  ;;  %v6509_v23 = vor.u32 %v6507_v59, %v6505_v7  ;;  %v6506_v50 = vsel %vm1100_vm1, %v6501_v60, %v6505_v7  ;;  %v19498_v56 = vld [vmem:[#allocation2 + $0x78] sm:$0xf]  ;;  %v19035_v60 = vld [vmem:[%s24287_s1 + $0x1e8] sm:$0xff]   ;;  %v7836_v7 = vshll.u32 %v21550_v42, 16 }
 0x218   : > { %17711 = vmatprep.mubr.bf16.mxu1 %v14819_v53  ;;  %v6515_v53 = vshrl.u32 %v21541_v61, 16  ;;  %v19496_v61 = vld [vmem:[#allocation3 + $0x18] sm:$0xf]  ;;  %v21609_v24 = vcombine.low %v19498_v56, %v19499_v54  ;;  %v7158_v56 = vld [vmem:[#allocation3 + $0x8] sm:$0xf] }
 0x219   : > { %17678 = vmatpush3.bf16.msra.mxu0 %v19011_v46  ;;  %v21603_v58 = vcombine.low %v19497_v17, %v19496_v61  ;;  %v7157_v17 = vld [vmem:[#allocation3 + $0x4] sm:$0x8]  ;;  %v7159_v54 = vld [vmem:[#allocation3 + $0xc] sm:$0xf] }
 0x21a   : > { %17702 = vmatpush3.bf16.msra.mxu1 %v19012_v39  ;;  %17679 = vmatprep.subr.bf16.mxu0 %v19013_v0  ;;  %v6513_v39 = vrot.slane %v6511_v13, 1 }
 0x21b   : > { %17703 = vmatprep.subr.bf16.mxu1 %v19014_v22 }
 0x21d   : > { %17680 = vmatpush3.bf16.msra.mxu0 %v19013_v0  ;;  %v21591_v0 = vld [vmem:[#allocation3 + $0x18] sm:$0xff]  }
 0x21e   : > { %17704 = vmatpush3.bf16.msra.mxu1 %v19014_v22  ;;  %17681 = vmatprep.subr.bf16.mxu0 %v19018_v6  ;;  %v6519_v22 = vshll.u32 %v19033_v18, 16  ;;  %v19500_v18 = vld [vmem:[#allocation3 + $0x10] sm:$0xf]  ;;  %v7841_v61 = vshll.u32 %v21591_v0, 16 }
 0x21f   : > { %17705 = vmatprep.subr.bf16.mxu1 %v19019_v45 }
 0x220   : > { %v6521_v59 = vrot.slane %v6519_v22, 1  ;;  %v21622_v22 = vpop.f32.mrf.mxu1 }
 0x221   : > { %17682 = vmatpush3.bf16.msra.mxu0 %v19018_v6 }
 0x222   : > { %17706 = vmatpush3.bf16.msra.mxu1 %v19019_v45  ;;  %17683 = vmatprep.subr.bf16.mxu0 %v19020_v3  ;;  %v21595_v45 = vpop.f32.mrf.mxu0  ;;  %v21644_v6 = vpop.f32.mrf.mxu1 }
 0x223   : > { %17707 = vmatprep.subr.bf16.mxu1 %v19021_v51  ;;  %24480 = vst [vmem:[#allocation28_spill] sm:$0xff] %v21595_v45 }
 0x224   : > { %v21611_v13 = vpop.f32.mrf.mxu0 }
 0x225   : > { %17684 = vmatpush3.bf16.msra.mxu0 %v19020_v3  ;;  %v19030_v3 = vld [vmem:[%s24287_s1 + $0x130] sm:$0xff]   ;;  %24482 = vst [vmem:[#allocation27_spill] sm:$0xff] %v21611_v13 }
 0x226   : > { %17708 = vmatpush3.bf16.msra.mxu1 %v19021_v51  ;;  %17685 = vmatprep.subr.bf16.mxu0 %v19022_v33  ;;  %v19502_v51 = vld [vmem:[#allocation2 + $0x84] sm:$0xf]  ;;  %v21627_v12 = vpop.f32.mrf.mxu0 }
 0x227   : > { %17709 = vmatprep.subr.bf16.mxu1 %v19023_v57  ;;  %24483 = vst [vmem:[#allocation37_spill] sm:$0xff] %v21627_v12 }
 0x229   : > { %17686 = vmatpush3.bf16.msra.mxu0 %v19022_v33  ;;  %v14908_v33 = vcombine.low %v7182_v1, %v19500_v18  ;;  %v7234_v1 = vshrl.u32 %v21603_v58, 16 }
 0x22a   : > { %17710 = vmatpush3.bf16.msra.mxu1 %v19023_v57  ;;  %17719 = vmatprep.subr.bf16.mxu0 %v19028_v37  ;;  %v6514_v57 = vsel %vm1100_vm1, %v6509_v23, %v6513_v39  ;;  %v6517_v23 = vor.u32 %v6515_v53, %v6513_v39 }
 0x22b   : > { %17743 = vmatprep.subr.bf16.mxu1 %v19029_v28  ;;  %v7226_v39 = vshrl.u32 %v14908_v33, 16  ;;  %v7229_v53 = vshll.u32 %v14908_v33, 16  ;;  %v7237_v33 = vshll.u32 %v21603_v58, 16 }
 0x22c   : > { %17688 = vmatmul.mubr.bf16.vlgmr.msra.gmra.mxu0 %v6506_v50  ;;  %v19501_v50 = vld [vmem:[#allocation2 + $0x80] sm:$0xf]  ;;  %v6522_v35 = vsel %vm1100_vm1, %v6517_v23, %v6521_v59  ;;  %v19039_v59 = vld [vmem:[%s24287_s1 + $0x1d8] sm:$0xff]  }
 0x22d   : > { %17712 = vmatmul.mubr.bf16.vlgmr.msra.gmra.mxu1 %v24481_v20  ;;  %17720 = vmatpush3.bf16.msra.mxu0 %v19028_v37  ;;  %v21625_v37 = vcombine.low %v19501_v50, %v19502_v51  ;;  %v19037_v51 = vld [vmem:[%s24287_s1 + $0x1e0] sm:$0xff]   ;;  %v21640_v50 = vrot.slane %v7841_v61, 1  ;;  %v19503_v23 = vld [vmem:[#allocation2 + $0x78] sm:$0xf]  ;;  %v21650_v11 = vrot.slane %v7226_v39, 3  ;;  %v21652_v58 = vrot.slane %v7229_v53, 4 }
 0x22e   : > { %17744 = vmatpush3.bf16.msra.mxu1 %v19029_v28  ;;  %17721 = vmatprep.subr.bf16.mxu0 %v19030_v3  ;;  %v19034_v28 = vld [vmem:[%s24287_s1 + $0x128] sm:$0xff]   ;;  %v14872_v46 = vcombine.low %v19503_v23, %v19504_v4  ;;  %v21654_v61 = vrot.slane %v7234_v1, 3  ;;  %v19505_v1 = vld [vmem:[#allocation3 + $0x1c] sm:$0xf]  ;;  %v19506_v53 = vld [vmem:[#allocation3 + $0x20] sm:$0xf] }
 0x22f   : > { %17745 = vmatprep.subr.bf16.mxu1 %v19031_v38  ;;  %17691 = vmatprep.mubr.bf16.mxu0 %v6514_v57  ;;  %v21629_v57 = vrot.slane %v7836_v7, 1  ;;  %v14921_v7 = vcombine.low %v7157_v17, %v7158_v56  ;;  %v19038_v56 = vld [vmem:[%s24287_s1 + $0x118] sm:$0xff]  }
 0x230   : > { %17715 = vmatprep.mubr.bf16.mxu1 %v21609_v24 }
 0x231   : > { %17722 = vmatpush3.bf16.msra.mxu0 %v19030_v3  ;;  %v14922_v3 = vcombine.low %v7159_v54, %v19500_v18  ;;  %v21656_v18 = vpop.f32.mrf.mxu1  ;;  %v7396_v4 = vshrl.u32 %v14921_v7, 16  ;;  %v7399_v54 = vshll.u32 %v14921_v7, 16  ;;  %v21674_v7 = vrot.slane %v7237_v33, 4 }
 0x232   : > { %17746 = vmatpush3.bf16.msra.mxu1 %v19031_v38  ;;  %v21642_v38 = vpop.f32.mrf.mxu0  ;;  %17723 = vmatprep.subr.bf16.mxu0 %v19034_v28 }
 0x233   : > { %17747 = vmatprep.subr.bf16.mxu1 %v19035_v60  ;;  %v7404_v39 = vshrl.u32 %v14922_v3, 16  ;;  %v21676_v55 = vrot.slane %v7396_v4, 3 }
 0x234   : > { %17692 = vmatmul.mubr.bf16.gmra.mxu0 %v6522_v35  ;;  %v21658_v17 = vpop.f32.mrf.mxu0  ;;  %v19041_v35 = vld [vmem:[%s24287_s1 + $0x1d0] sm:$0xff]  }
 0x235   : > { %17716 = vmatmul.mubr.bf16.gmra.mxu1 %v21625_v37  ;;  %17724 = vmatpush3.bf16.msra.mxu0 %v19034_v28  ;;  %v21670_v28 = vpop.f32.mrf.mxu1  ;;  %v21688_v33 = vrot.slane %v7404_v39, 3 }
 0x236   : > { %17748 = vmatpush3.bf16.msra.mxu1 %v19035_v60  ;;  %17725 = vmatprep.subr.bf16.mxu0 %v19036_v9  ;;  %v19040_v60 = vld [vmem:[%s24287_s1 + $0x110] sm:$0xff]   ;;  %24484 = vst [vmem:[#allocation38_spill] sm:$0xff] %v21670_v28  ;;  %v21672_v23 = vpop.f32.mrf.mxu0 }
 0x237   : > { %17749 = vmatprep.subr.bf16.mxu1 %v19037_v51  ;;  %17735 = vmatprep.mubr.bf16.mxu0 %v24481_v20  ;;  %v14910_v20 = vcombine.low %v19505_v1, %v19506_v53  ;;  %24485 = vst [vmem:[#allocation39_spill] sm:$0xff] %v21672_v23  ;;  %v21680_v47 = vpop.f32.mrf.mxu1  ;;  %v19043_v1 = vld [vmem:[%s24287_s1 + $0x1c8] sm:$0xff]  }
 0x238   : > { %17759 = vmatprep.mubr.bf16.mxu1 %v14872_v46  ;;  %v21678_v46 = vrot.slane %v7399_v54, 4  ;;  %24486 = vst [vmem:[#allocation40_spill] sm:$0xff] %v21680_v47  ;;  %v21690_v53 = vpop.f32.mrf.mxu0  ;;  %v19514_v47 = vld [vmem:[#allocation2 + $0x94] sm:$0xf] }
 0x239   : > { %17726 = vmatpush3.bf16.msra.mxu0 %v19036_v9  ;;  %v19042_v9 = vld [vmem:[%s24287_s1 + $0x108] sm:$0xff]   ;;  %v7243_v4 = vshrl.u32 %v14910_v20, 16  ;;  %24487 = vst [vmem:[#allocation41_spill] sm:$0xff] %v21690_v53  ;;  %v7246_v54 = vshll.u32 %v14910_v20, 16  ;;  %v21700_v63 = vpop.f32.mrf.mxu1  ;;  %v19048_v20 = vld [vmem:[%s24288_s2 + $0x38] sm:$0xff]  }
 0x23a   : > { %17750 = vmatpush3.bf16.msra.mxu1 %v19037_v51  ;;  %17727 = vmatprep.subr.bf16.mxu0 %v19038_v56  ;;  %v7407_v51 = vshll.u32 %v14922_v3, 16  ;;  %v19044_v3 = vld [vmem:[%s24287_s1 + $0x100] sm:$0xff]   ;;  %24488 = vst [vmem:[#allocation42_spill] sm:$0xff] %v21700_v63  ;;  %v21702_v39 = vpop.f32.mrf.mxu0  ;;  %v19510_v63 = vld [vmem:[#allocation2 + $0x8c] sm:$0xf] }
 0x23b   : > { %17751 = vmatprep.subr.bf16.mxu1 %v19039_v59  ;;  %24489 = vst [vmem:[#allocation43_spill] sm:$0xff] %v21702_v39  ;;  %v14874_v12 = vcombine.low %v19509_v19, %v19510_v63  ;;  %v7538_v53 = vld [vmem:[#allocation3 + $0x14] sm:$0x8]  ;;  %v19511_v19 = vld [vmem:[#allocation3 + $0x2c] sm:$0xf] }
 0x23c   : > { %v21718_v34 = vpop.f32.mrf.mxu0 }
 0x23d   : > { %17728 = vmatpush3.bf16.msra.mxu0 %v19038_v56  ;;  %v21698_v56 = vrot.slane %v7407_v51, 4  ;;  %v21714_v51 = vrot.slane %v7243_v4, 3  ;;  %24490 = vst [vmem:[#allocation44_spill] sm:$0xff] %v21718_v34  ;;  %v19050_v4 = vld [vmem:[%s24288_s2 + $0x30] sm:$0xff]  }
 0x23e   : > { %17752 = vmatpush3.bf16.msra.mxu1 %v19039_v59  ;;  %17729 = vmatprep.subr.bf16.mxu0 %v19040_v60  ;;  %v19045_v59 = vld [vmem:[%s24287_s1 + $0x1c0] sm:$0xff]   ;;  %v21732_v62 = vpop.f32.mrf.mxu0 }
 0x23f   : > { %17753 = vmatprep.subr.bf16.mxu1 %v19041_v35  ;;  %24491 = vst [vmem:[#allocation45_spill] sm:$0xff] %v21732_v62  ;;  %v19513_v62 = vld [vmem:[#allocation2 + $0x90] sm:$0xf] }
 0x240   : > { %v21748_v63 = vpop.f32.mrf.mxu0  ;;  %v14875_v13 = vcombine.low %v19513_v62, %v19514_v47  ;;  %v7402_v62 = vor.u32 %v21678_v46, %v21676_v55  ;;  %v21775_v47 = vor.u32 %v21698_v56, %v21688_v33  ;;  %v19062_v55 = vld [vmem:[%s24288_s2 + $0x20] sm:$0xff]   ;;  %v19063_v33 = vld [vmem:[%s24288_s2 + $0xd8] sm:$0xff]  }
 0x241   : > { %17730 = vmatpush3.bf16.msra.mxu0 %v19040_v60  ;;  %v21716_v60 = vrot.slane %v7246_v54, 4 }
 0x242   : > { %17754 = vmatpush3.bf16.msra.mxu1 %v19041_v35  ;;  %17731 = vmatprep.subr.bf16.mxu0 %v19042_v9  ;;  %v21706_v35 = vpop.f32.mrf.mxu1 }
 0x243   : > { %17755 = vmatprep.subr.bf16.mxu1 %v19043_v1  ;;  %v7249_v30 = vor.u32 %v21716_v60, %v21714_v51 }
 0x244   : > { %v21720_v10 = vpop.f32.mrf.mxu1 }
 0x245   : > { %17732 = vmatpush3.bf16.msra.mxu0 %v19042_v9  ;;  %v7849_v9 = vshll.u32 %v21704_v15, 16 }
 0x246   : > { %17756 = vmatpush3.bf16.msra.mxu1 %v19043_v1  ;;  %17733 = vmatprep.subr.bf16.mxu0 %v19044_v3  ;;  %v19507_v1 = vld [vmem:[#allocation3 + $0x24] sm:$0xf] }
 0x247   : > { %17757 = vmatprep.subr.bf16.mxu1 %v19045_v59  ;;  %v14911_v36 = vcombine.low %v19507_v1, %v19508_v26  ;;  %v21728_v54 = vcombine.low %v19507_v1, %v19507_v1  ;;  %v21734_v26 = vpop.f32.mrf.mxu1 }
 0x249   : > { %17734 = vmatpush3.bf16.msra.mxu0 %v19044_v3  ;;  %v7252_v1 = vshrl.u32 %v14911_v36, 16  ;;  %v7255_v49 = vshll.u32 %v14911_v36, 16  ;;  %v19053_v3 = vld [vmem:[%s24288_s2 + $0xe8] sm:$0xff]   ;;  %v14912_v36 = vcombine.low %v19511_v19, %v19511_v19 }
 0x24a   : > { %17758 = vmatpush3.bf16.msra.mxu1 %v19045_v59  ;;  %17767 = vmatprep.subr.bf16.mxu0 %v19047_v52  ;;  %v24492_v59 = vld [vmem:[#allocation23_spill] sm:$0xff] }
 0x24b   : > { %17791 = vmatprep.subr.bf16.mxu1 %v19048_v20  ;;  %v24494_v41 = vcombine.low %v24492_v59, %v24493_v14  ;;  %v7414_v14 = vshrl.u32 %v21728_v54, 16  ;;  %24495 = vst [vmem:[#allocation23_spill] sm:$0xff] %v21748_v63  ;;  %v21753_v59 = vpop.f32.mrf.mxu1  ;;  %v21755_v34 = vrot.slane %v7252_v1, 3  ;;  %v19515_v63 = vld [vmem:[#allocation2 + $0x88] sm:$0xf] }
 0x24c   : > { %17736 = vmatmul.mubr.bf16.vlgmr.msra.gmra.mxu0 %v21609_v24  ;;  %v19512_v24 = vld [vmem:[#allocation3 + $0x18] sm:$0xf]  ;;  %v21761_v19 = vpop.f32.mrf.mxu0  ;;  %v19517_v1 = vld [vmem:[#allocation3 + $0x20] sm:$0xf] }
 0x24d   : > { %17760 = vmatmul.mubr.bf16.vlgmr.msra.gmra.mxu1 %v24494_v41  ;;  %v7417_v41 = vshll.u32 %v21728_v54, 16  ;;  %17768 = vmatpush3.bf16.msra.mxu0 %v19047_v52  ;;  %v21757_v52 = vrot.slane %v7255_v49, 4  ;;  %v21759_v54 = vrot.slane %v7849_v9, 1  ;;  %v21771_v49 = vpop.f32.mrf.mxu1  ;;  %v21780_v9 = vrot.slane %v7414_v14, 3  ;;  %v19518_v14 = vld [vmem:[#allocation3 + $0x1c] sm:$0xf] }
 0x24e   : > { %17792 = vmatpush3.bf16.msra.mxu1 %v19048_v20  ;;  %17769 = vmatprep.subr.bf16.mxu0 %v19049_v40  ;;  %v21751_v20 = vcombine.low %v7538_v53, %v19512_v24  ;;  %v7232_v53 = vor.u32 %v21652_v58, %v21650_v11  ;;  %v7261_v11 = vshrl.u32 %v14912_v36, 16  ;;  %v7264_v58 = vshll.u32 %v14912_v36, 16 }
 0x24f   : > { %17793 = vmatprep.subr.bf16.mxu1 %v19050_v4  ;;  %17739 = vmatprep.mubr.bf16.mxu0 %v21625_v37  ;;  %v19516_v37 = vld [vmem:[#allocation2 + $0x8c] sm:$0xf]  ;;  %v21796_v56 = vpop.f32.mrf.mxu1  ;;  %v14949_v36 = vcombine.low %v19518_v14, %v19517_v1 }
 0x250   : > { %17763 = vmatprep.mubr.bf16.mxu1 %v14874_v12  ;;  %v14847_v5 = vcombine.low %v19515_v63, %v19516_v37  ;;  %v21767_v12 = vor.u32 %v21674_v7, %v21654_v61  ;;  %v19064_v61 = vld [vmem:[%s24288_s2 + $0x18] sm:$0xff]   ;;  %v21789_v7 = vpop.f32.mrf.mxu0  ;;  %24496 = vst [vmem:[#allocation10_spill] sm:$0xff] %v21796_v56  ;;  %v21804_v63 = vrot.slane %v7417_v41, 4  ;;  %v7591_v24 = vshll.u32 %v21751_v20, 16 }
 0x251   : > { %17770 = vmatpush3.bf16.msra.mxu0 %v19049_v40  ;;  %v7588_v40 = vshrl.u32 %v21751_v20, 16  ;;  %v7596_v41 = vshrl.u32 %v14949_v36, 16  ;;  %v7543_v20 = vld [vmem:[#allocation3 + $0x28] sm:$0xf]  ;;  %v7599_v14 = vshll.u32 %v14949_v36, 16 }
 0x252   : > { %17794 = vmatpush3.bf16.msra.mxu1 %v19050_v4  ;;  %v19061_v4 = vld [vmem:[%s24288_s2 + $0xe0] sm:$0xff]   ;;  %17771 = vmatprep.subr.bf16.mxu0 %v19053_v3  ;;  %v7241_v46 = vsel %vm491_vm0, %v7232_v53, %v21767_v12  ;;  %v21807_v37 = vpop.f32.mrf.mxu0  ;;  %v19065_v53 = vld [vmem:[%s24288_s2 + $0xd0] sm:$0xff]   ;;  %v21829_v1 = vrot.slane %v7591_v24, 4  ;;  %v7412_v60 = vsel %vm491_vm0, %v21775_v47, %v21767_v12 }
 0x253   : > { %17795 = vmatprep.subr.bf16.mxu1 %v19054_v48 }
 0x254   : > { %17740 = vmatmul.mubr.bf16.gmra.mxu0 %v14847_v5  ;;  %v21800_v5 = vrot.slane %v7261_v11, 3  ;;  %v21817_v11 = vrot.slane %v7588_v40, 3  ;;  %v19519_v40 = vld [vmem:[#allocation3 + $0x24] sm:$0xf] }
 0x255   : > { %17764 = vmatmul.mubr.bf16.gmra.mxu1 %v14875_v13  ;;  %17772 = vmatpush3.bf16.msra.mxu0 %v19053_v3  ;;  %v7411_v13 = vsel %vm491_vm0, %v7402_v62, %v21775_v47  ;;  %v21809_v3 = vpop.f32.mrf.mxu1  ;;  %v19066_v62 = vld [vmem:[%s24288_s2 + $0x10] sm:$0xff]   ;;  %v19079_v47 = vld [vmem:[%s24288_s2 + $0x168] sm:$0xff]  }
 0x256   : > { %17796 = vmatpush3.bf16.msra.mxu1 %v19054_v48  ;;  %17783 = vmatprep.mubr.bf16.mxu0 %v7241_v46  ;;  %v21802_v48 = vrot.slane %v7264_v58, 4  ;;  %v21819_v58 = vpop.f32.mrf.mxu0  ;;  %v19068_v46 = vld [vmem:[%s24288_s2 + $0x8] sm:$0xff]  }
 0x257   : > { %17807 = vmatprep.mubr.bf16.mxu1 %v7411_v13  ;;  %17773 = vmatprep.subr.bf16.mxu0 %v19061_v4  ;;  %v14950_v13 = vcombine.low %v19519_v40, %v7543_v20  ;;  %v7598_v20 = vrot.slane %v7596_v41, 3  ;;  %v21843_v40 = vld [vmem:[#allocation3 + $0x28] sm:$0xff]   ;;  %v7601_v41 = vrot.slane %v7599_v14, 4 }
 0x258   : > { %17797 = vmatprep.subr.bf16.mxu1 %v19062_v55  ;;  %v7857_v51 = vshll.u32 %v21843_v40, 16 }
 0x259   : > { %17774 = vmatpush3.bf16.msra.mxu0 %v19061_v4  ;;  %v19067_v4 = vld [vmem:[%s24288_s2 + $0xc8] sm:$0xff]   ;;  %v7605_v24 = vshrl.u32 %v14950_v13, 16  ;;  %v7608_v39 = vshll.u32 %v14950_v13, 16  ;;  %v19075_v13 = vld [vmem:[%s24288_s2 + $0x170] sm:$0xff]   ;;  %v21895_v45 = vor.u32 %v7601_v41, %v7598_v20  ;;  %v21911_v20 = vld [vmem:[#allocation3 + $0x20] sm:$0xff]  }
 0x25a   : > { %17798 = vmatpush3.bf16.msra.mxu1 %v19062_v55  ;;  %17775 = vmatprep.subr.bf16.mxu0 %v19063_v33  ;;  %v21821_v55 = vpop.f32.mrf.mxu1  ;;  %24502 = vst [vmem:[#allocation50_spill] sm:$0xff] %v21911_v20 }
 0x25b   : > { %17799 = vmatprep.subr.bf16.mxu1 %v19064_v61  ;;  %24497 = vst [vmem:[#allocation46_spill] sm:$0xff] %v21821_v55  ;;  %v19070_v55 = vld [vmem:[%s24288_s2] sm:$0xff]   ;;  %v21867_v14 = vrot.slane %v7605_v24, 3  ;;  %v19078_v24 = vld [vmem:[%s24288_s2 + $0x1a8] sm:$0xff]  }
 0x25c   : > { %v21831_v23 = vpop.f32.mrf.mxu1 }
 0x25d   : > { %17776 = vmatpush3.bf16.msra.mxu0 %v19063_v33  ;;  %v19069_v33 = vld [vmem:[%s24288_s2 + $0xc0] sm:$0xff]  }
 0x25e   : > { %17800 = vmatpush3.bf16.msra.mxu1 %v19064_v61  ;;  %17777 = vmatprep.subr.bf16.mxu0 %v19065_v53  ;;  %v21833_v61 = vpop.f32.mrf.mxu0  ;;  %v21841_v36 = vpop.f32.mrf.mxu1 }
 0x25f   : > { %17801 = vmatprep.subr.bf16.mxu1 %v19066_v62 }
 0x260   : > { %v21845_v56 = vpop.f32.mrf.mxu0  ;;  %v21853_v21 = vpop.f32.mrf.mxu1 }
 0x261   : > { %17778 = vmatpush3.bf16.msra.mxu0 %v19065_v53  ;;  %24498 = vst [vmem:[#allocation47_spill] sm:$0xff] %v21845_v56  ;;  %v19071_v53 = vld [vmem:[%s24288_s2 + $0x1b8] sm:$0xff]  }
 0x262   : > { %17802 = vmatpush3.bf16.msra.mxu1 %v19066_v62  ;;  %17779 = vmatprep.subr.bf16.mxu0 %v19067_v4  ;;  %v19072_v62 = vld [vmem:[%s24288_s2 + $0x178] sm:$0xff]   ;;  %v21857_v56 = vpop.f32.mrf.mxu0 }
 0x263   : > { %17803 = vmatprep.subr.bf16.mxu1 %v19068_v46 }
 0x265   : > { %17780 = vmatpush3.bf16.msra.mxu0 %v19067_v4  ;;  %v7258_v4 = vor.u32 %v21757_v52, %v21755_v34  ;;  %v21873_v34 = vpop.f32.mrf.mxu1  ;;  %v7250_v52 = vsel %vm491_vm0, %v21767_v12, %v7249_v30 }
 0x266   : > { %17804 = vmatpush3.bf16.msra.mxu1 %v19068_v46  ;;  %17781 = vmatprep.subr.bf16.mxu0 %v19069_v33  ;;  %v19074_v46 = vld [vmem:[%s24288_s2 + $0x1b0] sm:$0xff]  }
 0x267   : > { %17805 = vmatprep.subr.bf16.mxu1 %v19070_v55  ;;  %v21883_v28 = vpop.f32.mrf.mxu1 }
 0x269   : > { %17782 = vmatpush3.bf16.msra.mxu0 %v19069_v33  ;;  %v7259_v33 = vsel %vm491_vm0, %v7249_v30, %v7258_v4 }
 0x26a   : > { %17806 = vmatpush3.bf16.msra.mxu1 %v19070_v55  ;;  %17815 = vmatprep.subr.bf16.mxu0 %v19071_v53  ;;  %v21877_v55 = vpop.f32.mrf.mxu0 }
 0x26b   : > { %17839 = vmatprep.subr.bf16.mxu1 %v19072_v62  ;;  %24499 = vst [vmem:[#allocation48_spill] sm:$0xff] %v21877_v55 }
 0x26c   : > { %17784 = vmatmul.mubr.bf16.vlgmr.msra.gmra.mxu0 %v7250_v52  ;;  %v21888_v12 = vpop.f32.mrf.mxu0 }
 0x26d   : > { %17808 = vmatmul.mubr.bf16.vlgmr.msra.gmra.mxu1 %v7412_v60  ;;  %17787 = vmatprep.mubr.bf16.mxu0 %v7259_v33  ;;  %v7420_v60 = vor.u32 %v21804_v63, %v21780_v9  ;;  %v21897_v33 = vpop.f32.mrf.mxu1  ;;  %v19087_v9 = vld [vmem:[%s24288_s2 + $0x160] sm:$0xff]   ;;  %v7610_v63 = vrot.slane %v7608_v39, 4 }
 0x26e   : > { %17811 = vmatprep.mubr.bf16.mxu1 %v7250_v52  ;;  %17816 = vmatpush3.bf16.msra.mxu0 %v19071_v53  ;;  %v24500_v52 = vshrl.u32 %v21550_v42, 16  ;;  %24501 = vst [vmem:[#allocation49_spill] sm:$0xff] %v21897_v33  ;;  %v7267_v53 = vor.u32 %v21802_v48, %v21800_v5  ;;  %v21907_v42 = vrot.slane %v7857_v51, 1  ;;  %v21913_v41 = vpop.f32.mrf.mxu0  ;;  %v7594_v48 = vor.u32 %v21829_v1, %v21817_v11  ;;  %v19520_v1 = vld [vmem:[#allocation3 + $0x30] sm:$0xf] }
 0x26f   : > { %17840 = vmatpush3.bf16.msra.mxu1 %v19072_v62  ;;  %17817 = vmatprep.subr.bf16.mxu0 %v19074_v46  ;;  %v19086_v62 = vld [vmem:[%s24288_s2 + $0x1a0] sm:$0xff]   ;;  %24503 = vst [vmem:[#allocation51_spill] sm:$0xff] %v21913_v41  ;;  %v7421_v5 = vsel %vm491_vm0, %v7249_v30, %v7420_v60  ;;  %v19088_v30 = vld [vmem:[%s24288_s2 + $0x198] sm:$0xff]   ;;  %v21929_v11 = vpop.f32.mrf.mxu1 }
 0x270   : > { %17841 = vmatprep.subr.bf16.mxu1 %v19075_v13  ;;  %v7839_v55 = vor.u32 %v21629_v57, %v24500_v52  ;;  %v21909_v52 = vld [vmem:[#allocation3 + $0x18] sm:$0xff]   ;;  %v7268_v33 = vsel %vm491_vm0, %v7258_v4, %v7267_v53  ;;  %v7603_v51 = vsel %vm491_vm0, %v7594_v48, %v21895_v45  ;;  %v7861_v53 = vshrl.u32 %v21843_v40, 16  ;;  %v19090_v48 = vld [vmem:[%s24288_s2 + $0x190] sm:$0xff]  }
 0x272   : > { %17818 = vmatpush3.bf16.msra.mxu0 %v19074_v46  ;;  %v7544_v46 = vld [vmem:[#allocation3 + $0x2c] sm:$0xf]  ;;  %v21921_v39 = vsel %vm1100_vm1, %v7839_v55, %v21640_v50  ;;  %v21931_v55 = vpop.f32.mrf.mxu0 }
 0x273   : > { %17842 = vmatpush3.bf16.msra.mxu1 %v19075_v13  ;;  %17819 = vmatprep.subr.bf16.mxu0 %v19078_v24  ;;  %24504 = vst [vmem:[#allocation52_spill] sm:$0xff] %v21921_v39  ;;  %v14951_v4 = vcombine.low %v7544_v46, %v19520_v1  ;;  %v19521_v13 = vld [vmem:[#allocation3 + $0x34] sm:$0xf]  ;;  %24505 = vst [vmem:[#allocation53_spill] sm:$0xff] %v21931_v55  ;;  %v21942_v46 = vpop.f32.mrf.mxu1  ;;  %v8172_v55 = vshrl.u32 %v21909_v52, 16 }
 0x274   : > { %17843 = vmatprep.subr.bf16.mxu1 %v19079_v47  ;;  %17788 = vmatmul.mubr.bf16.gmra.mxu0 %v7268_v33  ;;  %v14952_v60 = vcombine.low %v19521_v13, %v19521_v13  ;;  %v19089_v33 = vld [vmem:[%s24288_s2 + $0x158] sm:$0xff]   ;;  %24506 = vst [vmem:[#allocation54_spill] sm:$0xff] %v21942_v46 }
 0x275   : > { %17812 = vmatmul.mubr.bf16.gmra.mxu1 %v7421_v5  ;;  %17831 = vmatprep.mubr.bf16.mxu0 %v7603_v51  ;;  %v8174_v5 = vshll.u32 %v21909_v52, 16  ;;  %v7617_v51 = vshll.u32 %v14951_v4, 16  ;;  %v21946_v40 = vpop.f32.mrf.mxu1  ;;  %v4157_v52 = vadd.f32 %v21585_v16, %v21516_v27 }
 0x276   : > { %17855 = vmatprep.mubr.bf16.mxu1 %v21921_v39  ;;  %17820 = vmatpush3.bf16.msra.mxu0 %v19078_v24  ;;  %v8179_v24 = vshll.u32 %v21911_v20, 16  ;;  %v7623_v1 = vshrl.u32 %v14952_v60, 16  ;;  %v7626_v13 = vshll.u32 %v14952_v60, 16  ;;  %v21944_v39 = vpop.f32.mrf.mxu0  ;;  %24508 = vst [vmem:[#allocation56_spill] sm:$0xff] %v21946_v40  ;;  %v19091_v20 = vld [vmem:[%s24288_s2 + $0x150] sm:$0xff]  }
 0x277   : > { %17844 = vmatpush3.bf16.msra.mxu1 %v19079_v47  ;;  %17821 = vmatprep.subr.bf16.mxu0 %v19086_v62  ;;  %v7614_v47 = vshrl.u32 %v14951_v4, 16  ;;  %24507 = vst [vmem:[#allocation55_spill] sm:$0xff] %v21944_v39  ;;  %v8176_v41 = vrot.slane %v8174_v5, 1  ;;  %v21958_v4 = vor.u32 %v7610_v63, %v21867_v14  ;;  %v24510_v39 = vshrl.u32 %v21533_v2, 16  ;;  %v19093_v2 = vld [vmem:[%s24288_s2 + $0x148] sm:$0xff]  }
 0x278   : > { %17845 = vmatprep.subr.bf16.mxu1 %v19087_v9  ;;  %v21952_v46 = vrot.slane %v8179_v24, 1  ;;  %v4738_v5 = vadd.f32 %v21761_v19, %v21706_v35  ;;  %v4741_v24 = vadd.f32 %v21807_v37, %v21734_v26  ;;  %v24511_v14 = vshrl.u32 %v21591_v0, 16  ;;  %v21993_v37 = vpop.f32.mrf.mxu1 }
 0x279   : > { %v8000_v40 = vor.u32 %v21583_v8, %v24510_v39  ;;  %v7616_v27 = vrot.slane %v7614_v47, 3  ;;  %v7619_v8 = vrot.slane %v7617_v51, 4  ;;  %v21982_v16 = vrot.slane %v7623_v1, 3  ;;  %v19094_v39 = vld [vmem:[%s24288_s2 + $0x180] sm:$0xff]  }
 0x27a   : > { %17822 = vmatpush3.bf16.msra.mxu0 %v19086_v62  ;;  %v19092_v62 = vld [vmem:[%s24288_s2 + $0x188] sm:$0xff]   ;;  %v7847_v63 = vor.u32 %v24511_v14, %v21640_v50  ;;  %v21984_v35 = vrot.slane %v7626_v13, 4  ;;  %v4149_v26 = vadd.f32 %v21605_v29, %v21529_v43  ;;  %v4390_v0 = vadd.f32 %v21642_v38, %v4157_v52  ;;  %v24514_v1 = vld [vmem:[#allocation4_spill] sm:$0xff]  ;;  %v24516_v52 = vld [vmem:[#allocation43_spill] sm:$0xff] }
 0x27b   : > { %17846 = vmatpush3.bf16.msra.mxu1 %v19087_v9  ;;  %17823 = vmatprep.subr.bf16.mxu0 %v19088_v30  ;;  %v24509_v9 = vshrl.u32 %v21704_v15, 16  ;;  %v21980_v15 = vpop.f32.mrf.mxu0  ;;  %v4730_v50 = vadd.f32 %v21789_v7, %v21720_v10  ;;  %v4733_v19 = vadd.f32 %v21819_v58, %v21753_v59  ;;  %v22014_v29 = vsel %vm1100_vm1, %v8000_v40, %v21629_v57  ;;  %v19095_v58 = vld [vmem:[%s24288_s2 + $0x140] sm:$0xff]   ;;  %v24521_v14 = vld [vmem:[#allocation39_spill] sm:$0xff] }
 0x27c   : > { %17847 = vmatprep.subr.bf16.mxu1 %v19089_v33  ;;  %v22005_v43 = vsel %vm1100_vm1, %v7847_v63, %v21759_v54  ;;  %v4388_v38 = vadd.f32 %v21658_v17, %v4149_v26  ;;  %v4963_v59 = vadd.f32 %v21831_v23, %v4738_v5  ;;  %v22020_v7 = vor.u32 %v7861_v53, %v21907_v42  ;;  %v19104_v23 = vld [vmem:[#allocation3 + $0x30] ss:$0 sps:$4 sm:$0x11]   ;;  %v24515_v13 = vld [vmem:[#allocation8_spill] sm:$0xff]  ;;  %v24518_v5 = vld [vmem:[#allocation47_spill] sm:$0xff] }
 0x27d   : > { %v21963_v60 = vor.u32 %v24509_v9, %v21759_v54  ;;  %v22022_v54 = vpop.f32.mrf.mxu0  ;;  %v22027_v57 = vor.u32 %v7619_v8, %v7616_v27  ;;  %v7629_v17 = vor.u32 %v21984_v35, %v21982_v16  ;;  %v4962_v53 = vadd.f32 %v21873_v34, %v4733_v19  ;;  %v24522_v27 = vld [vmem:[#allocation9_spill] sm:$0xff] }
 0x27e   : > { %17824 = vmatpush3.bf16.msra.mxu0 %v19088_v30  ;;  %v22001_v30 = vsel %vm491_vm0, %v21895_v45, %v21958_v4  ;;  %v4964_v45 = vadd.f32 %v21853_v21, %v4741_v24  ;;  %v4160_v21 = vadd.f32 %v21622_v22, %v21545_v31  ;;  %v4152_v47 = vadd.f32 %v21644_v6, %v21554_v25  ;;  %v24512_v22 = vld [vmem:[#allocation28_spill] sm:$0xff]  ;;  %v24517_v6 = vld [vmem:[#allocation10_spill] sm:$0xff] }
 0x27f   : > { %17848 = vmatpush3.bf16.msra.mxu1 %v19089_v33  ;;  %17825 = vmatprep.subr.bf16.mxu0 %v19090_v48  ;;  %v22010_v10 = vsel %vm1100_vm1, %v21963_v60, %v21907_v42  ;;  %v22031_v33 = vor.u32 %v8176_v41, %v8172_v55  ;;  %v4398_v42 = vmul.f32 %v4390_v0, %v20358_v44  ;;  %v24513_v55 = vld [vmem:[#allocation38_spill] sm:$0xff]  ;;  %v24520_v24 = vld [vmem:[#allocation48_spill] sm:$0xff] }
 0x280   : > { %17849 = vmatprep.subr.bf16.mxu1 %v19091_v20  ;;  %v4173_v51 = vadd.f32 %v21656_v18, %v21565_v32  ;;  %v4754_v41 = vadd.f32 %v21833_v61, %v21771_v49  ;;  %v4757_v31 = vadd.f32 %v21857_v56, %v21809_v3  ;;  %v4396_v34 = vmul.f32 %v4388_v38, %v24514_v1  ;;  %v24519_v18 = vld [vmem:[#allocation46_spill] sm:$0xff]  ;;  %v22057_v61 = vpop.f32.mrf.mxu0  ;;  %v19097_v56 = vld [vmem:[%s24288_s2 + $0xb8] sm:$0xff]  }
 0x281   : > { %v4972_v40 = vmul.f32 %v4964_v45, %v24515_v13  ;;  %v4979_v9 = vadd.f32 %v4963_v59, %v4398_v42  ;;  %v4746_v32 = vadd.f32 %v24518_v5, %v24517_v6  ;;  %v4749_v49 = vadd.f32 %v24520_v24, %v24519_v18  ;;  %v19098_v3 = vld [vmem:[%s24288_s2 + $0x238] sm:$0xff]   ;;  %v24525_v42 = vld [vmem:[#allocation40_spill] sm:$0xff] }
 0x282   : > { %17826 = vmatpush3.bf16.msra.mxu0 %v19090_v48  ;;  %v22038_v48 = vpop.f32.mrf.mxu1  ;;  %v4394_v25 = vadd.f32 %v24516_v52, %v4173_v51  ;;  %v4391_v63 = vadd.f32 %v24521_v14, %v4160_v21  ;;  %v4970_v8 = vmul.f32 %v4962_v53, %v24522_v27  ;;  %v4967_v38 = vadd.f32 %v21883_v28, %v4754_v41  ;;  %v24526_v51 = vld [vmem:[#allocation41_spill] sm:$0xff]  ;;  %v24530_v41 = vld [vmem:[#allocation54_spill] sm:$0xff]  ;;  %v24533_v6 = vld [vmem:[#allocation56_spill] sm:$0xff] }
 0x283   : > { %17850 = vmatpush3.bf16.msra.mxu1 %v19091_v20  ;;  %17827 = vmatprep.subr.bf16.mxu0 %v19092_v62  ;;  %v4961_v20 = vadd.f32 %v21841_v36, %v4730_v50  ;;  %v4165_v36 = vadd.f32 %v24513_v55, %v24512_v22  ;;  %v5124_v26 = vadd.f32 %v21888_v12, %v4979_v9  ;;  %v24527_v22 = vld [vmem:[#allocation51_spill] sm:$0xff]  ;;  %v24529_v9 = vld [vmem:[#allocation49_spill] sm:$0xff]  ;;  %v24532_v52 = vld [vmem:[#allocation42_spill] sm:$0xff] }
 0x284   : > { %17851 = vmatprep.subr.bf16.mxu1 %v19093_v2  ;;  %v5233_v50 = vpop.f32.mrf.mxu1  ;;  %v4968_v59 = vadd.f32 %v21929_v11, %v4757_v31  ;;  %v7621_v45 = vsel %vm491_vm0, %v21958_v4, %v22027_v57  ;;  %v4389_v53 = vadd.f32 %v24526_v51, %v4152_v47  ;;  %v4965_v28 = vadd.f32 %v24529_v9, %v4746_v32  ;;  %v22081_v31 = vpop.f32.mrf.mxu0  ;;  %v19101_v4 = vld [vmem:[%s24288_s2 + $0xb0] sm:$0xff]   ;;  %v24534_v32 = vld [vmem:[#allocation53_spill] sm:$0xff]  ;;  %v24538_v51 = vld [vmem:[#allocation55_spill] sm:$0xff] }
 0x285   : > { %v4977_v0 = vadd.f32 %v4961_v20, %v4396_v34  ;;  %v4980_v20 = vadd.f32 %v4972_v40, %v4391_v63  ;;  %v24528_v34 = vld [vmem:[#allocation5_spill] sm:$0xff]  ;;  %v4966_v11 = vadd.f32 %v24530_v41, %v4749_v49  ;;  %v19102_v47 = vld [vmem:[%s24288_s2 + $0x230] sm:$0xff]   ;;  %v5263_v5 = vadd.f32 %v24533_v6, %v5124_v26 }
 0x286   : > { %17828 = vmatpush3.bf16.msra.mxu0 %v19092_v62  ;;  %v7865_v62 = vshll.u32 %v19104_v23, 16  ;;  %v24524_v23 = vld [vmem:[#allocation27_spill] sm:$0xff]  ;;  %v17525_v55 = vpop.f32.mrf.mxu1  ;;  %v4978_v24 = vadd.f32 %v4970_v8, %v4389_v53  ;;  %v24536_v14 = vld [vmem:[#allocation45_spill] sm:$0xff] }
 0x287   : > { %17852 = vmatpush3.bf16.msra.mxu1 %v19093_v2  ;;  %17829 = vmatprep.subr.bf16.mxu0 %v19094_v39  ;;  %v24523_v2 = vld [vmem:[#allocation44_spill] sm:$0xff]  ;;  %v4176_v21 = vadd.f32 %v24525_v42, %v24524_v23  ;;  %v5122_v12 = vadd.f32 %v24527_v22, %v4977_v0  ;;  %v5125_v18 = vadd.f32 %v24534_v32, %v4980_v20  ;;  %v24537_v0 = vld [vmem:[#allocation13_spill] sm:$0xff]  ;;  %v24540_v20 = vld [vmem:[#allocation23_spill] sm:$0xff] }
 0x288   : > { %17853 = vmatprep.subr.bf16.mxu1 %v19095_v58  ;;  %v4392_v19 = vadd.f32 %v24523_v2, %v4165_v36  ;;  %v4402_v36 = vmul.f32 %v4394_v25, %v24528_v34  ;;  %v7867_v40 = vrot.slane %v7865_v62, 1  ;;  %v4976_v2 = vmul.f32 %v4968_v59, %v24537_v0  ;;  %v5246_v9 = vpop.f32.mrf.mxu1  ;;  %v19105_v8 = vld [vmem:[%s24288_s2 + $0xa8] sm:$0xff]   ;;  %v19165_v0 = vld [vmem:[%s24288_s2 + $0x38] sm:$0xff]  }
 0x289   : > { %v4395_v63 = vadd.f32 %v24536_v14, %v4176_v21  ;;  %v5261_v62 = vadd.f32 %v21993_v37, %v5122_v12  ;;  %v5123_v22 = vadd.f32 %v24538_v51, %v4978_v24  ;;  %v5264_v53 = vadd.f32 %v22038_v48, %v5125_v18 }
 0x28a   : > { %17830 = vmatpush3.bf16.msra.mxu0 %v19094_v39  ;;  %v24531_v39 = vld [vmem:[#allocation37_spill] sm:$0xff]  ;;  %v4983_v23 = vadd.f32 %v4967_v38, %v4402_v36  ;;  %v8182_v48 = vsel %vm1100_vm1, %v22031_v33, %v21952_v46  ;;  %v7630_v33 = vsel %vm491_vm0, %v22027_v57, %v7629_v17 }
 0x28b   : > { %17854 = vmatpush3.bf16.msra.mxu1 %v19095_v58  ;;  %17863 = vmatprep.subr.bf16.mxu0 %v19097_v56  ;;  %v4168_v25 = vadd.f32 %v24532_v52, %v24531_v39  ;;  %v24535_v58 = vld [vmem:[#allocation7_spill] sm:$0xff]  ;;  %v4984_v36 = vadd.f32 %v4976_v2, %v4395_v63  ;;  %v5262_v41 = vadd.f32 %v5233_v50, %v5123_v22 }
 0x28c   : > { %17887 = vmatprep.subr.bf16.mxu1 %v19098_v3  ;;  %v4400_v49 = vmul.f32 %v4392_v19, %v24535_v58  ;;  %v17545_v42 = vpop.f32.mrf.mxu0  ;;  %v24539_v19 = vld [vmem:[#allocation22_spill] sm:$0xff]  ;;  %v5128_v38 = vadd.f32 %v21980_v15, %v4983_v23  ;;  %v19537_v58 = vld [vmem:[#allocation3 + $0x28] sm:$0xf] }
 0x28d   : > { %17832 = vmatmul.mubr.bf16.vlgmr.msra.gmra.mxu0 %v22001_v30  ;;  %v5408_v26 = vadd.f32 %v17545_v42, %v5263_v5  ;;  %v4974_v21 = vmul.f32 %v4966_v11, %v24539_v19  ;;  %v19106_v30 = vld [vmem:[%s24288_s2 + $0x228] sm:$0xff]   ;;  %v17526_v11 = vpop.f32.mrf.mxu1  ;;  %v5129_v6 = vadd.f32 %v22057_v61, %v4984_v36  ;;  %v19111_v61 = vld [vmem:[%s24288_s2 + $0x220] sm:$0xff]  }
 0x28e   : > { %17856 = vmatmul.mubr.bf16.vlgmr.msra.gmra.mxu1 %v22005_v43  ;;  %17835 = vmatprep.mubr.bf16.mxu0 %v7621_v45  ;;  %v4981_v59 = vadd.f32 %v4965_v28, %v4400_v49  ;;  %v5375_v37 = vpop.f32.mrf.mxu0  ;;  %v22113_v45 = vld [vmem:[%s24289_s3] ss:$0 sm:$0xff] }
 0x28f   : > { %17859 = vmatprep.mubr.bf16.mxu1 %v22010_v10  ;;  %17864 = vmatpush3.bf16.msra.mxu0 %v19097_v56  ;;  %v5416_v12 = vmul.f32 %v22113_v45, %v5408_v26  ;;  %v5406_v15 = vadd.f32 %v5375_v37, %v5261_v62  ;;  %v4393_v10 = vadd.f32 %v24540_v20, %v4168_v25  ;;  %v19110_v25 = vld [vmem:[%s24288_s2 + $0xa0] sm:$0xff]   ;;  %v5249_v57 = vpop.f32.mrf.mxu1 }
 0x290   : > { %17888 = vmatpush3.bf16.msra.mxu1 %v19098_v3  ;;  %17865 = vmatprep.subr.bf16.mxu0 %v19101_v4  ;;  %v5126_v56 = vadd.f32 %v22022_v54, %v4981_v59  ;;  %v17546_v28 = vpop.f32.mrf.mxu0  ;;  %v7868_v3 = vsel %vm1100_vm1, %v22020_v7, %v7867_v40  ;;  %v5267_v54 = vadd.f32 %v17525_v55, %v5128_v38  ;;  %v19523_v7 = vld [vmem:[%s24289_s3 + $0x1] ss:$0 sm:$0xff]  ;;  %v19114_v38 = vld [vmem:[%s24288_s2 + $0x90] sm:$0xff]  }
 0x291   : > { %17889 = vmatprep.subr.bf16.mxu1 %v19102_v47  ;;  %v5414_v39 = vmul.f32 %v22113_v45, %v5406_v15  ;;  %v5409_v52 = vadd.f32 %v17546_v28, %v5264_v53  ;;  %v4982_v5 = vadd.f32 %v4974_v21, %v4393_v10  ;;  %v5424_v50 = vadd.f32 %v19523_v7, %v5416_v12  ;;  %v19115_v12 = vld [vmem:[%s24288_s2 + $0x210] sm:$0xff]   ;;  %v22158_v10 = vpop.f32.mrf.mxu1  ;;  %v19116_v28 = vld [vmem:[%s24288_s2 + $0x88] sm:$0xff]  }
 0x292   : > { %v5378_v32 = vpop.f32.mrf.mxu0  ;;  %v5268_v62 = vadd.f32 %v17526_v11, %v5129_v6 }
 0x293   : > { %17866 = vmatpush3.bf16.msra.mxu0 %v19101_v4  ;;  %v5417_v40 = vmul.f32 %v22113_v45, %v5409_v52  ;;  %v5407_v55 = vadd.f32 %v5378_v32, %v5262_v41  ;;  %v5265_v4 = vadd.f32 %v5246_v9, %v5126_v56  ;;  %v5127_v16 = vadd.f32 %v22081_v31, %v4982_v5  ;;  %v19113_v31 = vld [vmem:[%s24288_s2 + $0x218] sm:$0xff]   ;;  %v19117_v52 = vld [vmem:[%s24288_s2 + $0x208] sm:$0xff]   ;;  %v19118_v5 = vld [vmem:[%s24288_s2 + $0x80] sm:$0xff]  }
 0x294   : > { %17890 = vmatpush3.bf16.msra.mxu1 %v19102_v47  ;;  %17867 = vmatprep.subr.bf16.mxu0 %v19105_v8  ;;  %v5422_v35 = vadd.f32 %v19523_v7, %v5414_v39  ;;  %v17549_v18 = vpop.f32.mrf.mxu0  ;;  %v19112_v47 = vld [vmem:[%s24288_s2 + $0x98] sm:$0xff]   ;;  %v5432_v63 = vmax.f32 %v5424_v50, 0.0 }
 0x295   : > { %17836 = vmatmul.mubr.bf16.gmra.mxu0 %v7630_v33  ;;  %17891 = vmatprep.subr.bf16.mxu1 %v19106_v30  ;;  %v5425_v17 = vadd.f32 %v19523_v7, %v5417_v40  ;;  %v5415_v24 = vmul.f32 %v22113_v45, %v5407_v55  ;;  %v5412_v49 = vadd.f32 %v17549_v18, %v5267_v54  ;;  %v19119_v40 = vld [vmem:[%s24288_s2 + $0x200] sm:$0xff]  }
 0x296   : > { %17860 = vmatmul.mubr.bf16.gmra.mxu1 %v7868_v3  ;;  %17879 = vmatprep.mubr.bf16.mxu0 %v22014_v29  ;;  %v5391_v14 = vpop.f32.mrf.mxu0  ;;  %v5266_v51 = vadd.f32 %v5249_v57, %v5127_v16  ;;  %v5430_v9 = vmax.f32 %v5422_v35, 0.0  ;;  %v19120_v3 = vld [vmem:[#allocation3 + $0x28] sm:$0xff]   ;;  %v19121_v16 = vld [vmem:[%s24288_s2 + $0x78] sm:$0xff]  }
 0x297   : > { %17868 = vmatpush3.bf16.msra.mxu0 %v19105_v8  ;;  %17903 = vmatprep.mubr.bf16.mxu1 %v8182_v48  ;;  %v5433_v2 = vmax.f32 %v5425_v17, 0.0  ;;  %v5423_v23 = vadd.f32 %v19523_v7, %v5415_v24  ;;  %v5410_v42 = vadd.f32 %v5391_v14, %v5265_v4  ;;  %v5420_v29 = vmul.f32 %v22113_v45, %v5412_v49  ;;  %v19126_v35 = vld [vmem:[#allocation3 + $0x28] ss:$0 sps:$4 sm:$0x11]   ;;  %v19122_v57 = vld [vmem:[%s24288_s2 + $0x138] sm:$0xff]  }
 0x298   : > { %17892 = vmatpush3.bf16.msra.mxu1 %v19106_v30  ;;  %17869 = vmatprep.subr.bf16.mxu0 %v19110_v25  ;;  %v17550_v22 = vpop.f32.mrf.mxu0  ;;  %v8187_v55 = vshll.u32 %v19120_v3, 16  ;;  %v19127_v49 = vld [vmem:[#allocation3 + $0x38] ss:$0 sps:$4 sm:$0x11]  }
 0x299   : > { %17893 = vmatprep.subr.bf16.mxu1 %v19111_v61  ;;  %v15912_v26 = vpack.c.bf16 %v5433_v2, %v5432_v63  ;;  %v5431_v8 = vmax.f32 %v5423_v23, 0.0  ;;  %v5418_v21 = vmul.f32 %v22113_v45, %v5410_v42  ;;  %v5413_v59 = vadd.f32 %v17550_v22, %v5268_v62  ;;  %v19124_v63 = vld [vmem:[%s24288_s2 + $0x70] sm:$0xff]  }
 0x29a   : > { %v5394_v37 = vpop.f32.mrf.mxu0  ;;  %v5428_v15 = vadd.f32 %v19523_v7, %v5420_v29  ;;  %v8189_v18 = vrot.slane %v8187_v55, 1  ;;  %v19125_v2 = vld [vmem:[%s24288_s2 + $0x130] sm:$0xff]   ;;  %v8003_v23 = vshll.u32 %v19126_v35, 16 }
 0x29b   : > { %17870 = vmatpush3.bf16.msra.mxu0 %v19110_v25  ;;  %16017 = vst [vmem:[#allocation3 + $0x58] sm:$0xff] %v15912_v26   ;;  %v15907_v30 = vpack.c.bf16 %v5431_v8, %v5430_v9  ;;  %v5411_v53 = vadd.f32 %v5394_v37, %v5266_v51  ;;  %v5421_v20 = vmul.f32 %v22113_v45, %v5413_v59  ;;  %v22167_v25 = vld [vmem:[#allocation3 + $0x30] sm:$0xff]   ;;  %v8203_v37 = vshll.u32 %v19127_v49, 16 }
 0x29c   : > { %17894 = vmatpush3.bf16.msra.mxu1 %v19111_v61  ;;  %17871 = vmatprep.subr.bf16.mxu0 %v19112_v47  ;;  %v5426_v56 = vadd.f32 %v19523_v7, %v5418_v21  ;;  %v5436_v11 = vmax.f32 %v5428_v15, 0.0  ;;  %v8195_v61 = vshll.u32 %v22167_v25, 16  ;;  %v8199_v59 = vshrl.u32 %v22167_v25, 16 }
 0x29d   : > { %17895 = vmatprep.subr.bf16.mxu1 %v19113_v31  ;;  %16016 = vst [vmem:[#allocation3 + $0x50] sm:$0xff] %v15907_v30   ;;  %v5419_v36 = vmul.f32 %v22113_v45, %v5411_v53  ;;  %v5429_v48 = vadd.f32 %v19523_v7, %v5421_v20  ;;  %v22169_v45 = vpop.f32.mrf.mxu1  ;;  %v19129_v20 = vld [vmem:[%s24288_s2 + $0x128] sm:$0xff]  }
 0x29e   : > { %v5434_v54 = vmax.f32 %v5426_v56, 0.0  ;;  %v8197_v14 = vrot.slane %v8195_v61, 1  ;;  %v8005_v56 = vrot.slane %v8003_v23, 1  ;;  %v19136_v61 = vld [vmem:[%s24288_s2 + $0x110] sm:$0xff]  }
 0x29f   : > { %17872 = vmatpush3.bf16.msra.mxu0 %v19112_v47  ;;  %v5427_v41 = vadd.f32 %v19523_v7, %v5419_v36  ;;  %v5437_v39 = vmax.f32 %v5429_v48, 0.0  ;;  %v24541_v7 = vld [vmem:[#allocation50_spill] sm:$0xff]  ;;  %v22179_v4 = vpop.f32.mrf.mxu1  ;;  %v8191_v47 = vshrl.u32 %v19120_v3, 16  ;;  %v19524_v36 = vld [vmem:[#allocation3 + $0x8] sm:$0xf]  ;;  %v19131_v3 = vld [vmem:[%s24288_s2 + $0x60] sm:$0xff]  }
 0x2a0   : > { %17896 = vmatpush3.bf16.msra.mxu1 %v19113_v31  ;;  %17873 = vmatprep.subr.bf16.mxu0 %v19114_v38  ;;  %v8183_v50 = vshrl.u32 %v24541_v7, 16  ;;  %v8201_v15 = vor.u32 %v8199_v59, %v8197_v14  ;;  %v19134_v7 = vld [vmem:[%s24288_s2 + $0x118] sm:$0xff]  }
 0x2a1   : > { %17897 = vmatprep.subr.bf16.mxu1 %v19115_v12  ;;  %v5435_v6 = vmax.f32 %v5427_v41, 0.0  ;;  %v15922_v32 = vpack.c.bf16 %v5437_v39, %v5436_v11  ;;  %v22187_v17 = vpop.f32.mrf.mxu1  ;;  %v8193_v42 = vor.u32 %v8191_v47, %v8189_v18  ;;  %v8205_v11 = vrot.slane %v8203_v37, 1  ;;  %v22273_v47 = vld [vmem:[#allocation3 + $0x30] sm:$0xf] }
 0x2a2   : > { %v8185_v24 = vor.u32 %v8183_v50, %v21952_v46  ;;  %v24542_v46 = vld [vmem:[#allocation52_spill] sm:$0xff]  ;;  %v10520_v22 = vld [vmem:[#allocation3 + $0x58] sm:$0xf]  ;;  %v10521_v26 = vld [vmem:[#allocation3 + $0x5c] sm:$0xf] }
 0x2a3   : > { %17874 = vmatpush3.bf16.msra.mxu0 %v19114_v38  ;;  %v15917_v33 = vpack.c.bf16 %v5435_v6, %v5434_v54  ;;  %16019 = vst [vmem:[#allocation3 + $0x68] sm:$0xff] %v15922_v32   ;;  %v22190_v31 = vpop.f32.mrf.mxu1  ;;  %v8198_v9 = vsel %vm1100_vm1, %v8193_v42, %v8197_v14  ;;  %v22206_v8 = vld [vmem:[#allocation3 + $0x58] sm:$0xf]  ;;  %v22208_v21 = vld [vmem:[#allocation3 + $0x5c] sm:$0xf]  ;;  %v22213_v30 = vcombine.low %v10520_v22, %v10521_v26  ;;  %v19132_v54 = vld [vmem:[%s24288_s2 + $0x120] sm:$0xff]  }
 0x2a4   : > { %17898 = vmatpush3.bf16.msra.mxu1 %v19115_v12  ;;  %17875 = vmatprep.subr.bf16.mxu0 %v19116_v28  ;;  %v8190_v62 = vsel %vm1100_vm1, %v8185_v24, %v8189_v18  ;;  %v22200_v51 = vld [vmem:[#allocation3 + $0x50] sm:$0xf]  ;;  %v22202_v29 = vld [vmem:[#allocation3 + $0x54] sm:$0xf]  ;;  %24544 = vst [vmem:[#allocation38_spill] sm:$0xff] %v22206_v8  ;;  %24545 = vst [vmem:[#allocation43_spill] sm:$0xff] %v22208_v21  ;;  %v8206_v25 = vsel %vm1100_vm1, %v8201_v15, %v8205_v11 }
 0x2a5   : > { %17899 = vmatprep.subr.bf16.mxu1 %v19117_v52  ;;  %16018 = vst [vmem:[#allocation3 + $0x60] sm:$0xff] %v15917_v33   ;;  %24543 = vst [vmem:[#allocation28_spill] sm:$0xff] %v22200_v51  ;;  %v22210_v38 = vpop.f32.mrf.mxu1  ;;  %v19133_v32 = vld [vmem:[%s24288_s2 + $0x58] sm:$0xff]   ;;  %v19137_v18 = vld [vmem:[%s24288_s2 + $0x48] sm:$0xff]  }
 0x2a6   : > { %24546 = vst [vmem:[#allocation10_spill] sm:$0xff] %v22213_v30  ;;  %v19157_v12 = vld [vmem:[%s24288_s2 + $0xd8] sm:$0xff]  }
 0x2a7   : > { %17876 = vmatpush3.bf16.msra.mxu0 %v19116_v28  ;;  %v19525_v28 = vld [vmem:[#allocation3 + $0xc] sm:$0xf]  ;;  %v22225_v41 = vpop.f32.mrf.mxu1 }
 0x2a8   : > { %17900 = vmatpush3.bf16.msra.mxu1 %v19117_v52  ;;  %17877 = vmatprep.subr.bf16.mxu0 %v19118_v5  ;;  %v15061_v48 = vcombine.low %v19524_v36, %v19525_v28  ;;  %24547 = vst [vmem:[#allocation47_spill] sm:$0xff] %v22225_v41  ;;  %v8006_v52 = vsel %vm1100_vm1, %v21963_v60, %v8005_v56  ;;  %v19142_v36 = vld [vmem:[%s24288_s2 + $0x1f8] sm:$0xff]  }
 0x2a9   : > { %17901 = vmatprep.subr.bf16.mxu1 %v19119_v40  ;;  %v22238_v6 = vpop.f32.mrf.mxu1  ;;  %v19143_v28 = vld [vmem:[%s24288_s2 + $0xf8] sm:$0xff]  }
 0x2aa   : > { %24548 = vst [vmem:[#allocation46_spill] sm:$0xff] %v22238_v6 }
 0x2ab   : > { %17878 = vmatpush3.bf16.msra.mxu0 %v19118_v5  ;;  %v24549_v5 = vld [vmem:[#allocation25_spill] sm:$0xff] }
 0x2ac   : > { %17902 = vmatpush3.bf16.msra.mxu1 %v19119_v40  ;;  %17911 = vmatprep.subr.bf16.mxu0 %v19121_v16  ;;  %v22227_v39 = vpop.f32.mrf.mxu0  ;;  %v19135_v40 = vld [vmem:[%s24288_s2 + $0x50] sm:$0xff]   ;;  %v22271_v49 = vld [vmem:[#allocation3 + $0x60] sm:$0xf]  ;;  %v22276_v42 = vld [vmem:[#allocation3 + $0x64] sm:$0xf] }
 0x2ad   : > { %17935 = vmatprep.subr.bf16.mxu1 %v19122_v57  ;;  %v22246_v33 = vpop.f32.mrf.mxu1  ;;  %24550 = vst [vmem:[#allocation48_spill] sm:$0xff] %v22271_v49  ;;  %24551 = vst [vmem:[#allocation39_spill] sm:$0xff] %v22276_v42  ;;  %v19160_v42 = vld [vmem:[%s24288_s2 + $0x1c8] sm:$0xff]  }
 0x2ae   : > { %17880 = vmatmul.mubr.bf16.vlgmr.msra.gmra.mxu0 %v24542_v46  ;;  %v22241_v60 = vpop.f32.mrf.mxu0 }
 0x2af   : > { %17904 = vmatmul.mubr.bf16.vlgmr.msra.gmra.mxu1 %v8190_v62  ;;  %17883 = vmatprep.mubr.bf16.mxu0 %v22005_v43  ;;  %v19128_v43 = vld [vmem:[%s24288_s2 + $0x68] sm:$0xff]   ;;  %v22256_v55 = vpop.f32.mrf.mxu1  ;;  %v19139_v62 = vld [vmem:[%s24288_s2 + $0x40] sm:$0xff]  }
 0x2b0   : > { %17907 = vmatprep.mubr.bf16.mxu1 %v8198_v9  ;;  %17912 = vmatpush3.bf16.msra.mxu0 %v19121_v16  ;;  %v22251_v50 = vpop.f32.mrf.mxu0  ;;  %v8869_v16 = vld [vmem:[#allocation3 + $0x2c] sm:$0x8]  ;;  %v19140_v9 = vld [vmem:[%s24288_s2 + $0x100] sm:$0xff]  }
 0x2b1   : > { %17936 = vmatpush3.bf16.msra.mxu1 %v19122_v57  ;;  %17913 = vmatprep.subr.bf16.mxu0 %v19124_v63  ;;  %v19138_v57 = vld [vmem:[%s24288_s2 + $0x108] sm:$0xff]   ;;  %v22269_v24 = vpop.f32.mrf.mxu1  ;;  %v15144_v14 = vcombine.low %v8869_v16, %v22273_v47 }
 0x2b2   : > { %17937 = vmatprep.subr.bf16.mxu1 %v19125_v2  ;;  %v22261_v35 = vpop.f32.mrf.mxu0  ;;  %v22310_v16 = vld [vmem:[#allocation3 + $0x68] sm:$0xf] }
 0x2b3   : > { %v22283_v22 = vpop.f32.mrf.mxu1  ;;  %v8912_v59 = vshrl.u32 %v15144_v14, 16  ;;  %v8915_v37 = vshll.u32 %v15144_v14, 16  ;;  %24555 = vst [vmem:[#allocation41_spill] sm:$0xff] %v22310_v16  ;;  %v8844_v16 = vld [vmem:[#allocation3 + $0x24] sm:$0x8] }
 0x2b4   : > { %17914 = vmatpush3.bf16.msra.mxu0 %v19124_v63  ;;  %v19527_v63 = vld [vmem:[#allocation3 + $0x34] sm:$0xf]  ;;  %v22278_v46 = vpop.f32.mrf.mxu0  ;;  %24552 = vst [vmem:[#allocation44_spill] sm:$0xff] %v22283_v22  ;;  %v15157_v34 = vcombine.low %v8844_v16, %v19537_v58 }
 0x2b5   : > { %17938 = vmatpush3.bf16.msra.mxu1 %v19125_v2  ;;  %17915 = vmatprep.subr.bf16.mxu0 %v19128_v43  ;;  %v19528_v2 = vld [vmem:[#allocation3 + $0x38] sm:$0xf]  ;;  %v22290_v15 = vpop.f32.mrf.mxu1  ;;  %v8917_v11 = vrot.slane %v8915_v37, 4 }
 0x2b6   : > { %17884 = vmatmul.mubr.bf16.gmra.mxu0 %v8006_v52  ;;  %17939 = vmatprep.subr.bf16.mxu1 %v19129_v20  ;;  %v15145_v23 = vcombine.low %v19527_v63, %v19528_v2  ;;  %v22292_v56 = vpop.f32.mrf.mxu0  ;;  %v24557_v63 = vld [vmem:[#allocation21_spill] sm:$0xff]  ;;  %v9082_v22 = vshrl.u32 %v15157_v34, 16  ;;  %v9085_v27 = vshll.u32 %v15157_v34, 16 }
 0x2b7   : > { %17908 = vmatmul.mubr.bf16.gmra.mxu1 %v8206_v25  ;;  %17927 = vmatprep.mubr.bf16.mxu0 %v15061_v48  ;;  %v8914_v48 = vrot.slane %v8912_v59, 3  ;;  %v19145_v25 = vld [vmem:[%s24288_s2 + $0x1f0] sm:$0xff]   ;;  %v22317_v2 = vld [vmem:[#allocation3 + $0x6c] sm:$0xf] }
 0x2b8   : > { %17916 = vmatpush3.bf16.msra.mxu0 %v19128_v43  ;;  %17951 = vmatprep.mubr.bf16.mxu1 %v24549_v5  ;;  %v8920_v43 = vshrl.u32 %v15145_v23, 16  ;;  %24558 = vst [vmem:[#allocation49_spill] sm:$0xff] %v22317_v2  ;;  %v19163_v2 = vld [vmem:[%s24288_s2 + $0xc0] sm:$0xff]  }
 0x2b9   : > { %17940 = vmatpush3.bf16.msra.mxu1 %v19129_v20  ;;  %17917 = vmatprep.subr.bf16.mxu0 %v19131_v3  ;;  %v8923_v20 = vshll.u32 %v15145_v23, 16 }
 0x2ba   : > { %17941 = vmatprep.subr.bf16.mxu1 %v19132_v54  ;;  %v8922_v52 = vrot.slane %v8920_v43, 3  ;;  %v19149_v43 = vld [vmem:[%s24288_s2 + $0xe8] sm:$0xff]  }
 0x2bc   : > { %17918 = vmatpush3.bf16.msra.mxu0 %v19131_v3  ;;  %v22300_v3 = vpop.f32.mrf.mxu1 }
 0x2bd   : > { %17942 = vmatpush3.bf16.msra.mxu1 %v19132_v54  ;;  %17919 = vmatprep.subr.bf16.mxu0 %v19133_v32  ;;  %24553 = vst [vmem:[#allocation27_spill] sm:$0xff] %v22300_v3  ;;  %v8925_v54 = vrot.slane %v8923_v20, 4  ;;  %v9084_v3 = vrot.slane %v9082_v22, 3 }
 0x2be   : > { %17943 = vmatprep.subr.bf16.mxu1 %v19134_v7  ;;  %v22313_v14 = vpop.f32.mrf.mxu1 }
 0x2bf   : > { %24556 = vst [vmem:[#allocation51_spill] sm:$0xff] %v22313_v14  ;;  %v19534_v14 = vld [vmem:[#allocation3 + $0x40] sm:$0xf] }
 0x2c0   : > { %17920 = vmatpush3.bf16.msra.mxu0 %v19133_v32  ;;  %v22305_v32 = vpop.f32.mrf.mxu0 }
 0x2c1   : > { %17944 = vmatpush3.bf16.msra.mxu1 %v19134_v7  ;;  %17921 = vmatprep.subr.bf16.mxu0 %v19135_v40  ;;  %24554 = vst [vmem:[#allocation40_spill] sm:$0xff] %v22305_v32  ;;  %v19146_v7 = vld [vmem:[%s24288_s2 + $0xf0] sm:$0xff]  }
 0x2c2   : > { %17945 = vmatprep.subr.bf16.mxu1 %v19136_v61  ;;  %v22319_v23 = vpop.f32.mrf.mxu0 }
 0x2c3   : > { %24559 = vst [vmem:[#allocation54_spill] sm:$0xff] %v22319_v23  ;;  %v19535_v23 = vld [vmem:[#allocation3 + $0x3c] sm:$0xf] }
 0x2c4   : > { %17922 = vmatpush3.bf16.msra.mxu0 %v19135_v40  ;;  %v10518_v40 = vld [vmem:[#allocation3 + $0x50] sm:$0xf]  ;;  %v15185_v6 = vcombine.low %v19535_v23, %v19534_v14 }
 0x2c5   : > { %17946 = vmatpush3.bf16.msra.mxu1 %v19136_v61  ;;  %17923 = vmatprep.subr.bf16.mxu0 %v19137_v18  ;;  %v10519_v61 = vld [vmem:[#allocation3 + $0x54] sm:$0xf] }
 0x2c6   : > { %17947 = vmatprep.subr.bf16.mxu1 %v19138_v57  ;;  %v9284_v41 = vshll.u32 %v15185_v6, 16 }
 0x2c8   : > { %17924 = vmatpush3.bf16.msra.mxu0 %v19137_v18  ;;  %v10522_v18 = vld [vmem:[#allocation3 + $0x60] sm:$0xf] }
 0x2c9   : > { %17948 = vmatpush3.bf16.msra.mxu1 %v19138_v57  ;;  %17925 = vmatprep.subr.bf16.mxu0 %v19139_v62  ;;  %v10523_v57 = vld [vmem:[#allocation3 + $0x64] sm:$0xf] }
 0x2ca   : > { %17949 = vmatprep.subr.bf16.mxu1 %v19140_v9  ;;  %v22327_v59 = vcombine.low %v10522_v18, %v10523_v57 }
 0x2cc   : > { %17926 = vmatpush3.bf16.msra.mxu0 %v19139_v62  ;;  %v24560_v62 = vld [vmem:[#allocation24_spill] sm:$0xff]  ;;  %24562 = vst [vmem:[#allocation42_spill] sm:$0xff] %v22327_v59  ;;  %v22329_v37 = vpop.f32.mrf.mxu0 }
 0x2cd   : > { %17950 = vmatpush3.bf16.msra.mxu1 %v19140_v9  ;;  %17959 = vmatprep.subr.bf16.mxu0 %v19142_v36  ;;  %v22325_v9 = vcombine.low %v10518_v40, %v10519_v61  ;;  %v19154_v61 = vld [vmem:[%s24288_s2 + $0x1e0] sm:$0xff]  }
 0x2ce   : > { %17983 = vmatprep.subr.bf16.mxu1 %v19143_v28  ;;  %v22345_v18 = vpop.f32.mrf.mxu0 }
 0x2cf   : > { %17928 = vmatmul.mubr.bf16.vlgmr.msra.gmra.mxu0 %v24549_v5  ;;  %v19148_v5 = vld [vmem:[%s24288_s2 + $0x1e8] sm:$0xff]   ;;  %24561 = vst [vmem:[#allocation37_spill] sm:$0xff] %v22325_v9 }
 0x2d0   : > { %17952 = vmatmul.mubr.bf16.vlgmr.msra.gmra.mxu1 %v24557_v63  ;;  %17931 = vmatprep.mubr.bf16.mxu0 %v24557_v63  ;;  %v22338_v63 = vor.u32 %v8925_v54, %v8922_v52  ;;  %v24565_v52 = vld [vmem:[#allocation16_spill] sm:$0xff]  ;;  %v24567_v54 = vld [vmem:[#allocation18_spill] sm:$0xff]  ;;  %v19533_v9 = vld [vmem:[#allocation3 + $0x2c] sm:$0xf] }
 0x2d1   : > { %17955 = vmatprep.mubr.bf16.mxu1 %v24560_v62  ;;  %17960 = vmatpush3.bf16.msra.mxu0 %v19142_v36  ;;  %v22336_v36 = vpop.f32.mrf.mxu1 }
 0x2d2   : > { %17984 = vmatpush3.bf16.msra.mxu1 %v19143_v28  ;;  %17961 = vmatprep.subr.bf16.mxu0 %v19145_v25  ;;  %24563 = vst [vmem:[#allocation56_spill] sm:$0xff] %v22336_v36  ;;  %v8918_v28 = vor.u32 %v8917_v11, %v8914_v48  ;;  %v19155_v48 = vld [vmem:[%s24288_s2 + $0xe0] sm:$0xff]   ;;  %v24564_v11 = vld [vmem:[#allocation26_spill] sm:$0xff] }
 0x2d3   : > { %17985 = vmatprep.subr.bf16.mxu1 %v19146_v7  ;;  %v22340_v40 = vpop.f32.mrf.mxu1 }
 0x2d4   : > { %v8927_v26 = vsel %vm491_vm0, %v8918_v28, %v22338_v63 }
 0x2d5   : > { %17962 = vmatpush3.bf16.msra.mxu0 %v19145_v25  ;;  %v24566_v25 = vcombine.low %v24564_v11, %v24565_v52  ;;  %v22365_v20 = vpop.f32.mrf.mxu1  ;;  %v22367_v11 = vpop.f32.mrf.mxu0 }
 0x2d6   : > { %17986 = vmatpush3.bf16.msra.mxu1 %v19146_v7  ;;  %17963 = vmatprep.subr.bf16.mxu0 %v19148_v5  ;;  %v24568_v7 = vld [vmem:[#allocation29_spill] sm:$0xff] }
 0x2d7   : > { %17932 = vmatmul.mubr.bf16.gmra.mxu0 %v24560_v62  ;;  %17987 = vmatprep.subr.bf16.mxu1 %v19149_v43  ;;  %v24569_v57 = vcombine.low %v24567_v54, %v24568_v7  ;;  %v19156_v62 = vld [vmem:[%s24288_s2 + $0x1d8] sm:$0xff]   ;;  %v22369_v52 = vpop.f32.mrf.mxu1  ;;  %v22377_v28 = vpop.f32.mrf.mxu0  ;;  %v22381_v7 = vld [vmem:[#allocation3 + $0x44] sm:$0xf] }
 0x2d8   : > { %17956 = vmatmul.mubr.bf16.gmra.mxu1 %v24566_v25  ;;  %v19530_v25 = vld [vmem:[#allocation3 + $0x40] sm:$0xf] }
 0x2d9   : > { %17975 = vmatprep.mubr.bf16.mxu0 %v24569_v57  ;;  %17964 = vmatpush3.bf16.msra.mxu0 %v19148_v5  ;;  %v19159_v5 = vld [vmem:[%s24288_s2 + $0xd0] sm:$0xff]   ;;  %v22384_v53 = vpop.f32.mrf.mxu1 }
 0x2da   : > { %17999 = vmatprep.mubr.bf16.mxu1 %v8927_v26  ;;  %17988 = vmatpush3.bf16.msra.mxu1 %v19149_v43  ;;  %v19158_v26 = vld [vmem:[%s24288_s2 + $0x1d0] sm:$0xff]   ;;  %v19529_v43 = vld [vmem:[#allocation3 + $0x3c] sm:$0xf] }
 0x2db   : > { %17965 = vmatprep.subr.bf16.mxu0 %v19154_v61  ;;  %17989 = vmatprep.subr.bf16.mxu1 %v19155_v48  ;;  %v15146_v54 = vcombine.low %v19529_v43, %v19530_v25  ;;  %v19161_v43 = vld [vmem:[%s24288_s2 + $0xc8] sm:$0xff]  }
 0x2dd   : > { %17966 = vmatpush3.bf16.msra.mxu0 %v19154_v61  ;;  %v22379_v61 = vpop.f32.mrf.mxu0  ;;  %v8929_v25 = vshrl.u32 %v15146_v54, 16  ;;  %v8932_v49 = vshll.u32 %v15146_v54, 16 }
 0x2de   : > { %17990 = vmatpush3.bf16.msra.mxu1 %v19155_v48  ;;  %17967 = vmatprep.subr.bf16.mxu0 %v19156_v62  ;;  %24570 = vst [vmem:[#allocation53_spill] sm:$0xff] %v22379_v61  ;;  %v19532_v48 = vld [vmem:[#allocation3 + $0x48] sm:$0xf] }
 0x2df   : > { %17991 = vmatprep.subr.bf16.mxu1 %v19157_v12  ;;  %v15147_v57 = vcombine.low %v22381_v7, %v19532_v48  ;;  %v22394_v21 = vpop.f32.mrf.mxu0  ;;  %v8931_v54 = vrot.slane %v8929_v25, 3  ;;  %v8934_v30 = vrot.slane %v8932_v49, 4  ;;  %v19536_v25 = vld [vmem:[#allocation3 + $0x4c] sm:$0xf] }
 0x2e0   : > { %24572 = vst [vmem:[#allocation55_spill] sm:$0xff] %v22394_v21  ;;  %v15148_v49 = vcombine.low %v19536_v25, %v19536_v25  ;;  %v9281_v25 = vshrl.u32 %v15185_v6, 16  ;;  %v24577_v6 = vld [vmem:[#allocation12_spill] sm:$0xff] }
 0x2e1   : > { %17968 = vmatpush3.bf16.msra.mxu0 %v19156_v62  ;;  %v22392_v62 = vpop.f32.mrf.mxu1  ;;  %v8938_v48 = vshrl.u32 %v15147_v57, 16  ;;  %v8941_v8 = vshll.u32 %v15147_v57, 16  ;;  %v9224_v57 = vld [vmem:[#allocation3 + $0x34] sm:$0x8]  ;;  %v22415_v14 = vor.u32 %v8934_v30, %v8931_v54  ;;  %v19540_v30 = vld [vmem:[#allocation3 + $0x2c] sm:$0xf] }
 0x2e2   : > { %17992 = vmatpush3.bf16.msra.mxu1 %v19157_v12  ;;  %17969 = vmatprep.subr.bf16.mxu0 %v19158_v26  ;;  %24571 = vst [vmem:[#allocation45_spill] sm:$0xff] %v22392_v62  ;;  %v19162_v12 = vld [vmem:[%s24288_s2 + $0x1c0] sm:$0xff]   ;;  %v8947_v58 = vshrl.u32 %v15148_v49, 16  ;;  %v8950_v16 = vshll.u32 %v15148_v49, 16  ;;  %v19170_v49 = vld [vmem:[%s24288_s2 + $0x1b0] sm:$0xff]  }
 0x2e3   : > { %17993 = vmatprep.subr.bf16.mxu1 %v19159_v5  ;;  %v22402_v59 = vpop.f32.mrf.mxu1  ;;  %v8940_v36 = vrot.slane %v8938_v48, 3  ;;  %v8943_v19 = vrot.slane %v8941_v8, 4  ;;  %24574 = vst [vmem:[#allocation50_spill] sm:$0xff] %v22415_v14  ;;  %v22432_v34 = vsel %vm491_vm0, %v22338_v63, %v22415_v14 }
 0x2e4   : > { %24573 = vst [vmem:[#allocation23_spill] sm:$0xff] %v22402_v59  ;;  %24580 = vst [vmem:[#allocation21_spill] sm:$0xff] %v22432_v34  ;;  %v8949_v62 = vrot.slane %v8947_v58, 3  ;;  %v8952_v61 = vrot.slane %v8950_v16, 4 }
 0x2e5   : > { %17970 = vmatpush3.bf16.msra.mxu0 %v19158_v26  ;;  %v15158_v26 = vcombine.low %v19533_v9, %v22273_v47  ;;  %v19166_v47 = vld [vmem:[%s24288_s2 + $0x1b8] sm:$0xff]   ;;  %v22413_v9 = vpop.f32.mrf.mxu1  ;;  %v8944_v32 = vor.u32 %v8943_v19, %v8940_v36 }
 0x2e6   : > { %17994 = vmatpush3.bf16.msra.mxu1 %v19159_v5  ;;  %17971 = vmatprep.subr.bf16.mxu0 %v19160_v42  ;;  %v22405_v5 = vpop.f32.mrf.mxu0  ;;  %v8953_v16 = vor.u32 %v8952_v61, %v8949_v62 }
 0x2e7   : > { %17995 = vmatprep.subr.bf16.mxu1 %v19161_v43  ;;  %v9090_v23 = vshrl.u32 %v15158_v26, 16  ;;  %v22424_v36 = vpop.f32.mrf.mxu1 }
 0x2e8   : > { %v22417_v48 = vpop.f32.mrf.mxu0  ;;  %24576 = vst [vmem:[#allocation25_spill] sm:$0xff] %v22424_v36  ;;  %v9286_v36 = vrot.slane %v9284_v41, 4  ;;  %v19174_v41 = vld [vmem:[%s24288_s2 + $0x1a8] sm:$0xff]  }
 0x2e9   : > { %17972 = vmatpush3.bf16.msra.mxu0 %v19160_v42  ;;  %v19538_v42 = vld [vmem:[#allocation3 + $0x38] sm:$0xf]  ;;  %24575 = vst [vmem:[#allocation52_spill] sm:$0xff] %v22417_v48  ;;  %v9229_v48 = vld [vmem:[#allocation3 + $0x48] sm:$0xf] }
 0x2ea   : > { %17996 = vmatpush3.bf16.msra.mxu1 %v19161_v43  ;;  %17973 = vmatprep.subr.bf16.mxu0 %v19162_v12  ;;  %v15184_v8 = vcombine.low %v9224_v57, %v19538_v42  ;;  %v9093_v43 = vshll.u32 %v15158_v26, 16  ;;  %v19539_v57 = vld [vmem:[#allocation3 + $0x28] sm:$0xf]  ;;  %v19169_v26 = vld [vmem:[%s24288_s2 + $0x30] sm:$0xff]  }
 0x2eb   : > { %17997 = vmatprep.subr.bf16.mxu1 %v19163_v2  ;;  %v15116_v54 = vcombine.low %v19539_v57, %v19540_v30  ;;  %v9092_v57 = vrot.slane %v9090_v23, 3  ;;  %v9087_v23 = vrot.slane %v9085_v27, 4 }
 0x2ec   : > { %v22419_v59 = vpop.f32.mrf.mxu0  ;;  %v9276_v19 = vshll.u32 %v15184_v8, 16  ;;  %v9095_v30 = vrot.slane %v9093_v43, 4 }
 0x2ed   : > { %17974 = vmatpush3.bf16.msra.mxu0 %v19162_v12  ;;  %v9273_v12 = vshrl.u32 %v15184_v8, 16  ;;  %v8945_v8 = vsel %vm491_vm0, %v22415_v14, %v8944_v32  ;;  %v22440_v21 = vpop.f32.mrf.mxu1 }
 0x2ee   : > { %17998 = vmatpush3.bf16.msra.mxu1 %v19163_v2  ;;  %18007 = vmatprep.subr.bf16.mxu0 %v19165_v0  ;;  %v24578_v2 = vld [vmem:[#allocation14_spill] sm:$0xff]  ;;  %v22442_v43 = vpop.f32.mrf.mxu0 }
 0x2ef   : > { %18031 = vmatprep.subr.bf16.mxu1 %v19166_v47  ;;  %v24579_v42 = vcombine.low %v24577_v6, %v24578_v2  ;;  %v19541_v6 = vld [vmem:[#allocation3 + $0x44] sm:$0xf]  ;;  %v9275_v14 = vrot.slane %v9273_v12, 3 }
 0x2f0   : > { %v15186_v2 = vcombine.low %v19541_v6, %v9229_v48  ;;  %v9278_v48 = vrot.slane %v9276_v19, 4  ;;  %v22452_v6 = vpop.f32.mrf.mxu0  ;;  %v19181_v19 = vld [vmem:[%s24288_s2 + $0x20] sm:$0xff]  }
 0x2f1   : > { %17976 = vmatmul.mubr.bf16.vlgmr.msra.gmra.mxu0 %v24579_v42  ;;  %18000 = vmatmul.mubr.bf16.vlgmr.msra.gmra.mxu1 %v22432_v34  ;;  %v9283_v42 = vrot.slane %v9281_v25, 3  ;;  %v19202_v25 = vld [vmem:[#allocation3 + $0x28] sm:$0xff]   ;;  %v24581_v34 = vld [vmem:[#allocation15_spill] sm:$0xff] }
 0x2f2   : > { %17979 = vmatprep.mubr.bf16.mxu0 %v15116_v54  ;;  %18003 = vmatprep.mubr.bf16.mxu1 %v8945_v8  ;;  %v19173_v54 = vld [vmem:[%s24288_s2 + $0x28] sm:$0xff]   ;;  %v9290_v22 = vshrl.u32 %v15186_v2, 16  ;;  %v9293_v27 = vshll.u32 %v15186_v2, 16  ;;  %v9088_v8 = vor.u32 %v9087_v23, %v9084_v3  ;;  %v9279_v12 = vor.u32 %v9278_v48, %v9275_v14  ;;  %v19182_v3 = vld [vmem:[%s24288_s2 + $0x1a0] sm:$0xff]   ;;  %v19200_v2 = vld [vmem:[#allocation3 + $0x30] sm:$0xff]  }
 0x2f3   : > { %18008 = vmatpush3.bf16.msra.mxu0 %v19165_v0  ;;  %18032 = vmatpush3.bf16.msra.mxu1 %v19166_v47  ;;  %v9096_v0 = vor.u32 %v9095_v30, %v9092_v57  ;;  %v9287_v58 = vor.u32 %v9286_v36, %v9283_v42  ;;  %v22450_v47 = vpop.f32.mrf.mxu1  ;;  %v24582_v57 = vld [vmem:[#allocation11_spill] sm:$0xff]  ;;  %v8954_v36 = vsel %vm491_vm0, %v8944_v32, %v8953_v16  ;;  %v9680_v61 = vshll.u32 %v19202_v25, 16 }
 0x2f4   : > { %18009 = vmatprep.subr.bf16.mxu0 %v19169_v26  ;;  %18033 = vmatprep.subr.bf16.mxu1 %v19170_v49  ;;  %v24583_v30 = vcombine.low %v24581_v34, %v24582_v57  ;;  %v9292_v14 = vrot.slane %v9290_v22, 3  ;;  %v15159_v32 = vcombine.low %v22381_v7, %v22381_v7  ;;  %v6612_v34 = vpop.f32.mrf.mxu0  ;;  %v19183_v23 = vld [vmem:[%s24288_s2 + $0x18] sm:$0xff]   ;;  %v9519_v16 = vshll.u32 %v19200_v2, 16 }
 0x2f5   : > { %v9288_v62 = vsel %vm491_vm0, %v9279_v12, %v9287_v58  ;;  %v22466_v42 = vpop.f32.mrf.mxu1  ;;  %v19184_v48 = vld [vmem:[%s24288_s2 + $0x198] sm:$0xff]   ;;  %v5836_v7 = vadd.f32 %v22227_v39, %v22158_v10  ;;  %v9678_v57 = vshrl.u32 %v19202_v25, 16  ;;  %v5828_v10 = vadd.f32 %v22241_v60, %v22169_v45  ;;  %v19186_v25 = vld [vmem:[%s24288_s2 + $0x190] sm:$0xff]  }
 0x2f6   : > { %v22476_v22 = vld [vmem:[#allocation3 + $0x38] sm:$0xff]   ;;  %v9100_v12 = vshrl.u32 %v15159_v32, 16  ;;  %v9521_v45 = vrot.slane %v9519_v16, 1  ;;  %v5839_v16 = vadd.f32 %v22251_v50, %v22179_v4  ;;  %v19189_v50 = vld [vmem:[%s24288_s2] sm:$0xff]  }
 0x2f7   : > { %18010 = vmatpush3.bf16.msra.mxu0 %v19169_v26  ;;  %18034 = vmatpush3.bf16.msra.mxu1 %v19170_v49  ;;  %v9097_v26 = vsel %vm491_vm0, %v9088_v8, %v9096_v0  ;;  %v9295_v49 = vrot.slane %v9293_v27, 4  ;;  %v9682_v27 = vrot.slane %v9680_v61, 1  ;;  %v22484_v8 = vld [vmem:[#allocation3 + $0x4c] sm:$0xf]  ;;  %v9103_v61 = vshll.u32 %v15159_v32, 16 }
 0x2f8   : > { %18011 = vmatprep.subr.bf16.mxu0 %v19173_v54  ;;  %18035 = vmatprep.subr.bf16.mxu1 %v19174_v41  ;;  %v6069_v60 = vadd.f32 %v22246_v33, %v5836_v7  ;;  %v6417_v32 = vadd.f32 %v22340_v40, %v22329_v37  ;;  %v22525_v37 = vcombine.low %v22202_v29, %v22202_v29 }
 0x2f9   : > { %17980 = vmatmul.mubr.bf16.gmra.mxu0 %v24583_v30  ;;  %18004 = vmatmul.mubr.bf16.gmra.mxu1 %v8954_v36  ;;  %v22486_v30 = vpop.f32.mrf.mxu0  ;;  %v19185_v36 = vld [vmem:[%s24288_s2 + $0x10] sm:$0xff]   ;;  %v22521_v33 = vrot.slane %v9103_v61, 4  ;;  %v6067_v40 = vadd.f32 %v22256_v55, %v5828_v10  ;;  %v6412_v55 = vadd.f32 %v22384_v53, %v22377_v28  ;;  %v5831_v61 = vadd.f32 %v22261_v35, %v22187_v17  ;;  %v24589_v17 = vld [vmem:[#allocation9_spill] sm:$0xff] }
 0x2fa   : > { %18023 = vmatprep.mubr.bf16.mxu0 %v9097_v26  ;;  %18047 = vmatprep.mubr.bf16.mxu1 %v9288_v62  ;;  %v15187_v26 = vcombine.low %v22484_v8, %v22200_v51  ;;  %v22503_v62 = vsel %vm491_vm0, %v9096_v0, %v22338_v63  ;;  %v6420_v51 = vadd.f32 %v22369_v52, %v22367_v11  ;;  %v19187_v63 = vld [vmem:[%s24288_s2 + $0x8] sm:$0xff]  }
 0x2fb   : > { %18012 = vmatpush3.bf16.msra.mxu0 %v19173_v54  ;;  %18036 = vmatpush3.bf16.msra.mxu1 %v19174_v41  ;;  %v22478_v54 = vor.u32 %v9295_v49, %v9292_v14  ;;  %v22482_v41 = vpop.f32.mrf.mxu1  ;;  %v9517_v49 = vshrl.u32 %v19200_v2, 16  ;;  %v6409_v11 = vadd.f32 %v22365_v20, %v22345_v18  ;;  %v6642_v52 = vadd.f32 %v22419_v59, %v6417_v32  ;;  %v24586_v32 = vld [vmem:[#allocation45_spill] sm:$0xff] }
 0x2fc   : > { %18013 = vmatprep.subr.bf16.mxu0 %v19181_v19  ;;  %18037 = vmatprep.subr.bf16.mxu1 %v19182_v3  ;;  %v9299_v0 = vshrl.u32 %v15187_v26, 16  ;;  %v6643_v2 = vadd.f32 %v22452_v6, %v6420_v51  ;;  %v6077_v51 = vmul.f32 %v6069_v60, %v20358_v44  ;;  %v5852_v59 = vadd.f32 %v22278_v46, %v22190_v31  ;;  %v24585_v60 = vld [vmem:[#allocation53_spill] sm:$0xff] }
 0x2fd   : > { %v22495_v39 = vpop.f32.mrf.mxu1  ;;  %v22507_v14 = vsel %vm491_vm0, %v9287_v58, %v22478_v54  ;;  %v9302_v58 = vshll.u32 %v15187_v26, 16  ;;  %v22541_v7 = vor.u32 %v9521_v45, %v9517_v49  ;;  %v5844_v18 = vadd.f32 %v22292_v56, %v22210_v38  ;;  %v24584_v49 = vld [vmem:[#allocation27_spill] sm:$0xff] }
 0x2fe   : > { %v6640_v6 = vadd.f32 %v22442_v43, %v6409_v11  ;;  %v6641_v4 = vadd.f32 %v6612_v34, %v6412_v55  ;;  %v9301_v28 = vrot.slane %v9299_v0, 3  ;;  %v9308_v46 = vshrl.u32 %v22525_v37, 16  ;;  %v19190_v34 = vld [vmem:[%s24288_s2 + $0x180] sm:$0xff]  }
 0x2ff   : > { %18014 = vmatpush3.bf16.msra.mxu0 %v19181_v19  ;;  %18038 = vmatpush3.bf16.msra.mxu1 %v19182_v3  ;;  %v9524_v19 = vshll.u32 %v22476_v22, 16  ;;  %v9683_v3 = vor.u32 %v9682_v27, %v9678_v57  ;;  %v22514_v27 = vrot.slane %v9100_v12, 3  ;;  %v22516_v57 = vpop.f32.mrf.mxu0  ;;  %v6075_v38 = vmul.f32 %v6067_v40, %v24514_v1 }
 0x300   : > { %18015 = vmatprep.subr.bf16.mxu0 %v19183_v23  ;;  %18039 = vmatprep.subr.bf16.mxu1 %v19184_v48  ;;  %v6658_v56 = vadd.f32 %v6642_v52, %v6077_v51  ;;  %v6651_v43 = vmul.f32 %v6643_v2, %v24515_v13  ;;  %v6070_v26 = vadd.f32 %v22269_v24, %v5839_v16  ;;  %v24587_v24 = vld [vmem:[#allocation55_spill] sm:$0xff] }
 0x301   : > { %v22544_v20 = vsel %vm1100_vm1, %v9683_v3, %v9521_v45  ;;  %v17694_v53 = vpop.f32.mrf.mxu0  ;;  %v9106_v31 = vor.u32 %v22521_v33, %v22514_v27  ;;  %v6436_v10 = vadd.f32 %v22413_v9, %v22405_v5  ;;  %v6073_v3 = vadd.f32 %v22290_v15, %v5852_v59  ;;  %v19191_v15 = vld [vmem:[%s24288_s2 + $0x178] sm:$0xff]  }
 0x302   : > { %v6071_v45 = vadd.f32 %v24584_v49, %v5844_v18  ;;  %v6433_v0 = vadd.f32 %v24586_v32, %v24585_v60  ;;  %v6656_v40 = vadd.f32 %v6640_v6, %v6075_v38  ;;  %v6649_v35 = vmul.f32 %v6641_v4, %v24589_v17  ;;  %v19192_v51 = vld [vmem:[%s24288_s2 + $0xb8] sm:$0xff]   ;;  %v24592_v4 = vld [vmem:[#allocation40_spill] sm:$0xff]  ;;  %v24594_v38 = vld [vmem:[#allocation25_spill] sm:$0xff] }
 0x303   : > { %18016 = vmatpush3.bf16.msra.mxu0 %v19183_v23  ;;  %18040 = vmatpush3.bf16.msra.mxu1 %v19184_v48  ;;  %v22532_v23 = vpop.f32.mrf.mxu1  ;;  %v19188_v48 = vld [vmem:[%s24288_s2 + $0x188] sm:$0xff]   ;;  %v6647_v2 = vadd.f32 %v17694_v53, %v6436_v10  ;;  %v6628_v5 = vpop.f32.mrf.mxu0  ;;  %v22583_v9 = vrot.slane %v9308_v46, 3  ;;  %v6659_v16 = vadd.f32 %v6651_v43, %v6070_v26  ;;  %v24591_v6 = vld [vmem:[#allocation47_spill] sm:$0xff]  ;;  %v24593_v46 = vld [vmem:[#allocation52_spill] sm:$0xff] }
 0x304   : > { %18017 = vmatprep.subr.bf16.mxu0 %v19185_v36  ;;  %18041 = vmatprep.subr.bf16.mxu1 %v19186_v25  ;;  %v5855_v53 = vadd.f32 %v24592_v4, %v24591_v6  ;;  %v6428_v10 = vadd.f32 %v24594_v38, %v24593_v46  ;;  %v24596_v26 = vld [vmem:[#allocation7_spill] sm:$0xff]  ;;  %v6801_v60 = vadd.f32 %v22450_v47, %v6656_v40  ;;  %v19194_v47 = vld [vmem:[%s24288_s2 + $0x170] sm:$0xff]  }
 0x305   : > { %v22552_v12 = vpop.f32.mrf.mxu1  ;;  %v6079_v49 = vmul.f32 %v6071_v45, %v24596_v26  ;;  %v24599_v40 = vld [vmem:[#allocation54_spill] sm:$0xff] }
 0x307   : > { %18018 = vmatpush3.bf16.msra.mxu0 %v19185_v36  ;;  %18042 = vmatpush3.bf16.msra.mxu1 %v19186_v25  ;;  %v9304_v36 = vrot.slane %v9302_v58, 4  ;;  %v9311_v25 = vshll.u32 %v22525_v37, 16  ;;  %v22575_v11 = vpop.f32.mrf.mxu1  ;;  %v24588_v58 = vld [vmem:[#allocation23_spill] sm:$0xff]  ;;  %v6803_v37 = vadd.f32 %v22440_v21, %v6658_v56 }
 0x308   : > { %18019 = vmatprep.subr.bf16.mxu0 %v19187_v63  ;;  %18043 = vmatprep.subr.bf16.mxu1 %v19188_v48  ;;  %v6425_v52 = vadd.f32 %v24588_v58, %v24587_v24  ;;  %v6645_v24 = vadd.f32 %v6628_v5, %v6428_v10 }
 0x309   : > { %v22590_v59 = vor.u32 %v9304_v36, %v9301_v28 }
 0x30a   : > { %v6644_v21 = vadd.f32 %v22516_v57, %v6425_v52  ;;  %v6804_v57 = vadd.f32 %v22466_v42, %v6659_v16  ;;  %v22621_v16 = vld [vmem:[%s24289_s3] ss:$0 sm:$0xff] }
 0x30b   : > { %18020 = vmatpush3.bf16.msra.mxu0 %v19187_v63  ;;  %18044 = vmatpush3.bf16.msra.mxu1 %v19188_v48  ;;  %v6646_v63 = vadd.f32 %v22486_v30, %v6433_v0  ;;  %v24590_v48 = vld [vmem:[#allocation44_spill] sm:$0xff]  ;;  %v24595_v30 = vld [vmem:[#allocation5_spill] sm:$0xff]  ;;  %v9306_v42 = vsel %vm491_vm0, %v22478_v54, %v22590_v59 }
 0x30c   : > { %18021 = vmatprep.subr.bf16.mxu0 %v19189_v50  ;;  %18045 = vmatprep.subr.bf16.mxu1 %v19190_v34  ;;  %v6068_v18 = vadd.f32 %v24590_v48, %v5831_v61  ;;  %v17737_v56 = vpop.f32.mrf.mxu0  ;;  %v6081_v43 = vmul.f32 %v6073_v3, %v24595_v30  ;;  %v24597_v61 = vld [vmem:[#allocation13_spill] sm:$0xff]  ;;  %v22602_v48 = vrot.slane %v9311_v25, 4  ;;  %v6660_v5 = vadd.f32 %v6644_v21, %v6079_v49 }
 0x30d   : > { %v17761_v55 = vpop.f32.mrf.mxu1  ;;  %v6942_v28 = vadd.f32 %v17737_v56, %v6803_v37  ;;  %v6655_v0 = vmul.f32 %v6647_v2, %v24597_v61  ;;  %v24600_v2 = vld [vmem:[#allocation51_spill] sm:$0xff]  ;;  %v19195_v37 = vld [vmem:[%s24288_s2 + $0xb0] sm:$0xff]   ;;  %v19552_v61 = vld [vmem:[#allocation3 + $0x6c] sm:$0xf] }
 0x30e   : > { %v6657_v32 = vadd.f32 %v6649_v35, %v6068_v18  ;;  %v6909_v58 = vpop.f32.mrf.mxu0  ;;  %v6662_v52 = vadd.f32 %v6646_v63, %v6081_v43  ;;  %v15382_v26 = vcombine.low %v19552_v61, %v19552_v61  ;;  %v19283_v61 = vld [vmem:[%s24288_s2 + $0x1b8] sm:$0xff]  }
 0x30f   : > { %18022 = vmatpush3.bf16.msra.mxu0 %v19189_v50  ;;  %v7054_v36 = vpop.f32.mrf.mxu1  ;;  %18046 = vmatpush3.bf16.msra.mxu1 %v19190_v34  ;;  %v7087_v3 = vadd.f32 %v17761_v55, %v6942_v28  ;;  %v6940_v45 = vadd.f32 %v6909_v58, %v6801_v60  ;;  %v24598_v50 = vld [vmem:[#allocation46_spill] sm:$0xff]  ;;  %v6074_v34 = vadd.f32 %v24600_v2, %v5855_v53  ;;  %v24601_v55 = vld [vmem:[#allocation21_spill] sm:$0xff]  ;;  %v24603_v60 = vld [vmem:[#allocation56_spill] sm:$0xff] }
 0x310   : > { %18055 = vmatprep.subr.bf16.mxu0 %v19191_v15  ;;  %18079 = vmatprep.subr.bf16.mxu1 %v19192_v51  ;;  %v5847_v35 = vadd.f32 %v24599_v40, %v24598_v50  ;;  %v17738_v25 = vpop.f32.mrf.mxu0  ;;  %v6802_v54 = vadd.f32 %v22482_v41, %v6657_v32  ;;  %v24602_v53 = vld [vmem:[#allocation22_spill] sm:$0xff]  ;;  %v6807_v21 = vadd.f32 %v22495_v39, %v6662_v52  ;;  %v22635_v41 = vrot.slane %v9524_v19, 1  ;;  %v19199_v19 = vld [vmem:[%s24288_s2 + $0xa8] sm:$0xff]   ;;  %v19203_v50 = vld [vmem:[%s24288_s2 + $0x160] sm:$0xff]  }
 0x311   : > { %v17762_v6 = vpop.f32.mrf.mxu1  ;;  %v7095_v63 = vmul.f32 %v22621_v16, %v7087_v3  ;;  %v6943_v18 = vadd.f32 %v17738_v25, %v6804_v57  ;;  %v6653_v46 = vmul.f32 %v6645_v24, %v24602_v53  ;;  %v6663_v38 = vadd.f32 %v6655_v0, %v6074_v34  ;;  %v24604_v39 = vld [vmem:[#allocation50_spill] sm:$0xff]  ;;  %v22652_v24 = vld [vmem:[%s24289_s3 + $0x1] ss:$0 sm:$0xff] }
 0x312   : > { %18024 = vmatmul.mubr.bf16.vlgmr.msra.gmra.mxu0 %v22503_v62  ;;  %18048 = vmatmul.mubr.bf16.vlgmr.msra.gmra.mxu1 %v22507_v14  ;;  %v7085_v62 = vadd.f32 %v7054_v36, %v6940_v45  ;;  %v6912_v10 = vpop.f32.mrf.mxu0  ;;  %v19198_v14 = vld [vmem:[%s24288_s2 + $0x168] sm:$0xff]   ;;  %v6072_v28 = vadd.f32 %v24603_v60, %v5847_v35  ;;  %v9314_v32 = vor.u32 %v22602_v48, %v22583_v9  ;;  %v19204_v34 = vld [vmem:[%s24288_s2 + $0xa0] sm:$0xff]  }
 0x313   : > { %18027 = vmatprep.mubr.bf16.mxu0 %v24601_v55  ;;  %v7057_v4 = vpop.f32.mrf.mxu1  ;;  %18051 = vmatprep.mubr.bf16.mxu1 %v9306_v42  ;;  %v7088_v43 = vadd.f32 %v17762_v6, %v6943_v18  ;;  %v6805_v0 = vadd.f32 %v22532_v23, %v6660_v5  ;;  %v7103_v58 = vadd.f32 %v22652_v24, %v7095_v63  ;;  %v19213_v60 = vld [vmem:[#allocation3 + $0x40] sm:$0xff]  }
 0x314   : > { %18056 = vmatpush3.bf16.msra.mxu0 %v19191_v15  ;;  %18080 = vmatpush3.bf16.msra.mxu1 %v19192_v51  ;;  %v7093_v56 = vmul.f32 %v22621_v16, %v7085_v62  ;;  %v6941_v15 = vadd.f32 %v6912_v10, %v6802_v54  ;;  %v17741_v36 = vpop.f32.mrf.mxu0  ;;  %v9107_v51 = vsel %vm491_vm0, %v24604_v39, %v9106_v31  ;;  %v19205_v54 = vld [vmem:[%s24288_s2 + $0x158] sm:$0xff]   ;;  %v19208_v39 = vld [vmem:[%s24288_s2 + $0x90] sm:$0xff]  }
 0x315   : > { %18057 = vmatprep.subr.bf16.mxu0 %v19194_v47  ;;  %v17765_v49 = vpop.f32.mrf.mxu1  ;;  %18081 = vmatprep.subr.bf16.mxu1 %v19195_v37  ;;  %v7096_v27 = vmul.f32 %v22621_v16, %v7088_v43  ;;  %v6946_v33 = vadd.f32 %v17741_v36, %v6807_v21  ;;  %v6808_v57 = vadd.f32 %v22552_v12, %v6663_v38  ;;  %v7111_v5 = vmax.f32 %v7103_v58, 0.0 }
 0x316   : > { %v6661_v9 = vadd.f32 %v6653_v46, %v6072_v28  ;;  %v7101_v48 = vadd.f32 %v22652_v24, %v7093_v56  ;;  %v7086_v52 = vadd.f32 %v7057_v4, %v6941_v15  ;;  %v6925_v3 = vpop.f32.mrf.mxu0  ;;  %v9315_v12 = vsel %vm491_vm0, %v22590_v59, %v9314_v32 }
 0x317   : > { %v7070_v31 = vpop.f32.mrf.mxu1  ;;  %v7104_v23 = vadd.f32 %v22652_v24, %v7096_v27  ;;  %v6944_v45 = vadd.f32 %v6925_v3, %v6805_v0  ;;  %v7091_v6 = vadd.f32 %v17765_v49, %v6946_v33  ;;  %v19207_v49 = vld [vmem:[%s24288_s2 + $0x150] sm:$0xff]   ;;  %v19209_v0 = vld [vmem:[%s24288_s2 + $0x148] sm:$0xff]   ;;  %v9532_v58 = vshll.u32 %v19213_v60, 16  ;;  %v19214_v3 = vld [vmem:[%s24288_s2 + $0x238] sm:$0xff]  }
 0x318   : > { %18058 = vmatpush3.bf16.msra.mxu0 %v19194_v47  ;;  %18082 = vmatpush3.bf16.msra.mxu1 %v19195_v37  ;;  %v7094_v35 = vmul.f32 %v22621_v16, %v7086_v52  ;;  %v22668_v47 = vsel %vm1100_vm1, %v22541_v7, %v22635_v41  ;;  %v17742_v2 = vpop.f32.mrf.mxu0  ;;  %v6806_v59 = vadd.f32 %v22575_v11, %v6661_v9  ;;  %v7109_v62 = vmax.f32 %v7101_v48, 0.0  ;;  %v19211_v9 = vld [vmem:[%s24288_s2 + $0x140] sm:$0xff]  }
 0x319   : > { %18059 = vmatprep.subr.bf16.mxu0 %v19198_v14  ;;  %v17766_v40 = vpop.f32.mrf.mxu1  ;;  %18083 = vmatprep.subr.bf16.mxu1 %v19199_v19  ;;  %v7112_v42 = vmax.f32 %v7104_v23, 0.0  ;;  %v6947_v25 = vadd.f32 %v17742_v2, %v6808_v57  ;;  %v7089_v37 = vadd.f32 %v7070_v31, %v6944_v45  ;;  %v7099_v7 = vmul.f32 %v22621_v16, %v7091_v6  ;;  %v19212_v48 = vld [vmem:[%s24288_s2 + $0x80] sm:$0xff]   ;;  %v19223_v6 = vld [vmem:[#allocation3 + $0x38] sm:$0xff]  }
 0x31a   : > { %18028 = vmatmul.mubr.bf16.gmra.mxu0 %v9107_v51  ;;  %18052 = vmatmul.mubr.bf16.gmra.mxu1 %v9315_v12  ;;  %v7102_v63 = vadd.f32 %v22652_v24, %v7094_v35  ;;  %v6928_v55 = vpop.f32.mrf.mxu0  ;;  %v9534_v52 = vrot.slane %v9532_v58, 1  ;;  %v9536_v23 = vshrl.u32 %v19213_v60, 16  ;;  %v19219_v35 = vld [vmem:[#allocation3 + $0x50] ss:$0 sps:$4 sm:$0x11]   ;;  %v22716_v12 = vld [vmem:[#allocation3 + $0x40] sm:$0xff]  }
 0x31b   : > { %18071 = vmatprep.mubr.bf16.mxu0 %v22668_v47  ;;  %18095 = vmatprep.mubr.bf16.mxu1 %v22544_v20  ;;  %v15932_v18 = vpack.c.bf16 %v7112_v42, %v7111_v5  ;;  %v7073_v4 = vpop.f32.mrf.mxu1  ;;  %v7097_v11 = vmul.f32 %v22621_v16, %v7089_v37  ;;  %v6945_v38 = vadd.f32 %v6928_v55, %v6806_v59  ;;  %v19206_v20 = vld [vmem:[%s24288_s2 + $0x98] sm:$0xff]   ;;  %v19220_v42 = vld [vmem:[#allocation3 + $0x48] ss:$0 sps:$4 sm:$0x11]   ;;  %v9548_v59 = vshll.u32 %v19219_v35, 16  ;;  %v24606_v58 = vld [vmem:[#allocation32_spill] sm:$0xff] }
 0x31c   : > { %18060 = vmatpush3.bf16.msra.mxu0 %v19198_v14  ;;  %18084 = vmatpush3.bf16.msra.mxu1 %v19199_v19  ;;  %v7110_v46 = vmax.f32 %v7102_v63, 0.0  ;;  %v7092_v10 = vadd.f32 %v17766_v40, %v6947_v25  ;;  %v7107_v56 = vadd.f32 %v22652_v24, %v7099_v7  ;;  %v19215_v40 = vld [vmem:[%s24288_s2 + $0x78] sm:$0xff]   ;;  %v9538_v2 = vor.u32 %v9536_v23, %v9534_v52  ;;  %v19236_v23 = vld [vmem:[#allocation3 + $0x48] sm:$0xff]  }
 0x31d   : > { %18061 = vmatprep.subr.bf16.mxu0 %v19203_v50  ;;  %18085 = vmatprep.subr.bf16.mxu1 %v19204_v34  ;;  %16021 = vst [vmem:[#allocation3 + $0x78] sm:$0xff] %v15932_v18   ;;  %v7090_v14 = vadd.f32 %v7073_v4, %v6945_v38  ;;  %v7105_v28 = vadd.f32 %v22652_v24, %v7097_v11  ;;  %v9856_v25 = vshll.u32 %v19223_v6, 16  ;;  %v9686_v11 = vshll.u32 %v19220_v42, 16  ;;  %v19233_v35 = vld [vmem:[%s24288_s2 + $0x48] sm:$0xff]  }
 0x31e   : > { %v15927_v21 = vpack.c.bf16 %v7110_v46, %v7109_v62  ;;  %v7100_v43 = vmul.f32 %v22621_v16, %v7092_v10  ;;  %v7115_v51 = vmax.f32 %v7107_v56, 0.0  ;;  %v9861_v62 = vshll.u32 %v22716_v12, 16 }
 0x31f   : > { %v7098_v36 = vmul.f32 %v22621_v16, %v7090_v14  ;;  %v19210_v16 = vld [vmem:[%s24288_s2 + $0x88] sm:$0xff]   ;;  %v7113_v27 = vmax.f32 %v7105_v28, 0.0  ;;  %v9858_v38 = vrot.slane %v9856_v25, 1  ;;  %v9854_v56 = vshrl.u32 %v19223_v6, 16  ;;  %v19234_v25 = vld [vmem:[%s24288_s2 + $0x200] sm:$0xff]  }
 0x320   : > { %18062 = vmatpush3.bf16.msra.mxu0 %v19203_v50  ;;  %18086 = vmatpush3.bf16.msra.mxu1 %v19204_v34  ;;  %16020 = vst [vmem:[#allocation3 + $0x70] sm:$0xff] %v15927_v21   ;;  %v7108_v15 = vadd.f32 %v22652_v24, %v7100_v43  ;;  %v9528_v50 = vshrl.u32 %v22476_v22, 16  ;;  %v19217_v22 = vld [vmem:[%s24288_s2 + $0x230] sm:$0xff]   ;;  %v19221_v21 = vld [vmem:[%s24288_s2 + $0x228] sm:$0xff]   ;;  %v22743_v43 = vrot.slane %v9861_v62, 1  ;;  %v9688_v60 = vrot.slane %v9686_v11, 1 }
 0x321   : > { %18063 = vmatprep.subr.bf16.mxu0 %v19205_v54  ;;  %18087 = vmatprep.subr.bf16.mxu1 %v19206_v20  ;;  %v7106_v19 = vadd.f32 %v22652_v24, %v7098_v36  ;;  %v19216_v24 = vld [vmem:[#allocation3 + $0x48] sm:$0xff]   ;;  %v9859_v28 = vor.u32 %v9858_v38, %v9854_v56  ;;  %v19226_v36 = vld [vmem:[%s24288_s2 + $0x220] sm:$0xff]   ;;  %v19237_v62 = vld [vmem:[%s24288_s2 + $0x138] sm:$0xff]  }
 0x322   : > { %v7116_v32 = vmax.f32 %v7108_v15, 0.0  ;;  %v9540_v45 = vshll.u32 %v19216_v24, 16  ;;  %v9530_v34 = vor.u32 %v9528_v50, %v22635_v41  ;;  %v19218_v41 = vld [vmem:[%s24288_s2 + $0x70] sm:$0xff]   ;;  %v9544_v10 = vshrl.u32 %v19216_v24, 16  ;;  %v19232_v6 = vld [vmem:[%s24288_s2 + $0x208] sm:$0xff]   ;;  %v19238_v38 = vld [vmem:[%s24288_s2 + $0x1f8] sm:$0xff]  }
 0x323   : > { %v7114_v31 = vmax.f32 %v7106_v19, 0.0 }
 0x324   : > { %18064 = vmatpush3.bf16.msra.mxu0 %v19205_v54  ;;  %18088 = vmatpush3.bf16.msra.mxu1 %v19206_v20  ;;  %v15942_v33 = vpack.c.bf16 %v7116_v32, %v7115_v51  ;;  %v9542_v5 = vrot.slane %v9540_v45, 1  ;;  %v9535_v37 = vsel %vm1100_vm1, %v9530_v34, %v9534_v52  ;;  %v12191_v63 = vld [vmem:[#allocation3 + $0x78] sm:$0xf]  ;;  %v12192_v7 = vld [vmem:[#allocation3 + $0x7c] sm:$0xf]  ;;  %v9550_v20 = vrot.slane %v9548_v59, 1 }
 0x325   : > { %18065 = vmatprep.subr.bf16.mxu0 %v19207_v49  ;;  %18089 = vmatprep.subr.bf16.mxu1 %v19208_v39  ;;  %v15937_v57 = vpack.c.bf16 %v7114_v31, %v7113_v27  ;;  %v22732_v54 = vcombine.low %v12191_v63, %v12192_v7  ;;  %v9864_v51 = vsel %vm1100_vm1, %v9859_v28, %v22743_v43  ;;  %v19227_v32 = vld [vmem:[%s24288_s2 + $0x60] sm:$0xff]   ;;  %v24607_v27 = vld [vmem:[#allocation34_spill] sm:$0xff]  ;;  %v19228_v31 = vld [vmem:[%s24288_s2 + $0x218] sm:$0xff]   ;;  %v9865_v63 = vshrl.u32 %v22716_v12, 16 }
 0x326   : > { %16023 = vst [vmem:[#allocation3 + $0x88] sm:$0xff] %v15942_v33   ;;  %v9543_v55 = vsel %vm1100_vm1, %v9538_v2, %v9542_v5  ;;  %v9546_v14 = vor.u32 %v9544_v10, %v9542_v5  ;;  %v24608_v33 = vcombine.low %v24606_v58, %v24607_v27  ;;  %v19231_v52 = vld [vmem:[%s24288_s2 + $0x50] sm:$0xff]   ;;  %v9873_v12 = vshrl.u32 %v19236_v23, 16  ;;  %v19245_v27 = vld [vmem:[%s24288_s2 + $0x128] sm:$0xff]   ;;  %v10515_v5 = vld [vmem:[#allocation3 + $0x44] sm:$0x8] }
 0x327   : > { %16022 = vst [vmem:[#allocation3 + $0x80] sm:$0xff] %v15937_v57   ;;  %v22728_v18 = vld [vmem:[#allocation3 + $0x70] sm:$0xf]  ;;  %v22730_v4 = vld [vmem:[#allocation3 + $0x74] sm:$0xf]  ;;  %24605 = vst [vmem:[#allocation24_spill] sm:$0xff] %v22732_v54  ;;  %v9867_v11 = vor.u32 %v9865_v63, %v22743_v43 }
 0x328   : > { %18066 = vmatpush3.bf16.msra.mxu0 %v19207_v49  ;;  %18090 = vmatpush3.bf16.msra.mxu1 %v19208_v39  ;;  %v9551_v15 = vsel %vm1100_vm1, %v9546_v14, %v9550_v20  ;;  %v9689_v39 = vsel %vm1100_vm1, %v9538_v2, %v9688_v60  ;;  %v12189_v19 = vld [vmem:[#allocation3 + $0x70] sm:$0xf]  ;;  %v19229_v57 = vld [vmem:[%s24288_s2 + $0x58] sm:$0xff]   ;;  %v24622_v63 = vld [vmem:[#allocation36_spill] sm:$0xff] }
 0x329   : > { %18067 = vmatprep.subr.bf16.mxu0 %v19209_v0  ;;  %18091 = vmatprep.subr.bf16.mxu1 %v19210_v16  ;;  %v19239_v2 = vld [vmem:[#allocation3 + $0x50] sm:$0xff]  }
 0x32a   : > { %v9877_v59 = vshll.u32 %v19239_v2, 16  ;;  %v19241_v43 = vld [vmem:[%s24288_s2 + $0x130] sm:$0xff]  }
 0x32b   : > { %v19242_v28 = vld [vmem:[%s24288_s2 + $0x1f0] sm:$0xff]  }
 0x32c   : > { %18068 = vmatpush3.bf16.msra.mxu0 %v19209_v0  ;;  %18092 = vmatpush3.bf16.msra.mxu1 %v19210_v16  ;;  %v22745_v49 = vpop.f32.mrf.mxu0  ;;  %v12190_v0 = vld [vmem:[#allocation3 + $0x74] sm:$0xf]  ;;  %v9879_v10 = vrot.slane %v9877_v59, 1 }
 0x32d   : > { %18069 = vmatprep.subr.bf16.mxu0 %v19211_v9  ;;  %18093 = vmatprep.subr.bf16.mxu1 %v19212_v48  ;;  %v22768_v24 = vcombine.low %v12189_v19, %v12190_v0  ;;  %v22780_v45 = vpop.f32.mrf.mxu1  ;;  %v24616_v19 = vld [vmem:[#allocation35_spill] sm:$0xff]  ;;  %v22859_v59 = vld [vmem:[#allocation3 + $0x8c] sm:$0xf] }
 0x32e   : > { %v22757_v16 = vpop.f32.mrf.mxu0  ;;  %v22785_v50 = vld [vmem:[#allocation3 + $0x80] sm:$0xf]  ;;  %24621 = vst [vmem:[#allocation45_spill] sm:$0xff] %v22859_v59 }
 0x32f   : > { %24609 = vst [vmem:[#allocation26_spill] sm:$0xff] %v22768_v24  ;;  %24610 = vst [vmem:[#allocation16_spill] sm:$0xff] %v22785_v50  ;;  %v22796_v42 = vpop.f32.mrf.mxu1  ;;  %v24638_v24 = vld [vmem:[#allocation30_spill] sm:$0xff] }
 0x330   : > { %18070 = vmatpush3.bf16.msra.mxu0 %v19211_v9  ;;  %18094 = vmatpush3.bf16.msra.mxu1 %v19212_v48  ;;  %v22770_v9 = vpop.f32.mrf.mxu0  ;;  %v19230_v48 = vld [vmem:[%s24288_s2 + $0x210] sm:$0xff]  }
 0x331   : > { %18103 = vmatprep.subr.bf16.mxu0 %v19214_v3  ;;  %18127 = vmatprep.subr.bf16.mxu1 %v19215_v40 }
 0x333   : > { %18072 = vmatmul.mubr.bf16.vlgmr.msra.gmra.mxu0 %v9535_v37  ;;  %18096 = vmatmul.mubr.bf16.vlgmr.msra.gmra.mxu1 %v22668_v47  ;;  %v19222_v47 = vld [vmem:[%s24288_s2 + $0x68] sm:$0xff]  }
 0x334   : > { %18075 = vmatprep.mubr.bf16.mxu0 %v9543_v55  ;;  %18099 = vmatprep.mubr.bf16.mxu1 %v9535_v37  ;;  %v9869_v37 = vshll.u32 %v19236_v23, 16  ;;  %v22807_v55 = vpop.f32.mrf.mxu1 }
 0x335   : > { %18104 = vmatpush3.bf16.msra.mxu0 %v19214_v3  ;;  %18128 = vmatpush3.bf16.msra.mxu1 %v19215_v40  ;;  %v22778_v3 = vpop.f32.mrf.mxu0  ;;  %v22787_v40 = vld [vmem:[#allocation3 + $0x84] sm:$0xf] }
 0x336   : > { %18105 = vmatprep.subr.bf16.mxu0 %v19217_v22  ;;  %18129 = vmatprep.subr.bf16.mxu1 %v19218_v41  ;;  %24611 = vst [vmem:[#allocation18_spill] sm:$0xff] %v22787_v40 }
 0x337   : > { %v22792_v34 = vpop.f32.mrf.mxu0 }
 0x339   : > { %18106 = vmatpush3.bf16.msra.mxu0 %v19217_v22  ;;  %18130 = vmatpush3.bf16.msra.mxu1 %v19218_v41  ;;  %v19235_v22 = vld [vmem:[%s24288_s2 + $0x40] sm:$0xff]   ;;  %v22805_v7 = vpop.f32.mrf.mxu0  ;;  %v9871_v41 = vrot.slane %v9869_v37, 1  ;;  %v22855_v37 = vld [vmem:[#allocation3 + $0x7c] sm:$0xf] }
 0x33a   : > { %18107 = vmatprep.subr.bf16.mxu0 %v19221_v21  ;;  %18131 = vmatprep.subr.bf16.mxu1 %v19222_v47  ;;  %24612 = vst [vmem:[#allocation29_spill] sm:$0xff] %v22805_v7  ;;  %24619 = vst [vmem:[#allocation27_spill] sm:$0xff] %v22855_v37  ;;  %v19547_v37 = vld [vmem:[#allocation3 + $0x48] sm:$0xf] }
 0x33b   : > { %18076 = vmatmul.mubr.bf16.gmra.mxu0 %v9551_v15  ;;  %18100 = vmatmul.mubr.bf16.gmra.mxu1 %v9689_v39  ;;  %v22816_v20 = vpop.f32.mrf.mxu0  ;;  %v9875_v56 = vor.u32 %v9873_v12, %v9871_v41  ;;  %v9872_v14 = vsel %vm1100_vm1, %v9867_v11, %v9871_v41  ;;  %v9881_v39 = vshrl.u32 %v19239_v2, 16  ;;  %v12194_v2 = vld [vmem:[#allocation3 + $0x84] sm:$0xf]  ;;  %v22863_v41 = vld [vmem:[#allocation3 + $0x88] sm:$0xf] }
 0x33c   : > { %18119 = vmatprep.mubr.bf16.mxu0 %v9864_v51  ;;  %18143 = vmatprep.mubr.bf16.mxu1 %v24608_v33  ;;  %24613 = vst [vmem:[#allocation12_spill] sm:$0xff] %v22816_v20  ;;  %v19246_v33 = vld [vmem:[%s24288_s2 + $0x1e8] sm:$0xff]   ;;  %24623 = vst [vmem:[#allocation55_spill] sm:$0xff] %v22863_v41  ;;  %v24627_v12 = vld [vmem:[#allocation20_spill] sm:$0xff] }
 0x33d   : > { %18108 = vmatpush3.bf16.msra.mxu0 %v19221_v21  ;;  %18132 = vmatpush3.bf16.msra.mxu1 %v19222_v47  ;;  %v19243_v21 = vld [vmem:[#allocation3 + $0x58] ss:$0 sps:$4 sm:$0x11]   ;;  %v22818_v47 = vpop.f32.mrf.mxu1  ;;  %v9880_v60 = vsel %vm1100_vm1, %v9875_v56, %v9879_v10  ;;  %v22828_v15 = vpop.f32.mrf.mxu0  ;;  %v9883_v58 = vor.u32 %v9881_v39, %v9879_v10  ;;  %v10516_v41 = vld [vmem:[#allocation3 + $0x48] sm:$0xf] }
 0x33e   : > { %18109 = vmatprep.subr.bf16.mxu0 %v19226_v36  ;;  %18133 = vmatprep.subr.bf16.mxu1 %v19227_v32  ;;  %24614 = vst [vmem:[#allocation14_spill] sm:$0xff] %v22828_v15  ;;  %v9885_v51 = vshll.u32 %v19243_v21, 16  ;;  %v19282_v15 = vld [vmem:[%s24288_s2] sm:$0xff]  }
 0x33f   : > { %v19554_v20 = vld [vmem:[#allocation3 + $0x60] sm:$0xf] }
 0x341   : > { %18110 = vmatpush3.bf16.msra.mxu0 %v19226_v36  ;;  %18134 = vmatpush3.bf16.msra.mxu1 %v19227_v32  ;;  %v24615_v36 = vld [vmem:[#allocation17_spill] sm:$0xff]  ;;  %v22831_v32 = vpop.f32.mrf.mxu1 }
 0x342   : > { %18111 = vmatprep.subr.bf16.mxu0 %v19228_v31  ;;  %18135 = vmatprep.subr.bf16.mxu1 %v19229_v57 }
 0x345   : > { %18112 = vmatpush3.bf16.msra.mxu0 %v19228_v31  ;;  %18136 = vmatpush3.bf16.msra.mxu1 %v19229_v57  ;;  %v9887_v31 = vrot.slane %v9885_v51, 1  ;;  %v22842_v57 = vpop.f32.mrf.mxu1 }
 0x346   : > { %18113 = vmatprep.subr.bf16.mxu0 %v19230_v48  ;;  %18137 = vmatprep.subr.bf16.mxu1 %v19231_v52  ;;  %24617 = vst [vmem:[#allocation15_spill] sm:$0xff] %v22842_v57 }
 0x347   : > { %v22867_v11 = vpop.f32.mrf.mxu1 }
 0x348   : > { %24625 = vst [vmem:[#allocation44_spill] sm:$0xff] %v22867_v11  ;;  %v19553_v11 = vld [vmem:[#allocation3 + $0x5c] sm:$0xf] }
 0x349   : > { %18114 = vmatpush3.bf16.msra.mxu0 %v19230_v48  ;;  %18138 = vmatpush3.bf16.msra.mxu1 %v19231_v52  ;;  %v19248_v48 = vld [vmem:[%s24288_s2 + $0x120] sm:$0xff]   ;;  %v22888_v39 = vpop.f32.mrf.mxu1 }
 0x34a   : > { %18115 = vmatprep.subr.bf16.mxu0 %v19232_v6  ;;  %18139 = vmatprep.subr.bf16.mxu1 %v19233_v35  ;;  %v19249_v52 = vld [vmem:[%s24288_s2 + $0x1e0] sm:$0xff]   ;;  %24631 = vst [vmem:[#allocation52_spill] sm:$0xff] %v22888_v39 }
 0x34d   : > { %18116 = vmatpush3.bf16.msra.mxu0 %v19232_v6  ;;  %18140 = vmatpush3.bf16.msra.mxu1 %v19233_v35  ;;  %v22834_v0 = vpop.f32.mrf.mxu0  ;;  %v9888_v6 = vsel %vm1100_vm1, %v9883_v58, %v9887_v31  ;;  %v12193_v35 = vld [vmem:[#allocation3 + $0x80] sm:$0xf]  ;;  %v19252_v58 = vld [vmem:[%s24288_s2 + $0x110] sm:$0xff]  }
 0x34e   : > { %18117 = vmatprep.subr.bf16.mxu0 %v19234_v25  ;;  %18141 = vmatprep.subr.bf16.mxu1 %v19235_v22  ;;  %v22872_v21 = vcombine.low %v12193_v35, %v12194_v2  ;;  %v19256_v2 = vld [vmem:[%s24288_s2 + $0x100] sm:$0xff]  }
 0x34f   : > { %v22850_v23 = vpop.f32.mrf.mxu0 }
 0x350   : > { %24629 = vst [vmem:[#allocation47_spill] sm:$0xff] %v22872_v21 }
 0x351   : > { %18118 = vmatpush3.bf16.msra.mxu0 %v19234_v25  ;;  %18142 = vmatpush3.bf16.msra.mxu1 %v19235_v22  ;;  %v22853_v25 = vld [vmem:[#allocation3 + $0x78] sm:$0xf]  ;;  %v22857_v22 = vld [vmem:[#allocation3 + $0x88] sm:$0xf]  ;;  %v22874_v56 = vpop.f32.mrf.mxu0 }
 0x352   : > { %18151 = vmatprep.subr.bf16.mxu0 %v19237_v62  ;;  %18175 = vmatprep.subr.bf16.mxu1 %v19238_v38  ;;  %24618 = vst [vmem:[#allocation11_spill] sm:$0xff] %v22853_v25  ;;  %24620 = vst [vmem:[#allocation53_spill] sm:$0xff] %v22857_v22  ;;  %v15352_v25 = vcombine.low %v19547_v37, %v22484_v8  ;;  %v24639_v8 = vld [vmem:[#allocation31_spill] sm:$0xff] }
 0x353   : > { %24630 = vst [vmem:[#allocation40_spill] sm:$0xff] %v22874_v56  ;;  %v22890_v51 = vpop.f32.mrf.mxu0  ;;  %v24640_v37 = vcombine.low %v24638_v24, %v24639_v8  ;;  %v19266_v24 = vld [vmem:[%s24288_s2 + $0x28] sm:$0xff]  }
 0x354   : > { %18120 = vmatmul.mubr.bf16.vlgmr.msra.gmra.mxu0 %v9872_v14  ;;  %18144 = vmatmul.mubr.bf16.vlgmr.msra.gmra.mxu1 %v24615_v36  ;;  %v19250_v14 = vld [vmem:[%s24288_s2 + $0x118] sm:$0xff]   ;;  %24632 = vst [vmem:[#allocation25_spill] sm:$0xff] %v22890_v51  ;;  %v15419_v51 = vcombine.low %v19553_v11, %v19554_v20 }
 0x355   : > { %18123 = vmatprep.mubr.bf16.mxu0 %v9880_v60  ;;  %18147 = vmatprep.mubr.bf16.mxu1 %v24616_v19  ;;  %v22900_v31 = vpop.f32.mrf.mxu0  ;;  %v19284_v20 = vld [vmem:[%s24288_s2 + $0x178] sm:$0xff]  }
 0x356   : > { %18152 = vmatpush3.bf16.msra.mxu0 %v19237_v62  ;;  %18176 = vmatpush3.bf16.msra.mxu1 %v19238_v38  ;;  %v22865_v62 = vld [vmem:[#allocation3 + $0x8c] sm:$0xf]  ;;  %v24626_v38 = vld [vmem:[#allocation19_spill] sm:$0xff]  ;;  %24633 = vst [vmem:[#allocation46_spill] sm:$0xff] %v22900_v31 }
 0x357   : > { %18153 = vmatprep.subr.bf16.mxu0 %v19241_v43  ;;  %18177 = vmatprep.subr.bf16.mxu1 %v19242_v28  ;;  %24624 = vst [vmem:[#allocation23_spill] sm:$0xff] %v22865_v62  ;;  %v24628_v10 = vcombine.low %v24626_v38, %v24627_v12  ;;  %v22910_v35 = vpop.f32.mrf.mxu0  ;;  %v19257_v12 = vld [vmem:[%s24288_s2 + $0x1c0] sm:$0xff]   ;;  %v19258_v62 = vld [vmem:[%s24288_s2 + $0xf8] sm:$0xff]  }
 0x358   : > { %24634 = vst [vmem:[#allocation54_spill] sm:$0xff] %v22910_v35  ;;  %v10900_v35 = vld [vmem:[#allocation3 + $0x68] sm:$0xf]  ;;  %v23042_v31 = vld [vmem:[#allocation3 + $0x58] sm:$0xff]  }
 0x359   : > { %v22920_v46 = vpop.f32.mrf.mxu0  ;;  %v11195_v57 = vshll.u32 %v23042_v31, 16 }
 0x35a   : > { %18154 = vmatpush3.bf16.msra.mxu0 %v19241_v43  ;;  %18178 = vmatpush3.bf16.msra.mxu1 %v19242_v28  ;;  %v19251_v28 = vld [vmem:[%s24288_s2 + $0x1d8] sm:$0xff]   ;;  %24635 = vst [vmem:[#allocation51_spill] sm:$0xff] %v22920_v46 }
 0x35b   : > { %18155 = vmatprep.subr.bf16.mxu0 %v19245_v27  ;;  %18179 = vmatprep.subr.bf16.mxu1 %v19246_v33  ;;  %v22930_v40 = vpop.f32.mrf.mxu0 }
 0x35c   : > { %18124 = vmatmul.mubr.bf16.gmra.mxu0 %v9888_v6  ;;  %18148 = vmatmul.mubr.bf16.gmra.mxu1 %v24622_v63  ;;  %v19255_v6 = vld [vmem:[%s24288_s2 + $0x1c8] sm:$0xff]   ;;  %24636 = vst [vmem:[#allocation21_spill] sm:$0xff] %v22930_v40 }
 0x35d   : > { %18167 = vmatprep.mubr.bf16.mxu0 %v24615_v36  ;;  %18191 = vmatprep.mubr.bf16.mxu1 %v24628_v10  ;;  %v10540_v10 = vld [vmem:[#allocation3 + $0x4c] sm:$0x8]  ;;  %v19545_v36 = vld [vmem:[#allocation3 + $0x58] sm:$0xf] }
 0x35e   : > { %18156 = vmatpush3.bf16.msra.mxu0 %v19245_v27  ;;  %18180 = vmatpush3.bf16.msra.mxu1 %v19246_v33  ;;  %v22895_v27 = vpop.f32.mrf.mxu1  ;;  %v19253_v33 = vld [vmem:[%s24288_s2 + $0x1d0] sm:$0xff]  }
 0x35f   : > { %18157 = vmatprep.subr.bf16.mxu0 %v19248_v48  ;;  %18181 = vmatprep.subr.bf16.mxu1 %v19249_v52 }
 0x362   : > { %18158 = vmatpush3.bf16.msra.mxu0 %v19248_v48  ;;  %18182 = vmatpush3.bf16.msra.mxu1 %v19249_v52  ;;  %v19254_v48 = vld [vmem:[%s24288_s2 + $0x108] sm:$0xff]   ;;  %v22905_v52 = vpop.f32.mrf.mxu1 }
 0x363   : > { %18159 = vmatprep.subr.bf16.mxu0 %v19250_v14  ;;  %18183 = vmatprep.subr.bf16.mxu1 %v19251_v28 }
 0x364   : > { %v22915_v38 = vpop.f32.mrf.mxu1 }
 0x366   : > { %18160 = vmatpush3.bf16.msra.mxu0 %v19250_v14  ;;  %18184 = vmatpush3.bf16.msra.mxu1 %v19251_v28  ;;  %v19544_v14 = vld [vmem:[#allocation3 + $0x50] sm:$0xf]  ;;  %v22925_v59 = vpop.f32.mrf.mxu1 }
 0x367   : > { %18161 = vmatprep.subr.bf16.mxu0 %v19252_v58  ;;  %18185 = vmatprep.subr.bf16.mxu1 %v19253_v33  ;;  %v15378_v28 = vcombine.low %v10540_v10, %v19544_v14  ;;  %v15391_v10 = vcombine.low %v10515_v5, %v10516_v41  ;;  %v19261_v5 = vld [vmem:[%s24288_s2 + $0xf0] sm:$0xff]  }
 0x368   : > { %v22932_v50 = vpop.f32.mrf.mxu1 }
 0x369   : > { %24637 = vst [vmem:[#allocation56_spill] sm:$0xff] %v22932_v50  ;;  %v10753_v41 = vshrl.u32 %v15391_v10, 16 }
 0x36a   : > { %18162 = vmatpush3.bf16.msra.mxu0 %v19252_v58  ;;  %18186 = vmatpush3.bf16.msra.mxu1 %v19253_v33  ;;  %v19546_v58 = vld [vmem:[#allocation3 + $0x54] sm:$0xf]  ;;  %v10517_v33 = vld [vmem:[#allocation3 + $0x4c] sm:$0xf]  ;;  %v22948_v53 = vpop.f32.mrf.mxu1 }
 0x36b   : > { %18163 = vmatprep.subr.bf16.mxu0 %v19254_v48  ;;  %18187 = vmatprep.subr.bf16.mxu1 %v19255_v6  ;;  %v15379_v60 = vcombine.low %v19546_v58, %v19545_v36  ;;  %v15392_v43 = vcombine.low %v10517_v33, %v19544_v14  ;;  %v19259_v36 = vld [vmem:[%s24288_s2 + $0x38] sm:$0xff]   ;;  %v10583_v58 = vshrl.u32 %v15378_v28, 16  ;;  %24641 = vst [vmem:[#allocation50_spill] sm:$0xff] %v22948_v53  ;;  %v10955_v53 = vshll.u32 %v15419_v51, 16 }
 0x36d   : > { %v10591_v14 = vshrl.u32 %v15379_v60, 16  ;;  %v10594_v33 = vshll.u32 %v15379_v60, 16  ;;  %v10764_v22 = vshll.u32 %v15392_v43, 16  ;;  %v10957_v1 = vrot.slane %v10955_v53, 4  ;;  %v19290_v53 = vld [vmem:[%s24288_s2 + $0x1a8] sm:$0xff]  }
 0x36e   : > { %18164 = vmatpush3.bf16.msra.mxu0 %v19254_v48  ;;  %18188 = vmatpush3.bf16.msra.mxu1 %v19255_v6  ;;  %v10586_v48 = vshll.u32 %v15378_v28, 16  ;;  %v10761_v6 = vshrl.u32 %v15392_v43, 16  ;;  %v10756_v28 = vshll.u32 %v15391_v10, 16  ;;  %v22938_v60 = vpop.f32.mrf.mxu0  ;;  %v19262_v43 = vld [vmem:[%s24288_s2 + $0x30] sm:$0xff]  }
 0x36f   : > { %18165 = vmatprep.subr.bf16.mxu0 %v19256_v2  ;;  %18189 = vmatprep.subr.bf16.mxu1 %v19257_v12  ;;  %v10593_v21 = vrot.slane %v10591_v14, 3  ;;  %v10596_v54 = vrot.slane %v10594_v33, 4  ;;  %v10766_v10 = vrot.slane %v10764_v22, 4  ;;  %v19273_v33 = vld [vmem:[%s24288_s2 + $0xe0] sm:$0xff]  }
 0x370   : > { %v10763_v40 = vrot.slane %v10761_v6, 3  ;;  %v22953_v14 = vpop.f32.mrf.mxu0 }
 0x372   : > { %18166 = vmatpush3.bf16.msra.mxu0 %v19256_v2  ;;  %18190 = vmatpush3.bf16.msra.mxu1 %v19257_v12  ;;  %v10585_v2 = vrot.slane %v10583_v58, 3  ;;  %v10588_v12 = vrot.slane %v10586_v48, 4  ;;  %v10755_v58 = vrot.slane %v10753_v41, 3  ;;  %v10758_v48 = vrot.slane %v10756_v28, 4  ;;  %v22967_v6 = vpop.f32.mrf.mxu0  ;;  %v24643_v41 = vld [vmem:[#allocation6_spill] sm:$0xff]  ;;  %v24644_v28 = vld [vmem:[#allocation33_spill] sm:$0xff] }
 0x373   : > { %18199 = vmatprep.subr.bf16.mxu0 %v19258_v62  ;;  %18223 = vmatprep.subr.bf16.mxu1 %v19259_v36  ;;  %v24645_v8 = vcombine.low %v24643_v41, %v24644_v28  ;;  %v19550_v41 = vld [vmem:[#allocation3 + $0x68] sm:$0xf]  ;;  %v19551_v28 = vld [vmem:[#allocation3 + $0x64] sm:$0xf] }
 0x374   : > { %v10589_v22 = vor.u32 %v10588_v12, %v10585_v2  ;;  %v19275_v12 = vld [vmem:[%s24288_s2 + $0xd8] sm:$0xff]  }
 0x375   : > { %18168 = vmatmul.mubr.bf16.vlgmr.msra.gmra.mxu0 %v24616_v19  ;;  %18192 = vmatmul.mubr.bf16.vlgmr.msra.gmra.mxu1 %v24640_v37  ;;  %v19265_v19 = vld [vmem:[%s24288_s2 + $0xe8] sm:$0xff]   ;;  %v22987_v37 = vpop.f32.mrf.mxu0 }
 0x376   : > { %18171 = vmatprep.mubr.bf16.mxu0 %v24622_v63  ;;  %18195 = vmatprep.mubr.bf16.mxu1 %v15352_v25  ;;  %v22958_v25 = vor.u32 %v10596_v54, %v10593_v21  ;;  %v22960_v63 = vor.u32 %v10766_v10, %v10763_v40  ;;  %v19274_v40 = vld [vmem:[%s24288_s2 + $0x20] sm:$0xff]  }
 0x377   : > { %18200 = vmatpush3.bf16.msra.mxu0 %v19258_v62  ;;  %18224 = vmatpush3.bf16.msra.mxu1 %v19259_v36  ;;  %v22962_v62 = vpop.f32.mrf.mxu1  ;;  %v10759_v36 = vor.u32 %v10758_v48, %v10755_v58  ;;  %v24646_v21 = vld [vmem:[#allocation28_spill] sm:$0xff] }
 0x378   : > { %18201 = vmatprep.subr.bf16.mxu0 %v19261_v5  ;;  %18225 = vmatprep.subr.bf16.mxu1 %v19262_v43  ;;  %24642 = vst [vmem:[#allocation32_spill] sm:$0xff] %v22962_v62  ;;  %v10598_v54 = vsel %vm491_vm0, %v10589_v22, %v22958_v25  ;;  %v19549_v58 = vld [vmem:[#allocation3 + $0x60] sm:$0xf]  ;;  %v22997_v22 = vpop.f32.mrf.mxu0 }
 0x379   : > { %v22982_v2 = vpop.f32.mrf.mxu1  ;;  %24649 = vst [vmem:[#allocation17_spill] sm:$0xff] %v22997_v22 }
 0x37a   : > { %24648 = vst [vmem:[#allocation34_spill] sm:$0xff] %v22982_v2 }
 0x37b   : > { %18202 = vmatpush3.bf16.msra.mxu0 %v19261_v5  ;;  %18226 = vmatpush3.bf16.msra.mxu1 %v19262_v43  ;;  %v24647_v5 = vcombine.low %v24646_v21, %v22202_v29  ;;  %v10768_v43 = vsel %vm491_vm0, %v10759_v36, %v22960_v63  ;;  %v19276_v29 = vld [vmem:[%s24288_s2 + $0x18] sm:$0xff]   ;;  %v22992_v10 = vpop.f32.mrf.mxu1  ;;  %v19278_v36 = vld [vmem:[%s24288_s2 + $0x10] sm:$0xff]  }
 0x37c   : > { %18203 = vmatprep.subr.bf16.mxu0 %v19265_v19  ;;  %18227 = vmatprep.subr.bf16.mxu1 %v19266_v24 }
 0x37d   : > { %18172 = vmatmul.mubr.bf16.gmra.mxu0 %v24645_v8  ;;  %18196 = vmatmul.mubr.bf16.gmra.mxu1 %v24647_v5  ;;  %v15381_v8 = vcombine.low %v19551_v28, %v19550_v41  ;;  %v23007_v5 = vpop.f32.mrf.mxu0 }
 0x37e   : > { %18215 = vmatprep.mubr.bf16.mxu0 %v10598_v54  ;;  %18239 = vmatprep.mubr.bf16.mxu1 %v10768_v43  ;;  %v19279_v54 = vld [vmem:[%s24288_s2 + $0xc8] sm:$0xff]   ;;  %24650 = vst [vmem:[#allocation35_spill] sm:$0xff] %v23007_v5  ;;  %v10952_v5 = vshrl.u32 %v15419_v51, 16  ;;  %v10769_v51 = vsel %vm491_vm0, %v22960_v63, %v22958_v25 }
 0x37f   : > { %18204 = vmatpush3.bf16.msra.mxu0 %v19265_v19  ;;  %18228 = vmatpush3.bf16.msra.mxu1 %v19266_v24  ;;  %v19548_v19 = vld [vmem:[#allocation3 + $0x5c] sm:$0xf]  ;;  %v19277_v24 = vld [vmem:[%s24288_s2 + $0xd0] sm:$0xff]   ;;  %v19280_v43 = vld [vmem:[%s24288_s2 + $0x8] sm:$0xff]   ;;  %v23017_v39 = vpop.f32.mrf.mxu0 }
 0x380   : > { %18205 = vmatprep.subr.bf16.mxu0 %v19273_v33  ;;  %18229 = vmatprep.subr.bf16.mxu1 %v19274_v40  ;;  %v15380_v48 = vcombine.low %v19548_v19, %v19549_v58  ;;  %v10609_v19 = vshrl.u32 %v15381_v8, 16  ;;  %v10612_v58 = vshll.u32 %v15381_v8, 16  ;;  %24651 = vst [vmem:[#allocation36_spill] sm:$0xff] %v23017_v39  ;;  %v23070_v39 = vld [vmem:[#allocation3 + $0x68] sm:$0xff]  }
 0x382   : > { %v10603_v21 = vshll.u32 %v15380_v48, 16  ;;  %v10611_v46 = vrot.slane %v10609_v19, 3  ;;  %v10614_v8 = vrot.slane %v10612_v58, 4  ;;  %v23033_v58 = vpop.f32.mrf.mxu0 }
 0x383   : > { %18206 = vmatpush3.bf16.msra.mxu0 %v19273_v33  ;;  %18230 = vmatpush3.bf16.msra.mxu1 %v19274_v40  ;;  %v23002_v33 = vpop.f32.mrf.mxu1  ;;  %v10600_v40 = vshrl.u32 %v15380_v48, 16  ;;  %24652 = vst [vmem:[#allocation19_spill] sm:$0xff] %v23033_v58 }
 0x384   : > { %18207 = vmatprep.subr.bf16.mxu0 %v19275_v12  ;;  %18231 = vmatprep.subr.bf16.mxu1 %v19276_v29  ;;  %v10605_v48 = vrot.slane %v10603_v21, 4  ;;  %v23026_v21 = vld [vmem:[#allocation3 + $0x48] sm:$0xff]   ;;  %v23038_v11 = vor.u32 %v10614_v8, %v10611_v46 }
 0x385   : > { %v23012_v41 = vpop.f32.mrf.mxu1  ;;  %v11351_v46 = vshll.u32 %v23026_v21, 16 }
 0x387   : > { %18208 = vmatpush3.bf16.msra.mxu0 %v19275_v12  ;;  %18232 = vmatpush3.bf16.msra.mxu1 %v19276_v29  ;;  %v19281_v12 = vld [vmem:[%s24288_s2 + $0xc0] sm:$0xff]   ;;  %v10602_v29 = vrot.slane %v10600_v40, 3  ;;  %v23022_v30 = vpop.f32.mrf.mxu1  ;;  %v23024_v40 = vld [vmem:[#allocation3 + $0x50] sm:$0xff]  }
 0x388   : > { %18209 = vmatprep.subr.bf16.mxu0 %v19277_v24  ;;  %18233 = vmatprep.subr.bf16.mxu1 %v19278_v36  ;;  %v11190_v56 = vshll.u32 %v23024_v40, 16 }
 0x389   : > { %v23028_v2 = vor.u32 %v10605_v48, %v10602_v29  ;;  %v23040_v29 = vpop.f32.mrf.mxu1 }
 0x38a   : > { %24653 = vst [vmem:[#allocation20_spill] sm:$0xff] %v23040_v29 }
 0x38b   : > { %18210 = vmatpush3.bf16.msra.mxu0 %v19277_v24  ;;  %18234 = vmatpush3.bf16.msra.mxu1 %v19278_v36  ;;  %v15393_v24 = vcombine.low %v19551_v28, %v19551_v28  ;;  %v10895_v36 = vld [vmem:[#allocation3 + $0x54] sm:$0x8]  ;;  %v19555_v28 = vld [vmem:[#allocation3 + $0x58] sm:$0xf]  ;;  %v23062_v13 = vpop.f32.mrf.mxu1 }
 0x38c   : > { %18211 = vmatprep.subr.bf16.mxu0 %v19279_v54  ;;  %18235 = vmatprep.subr.bf16.mxu1 %v19280_v43  ;;  %v15418_v19 = vcombine.low %v10895_v36, %v19555_v28  ;;  %v19556_v28 = vld [vmem:[#allocation3 + $0x64] sm:$0xf]  ;;  %24655 = vst [vmem:[#allocation31_spill] sm:$0xff] %v23062_v13 }
 0x38d   : > { %v10771_v17 = vshrl.u32 %v15393_v24, 16  ;;  %v10774_v48 = vshll.u32 %v15393_v24, 16  ;;  %v15420_v58 = vcombine.low %v19556_v28, %v10900_v35  ;;  %v10616_v35 = vsel %vm491_vm0, %v23028_v2, %v23038_v11 }
 0x38e   : > { %v10944_v8 = vshrl.u32 %v15418_v19, 16 }
 0x38f   : > { %18212 = vmatpush3.bf16.msra.mxu0 %v19279_v54  ;;  %18236 = vmatpush3.bf16.msra.mxu1 %v19280_v43  ;;  %v10618_v54 = vshrl.u32 %v15382_v26, 16  ;;  %v10621_v43 = vshll.u32 %v15382_v26, 16  ;;  %v23044_v36 = vpop.f32.mrf.mxu0  ;;  %v10607_v26 = vsel %vm491_vm0, %v22958_v25, %v23028_v2  ;;  %v10773_v29 = vrot.slane %v10771_v17, 3  ;;  %v19287_v25 = vld [vmem:[%s24288_s2 + $0x170] sm:$0xff]  }
 0x390   : > { %18213 = vmatprep.subr.bf16.mxu0 %v19281_v12  ;;  %18237 = vmatprep.subr.bf16.mxu1 %v19282_v15  ;;  %24654 = vst [vmem:[#allocation30_spill] sm:$0xff] %v23044_v36  ;;  %v23060_v36 = vld [vmem:[#allocation3 + $0x60] sm:$0xff]   ;;  %v10776_v63 = vrot.slane %v10774_v48, 4  ;;  %v10961_v17 = vshrl.u32 %v15420_v58, 16  ;;  %v10946_v13 = vrot.slane %v10944_v8, 3 }
 0x391   : > { %v10620_v24 = vrot.slane %v10618_v54, 3  ;;  %v10623_v28 = vrot.slane %v10621_v43, 4  ;;  %v23068_v7 = vpop.f32.mrf.mxu0  ;;  %v11192_v54 = vrot.slane %v11190_v56, 1  ;;  %v10964_v43 = vshll.u32 %v15420_v58, 16  ;;  %v23078_v58 = vpop.f32.mrf.mxu1 }
 0x392   : > { %24656 = vst [vmem:[#allocation6_spill] sm:$0xff] %v23068_v7  ;;  %v11203_v48 = vshll.u32 %v23060_v36, 16  ;;  %v11349_v56 = vshrl.u32 %v23026_v21, 16  ;;  %v10963_v22 = vrot.slane %v10961_v17, 3  ;;  %v11211_v21 = vshll.u32 %v23070_v39, 16 }
 0x393   : > { %18214 = vmatpush3.bf16.msra.mxu0 %v19281_v12  ;;  %18238 = vmatpush3.bf16.msra.mxu1 %v19282_v15  ;;  %v10947_v12 = vshll.u32 %v15418_v19, 16  ;;  %v19286_v15 = vld [vmem:[%s24288_s2 + $0x1b0] sm:$0xff]   ;;  %v10954_v19 = vrot.slane %v10952_v5, 3  ;;  %v11188_v5 = vshrl.u32 %v23024_v40, 16  ;;  %v23085_v7 = vpop.f32.mrf.mxu0  ;;  %v10966_v50 = vrot.slane %v10964_v43, 4 }
 0x394   : > { %18247 = vmatprep.subr.bf16.mxu0 %v19283_v61  ;;  %18271 = vmatprep.subr.bf16.mxu1 %v19284_v20 }
 0x395   : > { %v10949_v62 = vrot.slane %v10947_v12, 4  ;;  %v10958_v8 = vor.u32 %v10957_v1, %v10954_v19  ;;  %v11197_v12 = vrot.slane %v11195_v57, 1  ;;  %v11193_v40 = vor.u32 %v11192_v54, %v11188_v5  ;;  %v19298_v1 = vld [vmem:[%s24288_s2 + $0x1a0] sm:$0xff]   ;;  %v23096_v19 = vpop.f32.mrf.mxu1 }
 0x396   : > { %18216 = vmatmul.mubr.bf16.vlgmr.msra.gmra.mxu0 %v10607_v26  ;;  %18240 = vmatmul.mubr.bf16.vlgmr.msra.gmra.mxu1 %v10769_v51  ;;  %v11353_v51 = vrot.slane %v11351_v46, 1  ;;  %v11205_v57 = vrot.slane %v11203_v48, 1  ;;  %v11213_v5 = vrot.slane %v11211_v21, 1 }
 0x397   : > { %18219 = vmatprep.mubr.bf16.mxu0 %v10616_v35  ;;  %18243 = vmatprep.mubr.bf16.mxu1 %v10607_v26  ;;  %v10624_v26 = vor.u32 %v10623_v28, %v10620_v24  ;;  %v23083_v35 = vld [vmem:[#allocation3 + $0x58] sm:$0xff]   ;;  %v10950_v46 = vor.u32 %v10949_v62, %v10946_v13  ;;  %v11199_v24 = vshrl.u32 %v23042_v31, 16  ;;  %v19299_v31 = vld [vmem:[%s24288_s2 + $0x160] sm:$0xff]   ;;  %v23109_v17 = vsel %vm1100_vm1, %v11193_v40, %v11197_v12  ;;  %v23113_v48 = vpop.f32.mrf.mxu1 }
 0x398   : > { %18248 = vmatpush3.bf16.msra.mxu0 %v19283_v61  ;;  %18272 = vmatpush3.bf16.msra.mxu1 %v19284_v20  ;;  %v10777_v61 = vor.u32 %v10776_v63, %v10773_v29  ;;  %v19291_v20 = vld [vmem:[%s24288_s2 + $0x168] sm:$0xff]   ;;  %v11354_v28 = vor.u32 %v11353_v51, %v11349_v56  ;;  %v23094_v63 = vld [vmem:[#allocation3 + $0x60] sm:$0xff]  }
 0x399   : > { %18249 = vmatprep.subr.bf16.mxu0 %v19286_v15  ;;  %18273 = vmatprep.subr.bf16.mxu1 %v19287_v25  ;;  %v10625_v29 = vsel %vm491_vm0, %v23038_v11, %v10624_v26  ;;  %v10959_v62 = vsel %vm491_vm0, %v10950_v46, %v10958_v8  ;;  %v11207_v11 = vshrl.u32 %v23060_v36, 16  ;;  %v11201_v43 = vor.u32 %v11199_v24, %v11197_v12  ;;  %v23116_v56 = vld [vmem:[#allocation3 + $0x6c] sm:$0xf]  ;;  %v19301_v12 = vld [vmem:[%s24288_s2 + $0x158] sm:$0xff]  }
 0x39a   : > { %v10778_v13 = vsel %vm491_vm0, %v23028_v2, %v10777_v61  ;;  %v23111_v2 = vor.u32 %v10966_v50, %v10963_v22  ;;  %v11215_v36 = vshrl.u32 %v23070_v39, 16  ;;  %v23120_v51 = vsel %vm1100_vm1, %v11354_v28, %v11192_v54  ;;  %v19300_v50 = vld [vmem:[%s24288_s2 + $0x198] sm:$0xff]  }
 0x39b   : > { %v23126_v22 = vsel %vm1100_vm1, %v11201_v43, %v11205_v57  ;;  %v23130_v26 = vor.u32 %v11207_v11, %v11205_v57  ;;  %v11532_v61 = vshll.u32 %v23094_v63, 16  ;;  %v7516_v39 = vadd.f32 %v22780_v45, %v22745_v49  ;;  %v24660_v43 = vld [vmem:[#allocation36_spill] sm:$0xff] }
 0x39c   : > { %18250 = vmatpush3.bf16.msra.mxu0 %v19286_v15  ;;  %18274 = vmatpush3.bf16.msra.mxu1 %v19287_v25  ;;  %v11527_v15 = vshll.u32 %v23083_v35, 16  ;;  %v23106_v25 = vpop.f32.mrf.mxu0  ;;  %v8100_v54 = vadd.f32 %v22938_v60, %v22895_v27  ;;  %v23146_v46 = vsel %vm491_vm0, %v10958_v8, %v23111_v2  ;;  %v23150_v49 = vcombine.low %v22730_v4, %v22730_v4 }
 0x39d   : > { %18251 = vmatprep.subr.bf16.mxu0 %v19290_v53  ;;  %18275 = vmatprep.subr.bf16.mxu1 %v19291_v20  ;;  %v23152_v45 = vor.u32 %v11215_v36, %v11213_v5  ;;  %v11525_v27 = vshrl.u32 %v23083_v35, 16  ;;  %v7750_v60 = vadd.f32 %v22834_v0, %v7516_v39  ;;  %v8095_v8 = vadd.f32 %v22987_v37, %v22925_v59  ;;  %v19302_v35 = vld [vmem:[%s24288_s2 + $0x190] sm:$0xff]  }
 0x39e   : > { %18220 = vmatmul.mubr.bf16.gmra.mxu0 %v10625_v29  ;;  %18244 = vmatmul.mubr.bf16.gmra.mxu1 %v10778_v13  ;;  %v11529_v40 = vrot.slane %v11527_v15, 1  ;;  %v23142_v21 = vpop.f32.mrf.mxu0  ;;  %v23162_v29 = vpop.f32.mrf.mxu1  ;;  %v8326_v59 = vadd.f32 %v22992_v10, %v8100_v54  ;;  %v7511_v28 = vadd.f32 %v22818_v47, %v22778_v3  ;;  %v10982_v10 = vshll.u32 %v23150_v49, 16  ;;  %v24658_v3 = vld [vmem:[#allocation17_spill] sm:$0xff]  ;;  %v24659_v47 = vld [vmem:[#allocation32_spill] sm:$0xff] }
 0x39f   : > { %18263 = vmatprep.mubr.bf16.mxu0 %v10959_v62  ;;  %18287 = vmatprep.mubr.bf16.mxu1 %v23109_v17  ;;  %v7758_v62 = vmul.f32 %v7750_v60, %v20358_v44  ;;  %v8325_v11 = vadd.f32 %v23022_v30, %v8095_v8  ;;  %v24667_v60 = vld [vmem:[#allocation50_spill] sm:$0xff] }
 0x3a0   : > { %18252 = vmatpush3.bf16.msra.mxu0 %v19290_v53  ;;  %18276 = vmatpush3.bf16.msra.mxu1 %v19291_v20  ;;  %v15421_v53 = vcombine.low %v23116_v56, %v22728_v18  ;;  %v8103_v20 = vadd.f32 %v22967_v6, %v22915_v38  ;;  %v7508_v38 = vadd.f32 %v22796_v42, %v22757_v16  ;;  %v23171_v42 = vrot.slane %v11532_v61, 1  ;;  %v23185_v13 = vpop.f32.mrf.mxu0  ;;  %v23194_v15 = vpop.f32.mrf.mxu1  ;;  %v24663_v61 = vld [vmem:[#allocation4_spill] sm:$0xff] }
 0x3a1   : > { %18253 = vmatprep.subr.bf16.mxu0 %v19298_v1  ;;  %18277 = vmatprep.subr.bf16.mxu1 %v19299_v31  ;;  %v8092_v6 = vadd.f32 %v22953_v14, %v22905_v52  ;;  %v23169_v16 = vsel %vm1100_vm1, %v23130_v26, %v11213_v5  ;;  %v19303_v14 = vld [vmem:[%s24288_s2 + $0x150] sm:$0xff]   ;;  %v23179_v37 = vor.u32 %v11529_v40, %v11525_v27  ;;  %v24665_v40 = vld [vmem:[#allocation40_spill] sm:$0xff] }
 0x3a2   : > { %v10970_v24 = vshrl.u32 %v15421_v53, 16  ;;  %v10973_v57 = vshll.u32 %v15421_v53, 16  ;;  %v7748_v0 = vadd.f32 %v22850_v23, %v7508_v38  ;;  %v8327_v52 = vadd.f32 %v23012_v41, %v8103_v20  ;;  %v24662_v53 = vld [vmem:[#allocation15_spill] sm:$0xff]  ;;  %v24666_v27 = vld [vmem:[#allocation46_spill] sm:$0xff] }
 0x3a3   : > { %v10979_v23 = vshrl.u32 %v23150_v49, 16  ;;  %v7532_v41 = vadd.f32 %v22831_v32, %v22792_v34  ;;  %v8119_v5 = vadd.f32 %v24660_v43, %v24659_v47  ;;  %v19304_v34 = vld [vmem:[%s24288_s2 + $0x188] sm:$0xff]   ;;  %v8342_v20 = vadd.f32 %v8326_v59, %v7758_v62  ;;  %v24671_v62 = vld [vmem:[#allocation30_spill] sm:$0xff]  ;;  %v23221_v43 = vpop.f32.mrf.mxu1 }
 0x3a4   : > { %18254 = vmatpush3.bf16.msra.mxu0 %v19298_v1  ;;  %18278 = vmatpush3.bf16.msra.mxu1 %v19299_v31  ;;  %v7519_v1 = vadd.f32 %v22807_v55, %v22770_v9  ;;  %v8324_v31 = vadd.f32 %v23002_v33, %v8092_v6  ;;  %v24657_v9 = vld [vmem:[#allocation56_spill] sm:$0xff]  ;;  %v10972_v32 = vrot.slane %v10970_v24, 3  ;;  %v10975_v36 = vrot.slane %v10973_v57, 4  ;;  %v24661_v33 = vld [vmem:[#allocation29_spill] sm:$0xff]  ;;  %v24668_v6 = vld [vmem:[#allocation35_spill] sm:$0xff]  ;;  %v23214_v24 = vpop.f32.mrf.mxu0 }
 0x3a5   : > { %18255 = vmatprep.subr.bf16.mxu0 %v19300_v50  ;;  %18279 = vmatprep.subr.bf16.mxu1 %v19301_v12  ;;  %v8116_v55 = vadd.f32 %v24658_v3, %v24657_v9  ;;  %v7524_v30 = vadd.f32 %v24662_v53, %v24661_v33  ;;  %v7756_v39 = vmul.f32 %v7748_v0, %v24663_v61  ;;  %v23216_v57 = vrot.slane %v10979_v23, 3  ;;  %v24669_v0 = vld [vmem:[#allocation54_spill] sm:$0xff] }
 0x3a6   : > { %v7751_v49 = vadd.f32 %v24665_v40, %v7519_v1  ;;  %v7754_v38 = vadd.f32 %v24666_v27, %v7532_v41  ;;  %v8108_v8 = vadd.f32 %v24668_v6, %v24667_v60  ;;  %v8488_v3 = vadd.f32 %v24671_v62, %v8342_v20  ;;  %v23224_v1 = vld [vmem:[%s19659_s16 + $0x8] sm:$0xff]   ;;  %v24672_v41 = vld [vmem:[#allocation20_spill] sm:$0xff]  ;;  %v24673_v40 = vld [vmem:[#allocation34_spill] sm:$0xff] }
 0x3a7   : > { %v7752_v9 = vadd.f32 %v24669_v0, %v7524_v30  ;;  %v8340_v47 = vadd.f32 %v8324_v31, %v7756_v39  ;;  %v8330_v33 = vadd.f32 %v24672_v41, %v8116_v55  ;;  %v8331_v53 = vadd.f32 %v23078_v58, %v8119_v5  ;;  %v24674_v27 = vld [vmem:[#allocation19_spill] sm:$0xff]  ;;  %v19316_v31 = vld [vmem:[#allocation3 + $0x70] ss:$0 sps:$4 sm:$0x11]   ;;  %v24675_v39 = vld [vmem:[#allocation25_spill] sm:$0xff] }
 0x3a8   : > { %18256 = vmatpush3.bf16.msra.mxu0 %v19300_v50  ;;  %18280 = vmatpush3.bf16.msra.mxu1 %v19301_v12  ;;  %v24664_v50 = vld [vmem:[#allocation8_spill] sm:$0xff]  ;;  %v19305_v12 = vld [vmem:[%s24288_s2 + $0x148] sm:$0xff]   ;;  %v8111_v23 = vadd.f32 %v24674_v27, %v24673_v40  ;;  %v23233_v30 = vrot.slane %v10982_v10, 4  ;;  %v24676_v20 = vld [vmem:[#allocation6_spill] sm:$0xff]  ;;  %v23240_v55 = vor.u32 %v10975_v36, %v10972_v32  ;;  %v23246_v27 = vpop.f32.mrf.mxu0  ;;  %v17957_v32 = vpop.f32.mrf.mxu1 }
 0x3a9   : > { %18257 = vmatprep.subr.bf16.mxu0 %v19302_v35  ;;  %v8335_v54 = vmul.f32 %v8327_v52, %v24664_v50  ;;  %18281 = vmatprep.subr.bf16.mxu1 %v19303_v14  ;;  %v24670_v52 = vld [vmem:[#allocation9_spill] sm:$0xff]  ;;  %v8486_v60 = vadd.f32 %v24676_v20, %v8340_v47  ;;  %v19307_v58 = vld [vmem:[%s24288_s2 + $0x140] sm:$0xff]   ;;  %v24680_v10 = vld [vmem:[#allocation31_spill] sm:$0xff] }
 0x3aa   : > { %v8333_v59 = vmul.f32 %v8325_v11, %v24670_v52  ;;  %v19306_v11 = vld [vmem:[%s24288_s2 + $0x180] sm:$0xff]   ;;  %v24679_v62 = vld [vmem:[#allocation5_spill] sm:$0xff]  ;;  %v8328_v40 = vadd.f32 %v24680_v10, %v8108_v8  ;;  %v24681_v47 = vld [vmem:[#allocation7_spill] sm:$0xff] }
 0x3ab   : > { %v8343_v6 = vadd.f32 %v8335_v54, %v7751_v49  ;;  %v24678_v5 = vld [vmem:[#allocation44_spill] sm:$0xff]  ;;  %v7762_v41 = vmul.f32 %v7754_v38, %v24679_v62  ;;  %v7760_v54 = vmul.f32 %v7752_v9, %v24681_v47  ;;  %v8628_v49 = vadd.f32 %v23113_v48, %v8488_v3  ;;  %v24682_v36 = vld [vmem:[#allocation13_spill] sm:$0xff] }
 0x3ac   : > { %18258 = vmatpush3.bf16.msra.mxu0 %v19302_v35  ;;  %18282 = vmatpush3.bf16.msra.mxu1 %v19303_v14  ;;  %v7749_v35 = vadd.f32 %v24675_v39, %v7511_v28  ;;  %v24677_v14 = vld [vmem:[#allocation12_spill] sm:$0xff]  ;;  %v15950_v28 = vunpack.c.l.bf16 %v23224_v1  ;;  %v8339_v52 = vmul.f32 %v8331_v53, %v24682_v36  ;;  %v11219_v48 = vshll.u32 %v19316_v31, 16  ;;  %v23600_v36 = vld [vmem:[#allocation3 + $0x68] sm:$0xf] }
 0x3ad   : > { %18259 = vmatprep.subr.bf16.mxu0 %v19304_v34  ;;  %18283 = vmatprep.subr.bf16.mxu1 %v19305_v12  ;;  %v7535_v0 = vadd.f32 %v24678_v5, %v24677_v14  ;;  %v8489_v39 = vadd.f32 %v23085_v7, %v8343_v6  ;;  %v8329_v14 = vadd.f32 %v23096_v19, %v8111_v23  ;;  %v23257_v8 = vld [vmem:[%s24289_s3 + $0x2] ss:$0 sm:$0xff]  ;;  %v19309_v7 = vld [vmem:[%s24288_s2 + $0xb8] sm:$0xff]  }
 0x3ae   : > { %v8341_v20 = vadd.f32 %v8333_v59, %v7749_v35  ;;  %v8346_v38 = vadd.f32 %v8330_v33, %v7762_v41  ;;  %v19310_v19 = vld [vmem:[%s24288_s2 + $0x238] sm:$0xff]   ;;  %v10985_v3 = vor.u32 %v23233_v30, %v23216_v57  ;;  %v23277_v35 = vld [vmem:[%s24289_s3 + $0x3] ss:$0 sm:$0xff]  ;;  %24712 = vst [vmem:[#allocation30_spill] sm:$0xff] %v23600_v36 }
 0x3af   : > { %v24683_v33 = vld [vmem:[#allocation51_spill] sm:$0xff]  ;;  %v23280_v6 = vld [vmem:[%s19659_s16] sm:$0xff]   ;;  %v8629_v10 = vadd.f32 %v23194_v15, %v8489_v39 }
 0x3b0   : > { %18260 = vmatpush3.bf16.msra.mxu0 %v19304_v34  ;;  %18284 = vmatpush3.bf16.msra.mxu1 %v19305_v12  ;;  %v8626_v34 = vadd.f32 %v23162_v29, %v8486_v60  ;;  %v10977_v12 = vsel %vm491_vm0, %v23111_v2, %v23240_v55  ;;  %v7755_v53 = vadd.f32 %v24683_v33, %v7535_v0  ;;  %v24684_v2 = vld [vmem:[#allocation14_spill] sm:$0xff]  ;;  %v24685_v5 = vld [vmem:[#allocation52_spill] sm:$0xff]  ;;  %v8611_v0 = vpop.f32.mrf.mxu1 }
 0x3b1   : > { %18261 = vmatprep.subr.bf16.mxu0 %v19306_v11  ;;  %v17977_v9 = vpop.f32.mrf.mxu0  ;;  %18285 = vmatprep.subr.bf16.mxu1 %v19307_v58  ;;  %v8487_v23 = vadd.f32 %v23106_v25, %v8341_v20  ;;  %v8492_v31 = vadd.f32 %v23142_v21, %v8346_v38  ;;  %v8344_v29 = vadd.f32 %v8328_v40, %v7760_v54  ;;  %v24686_v40 = vld [vmem:[#allocation22_spill] sm:$0xff] }
 0x3b2   : > { %v8774_v59 = vadd.f32 %v17977_v9, %v8628_v49  ;;  %v7527_v41 = vadd.f32 %v24685_v5, %v24684_v2  ;;  %v8337_v54 = vmul.f32 %v8329_v14, %v24686_v40  ;;  %v8347_v20 = vadd.f32 %v8339_v52, %v7755_v53  ;;  %v24687_v52 = vld [vmem:[#allocation21_spill] sm:$0xff] }
 0x3b3   : > { %v8741_v60 = vpop.f32.mrf.mxu0  ;;  %v8490_v49 = vadd.f32 %v23185_v13, %v8344_v29  ;;  %v23288_v9 = vrot.slane %v11219_v48, 1  ;;  %v19313_v13 = vld [vmem:[%s24288_s2 + $0xb0] sm:$0xff]   ;;  %v8627_v14 = vadd.f32 %v23221_v43, %v8487_v23  ;;  %v8632_v48 = vadd.f32 %v17957_v32, %v8492_v31  ;;  %v17958_v29 = vpop.f32.mrf.mxu1  ;;  %v23309_v32 = vld [vmem:[%s19659_s16 + $0x18] sm:$0xff]  }
 0x3b4   : > { %18262 = vmatpush3.bf16.msra.mxu0 %v19306_v11  ;;  %v8786_v25 = vmul.f32 %v23257_v8, %v8774_v59  ;;  %v8772_v21 = vadd.f32 %v8741_v60, %v8626_v34  ;;  %18286 = vmatpush3.bf16.msra.mxu1 %v19307_v58  ;;  %v15946_v11 = vunpack.c.l.bf16 %v23280_v6  ;;  %v7753_v58 = vadd.f32 %v24687_v52, %v7527_v41  ;;  %v19314_v59 = vld [vmem:[%s24288_s2 + $0x230] sm:$0xff]  }
 0x3b5   : > { %18295 = vmatprep.subr.bf16.mxu0 %v19309_v7  ;;  %v17978_v38 = vpop.f32.mrf.mxu0  ;;  %18319 = vmatprep.subr.bf16.mxu1 %v19310_v19  ;;  %v8493_v34 = vadd.f32 %v23214_v24, %v8347_v20  ;;  %v15951_v43 = vunpack.c.h.bf16 %v23224_v1 }
 0x3b6   : > { %v8798_v33 = vadd.f32 %v23277_v35, %v8786_v25  ;;  %v8784_v15 = vmul.f32 %v23257_v8, %v8772_v21  ;;  %v8775_v39 = vadd.f32 %v17978_v38, %v8629_v10  ;;  %v8345_v24 = vadd.f32 %v8337_v54, %v7753_v58  ;;  %v23323_v25 = vld [vmem:[%s19659_s16 + $0x10] sm:$0xff]  }
 0x3b7   : > { %18264 = vmatmul.mubr.bf16.vlgmr.msra.gmra.mxu0 %v23146_v46  ;;  %v8744_v53 = vpop.f32.mrf.mxu0  ;;  %18288 = vmatmul.mubr.bf16.vlgmr.msra.gmra.mxu1 %v23126_v22  ;;  %v8630_v46 = vadd.f32 %v8611_v0, %v8490_v49  ;;  %v19317_v0 = vld [vmem:[%s24288_s2 + $0xa8] sm:$0xff]   ;;  %v15958_v21 = vunpack.c.l.bf16 %v23309_v32  ;;  %v8614_v49 = vpop.f32.mrf.mxu1  ;;  %v15954_v52 = vunpack.c.l.bf16 %v23323_v25 }
 0x3b8   : > { %v8822_v60 = vadd.f32 %v15950_v28, %v8798_v33  ;;  %18267 = vmatprep.mubr.bf16.mxu0 %v10977_v12  ;;  %v8796_v2 = vadd.f32 %v23277_v35, %v8784_v15  ;;  %v8787_v5 = vmul.f32 %v23257_v8, %v8775_v39  ;;  %18291 = vmatprep.mubr.bf16.mxu1 %v23169_v16  ;;  %v15947_v12 = vunpack.c.h.bf16 %v23280_v6 }
 0x3b9   : > { %18296 = vmatpush3.bf16.msra.mxu0 %v19309_v7  ;;  %v8773_v28 = vadd.f32 %v8744_v53, %v8627_v14  ;;  %v17981_v23 = vpop.f32.mrf.mxu0  ;;  %18320 = vmatpush3.bf16.msra.mxu1 %v19310_v19  ;;  %v8633_v16 = vadd.f32 %v17958_v29, %v8493_v34  ;;  %v8491_v7 = vadd.f32 %v23246_v27, %v8345_v24  ;;  %v19318_v19 = vld [vmem:[%s24288_s2 + $0x228] sm:$0xff]   ;;  %v23343_v14 = vpop.f32.mrf.mxu1 }
 0x3ba   : > { %v8830_v31 = vmax.f32 %v8822_v60, 0.0  ;;  %v8820_v1 = vadd.f32 %v15946_v11, %v8796_v2  ;;  %v8799_v41 = vadd.f32 %v23277_v35, %v8787_v5  ;;  %18297 = vmatprep.subr.bf16.mxu0 %v19313_v13  ;;  %v8778_v10 = vadd.f32 %v17981_v23, %v8632_v48  ;;  %18321 = vmatprep.subr.bf16.mxu1 %v19314_v59  ;;  %v19325_v23 = vld [vmem:[%s24288_s2 + $0x218] sm:$0xff]  }
 0x3bb   : > { %v8785_v6 = vmul.f32 %v23257_v8, %v8773_v28  ;;  %v8757_v54 = vpop.f32.mrf.mxu0  ;;  %v10986_v11 = vsel %vm491_vm0, %v23240_v55, %v10985_v3  ;;  %v11535_v39 = vsel %vm1100_vm1, %v23179_v37, %v23171_v42  ;;  %v19322_v55 = vld [vmem:[%s24288_s2 + $0xa0] sm:$0xff]   ;;  %v8631_v37 = vadd.f32 %v8614_v49, %v8491_v7 }
 0x3bc   : > { %8838 = vst [vmem:[%s23314_s10 + $0x10] sm:$0xff] %v8830_v31  ;;  %v8828_v20 = vmax.f32 %v8820_v1, 0.0  ;;  %v8823_v38 = vadd.f32 %v15951_v43, %v8799_v41  ;;  %v8790_v33 = vmul.f32 %v23257_v8, %v8778_v10  ;;  %v8776_v15 = vadd.f32 %v8757_v54, %v8630_v46  ;;  %v19335_v54 = vld [vmem:[#allocation3 + $0x70] sm:$0xff]  }
 0x3bd   : > { %18298 = vmatpush3.bf16.msra.mxu0 %v19313_v13  ;;  %v8797_v27 = vadd.f32 %v23277_v35, %v8785_v6  ;;  %v17982_v58 = vpop.f32.mrf.mxu0  ;;  %18322 = vmatpush3.bf16.msra.mxu1 %v19314_v59  ;;  %v11222_v34 = vsel %vm1100_vm1, %v23152_v45, %v23288_v9  ;;  %v19323_v59 = vld [vmem:[%s24288_s2 + $0x220] sm:$0xff]   ;;  %v15959_v5 = vunpack.c.h.bf16 %v23309_v32  ;;  %v23362_v9 = vpop.f32.mrf.mxu1  ;;  %v19328_v6 = vld [vmem:[%s24288_s2 + $0x88] sm:$0xff]  }
 0x3be   : > { %8836 = vst [vmem:[%s23314_s10] sm:$0xff] %v8828_v20  ;;  %v8831_v13 = vmax.f32 %v8823_v38, 0.0  ;;  %v8802_v48 = vadd.f32 %v23277_v35, %v8790_v33  ;;  %18299 = vmatprep.subr.bf16.mxu0 %v19317_v0  ;;  %v8788_v57 = vmul.f32 %v23257_v8, %v8776_v15  ;;  %v8779_v30 = vadd.f32 %v17982_v58, %v8633_v16  ;;  %v19327_v16 = vld [vmem:[%s24288_s2 + $0x210] sm:$0xff]   ;;  %v19330_v20 = vld [vmem:[%s24288_s2 + $0x80] sm:$0xff]   ;;  %v19334_v58 = vld [vmem:[%s24288_s2 + $0x138] sm:$0xff]  }
 0x3bf   : > { %v8821_v3 = vadd.f32 %v15947_v12, %v8797_v27  ;;  %18268 = vmatmul.mubr.bf16.gmra.mxu0 %v10986_v11  ;;  %18323 = vmatprep.subr.bf16.mxu1 %v19318_v19  ;;  %v8760_v53 = vpop.f32.mrf.mxu0  ;;  %v15955_v12 = vunpack.c.h.bf16 %v23323_v25  ;;  %v23376_v10 = vpop.f32.mrf.mxu1  ;;  %v19331_v38 = vld [vmem:[%s24288_s2 + $0x200] sm:$0xff]   ;;  %v11548_v15 = vshll.u32 %v19335_v54, 16  ;;  %v11536_v27 = vshrl.u32 %v23094_v63, 16  ;;  %v19338_v63 = vld [vmem:[#allocation3 + $0x68] ss:$0 sps:$4 sm:$0x11]  }
 0x3c0   : > { %8839 = vst [vmem:[%s23314_s10 + $0x18] sm:$0xff] %v8831_v13  ;;  %v8826_v29 = vadd.f32 %v15958_v21, %v8802_v48  ;;  %18292 = vmatmul.mubr.bf16.gmra.mxu1 %v11222_v34  ;;  %18311 = vmatprep.mubr.bf16.mxu0 %v23120_v51  ;;  %v8800_v60 = vadd.f32 %v23277_v35, %v8788_v57  ;;  %v19324_v51 = vld [vmem:[%s24288_s2 + $0x98] sm:$0xff]   ;;  %v19329_v21 = vld [vmem:[%s24288_s2 + $0x208] sm:$0xff]  }
 0x3c1   : > { %v8791_v2 = vmul.f32 %v23257_v8, %v8779_v30  ;;  %v8829_v43 = vmax.f32 %v8821_v3, 0.0  ;;  %18300 = vmatpush3.bf16.msra.mxu0 %v19317_v0  ;;  %18335 = vmatprep.mubr.bf16.mxu1 %v11535_v39  ;;  %v8777_v45 = vadd.f32 %v8760_v53, %v8631_v37  ;;  %v19333_v39 = vld [vmem:[%s24288_s2 + $0x78] sm:$0xff]   ;;  %v11538_v13 = vor.u32 %v11536_v27, %v23171_v42  ;;  %v19336_v3 = vld [vmem:[%s24288_s2 + $0x70] sm:$0xff]  }
 0x3c2   : > { %v8834_v46 = vmax.f32 %v8826_v29, 0.0  ;;  %18324 = vmatpush3.bf16.msra.mxu1 %v19318_v19  ;;  %v8824_v24 = vadd.f32 %v15954_v52, %v8800_v60  ;;  %18301 = vmatprep.subr.bf16.mxu0 %v19322_v55  ;;  %v19332_v19 = vld [vmem:[#allocation3 + $0x68] sm:$0xff]   ;;  %v11550_v57 = vrot.slane %v11548_v15, 1  ;;  %v19337_v42 = vld [vmem:[%s24288_s2 + $0x130] sm:$0xff]   ;;  %v11357_v53 = vshll.u32 %v19338_v63, 16 }
 0x3c3   : > { %v8803_v28 = vadd.f32 %v23277_v35, %v8791_v2  ;;  %8837 = vst [vmem:[%s23314_s10 + $0x8] sm:$0xff] %v8829_v43  ;;  %18325 = vmatprep.subr.bf16.mxu1 %v19323_v59  ;;  %v8789_v32 = vmul.f32 %v23257_v8, %v8777_v45  ;;  %v19326_v8 = vld [vmem:[%s24288_s2 + $0x90] sm:$0xff]   ;;  %v11540_v33 = vshll.u32 %v19332_v19, 16  ;;  %v11544_v48 = vshrl.u32 %v19332_v19, 16  ;;  %v19341_v45 = vld [vmem:[%s24288_s2 + $0x128] sm:$0xff]  }
 0x3c4   : > { %8842 = vst [vmem:[%s23314_s10 + $0x30] sm:$0xff] %v8834_v46  ;;  %v8832_v31 = vmax.f32 %v8824_v24, 0.0  ;;  %v11552_v2 = vshrl.u32 %v19335_v54, 16  ;;  %v11359_v46 = vrot.slane %v11357_v53, 1  ;;  %v19349_v54 = vld [vmem:[%s24288_s2 + $0x110] sm:$0xff]   ;;  %v19351_v15 = vld [vmem:[%s24288_s2 + $0x108] sm:$0xff]  }
 0x3c5   : > { %v8827_v1 = vadd.f32 %v15959_v5, %v8803_v28  ;;  %18302 = vmatpush3.bf16.msra.mxu0 %v19322_v55  ;;  %v8801_v41 = vadd.f32 %v23277_v35, %v8789_v32  ;;  %v23386_v35 = vpop.f32.mrf.mxu1  ;;  %v11542_v52 = vrot.slane %v11540_v33, 1  ;;  %v19339_v55 = vld [vmem:[#allocation3 + $0x78] ss:$0 sps:$4 sm:$0x11]   ;;  %v19340_v5 = vld [vmem:[%s24288_s2 + $0x68] sm:$0xff]  }
 0x3c6   : > { %8840 = vst [vmem:[%s23314_s10 + $0x20] sm:$0xff] %v8832_v31  ;;  %18326 = vmatpush3.bf16.msra.mxu1 %v19323_v59  ;;  %18303 = vmatprep.subr.bf16.mxu0 %v19324_v51  ;;  %v19557_v32 = vld [vmem:[#allocation3 + $0x4c] sm:$0xf]  ;;  %v19344_v31 = vld [vmem:[%s24288_s2 + $0x60] sm:$0xff]  }
 0x3c7   : > { %v8835_v0 = vmax.f32 %v8827_v1, 0.0  ;;  %v8825_v25 = vadd.f32 %v15955_v12, %v8801_v41  ;;  %18327 = vmatprep.subr.bf16.mxu1 %v19325_v23  ;;  %v23395_v49 = vpop.f32.mrf.mxu1  ;;  %v11546_v37 = vor.u32 %v11544_v48, %v11542_v52  ;;  %v11543_v34 = vsel %vm1100_vm1, %v11538_v13, %v11542_v52  ;;  %v19558_v12 = vld [vmem:[#allocation3 + $0x48] sm:$0xf]  ;;  %v12211_v13 = vld [vmem:[#allocation3 + $0x6c] sm:$0x8] }
 0x3c9   : > { %8843 = vst [vmem:[%s23314_s10 + $0x38] sm:$0xff] %v8835_v0  ;;  %v8833_v7 = vmax.f32 %v8825_v25, 0.0  ;;  %18304 = vmatpush3.bf16.msra.mxu0 %v19324_v51  ;;  %v23404_v11 = vpop.f32.mrf.mxu1  ;;  %v11551_v59 = vsel %vm1100_vm1, %v11546_v37, %v11550_v57  ;;  %v11360_v51 = vsel %vm1100_vm1, %v23130_v26, %v11359_v46  ;;  %v19345_v0 = vld [vmem:[%s24288_s2 + $0x120] sm:$0xff]   ;;  %v19346_v25 = vld [vmem:[%s24288_s2 + $0x58] sm:$0xff]   ;;  %v19561_v37 = vld [vmem:[#allocation3 + $0x74] sm:$0xf] }
 0x3ca   : > { %18328 = vmatpush3.bf16.msra.mxu1 %v19325_v23  ;;  %18305 = vmatprep.subr.bf16.mxu0 %v19326_v8  ;;  %v15531_v23 = vcombine.low %v19558_v12, %v19557_v32  ;;  %v24698_v12 = vld [vmem:[#allocation10_spill] sm:$0xff] }
 0x3cb   : > { %8841 = vst [vmem:[%s23314_s10 + $0x28] sm:$0xff] %v8833_v7  ;;  %18329 = vmatprep.subr.bf16.mxu1 %v19327_v16  ;;  %v23413_v30 = vpop.f32.mrf.mxu1  ;;  %v19347_v7 = vld [vmem:[%s24288_s2 + $0x118] sm:$0xff]  }
 0x3cc   : > { %24688 = vst [vmem:[#allocation33_spill] sm:$0xff] %v23413_v30 }
 0x3cd   : > { %18306 = vmatpush3.bf16.msra.mxu0 %v19326_v8  ;;  %v23425_v29 = vpop.f32.mrf.mxu1  ;;  %v24690_v8 = vld [vmem:[#allocation37_spill] sm:$0xff] }
 0x3ce   : > { %18330 = vmatpush3.bf16.msra.mxu1 %v19327_v16  ;;  %18307 = vmatprep.subr.bf16.mxu0 %v19328_v6  ;;  %24689 = vst [vmem:[#allocation28_spill] sm:$0xff] %v23425_v29  ;;  %v19567_v29 = vld [vmem:[#allocation3 + $0x7c] sm:$0xf] }
 0x3cf   : > { %18331 = vmatprep.subr.bf16.mxu1 %v19329_v21 }
 0x3d1   : > { %18308 = vmatpush3.bf16.msra.mxu0 %v19328_v6 }
 0x3d2   : > { %18332 = vmatpush3.bf16.msra.mxu1 %v19329_v21  ;;  %18309 = vmatprep.subr.bf16.mxu0 %v19330_v20  ;;  %v23427_v60 = vpop.f32.mrf.mxu0  ;;  %v23432_v43 = vpop.f32.mrf.mxu1  ;;  %v19348_v21 = vld [vmem:[%s24288_s2 + $0x50] sm:$0xff]  }
 0x3d3   : > { %18333 = vmatprep.subr.bf16.mxu1 %v19331_v38 }
 0x3d4   : > { %v23437_v24 = vpop.f32.mrf.mxu0  ;;  %v23444_v1 = vpop.f32.mrf.mxu1 }
 0x3d5   : > { %18310 = vmatpush3.bf16.msra.mxu0 %v19330_v20 }
 0x3d6   : > { %18334 = vmatpush3.bf16.msra.mxu1 %v19331_v38  ;;  %18343 = vmatprep.subr.bf16.mxu0 %v19333_v39  ;;  %v23450_v26 = vpop.f32.mrf.mxu0  ;;  %v23456_v16 = vpop.f32.mrf.mxu1  ;;  %v19350_v38 = vld [vmem:[%s24288_s2 + $0x48] sm:$0xff]  }
 0x3d7   : > { %18367 = vmatprep.subr.bf16.mxu1 %v19334_v58  ;;  %24691 = vst [vmem:[#allocation56_spill] sm:$0xff] %v23456_v16 }
 0x3d8   : > { %18312 = vmatmul.mubr.bf16.vlgmr.msra.gmra.mxu0 %v23109_v17  ;;  %v11556_v17 = vshll.u32 %v19339_v55, 16  ;;  %v23461_v6 = vpop.f32.mrf.mxu0  ;;  %v23466_v19 = vpop.f32.mrf.mxu1  ;;  %v19560_v55 = vld [vmem:[#allocation3 + $0x78] sm:$0xf] }
 0x3d9   : > { %18336 = vmatmul.mubr.bf16.vlgmr.msra.gmra.mxu1 %v11543_v34  ;;  %18315 = vmatprep.mubr.bf16.mxu0 %v23126_v22  ;;  %v11554_v22 = vor.u32 %v11552_v2, %v11550_v57  ;;  %24692 = vst [vmem:[#allocation17_spill] sm:$0xff] %v23466_v19  ;;  %v23493_v57 = vld [vmem:[#allocation3 + $0x70] sm:$0xf]  ;;  %v19354_v34 = vld [vmem:[%s24288_s2 + $0x1f8] sm:$0xff]  }
 0x3da   : > { %18339 = vmatprep.mubr.bf16.mxu1 %v11551_v59  ;;  %18344 = vmatpush3.bf16.msra.mxu0 %v19333_v39  ;;  %v11558_v28 = vrot.slane %v11556_v17, 1  ;;  %v23471_v20 = vpop.f32.mrf.mxu0  ;;  %v23476_v33 = vpop.f32.mrf.mxu1  ;;  %v19352_v39 = vld [vmem:[%s24288_s2 + $0x40] sm:$0xff]   ;;  %v15612_v63 = vcombine.low %v12211_v13, %v23493_v57  ;;  %v19355_v59 = vld [vmem:[%s24288_s2 + $0xf8] sm:$0xff]  }
 0x3db   : > { %18368 = vmatpush3.bf16.msra.mxu1 %v19334_v58  ;;  %18345 = vmatprep.subr.bf16.mxu0 %v19336_v3  ;;  %v19353_v58 = vld [vmem:[%s24288_s2 + $0x100] sm:$0xff]  }
 0x3dc   : > { %18369 = vmatprep.subr.bf16.mxu1 %v19337_v42  ;;  %v11559_v41 = vsel %vm1100_vm1, %v11554_v22, %v11558_v28  ;;  %v23481_v27 = vpop.f32.mrf.mxu0  ;;  %v23486_v52 = vpop.f32.mrf.mxu1  ;;  %v12254_v2 = vshrl.u32 %v15612_v63, 16  ;;  %v12257_v17 = vshll.u32 %v15612_v63, 16  ;;  %v19357_v28 = vld [vmem:[%s24288_s2 + $0x1f0] sm:$0xff]   ;;  %v19367_v13 = vld [vmem:[%s24288_s2 + $0xe0] sm:$0xff]  }
 0x3dd   : > { %24693 = vst [vmem:[#allocation32_spill] sm:$0xff] %v23486_v52 }
 0x3de   : > { %18346 = vmatpush3.bf16.msra.mxu0 %v19336_v3  ;;  %v23491_v48 = vpop.f32.mrf.mxu0  ;;  %v15613_v3 = vcombine.low %v19561_v37, %v19560_v55  ;;  %v24700_v55 = vld [vmem:[#allocation41_spill] sm:$0xff] }
 0x3df   : > { %18370 = vmatpush3.bf16.msra.mxu1 %v19337_v42  ;;  %18347 = vmatprep.subr.bf16.mxu0 %v19340_v5  ;;  %24694 = vst [vmem:[#allocation36_spill] sm:$0xff] %v23491_v48  ;;  %v23499_v42 = vpop.f32.mrf.mxu1  ;;  %v24701_v37 = vld [vmem:[#allocation49_spill] sm:$0xff] }
 0x3e0   : > { %18316 = vmatmul.mubr.bf16.gmra.mxu0 %v11360_v51  ;;  %18371 = vmatprep.subr.bf16.mxu1 %v19341_v45  ;;  %24695 = vst [vmem:[#allocation29_spill] sm:$0xff] %v23499_v42  ;;  %v23504_v53 = vpop.f32.mrf.mxu0  ;;  %v12265_v22 = vshll.u32 %v15613_v3, 16  ;;  %v19358_v51 = vld [vmem:[%s24288_s2 + $0xf0] sm:$0xff]  }
 0x3e1   : > { %18340 = vmatmul.mubr.bf16.gmra.mxu1 %v11559_v41  ;;  %18359 = vmatprep.mubr.bf16.mxu0 %v15531_v23  ;;  %24696 = vst [vmem:[#allocation15_spill] sm:$0xff] %v23504_v53  ;;  %v12256_v23 = vrot.slane %v12254_v2, 3  ;;  %v19566_v53 = vld [vmem:[#allocation3 + $0x80] sm:$0xf] }
 0x3e2   : > { %18348 = vmatpush3.bf16.msra.mxu0 %v19340_v5  ;;  %18383 = vmatprep.mubr.bf16.mxu1 %v24690_v8  ;;  %v12262_v5 = vshrl.u32 %v15613_v3, 16  ;;  %v24702_v3 = vcombine.low %v24700_v55, %v24701_v37  ;;  %v19372_v55 = vld [vmem:[%s24288_s2 + $0x1c8] sm:$0xff]   ;;  %v15653_v47 = vcombine.low %v19567_v29, %v19566_v53 }
 0x3e3   : > { %18372 = vmatpush3.bf16.msra.mxu1 %v19341_v45  ;;  %18349 = vmatprep.subr.bf16.mxu0 %v19344_v31  ;;  %v23506_v45 = vpop.f32.mrf.mxu1  ;;  %v19373_v37 = vld [vmem:[%s24288_s2 + $0xc8] sm:$0xff]  }
 0x3e4   : > { %18373 = vmatprep.subr.bf16.mxu1 %v19345_v0  ;;  %24697 = vst [vmem:[#allocation4_spill] sm:$0xff] %v23506_v45  ;;  %v12264_v41 = vrot.slane %v12262_v5, 3  ;;  %v12566_v45 = vld [vmem:[#allocation3 + $0x74] sm:$0x8] }
 0x3e6   : > { %18350 = vmatpush3.bf16.msra.mxu0 %v19344_v31  ;;  %v12259_v31 = vrot.slane %v12257_v17, 4 }
 0x3e7   : > { %18374 = vmatpush3.bf16.msra.mxu1 %v19345_v0  ;;  %18351 = vmatprep.subr.bf16.mxu0 %v19346_v25  ;;  %v12267_v0 = vrot.slane %v12265_v22, 4  ;;  %v19368_v22 = vld [vmem:[%s24288_s2 + $0x1d8] sm:$0xff]  }
 0x3e8   : > { %18375 = vmatprep.subr.bf16.mxu1 %v19347_v7 }
 0x3ea   : > { %18352 = vmatpush3.bf16.msra.mxu0 %v19346_v25  ;;  %v24699_v25 = vld [vmem:[#allocation42_spill] sm:$0xff] }
 0x3eb   : > { %18376 = vmatpush3.bf16.msra.mxu1 %v19347_v7  ;;  %18353 = vmatprep.subr.bf16.mxu0 %v19348_v21 }
 0x3ec   : > { %18377 = vmatprep.subr.bf16.mxu1 %v19349_v54 }
 0x3ee   : > { %18354 = vmatpush3.bf16.msra.mxu0 %v19348_v21  ;;  %v19361_v21 = vld [vmem:[%s24288_s2 + $0xe8] sm:$0xff]  }
 0x3ef   : > { %18378 = vmatpush3.bf16.msra.mxu1 %v19349_v54  ;;  %18355 = vmatprep.subr.bf16.mxu0 %v19350_v38 }
 0x3f0   : > { %18379 = vmatprep.subr.bf16.mxu1 %v19351_v15 }
 0x3f2   : > { %18356 = vmatpush3.bf16.msra.mxu0 %v19350_v38  ;;  %v12260_v38 = vor.u32 %v12259_v31, %v12256_v23  ;;  %v19370_v23 = vld [vmem:[%s24288_s2 + $0x1d0] sm:$0xff]  }
 0x3f3   : > { %18380 = vmatpush3.bf16.msra.mxu1 %v19351_v15  ;;  %18357 = vmatprep.subr.bf16.mxu0 %v19352_v39  ;;  %v23508_v46 = vpop.f32.mrf.mxu0  ;;  %v23517_v32 = vpop.f32.mrf.mxu1  ;;  %v23532_v15 = vor.u32 %v12267_v0, %v12264_v41  ;;  %v19371_v31 = vld [vmem:[%s24288_s2 + $0xd0] sm:$0xff]   ;;  %v19562_v0 = vld [vmem:[#allocation3 + $0x7c] sm:$0xf] }
 0x3f4   : > { %18381 = vmatprep.subr.bf16.mxu1 %v19353_v58 }
 0x3f5   : > { %v23522_v7 = vpop.f32.mrf.mxu0  ;;  %v23530_v54 = vpop.f32.mrf.mxu1  ;;  %v12269_v17 = vsel %vm491_vm0, %v12260_v38, %v23532_v15  ;;  %v19565_v38 = vld [vmem:[#allocation3 + $0x88] sm:$0xf] }
 0x3f6   : > { %18358 = vmatpush3.bf16.msra.mxu0 %v19352_v39 }
 0x3f7   : > { %18382 = vmatpush3.bf16.msra.mxu1 %v19353_v58  ;;  %18391 = vmatprep.subr.bf16.mxu0 %v19354_v34  ;;  %v23534_v39 = vpop.f32.mrf.mxu0  ;;  %v19366_v58 = vld [vmem:[%s24288_s2 + $0x1e0] sm:$0xff]   ;;  %v23543_v63 = vpop.f32.mrf.mxu1 }
 0x3f8   : > { %18415 = vmatprep.subr.bf16.mxu1 %v19355_v59 }
 0x3f9   : > { %18360 = vmatmul.mubr.bf16.vlgmr.msra.gmra.mxu0 %v24690_v8  ;;  %v19360_v8 = vld [vmem:[%s24288_s2 + $0x1e8] sm:$0xff]   ;;  %v23553_v5 = vpop.f32.mrf.mxu0 }
 0x3fa   : > { %18384 = vmatmul.mubr.bf16.vlgmr.msra.gmra.mxu1 %v24698_v12  ;;  %18363 = vmatprep.mubr.bf16.mxu0 %v24698_v12 }
 0x3fb   : > { %18387 = vmatprep.mubr.bf16.mxu1 %v24699_v25  ;;  %18392 = vmatpush3.bf16.msra.mxu0 %v19354_v34  ;;  %v24703_v34 = vld [vmem:[#allocation38_spill] sm:$0xff]  ;;  %v23563_v12 = vpop.f32.mrf.mxu0 }
 0x3fc   : > { %18416 = vmatpush3.bf16.msra.mxu1 %v19355_v59  ;;  %18393 = vmatprep.subr.bf16.mxu0 %v19357_v28  ;;  %v24704_v59 = vld [vmem:[#allocation43_spill] sm:$0xff] }
 0x3fd   : > { %18417 = vmatprep.subr.bf16.mxu1 %v19358_v51  ;;  %v24705_v2 = vcombine.low %v24703_v34, %v24704_v59 }
 0x3ff   : > { %18394 = vmatpush3.bf16.msra.mxu0 %v19357_v28  ;;  %v19369_v28 = vld [vmem:[%s24288_s2 + $0xd8] sm:$0xff]  }
 0x400   : > { %18418 = vmatpush3.bf16.msra.mxu1 %v19358_v51  ;;  %18395 = vmatprep.subr.bf16.mxu0 %v19360_v8  ;;  %v23561_v51 = vpop.f32.mrf.mxu1 }
 0x401   : > { %18364 = vmatmul.mubr.bf16.gmra.mxu0 %v24699_v25  ;;  %18419 = vmatprep.subr.bf16.mxu1 %v19361_v21  ;;  %v19563_v25 = vld [vmem:[#allocation3 + $0x80] sm:$0xf] }
 0x402   : > { %18388 = vmatmul.mubr.bf16.gmra.mxu1 %v24702_v3  ;;  %18407 = vmatprep.mubr.bf16.mxu0 %v24705_v2  ;;  %v23571_v41 = vpop.f32.mrf.mxu1 }
 0x403   : > { %18396 = vmatpush3.bf16.msra.mxu0 %v19360_v8  ;;  %18431 = vmatprep.mubr.bf16.mxu1 %v12269_v17  ;;  %24706 = vst [vmem:[#allocation8_spill] sm:$0xff] %v23571_v41  ;;  %v15614_v8 = vcombine.low %v19562_v0, %v19563_v25  ;;  %v19375_v0 = vld [vmem:[%s24288_s2 + $0xc0] sm:$0xff]  }
 0x404   : > { %18420 = vmatpush3.bf16.msra.mxu1 %v19361_v21  ;;  %18397 = vmatprep.subr.bf16.mxu0 %v19366_v58  ;;  %v23573_v21 = vld [vmem:[#allocation3 + $0x84] sm:$0xf]  ;;  %v23584_v3 = vpop.f32.mrf.mxu1 }
 0x405   : > { %18421 = vmatprep.subr.bf16.mxu1 %v19367_v13  ;;  %24708 = vst [vmem:[#allocation46_spill] sm:$0xff] %v23584_v3  ;;  %v12271_v34 = vshrl.u32 %v15614_v8, 16  ;;  %v12274_v59 = vshll.u32 %v15614_v8, 16  ;;  %v12186_v25 = vld [vmem:[#allocation3 + $0x64] sm:$0x8] }
 0x406   : > { %v23596_v8 = vpop.f32.mrf.mxu1 }
 0x407   : > { %18398 = vmatpush3.bf16.msra.mxu0 %v19366_v58  ;;  %v15615_v58 = vcombine.low %v23573_v21, %v19565_v38  ;;  %v23594_v38 = vld [vmem:[#allocation3 + $0x6c] sm:$0xf]  ;;  %24711 = vst [vmem:[#allocation54_spill] sm:$0xff] %v23596_v8 }
 0x408   : > { %18422 = vmatpush3.bf16.msra.mxu1 %v19367_v13  ;;  %18399 = vmatprep.subr.bf16.mxu0 %v19368_v22  ;;  %v23576_v13 = vpop.f32.mrf.mxu0  ;;  %24710 = vst [vmem:[#allocation35_spill] sm:$0xff] %v23594_v38  ;;  %v23611_v29 = vpop.f32.mrf.mxu1 }
 0x409   : > { %18423 = vmatprep.subr.bf16.mxu1 %v19369_v28  ;;  %24707 = vst [vmem:[#allocation40_spill] sm:$0xff] %v23576_v13  ;;  %v12280_v2 = vshrl.u32 %v15615_v58, 16  ;;  %v12283_v17 = vshll.u32 %v15615_v58, 16  ;;  %v12276_v58 = vrot.slane %v12274_v59, 4  ;;  %v19568_v59 = vld [vmem:[#allocation3 + $0x8c] sm:$0xf] }
 0x40a   : > { %v15616_v30 = vcombine.low %v19568_v59, %v19568_v59  ;;  %24714 = vst [vmem:[#allocation34_spill] sm:$0xff] %v23611_v29  ;;  %v12623_v59 = vshrl.u32 %v15653_v47, 16  ;;  %v19570_v29 = vld [vmem:[#allocation3 + $0x68] sm:$0xf] }
 0x40b   : > { %18400 = vmatpush3.bf16.msra.mxu0 %v19368_v22  ;;  %v23586_v22 = vpop.f32.mrf.mxu0  ;;  %v12282_v40 = vrot.slane %v12280_v2, 3  ;;  %v12285_v42 = vrot.slane %v12283_v17, 4  ;;  %v19569_v2 = vld [vmem:[#allocation3 + $0x78] sm:$0xf] }
 0x40c   : > { %18424 = vmatpush3.bf16.msra.mxu1 %v19369_v28  ;;  %18401 = vmatprep.subr.bf16.mxu0 %v19370_v23  ;;  %24709 = vst [vmem:[#allocation50_spill] sm:$0xff] %v23586_v22  ;;  %v19374_v28 = vld [vmem:[%s24288_s2 + $0x1c0] sm:$0xff]   ;;  %v15652_v17 = vcombine.low %v12566_v45, %v19569_v2  ;;  %v12292_v3 = vshll.u32 %v15616_v30, 16 }
 0x40d   : > { %18425 = vmatprep.subr.bf16.mxu1 %v19371_v31  ;;  %v23602_v48 = vpop.f32.mrf.mxu0  ;;  %v23617_v19 = vor.u32 %v12285_v42, %v12282_v40  ;;  %v19571_v40 = vld [vmem:[#allocation3 + $0x84] sm:$0xf]  ;;  %v19572_v42 = vld [vmem:[#allocation3 + $0x88] sm:$0xf] }
 0x40e   : > { %24713 = vst [vmem:[#allocation20_spill] sm:$0xff] %v23602_v48  ;;  %v12289_v48 = vshrl.u32 %v15616_v30, 16  ;;  %v12294_v16 = vrot.slane %v12292_v3, 4 }
 0x40f   : > { %18402 = vmatpush3.bf16.msra.mxu0 %v19370_v23  ;;  %v12273_v23 = vrot.slane %v12271_v34, 3  ;;  %v19377_v34 = vld [vmem:[%s24288_s2 + $0x38] sm:$0xff]  }
 0x410   : > { %18426 = vmatpush3.bf16.msra.mxu1 %v19371_v31  ;;  %18403 = vmatprep.subr.bf16.mxu0 %v19372_v55  ;;  %v15626_v31 = vcombine.low %v23594_v38, %v23493_v57  ;;  %v15625_v57 = vcombine.low %v12186_v25, %v23600_v36  ;;  %v12626_v25 = vshll.u32 %v15653_v47, 16  ;;  %v12615_v47 = vshrl.u32 %v15652_v17, 16 }
 0x411   : > { %18427 = vmatprep.subr.bf16.mxu1 %v19373_v37 }
 0x412   : > { %v12432_v38 = vshrl.u32 %v15626_v31, 16  ;;  %v12435_v62 = vshll.u32 %v15626_v31, 16  ;;  %v12424_v45 = vshrl.u32 %v15625_v57, 16  ;;  %v12427_v2 = vshll.u32 %v15625_v57, 16  ;;  %v24716_v31 = vld [vmem:[#allocation48_spill] sm:$0xff] }
 0x413   : > { %18404 = vmatpush3.bf16.msra.mxu0 %v19372_v55  ;;  %v19378_v55 = vld [vmem:[%s24288_s2 + $0x1b8] sm:$0xff]  }
 0x414   : > { %18428 = vmatpush3.bf16.msra.mxu1 %v19373_v37  ;;  %18405 = vmatprep.subr.bf16.mxu0 %v19374_v28  ;;  %v23613_v53 = vpop.f32.mrf.mxu0  ;;  %v23615_v37 = vor.u32 %v12276_v58, %v12273_v23  ;;  %v23619_v36 = vpop.f32.mrf.mxu1  ;;  %v15586_v23 = vcombine.low %v19570_v29, %v23116_v56  ;;  %v15654_v58 = vcombine.low %v19571_v40, %v19572_v42  ;;  %v19382_v56 = vld [vmem:[%s24288_s2 + $0x1b0] sm:$0xff]   ;;  %v12434_v29 = vrot.slane %v12432_v38, 3 }
 0x415   : > { %18429 = vmatprep.subr.bf16.mxu1 %v19375_v0  ;;  %24715 = vst [vmem:[#allocation19_spill] sm:$0xff] %v23619_v36  ;;  %v24717_v36 = vld [vmem:[#allocation39_spill] sm:$0xff]  ;;  %v12437_v52 = vrot.slane %v12435_v62, 4  ;;  %v12573_v40 = vld [vmem:[#allocation3 + $0x90] sm:$0xf]  ;;  %v12426_v8 = vrot.slane %v12424_v45, 3 }
 0x416   : > { %v24718_v13 = vcombine.low %v24716_v31, %v24717_v36  ;;  %v23631_v30 = vsel %vm491_vm0, %v23532_v15, %v23615_v37  ;;  %v23633_v57 = vpop.f32.mrf.mxu0  ;;  %v12287_v36 = vsel %vm491_vm0, %v23615_v37, %v23617_v19  ;;  %v23642_v42 = vpop.f32.mrf.mxu1  ;;  %v12291_v31 = vrot.slane %v12289_v48, 3  ;;  %v19385_v62 = vld [vmem:[%s24288_s2 + $0x28] sm:$0xff]  }
 0x417   : > { %18406 = vmatpush3.bf16.msra.mxu0 %v19374_v28  ;;  %v19381_v28 = vld [vmem:[%s24288_s2 + $0x30] sm:$0xff]   ;;  %24719 = vst [vmem:[#allocation25_spill] sm:$0xff] %v23631_v30  ;;  %24720 = vst [vmem:[#allocation6_spill] sm:$0xff] %v23642_v42  ;;  %v12429_v22 = vrot.slane %v12427_v2, 4  ;;  %v12617_v38 = vrot.slane %v12615_v47, 3  ;;  %v19386_v48 = vld [vmem:[%s24288_s2 + $0x1a8] sm:$0xff]   ;;  %v12438_v3 = vor.u32 %v12437_v52, %v12434_v29  ;;  %v15627_v2 = vcombine.low %v23573_v21, %v23573_v21 }
 0x418   : > { %18430 = vmatpush3.bf16.msra.mxu1 %v19375_v0  ;;  %18439 = vmatprep.subr.bf16.mxu0 %v19377_v34  ;;  %v12618_v0 = vshll.u32 %v15652_v17, 16  ;;  %v12628_v17 = vrot.slane %v12626_v25, 4  ;;  %v23647_v25 = vld [vmem:[#allocation3 + $0x68] sm:$0xff]   ;;  %v23656_v47 = vpop.f32.mrf.mxu1  ;;  %v23658_v42 = vld [vmem:[#allocation3 + $0x94] sm:$0xf]  ;;  %v19393_v52 = vld [vmem:[%s24288_s2 + $0x20] sm:$0xff]   ;;  %v24721_v21 = vcombine.low %v22728_v18, %v22730_v4 }
 0x419   : > { %18463 = vmatprep.subr.bf16.mxu1 %v19378_v55  ;;  %v12442_v18 = vshrl.u32 %v15627_v2, 16  ;;  %v12445_v4 = vshll.u32 %v15627_v2, 16 }
 0x41a   : > { %18408 = vmatmul.mubr.bf16.vlgmr.msra.gmra.mxu0 %v24718_v13  ;;  %v12625_v13 = vrot.slane %v12623_v59, 3  ;;  %v12635_v59 = vshll.u32 %v15654_v58, 16 }
 0x41b   : > { %18432 = vmatmul.mubr.bf16.vlgmr.msra.gmra.mxu1 %v23631_v30  ;;  %18411 = vmatprep.mubr.bf16.mxu0 %v15586_v23  ;;  %v12620_v23 = vrot.slane %v12618_v0, 4  ;;  %v12632_v30 = vshrl.u32 %v15654_v58, 16  ;;  %v12295_v58 = vor.u32 %v12294_v16, %v12291_v31  ;;  %v12430_v0 = vor.u32 %v12429_v22, %v12426_v8  ;;  %v19394_v8 = vld [vmem:[%s24288_s2 + $0x1a0] sm:$0xff]  }
 0x41c   : > { %18435 = vmatprep.mubr.bf16.mxu1 %v12287_v36  ;;  %18440 = vmatpush3.bf16.msra.mxu0 %v19377_v34  ;;  %v23649_v36 = vpop.f32.mrf.mxu0  ;;  %v19573_v34 = vld [vmem:[#allocation3 + $0x8c] sm:$0xf]  ;;  %v12629_v45 = vor.u32 %v12628_v17, %v12625_v13  ;;  %v13022_v13 = vshll.u32 %v23647_v25, 16 }
 0x41d   : > { %18464 = vmatpush3.bf16.msra.mxu1 %v19378_v55  ;;  %18441 = vmatprep.subr.bf16.mxu0 %v19381_v28  ;;  %v15655_v55 = vcombine.low %v19573_v34, %v12573_v40  ;;  %v12621_v41 = vor.u32 %v12620_v23, %v12617_v38  ;;  %v12634_v29 = vrot.slane %v12632_v30, 3  ;;  %v12637_v40 = vrot.slane %v12635_v59, 4  ;;  %v23682_v38 = vpop.f32.mrf.mxu1  ;;  %v19395_v23 = vld [vmem:[%s24288_s2 + $0x18] sm:$0xff]  }
 0x41e   : > { %18465 = vmatprep.subr.bf16.mxu1 %v19382_v56  ;;  %v23664_v17 = vpop.f32.mrf.mxu0  ;;  %v12296_v16 = vsel %vm491_vm0, %v23617_v19, %v12295_v58  ;;  %v12439_v22 = vsel %vm491_vm0, %v12430_v0, %v12438_v3  ;;  %v23680_v19 = vcombine.low %v23658_v42, %v23658_v42  ;;  %v13020_v34 = vshrl.u32 %v23647_v25, 16 }
 0x41f   : > { %v12644_v30 = vshll.u32 %v15655_v55, 16  ;;  %v12630_v31 = vsel %vm491_vm0, %v12621_v41, %v12629_v45  ;;  %v12638_v59 = vor.u32 %v12637_v40, %v12634_v29  ;;  %v13024_v41 = vrot.slane %v13022_v13, 1 }
 0x420   : > { %18442 = vmatpush3.bf16.msra.mxu0 %v19381_v28  ;;  %v12641_v28 = vshrl.u32 %v15655_v55, 16  ;;  %v9202_v55 = vadd.f32 %v23427_v60, %v23343_v14  ;;  %v23690_v2 = vpop.f32.mrf.mxu0  ;;  %v9194_v29 = vadd.f32 %v23437_v24, %v23362_v9  ;;  %v12444_v40 = vrot.slane %v12442_v18, 3  ;;  %v19397_v14 = vld [vmem:[%s24288_s2 + $0x10] sm:$0xff]   ;;  %v23711_v9 = vld [vmem:[#allocation3 + $0x78] sm:$0xff]  }
 0x421   : > { %18466 = vmatpush3.bf16.msra.mxu1 %v19382_v56  ;;  %18443 = vmatprep.subr.bf16.mxu0 %v19385_v62  ;;  %v23675_v56 = vld [vmem:[#allocation3 + $0x70] sm:$0xff]   ;;  %v12646_v58 = vrot.slane %v12644_v30, 4  ;;  %v12447_v25 = vrot.slane %v12445_v4, 4  ;;  %v12650_v13 = vshrl.u32 %v23680_v19, 16  ;;  %v23706_v60 = vsel %vm491_vm0, %v12438_v3, %v23532_v15  ;;  %v19399_v4 = vld [vmem:[%s24288_s2 + $0x8] sm:$0xff]  }
 0x422   : > { %18412 = vmatmul.mubr.bf16.gmra.mxu0 %v24721_v21  ;;  %18467 = vmatprep.subr.bf16.mxu1 %v19386_v48  ;;  %v12861_v0 = vshll.u32 %v23675_v56, 16  ;;  %v23699_v21 = vpop.f32.mrf.mxu1  ;;  %v12859_v24 = vshrl.u32 %v23675_v56, 16  ;;  %v23719_v30 = vpop.f32.mrf.mxu0  ;;  %v19398_v15 = vld [vmem:[%s24288_s2 + $0x190] sm:$0xff]  }
 0x423   : > { %18436 = vmatmul.mubr.bf16.gmra.mxu1 %v12296_v16  ;;  %18455 = vmatprep.mubr.bf16.mxu0 %v12439_v22  ;;  %v23709_v16 = vsel %vm491_vm0, %v12629_v45, %v12638_v59  ;;  %v13025_v22 = vor.u32 %v13024_v41, %v13020_v34  ;;  %v9433_v45 = vadd.f32 %v23444_v1, %v9194_v29  ;;  %v24726_v29 = vld [vmem:[#allocation32_spill] sm:$0xff] }
 0x424   : > { %18444 = vmatpush3.bf16.msra.mxu0 %v19385_v62  ;;  %18479 = vmatprep.mubr.bf16.mxu1 %v12630_v31  ;;  %v19396_v62 = vld [vmem:[%s24288_s2 + $0x198] sm:$0xff]   ;;  %v12448_v56 = vor.u32 %v12447_v25, %v12444_v40  ;;  %v23727_v31 = vrot.slane %v12650_v13, 3  ;;  %v23735_v18 = vpop.f32.mrf.mxu1  ;;  %v9778_v1 = vadd.f32 %v23561_v51, %v23553_v5  ;;  %v9210_v5 = vadd.f32 %v23481_v27, %v23404_v11  ;;  %v24727_v25 = vld [vmem:[#allocation40_spill] sm:$0xff] }
 0x425   : > { %18468 = vmatpush3.bf16.msra.mxu1 %v19386_v48  ;;  %18445 = vmatprep.subr.bf16.mxu0 %v19393_v52  ;;  %v12643_v48 = vrot.slane %v12641_v28, 3  ;;  %v9786_v28 = vadd.f32 %v23543_v63, %v23534_v39  ;;  %v9197_v11 = vadd.f32 %v23461_v6, %v23386_v35  ;;  %v19401_v35 = vld [vmem:[%s24288_s2] sm:$0xff]  }
 0x426   : > { %18469 = vmatprep.subr.bf16.mxu1 %v19394_v8  ;;  %v23761_v34 = vsel %vm491_vm0, %v23615_v37, %v12448_v56  ;;  %v23767_v41 = vpop.f32.mrf.mxu1  ;;  %v24725_v37 = vld [vmem:[#allocation56_spill] sm:$0xff]  ;;  %v9437_v40 = vadd.f32 %v24726_v29, %v9210_v5  ;;  %v24735_v5 = vld [vmem:[#allocation33_spill] sm:$0xff] }
 0x427   : > { %v23724_v3 = vor.u32 %v12646_v58, %v12643_v48  ;;  %v10009_v63 = vadd.f32 %v23649_v36, %v9786_v28  ;;  %v18126_v36 = vpop.f32.mrf.mxu0  ;;  %v24724_v48 = vld [vmem:[#allocation54_spill] sm:$0xff]  ;;  %v24741_v29 = vld [vmem:[#allocation13_spill] sm:$0xff] }
 0x428   : > { %18446 = vmatpush3.bf16.msra.mxu0 %v19393_v52  ;;  %v9435_v52 = vadd.f32 %v23432_v43, %v9202_v55  ;;  %v12863_v43 = vrot.slane %v12861_v0, 1  ;;  %v24722_v55 = vld [vmem:[#allocation8_spill] sm:$0xff]  ;;  %v24730_v28 = vld [vmem:[#allocation34_spill] sm:$0xff] }
 0x429   : > { %18470 = vmatpush3.bf16.msra.mxu1 %v19394_v8  ;;  %18447 = vmatprep.subr.bf16.mxu0 %v19395_v23  ;;  %v9783_v8 = vadd.f32 %v23517_v32, %v23508_v46  ;;  %v9218_v46 = vadd.f32 %v23471_v20, %v23395_v49  ;;  %v9775_v32 = vadd.f32 %v23530_v54, %v23522_v7  ;;  %v12653_v20 = vshll.u32 %v23680_v19, 16 }
 0x42a   : > { %18471 = vmatprep.subr.bf16.mxu1 %v19396_v62  ;;  %v23744_v49 = vsel %vm491_vm0, %v12638_v59, %v23724_v3  ;;  %v12866_v7 = vshll.u32 %v23711_v9, 16  ;;  %v9443_v54 = vmul.f32 %v9435_v52, %v20358_v44  ;;  %v9441_v19 = vmul.f32 %v9433_v45, %v24663_v61  ;;  %v19402_v52 = vld [vmem:[%s24288_s2 + $0x180] sm:$0xff]   ;;  %v24731_v45 = vld [vmem:[#allocation9_spill] sm:$0xff] }
 0x42b   : > { %v10008_v39 = vadd.f32 %v23613_v53, %v9783_v8  ;;  %v9205_v53 = vadd.f32 %v23450_v26, %v23376_v10  ;;  %v10006_v51 = vadd.f32 %v23633_v57, %v9775_v32  ;;  %v10007_v59 = vadd.f32 %v23664_v17, %v9778_v1  ;;  %v24723_v17 = vld [vmem:[#allocation50_spill] sm:$0xff]  ;;  %v24729_v8 = vld [vmem:[#allocation20_spill] sm:$0xff]  ;;  %v24734_v1 = vld [vmem:[#allocation19_spill] sm:$0xff] }
 0x42c   : > { %18448 = vmatpush3.bf16.msra.mxu0 %v19395_v23  ;;  %v19400_v23 = vld [vmem:[%s24288_s2 + $0x188] sm:$0xff]   ;;  %v12864_v10 = vor.u32 %v12863_v43, %v12859_v24  ;;  %v9439_v26 = vadd.f32 %v23476_v33, %v9218_v46  ;;  %v10017_v57 = vmul.f32 %v10009_v63, %v24664_v50  ;;  %v9802_v58 = vadd.f32 %v24724_v48, %v24723_v17  ;;  %v9994_v24 = vpop.f32.mrf.mxu0  ;;  %v24739_v48 = vld [vmem:[#allocation28_spill] sm:$0xff] }
 0x42d   : > { %18472 = vmatpush3.bf16.msra.mxu1 %v19396_v62  ;;  %18449 = vmatprep.subr.bf16.mxu0 %v19397_v14  ;;  %v10024_v27 = vadd.f32 %v10008_v39, %v9443_v54  ;;  %v9799_v62 = vadd.f32 %v24722_v55, %v23563_v12  ;;  %v23776_v6 = vrot.slane %v12653_v20, 4  ;;  %v23779_v33 = vsel %vm1100_vm1, %v13025_v22, %v12863_v43  ;;  %v24728_v12 = vld [vmem:[#allocation46_spill] sm:$0xff]  ;;  %v24732_v46 = vld [vmem:[#allocation17_spill] sm:$0xff] }
 0x42e   : > { %18473 = vmatprep.subr.bf16.mxu1 %v19398_v15  ;;  %v9436_v0 = vadd.f32 %v24725_v37, %v9205_v53  ;;  %v9791_v13 = vadd.f32 %v24728_v12, %v24727_v25  ;;  %v10015_v22 = vmul.f32 %v10007_v59, %v24731_v45  ;;  %v10013_v43 = vadd.f32 %v18126_v36, %v9802_v58  ;;  %v24733_v39 = vld [vmem:[#allocation5_spill] sm:$0xff]  ;;  %v23795_v53 = vpop.f32.mrf.mxu1  ;;  %v19403_v36 = vld [vmem:[%s24288_s2 + $0x178] sm:$0xff]  }
 0x42f   : > { %v10012_v56 = vadd.f32 %v23690_v2, %v9799_v62  ;;  %v9434_v32 = vadd.f32 %v24732_v46, %v9197_v11  ;;  %v9447_v63 = vmul.f32 %v9439_v26, %v24733_v39  ;;  %v10169_v20 = vadd.f32 %v24734_v1, %v10024_v27  ;;  %v24737_v11 = vld [vmem:[#allocation7_spill] sm:$0xff]  ;;  %v24738_v27 = vld [vmem:[#allocation6_spill] sm:$0xff]  ;;  %v23816_v25 = vld [vmem:[%s19659_s16 + $0x28] sm:$0xff]  }
 0x430   : > { %18450 = vmatpush3.bf16.msra.mxu0 %v19397_v14  ;;  %v10022_v14 = vadd.f32 %v10006_v51, %v9441_v19  ;;  %v10025_v54 = vadd.f32 %v10017_v57, %v9436_v0  ;;  %v24736_v51 = vld [vmem:[#allocation36_spill] sm:$0xff]  ;;  %v10010_v55 = vadd.f32 %v23719_v30, %v9791_v13  ;;  %v23803_v59 = vrot.slane %v12866_v7, 1  ;;  %v19404_v30 = vld [vmem:[%s24288_s2 + $0xb8] sm:$0xff]  }
 0x431   : > { %18474 = vmatpush3.bf16.msra.mxu1 %v19398_v15  ;;  %18451 = vmatprep.subr.bf16.mxu0 %v19399_v4  ;;  %v9794_v15 = vadd.f32 %v24730_v28, %v24729_v8  ;;  %v9221_v19 = vadd.f32 %v24736_v51, %v24735_v5  ;;  %v9445_v26 = vmul.f32 %v9437_v40, %v24737_v11  ;;  %v24740_v58 = vld [vmem:[#allocation15_spill] sm:$0xff] }
 0x432   : > { %18475 = vmatprep.subr.bf16.mxu1 %v19400_v23  ;;  %v9213_v37 = vadd.f32 %v24740_v58, %v24739_v48  ;;  %v10023_v0 = vadd.f32 %v10015_v22, %v9434_v32  ;;  %v10028_v7 = vadd.f32 %v10012_v56, %v9447_v63  ;;  %v10021_v40 = vmul.f32 %v10013_v43, %v24741_v29  ;;  %v24743_v22 = vld [vmem:[#allocation22_spill] sm:$0xff]  ;;  %v23826_v43 = vld [vmem:[%s19659_s16 + $0x20] sm:$0xff]  }
 0x433   : > { %v10011_v17 = vadd.f32 %v9994_v24, %v9794_v15  ;;  %v10170_v13 = vadd.f32 %v23656_v47, %v10025_v54  ;;  %v10026_v15 = vadd.f32 %v10010_v55, %v9445_v26  ;;  %v23831_v47 = vld [vmem:[%s24289_s3 + $0x2] ss:$0 sm:$0xff]  ;;  %v19407_v55 = vld [vmem:[%s24288_s2 + $0xb0] sm:$0xff]  }
 0x434   : > { %18452 = vmatpush3.bf16.msra.mxu0 %v19399_v4  ;;  %v10167_v4 = vadd.f32 %v24738_v27, %v10022_v14  ;;  %24744 = vst [vmem:[#allocation12_spill] sm:$0xff] %v23831_v47  ;;  %v10168_v5 = vadd.f32 %v23682_v38, %v10023_v0  ;;  %v10173_v51 = vadd.f32 %v23699_v21, %v10028_v7  ;;  %v24747_v38 = vld [vmem:[#allocation25_spill] sm:$0xff]  ;;  %v15967_v7 = vunpack.c.h.bf16 %v23816_v25 }
 0x435   : > { %18476 = vmatpush3.bf16.msra.mxu1 %v19400_v23  ;;  %18453 = vmatprep.subr.bf16.mxu0 %v19401_v35  ;;  %v18169_v2 = vpop.f32.mrf.mxu0  ;;  %v18193_v62 = vpop.f32.mrf.mxu1  ;;  %v12656_v23 = vor.u32 %v23776_v6, %v23727_v31  ;;  %v23821_v31 = vsel %vm1100_vm1, %v12864_v10, %v23803_v59  ;;  %v24742_v6 = vld [vmem:[#allocation29_spill] sm:$0xff]  ;;  %v10019_v56 = vmul.f32 %v10011_v17, %v24743_v22  ;;  %v15966_v10 = vunpack.c.l.bf16 %v23816_v25 }
 0x436   : > { %18477 = vmatprep.subr.bf16.mxu1 %v19402_v52  ;;  %v10308_v57 = vadd.f32 %v18169_v2, %v10169_v20  ;;  %v9440_v28 = vadd.f32 %v24742_v6, %v9221_v19  ;;  %v24745_v20 = vld [vmem:[#allocation4_spill] sm:$0xff]  ;;  %v19411_v25 = vld [vmem:[%s24288_s2 + $0xa8] sm:$0xff]   ;;  %v16030_v6 = vld [vmem:[%s19659_s16 + $0x38] sm:$0xff]  }
 0x437   : > { %v10275_v12 = vpop.f32.mrf.mxu0  ;;  %v10420_v8 = vpop.f32.mrf.mxu1  ;;  %v9438_v54 = vadd.f32 %v24745_v20, %v9213_v37  ;;  %v23848_v2 = vld [vmem:[%s24289_s3 + $0x3] ss:$0 sm:$0xff] }
 0x438   : > { %18454 = vmatpush3.bf16.msra.mxu0 %v19401_v35  ;;  %v10453_v14 = vadd.f32 %v18193_v62, %v10308_v57  ;;  %v10306_v24 = vadd.f32 %v10275_v12, %v10167_v4  ;;  %v10029_v19 = vadd.f32 %v10021_v40, %v9440_v28  ;;  %24746 = vst [vmem:[#allocation44_spill] sm:$0xff] %v23848_v2 }
 0x439   : > { %18478 = vmatpush3.bf16.msra.mxu1 %v19402_v52  ;;  %18487 = vmatprep.subr.bf16.mxu0 %v19403_v36  ;;  %v18170_v46 = vpop.f32.mrf.mxu0  ;;  %v18194_v1 = vpop.f32.mrf.mxu1  ;;  %v19406_v52 = vld [vmem:[%s24288_s2 + $0x170] sm:$0xff]   ;;  %v10171_v57 = vadd.f32 %v23735_v18, %v10026_v15  ;;  %v10027_v62 = vadd.f32 %v10019_v56, %v9438_v54  ;;  %v19410_v18 = vld [vmem:[%s24288_s2 + $0x168] sm:$0xff]  }
 0x43a   : > { %v10461_v35 = vmul.f32 %v23831_v47, %v10453_v14  ;;  %18511 = vmatprep.subr.bf16.mxu1 %v19404_v30  ;;  %v10451_v32 = vadd.f32 %v10420_v8, %v10306_v24  ;;  %v10309_v63 = vadd.f32 %v18170_v46, %v10170_v13 }
 0x43b   : > { %18456 = vmatmul.mubr.bf16.vlgmr.msra.gmra.mxu0 %v23706_v60  ;;  %v10278_v17 = vpop.f32.mrf.mxu0  ;;  %v15962_v60 = vunpack.c.l.bf16 %v23826_v43  ;;  %v10423_v4 = vpop.f32.mrf.mxu1  ;;  %v10172_v56 = vadd.f32 %v23795_v53, %v10027_v62  ;;  %v19415_v53 = vld [vmem:[%s24288_s2 + $0x160] sm:$0xff]  }
 0x43c   : > { %v10469_v26 = vadd.f32 %v23848_v2, %v10461_v35  ;;  %18480 = vmatmul.mubr.bf16.vlgmr.msra.gmra.mxu1 %v23709_v16  ;;  %18459 = vmatprep.mubr.bf16.mxu0 %v24747_v38  ;;  %v10459_v21 = vmul.f32 %v23831_v47, %v10451_v32  ;;  %v10454_v27 = vadd.f32 %v18194_v1, %v10309_v63 }
 0x43d   : > { %18483 = vmatprep.mubr.bf16.mxu1 %v23744_v49  ;;  %18488 = vmatpush3.bf16.msra.mxu0 %v19403_v36  ;;  %v10307_v48 = vadd.f32 %v10278_v17, %v10168_v5  ;;  %v18173_v58 = vpop.f32.mrf.mxu0  ;;  %v18197_v40 = vpop.f32.mrf.mxu1  ;;  %v10174_v49 = vadd.f32 %v23767_v41, %v10029_v19  ;;  %v23872_v41 = vld [vmem:[%s19659_s16 + $0x30] sm:$0xff]  }
 0x43e   : > { %v10493_v37 = vadd.f32 %v15966_v10, %v10469_v26  ;;  %18512 = vmatpush3.bf16.msra.mxu1 %v19404_v30  ;;  %v10467_v16 = vadd.f32 %v23848_v2, %v10459_v21  ;;  %v10462_v0 = vmul.f32 %v23831_v47, %v10454_v27  ;;  %18489 = vmatprep.subr.bf16.mxu0 %v19406_v52  ;;  %v15970_v5 = vunpack.c.l.bf16 %v23872_v41 }
 0x43f   : > { %18513 = vmatprep.subr.bf16.mxu1 %v19407_v55  ;;  %v10452_v36 = vadd.f32 %v10423_v4, %v10307_v48  ;;  %v10312_v12 = vadd.f32 %v18173_v58, %v10173_v51  ;;  %v12657_v30 = vsel %vm491_vm0, %v23724_v3, %v12656_v23  ;;  %v10291_v13 = vpop.f32.mrf.mxu0  ;;  %v10436_v15 = vpop.f32.mrf.mxu1  ;;  %v15963_v23 = vunpack.c.h.bf16 %v23826_v43  ;;  %v19416_v51 = vld [vmem:[%s24288_s2 + $0xa0] sm:$0xff]   ;;  %v19417_v48 = vld [vmem:[%s24288_s2 + $0x158] sm:$0xff]  }
 0x440   : > { %v10501_v14 = vmax.f32 %v10493_v37, 0.0  ;;  %v10491_v24 = vadd.f32 %v15962_v60, %v10467_v16  ;;  %v10470_v8 = vadd.f32 %v23848_v2, %v10462_v0  ;;  %v10310_v28 = vadd.f32 %v10291_v13, %v10171_v57 }
 0x441   : > { %18490 = vmatpush3.bf16.msra.mxu0 %v19406_v52  ;;  %v10460_v3 = vmul.f32 %v23831_v47, %v10452_v36  ;;  %v10457_v46 = vadd.f32 %v18197_v40, %v10312_v12  ;;  %v18174_v35 = vpop.f32.mrf.mxu0  ;;  %v18198_v20 = vpop.f32.mrf.mxu1  ;;  %v15974_v43 = vunpack.c.l.bf16 %v16030_v6  ;;  %v15975_v57 = vunpack.c.h.bf16 %v16030_v6  ;;  %v19421_v6 = vld [vmem:[%s24288_s2 + $0x148] sm:$0xff]  }
 0x442   : > { %10509 = vst [vmem:[%s23314_s10 + $0x50] sm:$0xff] %v10501_v14  ;;  %v10499_v10 = vmax.f32 %v10491_v24, 0.0  ;;  %v10494_v32 = vadd.f32 %v15967_v7, %v10470_v8  ;;  %18514 = vmatpush3.bf16.msra.mxu1 %v19407_v55  ;;  %18491 = vmatprep.subr.bf16.mxu0 %v19410_v18  ;;  %v10455_v63 = vadd.f32 %v10436_v15, %v10310_v28  ;;  %v15971_v40 = vunpack.c.h.bf16 %v23872_v41  ;;  %v19425_v24 = vld [vmem:[#allocation3 + $0x80] sm:$0xff]   ;;  %v19422_v28 = vld [vmem:[%s24288_s2 + $0x88] sm:$0xff]  }
 0x443   : > { %v10313_v1 = vadd.f32 %v18174_v35, %v10174_v49  ;;  %v10468_v52 = vadd.f32 %v23848_v2, %v10460_v3  ;;  %v10465_v54 = vmul.f32 %v23831_v47, %v10457_v46  ;;  %18460 = vmatmul.mubr.bf16.gmra.mxu0 %v23761_v34  ;;  %18515 = vmatprep.subr.bf16.mxu1 %v19411_v25  ;;  %v10294_v19 = vpop.f32.mrf.mxu0  ;;  %v10439_v60 = vpop.f32.mrf.mxu1  ;;  %v12874_v15 = vshll.u32 %v19425_v24, 16  ;;  %v19423_v41 = vld [vmem:[%s24288_s2 + $0x140] sm:$0xff]   ;;  %v19426_v46 = vld [vmem:[%s24288_s2 + $0x238] sm:$0xff]  }
 0x444   : > { %10507 = vst [vmem:[%s23314_s10 + $0x40] sm:$0xff] %v10499_v10  ;;  %v10502_v55 = vmax.f32 %v10494_v32, 0.0  ;;  %18484 = vmatmul.mubr.bf16.gmra.mxu1 %v12657_v30  ;;  %18503 = vmatprep.mubr.bf16.mxu0 %v23821_v31  ;;  %v10463_v17 = vmul.f32 %v23831_v47, %v10455_v63  ;;  %v10311_v38 = vadd.f32 %v10294_v19, %v10172_v56  ;;  %v19419_v30 = vld [vmem:[%s24288_s2 + $0x150] sm:$0xff]   ;;  %v19428_v56 = vld [vmem:[#allocation3 + $0x88] sm:$0xff]   ;;  %v19424_v3 = vld [vmem:[%s24288_s2 + $0x80] sm:$0xff]   ;;  %v12878_v35 = vshrl.u32 %v19425_v24, 16 }
 0x445   : > { %v10458_v26 = vadd.f32 %v18198_v20, %v10313_v1  ;;  %v10492_v21 = vadd.f32 %v15963_v23, %v10468_v52  ;;  %v10473_v34 = vadd.f32 %v23848_v2, %v10465_v54  ;;  %18492 = vmatpush3.bf16.msra.mxu0 %v19410_v18  ;;  %18527 = vmatprep.mubr.bf16.mxu1 %v23779_v33  ;;  %v19418_v33 = vld [vmem:[%s24288_s2 + $0x98] sm:$0xff]   ;;  %v12876_v23 = vrot.slane %v12874_v15, 1  ;;  %v19431_v20 = vld [vmem:[#allocation3 + $0x90] ss:$0 sps:$4 sm:$0x11]   ;;  %v23936_v52 = vld [vmem:[#allocation3 + $0x80] sm:$0xff]  }
 0x446   : > { %10510 = vst [vmem:[%s23314_s10 + $0x58] sm:$0xff] %v10502_v55  ;;  %18516 = vmatpush3.bf16.msra.mxu1 %v19411_v25  ;;  %v10471_v27 = vadd.f32 %v23848_v2, %v10463_v17  ;;  %18493 = vmatprep.subr.bf16.mxu0 %v19415_v53  ;;  %v10456_v62 = vadd.f32 %v10439_v60, %v10311_v38  ;;  %v19420_v25 = vld [vmem:[%s24288_s2 + $0x90] sm:$0xff]   ;;  %v12882_v10 = vshll.u32 %v19428_v56, 16  ;;  %v19435_v32 = vld [vmem:[#allocation3 + $0x78] sm:$0xff]   ;;  %v12870_v63 = vshrl.u32 %v23711_v9, 16  ;;  %v19444_v15 = vld [vmem:[%s24288_s2 + $0x208] sm:$0xff]  }
 0x447   : > { %v10466_v4 = vmul.f32 %v23831_v47, %v10458_v26  ;;  %v10500_v58 = vmax.f32 %v10492_v21, 0.0  ;;  %v10497_v37 = vadd.f32 %v15974_v43, %v10473_v34  ;;  %18517 = vmatprep.subr.bf16.mxu1 %v19416_v51  ;;  %v19427_v1 = vld [vmem:[%s24288_s2 + $0x78] sm:$0xff]   ;;  %v19429_v9 = vld [vmem:[%s24288_s2 + $0x230] sm:$0xff]   ;;  %v12890_v55 = vshll.u32 %v19431_v20, 16 }
 0x448   : > { %v10495_v16 = vadd.f32 %v15970_v5, %v10471_v27  ;;  %v10464_v7 = vmul.f32 %v23831_v47, %v10456_v62  ;;  %v12872_v54 = vor.u32 %v12870_v63, %v23803_v59  ;;  %v12884_v43 = vrot.slane %v12882_v10, 1  ;;  %v19432_v5 = vld [vmem:[#allocation3 + $0x88] ss:$0 sps:$4 sm:$0x11]   ;;  %v19430_v59 = vld [vmem:[%s24288_s2 + $0x70] sm:$0xff]   ;;  %v19447_v10 = vld [vmem:[%s24288_s2 + $0x40] sm:$0xff]  }
 0x449   : > { %v10474_v0 = vadd.f32 %v23848_v2, %v10466_v4  ;;  %10508 = vst [vmem:[%s23314_s10 + $0x48] sm:$0xff] %v10500_v58  ;;  %v10505_v18 = vmax.f32 %v10497_v37, 0.0  ;;  %18494 = vmatpush3.bf16.msra.mxu0 %v19415_v53  ;;  %v12880_v53 = vor.u32 %v12878_v35, %v12876_v23  ;;  %v13203_v26 = vshll.u32 %v23936_v52, 16  ;;  %v19433_v4 = vld [vmem:[%s24288_s2 + $0x228] sm:$0xff]   ;;  %v19443_v24 = vld [vmem:[%s24288_s2 + $0x50] sm:$0xff]   ;;  %v19446_v35 = vld [vmem:[%s24288_s2 + $0x200] sm:$0xff]  }
 0x44a   : > { %v10503_v49 = vmax.f32 %v10495_v16, 0.0  ;;  %18518 = vmatpush3.bf16.msra.mxu1 %v19416_v51  ;;  %v10472_v12 = vadd.f32 %v23848_v2, %v10464_v7  ;;  %18495 = vmatprep.subr.bf16.mxu0 %v19417_v48  ;;  %v13198_v51 = vshll.u32 %v19435_v32, 16  ;;  %v12877_v19 = vsel %vm1100_vm1, %v12872_v54, %v12876_v23  ;;  %v19438_v16 = vld [vmem:[%s24288_s2 + $0x220] sm:$0xff]  }
 0x44b   : > { %v10498_v36 = vadd.f32 %v15975_v57, %v10474_v0  ;;  %10513 = vst [vmem:[%s23314_s10 + $0x70] sm:$0xff] %v10505_v18  ;;  %18519 = vmatprep.subr.bf16.mxu1 %v19418_v33  ;;  %v12885_v17 = vsel %vm1100_vm1, %v12880_v53, %v12884_v43  ;;  %v12886_v38 = vshrl.u32 %v19428_v56, 16  ;;  %v13028_v21 = vshll.u32 %v19432_v5, 16  ;;  %v19434_v57 = vld [vmem:[%s24288_s2 + $0x68] sm:$0xff]   ;;  %v24749_v18 = vld [vmem:[#allocation30_spill] sm:$0xff] }
 0x44c   : > { %10511 = vst [vmem:[%s23314_s10 + $0x60] sm:$0xff] %v10503_v49  ;;  %v10496_v14 = vadd.f32 %v15971_v40, %v10472_v12  ;;  %v13200_v34 = vrot.slane %v13198_v51, 1  ;;  %v12892_v27 = vrot.slane %v12890_v55, 1  ;;  %v13205_v62 = vrot.slane %v13203_v26, 1  ;;  %v24748_v40 = vld [vmem:[#allocation35_spill] sm:$0xff] }
 0x44d   : > { %v10506_v13 = vmax.f32 %v10498_v36, 0.0  ;;  %18496 = vmatpush3.bf16.msra.mxu0 %v19417_v48  ;;  %v12888_v60 = vor.u32 %v12886_v38, %v12884_v43  ;;  %v13030_v58 = vrot.slane %v13028_v21, 1  ;;  %v15765_v49 = vcombine.low %v24749_v18, %v24748_v40  ;;  %v19439_v36 = vld [vmem:[%s24288_s2 + $0x60] sm:$0xff]   ;;  %v19449_v43 = vld [vmem:[%s24288_s2 + $0x138] sm:$0xff]   ;;  %v19453_v21 = vld [vmem:[%s24288_s2 + $0x130] sm:$0xff]  }
 0x44e   : > { %v10504_v8 = vmax.f32 %v10496_v14, 0.0  ;;  %18520 = vmatpush3.bf16.msra.mxu1 %v19418_v33  ;;  %18497 = vmatprep.subr.bf16.mxu0 %v19419_v30  ;;  %v19442_v14 = vld [vmem:[%s24288_s2 + $0x210] sm:$0xff]   ;;  %v19460_v18 = vld [vmem:[%s24288_s2 + $0x120] sm:$0xff]  }
 0x44f   : > { %10514 = vst [vmem:[%s23314_s10 + $0x78] sm:$0xff] %v10506_v13  ;;  %18521 = vmatprep.subr.bf16.mxu1 %v19420_v25  ;;  %v12893_v33 = vsel %vm1100_vm1, %v12888_v60, %v12892_v27  ;;  %v13031_v0 = vsel %vm1100_vm1, %v12880_v53, %v13030_v58  ;;  %v19455_v53 = vld [vmem:[#allocation3 + $0x98] ss:$0 sps:$4 sm:$0x11]   ;;  %v19454_v60 = vld [vmem:[%s24288_s2 + $0x1f0] sm:$0xff]   ;;  %v24753_v58 = vld [vmem:[#allocation24_spill] sm:$0xff] }
 0x450   : > { %10512 = vst [vmem:[%s23314_s10 + $0x68] sm:$0xff] %v10504_v8  ;;  %v19448_v8 = vld [vmem:[#allocation3 + $0x88] sm:$0xff]  }
 0x451   : > { %18498 = vmatpush3.bf16.msra.mxu0 %v19419_v30  ;;  %v19440_v30 = vld [vmem:[%s24288_s2 + $0x218] sm:$0xff]   ;;  %v13211_v56 = vshll.u32 %v19448_v8, 16  ;;  %v13215_v5 = vshrl.u32 %v19448_v8, 16 }
 0x452   : > { %18522 = vmatpush3.bf16.msra.mxu1 %v19420_v25  ;;  %18499 = vmatprep.subr.bf16.mxu0 %v19421_v6  ;;  %v19441_v25 = vld [vmem:[%s24288_s2 + $0x58] sm:$0xff]  }
 0x453   : > { %18523 = vmatprep.subr.bf16.mxu1 %v19422_v28 }
 0x455   : > { %18500 = vmatpush3.bf16.msra.mxu0 %v19421_v6 }
 0x456   : > { %18524 = vmatpush3.bf16.msra.mxu1 %v19422_v28  ;;  %18501 = vmatprep.subr.bf16.mxu0 %v19423_v41  ;;  %v23955_v48 = vpop.f32.mrf.mxu0  ;;  %v23986_v28 = vpop.f32.mrf.mxu1 }
 0x457   : > { %18525 = vmatprep.subr.bf16.mxu1 %v19424_v3 }
 0x458   : > { %v23968_v12 = vpop.f32.mrf.mxu0 }
 0x459   : > { %18502 = vmatpush3.bf16.msra.mxu0 %v19423_v41  ;;  %v19445_v41 = vld [vmem:[%s24288_s2 + $0x48] sm:$0xff]  }
 0x45a   : > { %18526 = vmatpush3.bf16.msra.mxu1 %v19424_v3  ;;  %18535 = vmatprep.subr.bf16.mxu0 %v19426_v46  ;;  %v23976_v13 = vpop.f32.mrf.mxu0  ;;  %v19451_v3 = vld [vmem:[#allocation3 + $0x90] sm:$0xff]  }
 0x45b   : > { %18559 = vmatprep.subr.bf16.mxu1 %v19427_v1  ;;  %v13219_v63 = vshll.u32 %v19451_v3, 16 }
 0x45c   : > { %18504 = vmatmul.mubr.bf16.vlgmr.msra.gmra.mxu0 %v12877_v19  ;;  %v23984_v6 = vpop.f32.mrf.mxu0 }
 0x45d   : > { %18528 = vmatmul.mubr.bf16.vlgmr.msra.gmra.mxu1 %v23821_v31  ;;  %18507 = vmatprep.mubr.bf16.mxu0 %v12885_v17  ;;  %v13196_v31 = vshrl.u32 %v19435_v32, 16  ;;  %v13213_v32 = vrot.slane %v13211_v56, 1  ;;  %v13223_v17 = vshrl.u32 %v19451_v3, 16 }
 0x45e   : > { %18531 = vmatprep.mubr.bf16.mxu1 %v12877_v19  ;;  %18536 = vmatpush3.bf16.msra.mxu0 %v19426_v46  ;;  %v23994_v23 = vpop.f32.mrf.mxu0  ;;  %v23996_v46 = vpop.f32.mrf.mxu1  ;;  %v19450_v19 = vld [vmem:[%s24288_s2 + $0x1f8] sm:$0xff]  }
 0x45f   : > { %18560 = vmatpush3.bf16.msra.mxu1 %v19427_v1  ;;  %18537 = vmatprep.subr.bf16.mxu0 %v19429_v9  ;;  %v13201_v37 = vor.u32 %v13200_v34, %v13196_v31  ;;  %v13207_v1 = vshrl.u32 %v23936_v52, 16  ;;  %v13217_v52 = vor.u32 %v13215_v5, %v13213_v32  ;;  %v10865_v22 = vadd.f32 %v23996_v46, %v23968_v12 }
 0x460   : > { %18561 = vmatprep.subr.bf16.mxu1 %v19430_v59  ;;  %v24005_v20 = vpop.f32.mrf.mxu0  ;;  %v24007_v54 = vpop.f32.mrf.mxu1 }
 0x461   : > { %v13206_v7 = vsel %vm1100_vm1, %v13201_v37, %v13205_v62  ;;  %v13209_v51 = vor.u32 %v13207_v1, %v13205_v62  ;;  %v19466_v1 = vld [vmem:[%s24288_s2 + $0x108] sm:$0xff]  }
 0x462   : > { %18538 = vmatpush3.bf16.msra.mxu0 %v19429_v9  ;;  %v13221_v9 = vrot.slane %v13219_v63, 1  ;;  %v24015_v55 = vpop.f32.mrf.mxu0  ;;  %v24017_v26 = vpop.f32.mrf.mxu1 }
 0x463   : > { %18562 = vmatpush3.bf16.msra.mxu1 %v19430_v59  ;;  %18539 = vmatprep.subr.bf16.mxu0 %v19433_v4  ;;  %24750 = vst [vmem:[#allocation31_spill] sm:$0xff] %v24015_v55  ;;  %v13227_v59 = vshll.u32 %v19455_v53, 16  ;;  %v13214_v38 = vsel %vm1100_vm1, %v13209_v51, %v13213_v32  ;;  %v19465_v32 = vld [vmem:[%s24288_s2 + $0x1d0] sm:$0xff]   ;;  %v19468_v51 = vld [vmem:[%s24288_s2 + $0x100] sm:$0xff]   ;;  %v10868_v12 = vadd.f32 %v24017_v26, %v23984_v6 }
 0x464   : > { %18508 = vmatmul.mubr.bf16.gmra.mxu0 %v12893_v33  ;;  %18563 = vmatprep.subr.bf16.mxu1 %v19434_v57  ;;  %v13222_v34 = vsel %vm1100_vm1, %v13217_v52, %v13221_v9  ;;  %v24027_v27 = vpop.f32.mrf.mxu0  ;;  %v24030_v62 = vpop.f32.mrf.mxu1  ;;  %v19457_v33 = vld [vmem:[%s24288_s2 + $0x128] sm:$0xff]   ;;  %v19469_v52 = vld [vmem:[%s24288_s2 + $0x1c0] sm:$0xff]  }
 0x465   : > { %18532 = vmatmul.mubr.bf16.gmra.mxu1 %v13031_v0  ;;  %18551 = vmatprep.mubr.bf16.mxu0 %v13206_v7  ;;  %24751 = vst [vmem:[#allocation51_spill] sm:$0xff] %v24027_v27  ;;  %v13229_v31 = vrot.slane %v13227_v59, 1 }
 0x466   : > { %18540 = vmatpush3.bf16.msra.mxu0 %v19433_v4  ;;  %18575 = vmatprep.mubr.bf16.mxu1 %v15765_v49  ;;  %v24752_v4 = vld [vmem:[#allocation26_spill] sm:$0xff]  ;;  %v24042_v7 = vpop.f32.mrf.mxu1  ;;  %v19461_v49 = vld [vmem:[%s24288_s2 + $0x1e0] sm:$0xff]  }
 0x467   : > { %18564 = vmatpush3.bf16.msra.mxu1 %v19434_v57  ;;  %18541 = vmatprep.subr.bf16.mxu0 %v19438_v16  ;;  %v13225_v57 = vor.u32 %v13223_v17, %v13221_v9 }
 0x468   : > { %18565 = vmatprep.subr.bf16.mxu1 %v19439_v36 }
 0x469   : > { %v13230_v0 = vsel %vm1100_vm1, %v13225_v57, %v13229_v31  ;;  %v24766_v57 = vld [vmem:[#allocation53_spill] sm:$0xff] }
 0x46a   : > { %18542 = vmatpush3.bf16.msra.mxu0 %v19438_v16  ;;  %v19458_v16 = vld [vmem:[%s24288_s2 + $0x1e8] sm:$0xff]  }
 0x46b   : > { %18566 = vmatpush3.bf16.msra.mxu1 %v19439_v36  ;;  %18543 = vmatprep.subr.bf16.mxu0 %v19440_v30  ;;  %v24754_v36 = vld [vmem:[#allocation47_spill] sm:$0xff]  ;;  %v24767_v31 = vld [vmem:[#allocation45_spill] sm:$0xff] }
 0x46c   : > { %18567 = vmatprep.subr.bf16.mxu1 %v19441_v25 }
 0x46e   : > { %18544 = vmatpush3.bf16.msra.mxu0 %v19440_v30  ;;  %v24054_v30 = vpop.f32.mrf.mxu1 }
 0x46f   : > { %18568 = vmatpush3.bf16.msra.mxu1 %v19441_v25  ;;  %18545 = vmatprep.subr.bf16.mxu0 %v19442_v14  ;;  %24755 = vst [vmem:[#allocation14_spill] sm:$0xff] %v24054_v30  ;;  %v24756_v25 = vld [vmem:[#allocation11_spill] sm:$0xff] }
 0x470   : > { %18569 = vmatprep.subr.bf16.mxu1 %v19443_v24  ;;  %v24067_v56 = vpop.f32.mrf.mxu1 }
 0x471   : > { %24759 = vst [vmem:[#allocation52_spill] sm:$0xff] %v24067_v56 }
 0x472   : > { %18546 = vmatpush3.bf16.msra.mxu0 %v19442_v14  ;;  %v24757_v14 = vld [vmem:[#allocation27_spill] sm:$0xff] }
 0x473   : > { %18570 = vmatpush3.bf16.msra.mxu1 %v19443_v24  ;;  %18547 = vmatprep.subr.bf16.mxu0 %v19444_v15  ;;  %v24758_v24 = vcombine.low %v24756_v25, %v24757_v14 }
 0x474   : > { %18571 = vmatprep.subr.bf16.mxu1 %v19445_v41 }
 0x476   : > { %18548 = vmatpush3.bf16.msra.mxu0 %v19444_v15  ;;  %v19462_v15 = vld [vmem:[%s24288_s2 + $0x118] sm:$0xff]  }
 0x477   : > { %18572 = vmatpush3.bf16.msra.mxu1 %v19445_v41  ;;  %18549 = vmatprep.subr.bf16.mxu0 %v19446_v35  ;;  %v24033_v37 = vpop.f32.mrf.mxu0  ;;  %v19463_v41 = vld [vmem:[%s24288_s2 + $0x1d8] sm:$0xff]  }
 0x478   : > { %18573 = vmatprep.subr.bf16.mxu1 %v19447_v10 }
 0x479   : > { %v24044_v40 = vpop.f32.mrf.mxu0 }
 0x47a   : > { %18550 = vmatpush3.bf16.msra.mxu0 %v19446_v35  ;;  %v19464_v35 = vld [vmem:[%s24288_s2 + $0x110] sm:$0xff]   ;;  %v11104_v11 = vadd.f32 %v24044_v40, %v10865_v22 }
 0x47b   : > { %18574 = vmatpush3.bf16.msra.mxu1 %v19447_v10  ;;  %18583 = vmatprep.subr.bf16.mxu0 %v19449_v43  ;;  %v24059_v8 = vpop.f32.mrf.mxu0  ;;  %v18289_v10 = vpop.f32.mrf.mxu1 }
 0x47c   : > { %18607 = vmatprep.subr.bf16.mxu1 %v19450_v19  ;;  %v11112_v22 = vmul.f32 %v11104_v11, %v24663_v61 }
 0x47d   : > { %18552 = vmatmul.mubr.bf16.vlgmr.msra.gmra.mxu0 %v13214_v38  ;;  %v24069_v3 = vpop.f32.mrf.mxu0  ;;  %v11309_v53 = vpop.f32.mrf.mxu1 }
 0x47e   : > { %18576 = vmatmul.mubr.bf16.vlgmr.msra.gmra.mxu1 %v24752_v4  ;;  %18555 = vmatprep.mubr.bf16.mxu0 %v13222_v34  ;;  %24760 = vst [vmem:[#allocation21_spill] sm:$0xff] %v24069_v3  ;;  %v24763_v34 = vld [vmem:[#allocation16_spill] sm:$0xff] }
 0x47f   : > { %18579 = vmatprep.mubr.bf16.mxu1 %v24753_v58  ;;  %18584 = vmatpush3.bf16.msra.mxu0 %v19449_v43  ;;  %v24077_v63 = vpop.f32.mrf.mxu0  ;;  %v19467_v43 = vld [vmem:[%s24288_s2 + $0x1c8] sm:$0xff]  }
 0x480   : > { %18608 = vmatpush3.bf16.msra.mxu1 %v19450_v19  ;;  %18585 = vmatprep.subr.bf16.mxu0 %v19453_v21  ;;  %v18290_v19 = vpop.f32.mrf.mxu1 }
 0x481   : > { %18609 = vmatprep.subr.bf16.mxu1 %v19454_v60  ;;  %v24085_v5 = vpop.f32.mrf.mxu0 }
 0x482   : > { %v11312_v17 = vpop.f32.mrf.mxu1 }
 0x483   : > { %18586 = vmatpush3.bf16.msra.mxu0 %v19453_v21  ;;  %v24093_v9 = vpop.f32.mrf.mxu0 }
 0x484   : > { %18610 = vmatpush3.bf16.msra.mxu1 %v19454_v60  ;;  %18587 = vmatprep.subr.bf16.mxu0 %v19457_v33  ;;  %24761 = vst [vmem:[#allocation37_spill] sm:$0xff] %v24093_v9  ;;  %v18293_v38 = vpop.f32.mrf.mxu1  ;;  %v24764_v60 = vld [vmem:[#allocation18_spill] sm:$0xff] }
 0x485   : > { %18556 = vmatmul.mubr.bf16.gmra.mxu0 %v13230_v0  ;;  %18611 = vmatprep.subr.bf16.mxu1 %v19458_v16  ;;  %v24095_v59 = vpop.f32.mrf.mxu0 }
 0x486   : > { %18580 = vmatmul.mubr.bf16.gmra.mxu1 %v24754_v36  ;;  %18599 = vmatprep.mubr.bf16.mxu0 %v24752_v4  ;;  %24762 = vst [vmem:[#allocation10_spill] sm:$0xff] %v24095_v59  ;;  %v24765_v4 = vcombine.low %v24763_v34, %v24764_v60 }
 0x487   : > { %18588 = vmatpush3.bf16.msra.mxu0 %v19457_v33  ;;  %18623 = vmatprep.mubr.bf16.mxu1 %v24758_v24  ;;  %v24768_v33 = vcombine.low %v24766_v57, %v24767_v31  ;;  %v24769_v24 = vld [vmem:[#allocation55_spill] sm:$0xff] }
 0x488   : > { %18612 = vmatpush3.bf16.msra.mxu1 %v19458_v16  ;;  %18589 = vmatprep.subr.bf16.mxu0 %v19460_v18  ;;  %v11325_v16 = vpop.f32.mrf.mxu1 }
 0x489   : > { %18613 = vmatprep.subr.bf16.mxu1 %v19461_v49 }
 0x48a   : > { %v18294_v25 = vpop.f32.mrf.mxu1 }
 0x48b   : > { %18590 = vmatpush3.bf16.msra.mxu0 %v19460_v18  ;;  %v19576_v18 = vld [vmem:[#allocation3 + $0x90] sm:$0xf] }
 0x48c   : > { %18614 = vmatpush3.bf16.msra.mxu1 %v19461_v49  ;;  %18591 = vmatprep.subr.bf16.mxu0 %v19462_v15  ;;  %v15821_v49 = vcombine.low %v19576_v18, %v23658_v42 }
 0x48d   : > { %18615 = vmatprep.subr.bf16.mxu1 %v19463_v41 }
 0x48f   : > { %18592 = vmatpush3.bf16.msra.mxu0 %v19462_v15  ;;  %v24770_v15 = vld [vmem:[#allocation23_spill] sm:$0xff] }
 0x490   : > { %18616 = vmatpush3.bf16.msra.mxu1 %v19463_v41  ;;  %18593 = vmatprep.subr.bf16.mxu0 %v19464_v35  ;;  %v11328_v41 = vpop.f32.mrf.mxu1 }
 0x491   : > { %18617 = vmatprep.subr.bf16.mxu1 %v19465_v32 }
 0x493   : > { %18594 = vmatpush3.bf16.msra.mxu0 %v19464_v35 }
 0x494   : > { %18618 = vmatpush3.bf16.msra.mxu1 %v19465_v32  ;;  %18595 = vmatprep.subr.bf16.mxu0 %v19466_v1 }
 0x495   : > { %18619 = vmatprep.subr.bf16.mxu1 %v19467_v43 }
 0x497   : > { %18596 = vmatpush3.bf16.msra.mxu0 %v19466_v1 }
 0x498   : > { %18620 = vmatpush3.bf16.msra.mxu1 %v19467_v43  ;;  %18597 = vmatprep.subr.bf16.mxu0 %v19468_v51  ;;  %v18313_v21 = vpop.f32.mrf.mxu0 }
 0x499   : > { %18621 = vmatprep.subr.bf16.mxu1 %v19469_v52  ;;  %v18337_v32 = vpop.f32.mrf.mxu1 }
 0x49a   : > { %v11445_v0 = vpop.f32.mrf.mxu0 }
 0x49b   : > { %18598 = vmatpush3.bf16.msra.mxu0 %v19468_v51  ;;  %v11646_v1 = vpop.f32.mrf.mxu1  ;;  %v11446_v56 = vadd.f32 %v11445_v0, %v11309_v53 }
 0x49c   : > { %18622 = vmatpush3.bf16.msra.mxu1 %v19469_v52  ;;  %v18314_v14 = vpop.f32.mrf.mxu0 }
 0x49d   : > { %v18338_v51 = vpop.f32.mrf.mxu1  ;;  %v11457_v59 = vadd.f32 %v18314_v14, %v18290_v19  ;;  %v10876_v19 = vadd.f32 %v24007_v54, %v23976_v13 }
 0x49e   : > { %18600 = vmatmul.mubr.bf16.vlgmr.msra.gmra.mxu0 %v24753_v58  ;;  %v24771_v58 = vcombine.low %v24769_v24, %v24770_v15  ;;  %v11448_v35 = vpop.f32.mrf.mxu0 }
 0x49f   : > { %18624 = vmatmul.mubr.bf16.vlgmr.msra.gmra.mxu1 %v24765_v4  ;;  %18603 = vmatprep.mubr.bf16.mxu0 %v24754_v36  ;;  %v11649_v34 = vpop.f32.mrf.mxu1  ;;  %v11449_v27 = vadd.f32 %v11448_v35, %v11312_v17  ;;  %v11680_v30 = vadd.f32 %v18338_v51, %v11457_v59  ;;  %v11107_v54 = vadd.f32 %v24059_v8, %v10876_v19  ;;  %v24776_v51 = vld [vmem:[#allocation7_spill] sm:$0xff] }
 0x4a0   : > { %18627 = vmatprep.mubr.bf16.mxu1 %v24768_v33  ;;  %v18317_v36 = vpop.f32.mrf.mxu0 }
 0x4a1   : > { %v18341_v4 = vpop.f32.mrf.mxu1  ;;  %v11688_v40 = vmul.f32 %v11680_v30, %v24664_v50 }
 0x4a2   : > { %v11461_v43 = vpop.f32.mrf.mxu0 }
 0x4a3   : > { %v11662_v42 = vpop.f32.mrf.mxu1 }
 0x4a4   : > { %v18318_v52 = vpop.f32.mrf.mxu0 }
 0x4a5   : > { %v18342_v33 = vpop.f32.mrf.mxu1  ;;  %v11473_v46 = vadd.f32 %v18318_v52, %v18294_v25 }
 0x4a6   : > { %18604 = vmatmul.mubr.bf16.gmra.mxu0 %v24771_v58  ;;  %v11464_v60 = vpop.f32.mrf.mxu0  ;;  %v11454_v58 = vadd.f32 %v18313_v21, %v18289_v10 }
 0x4a7   : > { %18628 = vmatmul.mubr.bf16.gmra.mxu1 %v15821_v49  ;;  %v11665_v2 = vpop.f32.mrf.mxu1  ;;  %v10873_v49 = vadd.f32 %v23986_v28, %v23955_v48  ;;  %v11677_v48 = vadd.f32 %v11646_v1, %v11446_v56  ;;  %v11678_v28 = vadd.f32 %v11649_v34, %v11449_v27  ;;  %v10881_v27 = vadd.f32 %v24042_v7, %v24005_v20  ;;  %v24775_v1 = vld [vmem:[#allocation5_spill] sm:$0xff] }
 0x4a8   : > { %v11679_v39 = vadd.f32 %v18337_v32, %v11454_v58  ;;  %v11470_v56 = vadd.f32 %v18317_v36, %v18293_v38  ;;  %v11465_v17 = vadd.f32 %v11464_v60, %v11328_v41  ;;  %v11684_v30 = vadd.f32 %v18342_v33, %v11473_v46  ;;  %v24773_v32 = vld [vmem:[#allocation31_spill] sm:$0xff]  ;;  %v24777_v34 = vld [vmem:[#allocation13_spill] sm:$0xff] }
 0x4a9   : > { %v11106_v9 = vadd.f32 %v24033_v37, %v10873_v49  ;;  %v10889_v37 = vadd.f32 %v24030_v62, %v23994_v23  ;;  %v11686_v6 = vmul.f32 %v11678_v28, %v24731_v45  ;;  %v11693_v59 = vadd.f32 %v11677_v48, %v11112_v22  ;;  %v24780_v49 = vld [vmem:[#allocation37_spill] sm:$0xff]  ;;  %v24781_v48 = vld [vmem:[#allocation22_spill] sm:$0xff] }
 0x4aa   : > { %v11108_v62 = vadd.f32 %v24085_v5, %v10881_v27  ;;  %v11696_v38 = vadd.f32 %v11688_v40, %v11107_v54  ;;  %v11683_v21 = vadd.f32 %v18341_v4, %v11470_v56  ;;  %v11682_v8 = vadd.f32 %v11665_v2, %v11465_v17  ;;  %v24774_v5 = vld [vmem:[#allocation14_spill] sm:$0xff]  ;;  %v16031_v4 = vld [vmem:[%s19659_s16 + $0x40] sm:$0xff]  }
 0x4ab   : > { %v11114_v3 = vmul.f32 %v11106_v9, %v20358_v44  ;;  %v11462_v9 = vadd.f32 %v11461_v43, %v11325_v16  ;;  %v11110_v11 = vadd.f32 %v24077_v63, %v10889_v37  ;;  %v10892_v36 = vadd.f32 %v24774_v5, %v24773_v32  ;;  %v24779_v2 = vld [vmem:[#allocation52_spill] sm:$0xff] }
 0x4ac   : > { %v11116_v52 = vmul.f32 %v11108_v62, %v24776_v51  ;;  %v11692_v60 = vmul.f32 %v11684_v30, %v24777_v34  ;;  %v11690_v28 = vmul.f32 %v11682_v8, %v24781_v48  ;;  %v24782_v40 = vld [vmem:[#allocation12_spill] sm:$0xff]  ;;  %v15978_v56 = vunpack.c.l.bf16 %v16031_v4 }
 0x4ad   : > { %v11695_v53 = vadd.f32 %v11679_v39, %v11114_v3  ;;  %v24133_v39 = vld [vmem:[%s19659_s16 + $0x48] sm:$0xff]   ;;  %v11681_v16 = vadd.f32 %v11662_v42, %v11462_v9  ;;  %v11118_v43 = vmul.f32 %v11110_v11, %v24775_v1  ;;  %v24778_v42 = vld [vmem:[#allocation51_spill] sm:$0xff]  ;;  %v11111_v58 = vadd.f32 %v24780_v49, %v10892_v36  ;;  %v24783_v9 = vld [vmem:[#allocation10_spill] sm:$0xff] }
 0x4ae   : > { %v24772_v3 = vld [vmem:[#allocation21_spill] sm:$0xff]  ;;  %v15982_v63 = vunpack.c.l.bf16 %v24133_v39  ;;  %v16034_v36 = vld [vmem:[%s19659_s16 + $0x58] sm:$0xff]  }
 0x4af   : > { %v11105_v20 = vadd.f32 %v24772_v3, %v10868_v12  ;;  %v11699_v19 = vadd.f32 %v11683_v21, %v11118_v43  ;;  %v11697_v12 = vadd.f32 %v11681_v16, %v11116_v52  ;;  %v16033_v43 = vld [vmem:[%s19659_s16 + $0x50] sm:$0xff]  }
 0x4b1   : > { %v11694_v41 = vadd.f32 %v11686_v6, %v11105_v20  ;;  %v15983_v20 = vunpack.c.h.bf16 %v24133_v39 }
 0x4b9   : > { %v18361_v57 = vpop.f32.mrf.mxu0 }
 0x4ba   : > { %v18385_v15 = vpop.f32.mrf.mxu1  ;;  %v11840_v26 = vadd.f32 %v18361_v57, %v11695_v53 }
 0x4bb   : > { %v11807_v31 = vpop.f32.mrf.mxu0 }
 0x4bc   : > { %v11946_v29 = vpop.f32.mrf.mxu1  ;;  %v11838_v7 = vadd.f32 %v11807_v31, %v11693_v59  ;;  %v11979_v25 = vadd.f32 %v18385_v15, %v11840_v26  ;;  %v10884_v31 = vadd.f32 %v24779_v2, %v24778_v42  ;;  %v24784_v59 = vld [vmem:[#allocation44_spill] sm:$0xff] }
 0x4bd   : > { %v18362_v18 = vpop.f32.mrf.mxu0 }
 0x4be   : > { %v18386_v10 = vpop.f32.mrf.mxu1  ;;  %v11841_v14 = vadd.f32 %v18362_v18, %v11696_v38  ;;  %v11977_v33 = vadd.f32 %v11946_v29, %v11838_v7  ;;  %v11109_v17 = vadd.f32 %v24783_v9, %v10884_v31 }
 0x4bf   : > { %v11810_v24 = vpop.f32.mrf.mxu0 }
 0x4c0   : > { %v11949_v23 = vpop.f32.mrf.mxu1  ;;  %v11839_v18 = vadd.f32 %v11810_v24, %v11694_v41  ;;  %v11980_v37 = vadd.f32 %v18386_v10, %v11841_v14  ;;  %v11700_v24 = vadd.f32 %v11692_v60, %v11111_v58  ;;  %v11698_v10 = vadd.f32 %v11690_v28, %v11109_v17 }
 0x4c1   : > { %v24111_v47 = vpop.f32.mrf.mxu0  ;;  %v15979_v14 = vunpack.c.h.bf16 %v16031_v4 }
 0x4c2   : > { %v18389_v35 = vpop.f32.mrf.mxu1  ;;  %v11844_v54 = vadd.f32 %v24111_v47, %v11699_v19  ;;  %v11978_v26 = vadd.f32 %v11949_v23, %v11839_v18  ;;  %v15986_v18 = vunpack.c.l.bf16 %v16033_v43 }
 0x4c3   : > { %v11823_v55 = vpop.f32.mrf.mxu0 }
 0x4c4   : > { %v11962_v22 = vpop.f32.mrf.mxu1  ;;  %v11842_v29 = vadd.f32 %v11823_v55, %v11697_v12  ;;  %v11983_v23 = vadd.f32 %v18389_v35, %v11844_v54 }
 0x4c5   : > { %v18366_v13 = vpop.f32.mrf.mxu0 }
 0x4c6   : > { %v11845_v3 = vadd.f32 %v18366_v13, %v11700_v24  ;;  %v18390_v38 = vpop.f32.mrf.mxu1  ;;  %v11981_v8 = vadd.f32 %v11962_v22, %v11842_v29 }
 0x4c7   : > { %v11826_v0 = vpop.f32.mrf.mxu0 }
 0x4da   : > { %v18409_v57 = vpop.f32.mrf.mxu0 }
 0x4db   : > { %v12124_v15 = vadd.f32 %v18409_v57, %v11979_v25  ;;  %v11843_v25 = vadd.f32 %v11826_v0, %v11698_v10  ;;  %v11965_v57 = vpop.f32.mrf.mxu1 }
 0x4dc   : > { %v12091_v46 = vpop.f32.mrf.mxu0 }
 0x4dd   : > { %v12132_v53 = vmul.f32 %v24782_v40, %v12124_v15  ;;  %v12122_v27 = vadd.f32 %v12091_v46, %v11977_v33  ;;  %v11982_v2 = vadd.f32 %v11965_v57, %v11843_v25  ;;  %v15990_v33 = vunpack.c.l.bf16 %v16034_v36  ;;  %v24162_v49 = vpop.f32.mrf.mxu1 }
 0x4de   : > { %v18410_v6 = vpop.f32.mrf.mxu0 }
 0x4df   : > { %v12140_v11 = vadd.f32 %v24784_v59, %v12132_v53  ;;  %v12130_v62 = vmul.f32 %v24782_v40, %v12122_v27  ;;  %v12125_v30 = vadd.f32 %v18410_v6, %v11980_v37  ;;  %v15991_v37 = vunpack.c.h.bf16 %v16034_v36  ;;  %v24170_v54 = vpop.f32.mrf.mxu1 }
 0x4e0   : > { %v12094_v7 = vpop.f32.mrf.mxu0 }
 0x4e1   : > { %v12164_v21 = vadd.f32 %v15982_v63, %v12140_v11  ;;  %v12138_v47 = vadd.f32 %v24784_v59, %v12130_v62  ;;  %v12133_v55 = vmul.f32 %v24782_v40, %v12125_v30  ;;  %v12123_v16 = vadd.f32 %v12094_v7, %v11978_v26  ;;  %v24177_v10 = vpop.f32.mrf.mxu1 }
 0x4e2   : > { %v18413_v41 = vpop.f32.mrf.mxu0  ;;  %v11984_v63 = vadd.f32 %v18390_v38, %v11845_v3  ;;  %v15987_v26 = vunpack.c.h.bf16 %v16033_v43 }
 0x4e3   : > { %v12172_v13 = vmax.f32 %v12164_v21, 0.0  ;;  %v12162_v32 = vadd.f32 %v15978_v56, %v12138_v47  ;;  %v12141_v39 = vadd.f32 %v24784_v59, %v12133_v55  ;;  %v12131_v5 = vmul.f32 %v24782_v40, %v12123_v16  ;;  %v24181_v21 = vpop.f32.mrf.mxu1 }
 0x4e4   : > { %v12128_v52 = vadd.f32 %v18413_v41, %v11983_v23  ;;  %v12107_v60 = vpop.f32.mrf.mxu0 }
 0x4e5   : > { %12180 = vst [vmem:[%s23314_s10 + $0x90] sm:$0xff] %v12172_v13  ;;  %v12170_v42 = vmax.f32 %v12162_v32, 0.0  ;;  %v12165_v35 = vadd.f32 %v15983_v20, %v12141_v39  ;;  %v12139_v0 = vadd.f32 %v24784_v59, %v12131_v5  ;;  %v12126_v4 = vadd.f32 %v12107_v60, %v11981_v8  ;;  %v24184_v47 = vpop.f32.mrf.mxu1 }
 0x4e6   : > { %v12136_v31 = vmul.f32 %v24782_v40, %v12128_v52  ;;  %v18414_v15 = vpop.f32.mrf.mxu0 }
 0x4e7   : > { %12178 = vst [vmem:[%s23314_s10 + $0x80] sm:$0xff] %v12170_v42  ;;  %v12173_v58 = vmax.f32 %v12165_v35, 0.0  ;;  %v12163_v28 = vadd.f32 %v15979_v14, %v12139_v0  ;;  %v12134_v19 = vmul.f32 %v24782_v40, %v12126_v4  ;;  %v12129_v12 = vadd.f32 %v18414_v15, %v11984_v63 }
 0x4e8   : > { %v12144_v46 = vadd.f32 %v24784_v59, %v12136_v31  ;;  %v12110_v22 = vpop.f32.mrf.mxu0 }
 0x4e9   : > { %12181 = vst [vmem:[%s23314_s10 + $0x98] sm:$0xff] %v12173_v58  ;;  %v12171_v53 = vmax.f32 %v12163_v28, 0.0  ;;  %v12142_v27 = vadd.f32 %v24784_v59, %v12134_v19  ;;  %v12137_v56 = vmul.f32 %v24782_v40, %v12129_v12  ;;  %v12127_v9 = vadd.f32 %v12110_v22, %v11982_v2 }
 0x4ea   : > { %v12168_v17 = vadd.f32 %v15990_v33, %v12144_v46 }
 0x4eb   : > { %12179 = vst [vmem:[%s23314_s10 + $0x88] sm:$0xff] %v12171_v53  ;;  %v12166_v29 = vadd.f32 %v15986_v18, %v12142_v27  ;;  %v12145_v24 = vadd.f32 %v24784_v59, %v12137_v56  ;;  %v12135_v6 = vmul.f32 %v24782_v40, %v12127_v9  ;;  %v24186_v40 = vpop.f32.mrf.mxu1 }
 0x4ec   : > { %v12176_v11 = vmax.f32 %v12168_v17, 0.0 }
 0x4ed   : > { %v12174_v62 = vmax.f32 %v12166_v29, 0.0  ;;  %v12169_v30 = vadd.f32 %v15991_v37, %v12145_v24  ;;  %v12143_v3 = vadd.f32 %v24784_v59, %v12135_v6  ;;  %v24188_v55 = vpop.f32.mrf.mxu1 }
 0x4ee   : > { %12184 = vst [vmem:[%s23314_s10 + $0xb0] sm:$0xff] %v12176_v11 }
 0x4ef   : > { %12182 = vst [vmem:[%s23314_s10 + $0xa0] sm:$0xff] %v12174_v62  ;;  %v12177_v20 = vmax.f32 %v12169_v30, 0.0  ;;  %v12167_v7 = vadd.f32 %v15987_v26, %v12143_v3  ;;  %v24190_v16 = vpop.f32.mrf.mxu1 }
 0x4f0   : > { %24785 = vst [vmem:[#allocation42_spill] sm:$0xff] %v24190_v16 }
 0x4f1   : > { %12185 = vst [vmem:[%s23314_s10 + $0xb8] sm:$0xff] %v12177_v20  ;;  %v12175_v38 = vmax.f32 %v12167_v7, 0.0 }
 0x4f3   : > { %12183 = vst [vmem:[%s23314_s10 + $0xa8] sm:$0xff] %v12175_v38 }
 0x4fb   : > { %v18457_v59 = vpop.f32.mrf.mxu0 }
 0x4fc   : > { %v18481_v23 = vpop.f32.mrf.mxu1  ;;  %v12544_v26 = vadd.f32 %v18457_v59, %v24162_v49 }
 0x4fd   : > { %v12535_v8 = vpop.f32.mrf.mxu0 }
 0x4fe   : > { %v12744_v25 = vpop.f32.mrf.mxu1  ;;  %v12536_v62 = vadd.f32 %v12535_v8, %v24170_v54  ;;  %v12777_v3 = vadd.f32 %v18481_v23, %v12544_v26 }
 0x4ff   : > { %v18458_v14 = vpop.f32.mrf.mxu0 }
 0x500   : > { %v18482_v41 = vpop.f32.mrf.mxu1  ;;  %v12547_v49 = vadd.f32 %v18458_v14, %v24177_v10 }
 0x501   : > { %v12538_v13 = vpop.f32.mrf.mxu0 }
 0x502   : > { %v24192_v32 = vpop.f32.mrf.mxu1 }
 0x503   : > { %v18461_v39 = vpop.f32.mrf.mxu0 }
 0x504   : > { %v18485_v5 = vpop.f32.mrf.mxu1  ;;  %v12560_v23 = vadd.f32 %v18461_v39, %v24184_v47 }
 0x505   : > { %v12551_v36 = vpop.f32.mrf.mxu0 }
 0x506   : > { %v24194_v43 = vpop.f32.mrf.mxu1  ;;  %v12781_v14 = vadd.f32 %v18485_v5, %v12560_v23  ;;  %v24229_v5 = vld [vmem:[%s19659_s16 + $0x68] sm:$0xff]  }
 0x507   : > { %v24196_v63 = vpop.f32.mrf.mxu0 }
 0x508   : > { %v24198_v52 = vpop.f32.mrf.mxu1 }
 0x509   : > { %24786 = vst [vmem:[#allocation41_spill] sm:$0xff] %v24198_v52  ;;  %v24200_v60 = vpop.f32.mrf.mxu0 }
 0x50a   : > { %24787 = vst [vmem:[#allocation49_spill] sm:$0xff] %v24200_v60  ;;  %v24202_v57 = vpop.f32.mrf.mxu1 }
 0x50b   : > { %24788 = vst [vmem:[#allocation38_spill] sm:$0xff] %v24202_v57  ;;  %v12775_v57 = vadd.f32 %v12744_v25, %v12536_v62  ;;  %v12552_v25 = vadd.f32 %v12551_v36, %v24186_v40 }
 0x50d   : > { %v12783_v8 = vmul.f32 %v12775_v57, %v24663_v61  ;;  %v12779_v40 = vadd.f32 %v24194_v43, %v12552_v25  ;;  %v12789_v43 = vmul.f32 %v12781_v14, %v24775_v1  ;;  %v24795_v1 = vld [vmem:[#allocation22_spill] sm:$0xff] }
 0x51c   : > { %v18505_v42 = vpop.f32.mrf.mxu0 }
 0x51d   : > { %v18529_v35 = vpop.f32.mrf.mxu1 }
 0x51e   : > { %v12980_v0 = vpop.f32.mrf.mxu0  ;;  %v13125_v20 = vadd.f32 %v18529_v35, %v18505_v42  ;;  %v12539_v42 = vadd.f32 %v12538_v13, %v24181_v21 }
 0x51f   : > { %v13116_v4 = vpop.f32.mrf.mxu1 }
 0x520   : > { %v18506_v2 = vpop.f32.mrf.mxu0  ;;  %v13117_v48 = vadd.f32 %v13116_v4, %v12980_v0  ;;  %v12776_v21 = vadd.f32 %v24192_v32, %v12539_v42 }
 0x521   : > { %v18530_v31 = vpop.f32.mrf.mxu1 }
 0x522   : > { %v12983_v33 = vpop.f32.mrf.mxu0  ;;  %v13128_v7 = vadd.f32 %v18530_v31, %v18506_v2 }
 0x523   : > { %v13119_v18 = vpop.f32.mrf.mxu1 }
 0x524   : > { %v18509_v15 = vpop.f32.mrf.mxu0  ;;  %v13120_v52 = vadd.f32 %v13119_v18, %v12983_v33  ;;  %v24790_v18 = vld [vmem:[#allocation42_spill] sm:$0xff] }
 0x525   : > { %v18533_v58 = vpop.f32.mrf.mxu1 }
 0x526   : > { %v12996_v28 = vpop.f32.mrf.mxu0  ;;  %v13141_v61 = vadd.f32 %v18533_v58, %v18509_v15  ;;  %v24791_v15 = vld [vmem:[#allocation49_spill] sm:$0xff] }
 0x527   : > { %v13132_v19 = vpop.f32.mrf.mxu1  ;;  %v12555_v58 = vadd.f32 %v24791_v15, %v24790_v18 }
 0x528   : > { %v18510_v12 = vpop.f32.mrf.mxu0 }
 0x529   : > { %v18534_v46 = vpop.f32.mrf.mxu1 }
 0x52a   : > { %v12999_v37 = vpop.f32.mrf.mxu0  ;;  %v13144_v2 = vadd.f32 %v18534_v46, %v18510_v12  ;;  %v24792_v46 = vld [vmem:[#allocation13_spill] sm:$0xff] }
 0x52b   : > { %v13135_v22 = vpop.f32.mrf.mxu1 }
 0x53d   : > { %v18553_v53 = vpop.f32.mrf.mxu0 }
 0x53e   : > { %v18577_v27 = vpop.f32.mrf.mxu1  ;;  %v13350_v51 = vadd.f32 %v18553_v53, %v13125_v20 }
 0x53f   : > { %v13317_v56 = vpop.f32.mrf.mxu0 }
 0x540   : > { %v13478_v9 = vpop.f32.mrf.mxu1  ;;  %v13348_v59 = vadd.f32 %v13317_v56, %v13117_v48  ;;  %v24793_v56 = vld [vmem:[#allocation7_spill] sm:$0xff] }
 0x541   : > { %v18554_v17 = vpop.f32.mrf.mxu0 }
 0x542   : > { %v18578_v29 = vpop.f32.mrf.mxu1  ;;  %v13351_v34 = vadd.f32 %v18554_v17, %v13128_v7  ;;  %v13364_v31 = vadd.f32 %v13348_v59, %v12783_v8  ;;  %v24794_v17 = vld [vmem:[#allocation41_spill] sm:$0xff]  ;;  %v24797_v59 = vld [vmem:[#allocation38_spill] sm:$0xff] }
 0x543   : > { %v13320_v24 = vpop.f32.mrf.mxu0 }
 0x544   : > { %v24204_v6 = vpop.f32.mrf.mxu1  ;;  %v13349_v16 = vadd.f32 %v13320_v24, %v13120_v52  ;;  %v13359_v0 = vmul.f32 %v13351_v34, %v24664_v50  ;;  %v13136_v52 = vadd.f32 %v13135_v22, %v12999_v37  ;;  %v12563_v34 = vadd.f32 %v24196_v63, %v24188_v55 }
 0x545   : > { %24789 = vst [vmem:[#allocation43_spill] sm:$0xff] %v24204_v6  ;;  %v18557_v11 = vpop.f32.mrf.mxu0  ;;  %v12785_v6 = vmul.f32 %v12777_v3, %v20358_v44  ;;  %v12778_v44 = vadd.f32 %v18482_v41, %v12547_v49  ;;  %v13133_v41 = vadd.f32 %v13132_v19, %v12996_v28  ;;  %v13509_v36 = vadd.f32 %v13478_v9, %v13364_v31 }
 0x546   : > { %v24208_v30 = vpop.f32.mrf.mxu1  ;;  %v13357_v48 = vmul.f32 %v13349_v16, %v24731_v45  ;;  %v13354_v39 = vadd.f32 %v18557_v11, %v13141_v61  ;;  %v15998_v19 = vunpack.c.l.bf16 %v24229_v5  ;;  %v12787_v9 = vmul.f32 %v12779_v40, %v24793_v56 }
 0x547   : > { %v13333_v38 = vpop.f32.mrf.mxu0  ;;  %v13366_v35 = vadd.f32 %v13350_v51, %v12785_v6  ;;  %v13367_v13 = vadd.f32 %v13359_v0, %v12778_v44  ;;  %v12782_v24 = vadd.f32 %v24794_v17, %v12563_v34  ;;  %v15999_v61 = vunpack.c.h.bf16 %v24229_v5 }
 0x548   : > { %v24210_v60 = vpop.f32.mrf.mxu1  ;;  %v13365_v57 = vadd.f32 %v13357_v48, %v12776_v21  ;;  %v13352_v12 = vadd.f32 %v13333_v38, %v13133_v41  ;;  %v13370_v6 = vadd.f32 %v13354_v39, %v12789_v43 }
 0x549   : > { %v18558_v54 = vpop.f32.mrf.mxu0  ;;  %v13511_v51 = vadd.f32 %v18577_v27, %v13366_v35  ;;  %v13512_v63 = vadd.f32 %v18578_v29, %v13367_v13  ;;  %v16035_v27 = vld [vmem:[%s19659_s16 + $0x60] sm:$0xff]  }
 0x54a   : > { %v24219_v4 = vpop.f32.mrf.mxu1  ;;  %v13355_v47 = vadd.f32 %v18558_v54, %v13144_v2  ;;  %v24244_v29 = vld [vmem:[%s24289_s3 + $0x2] ss:$0 sm:$0xff]  ;;  %v12780_v54 = vadd.f32 %v24797_v59, %v12555_v58  ;;  %v13368_v8 = vadd.f32 %v13352_v12, %v12787_v9  ;;  %v15994_v42 = vunpack.c.l.bf16 %v16035_v27  ;;  %v24251_v35 = vld [vmem:[%s24289_s3 + $0x3] ss:$0 sm:$0xff] }
 0x54b   : > { %v13336_v10 = vpop.f32.mrf.mxu0  ;;  %v15995_v39 = vunpack.c.h.bf16 %v16035_v27 }
 0x54c   : > { %v24224_v50 = vpop.f32.mrf.mxu1  ;;  %v13353_v45 = vadd.f32 %v13336_v10, %v13136_v52  ;;  %v13363_v37 = vmul.f32 %v13355_v47, %v24792_v46  ;;  %v24796_v62 = vld [vmem:[#allocation43_spill] sm:$0xff]  ;;  %v13515_v10 = vadd.f32 %v24208_v30, %v13370_v6  ;;  %v13513_v34 = vadd.f32 %v24210_v60, %v13368_v8  ;;  %v16037_v46 = vld [vmem:[%s19659_s16 + $0x70] sm:$0xff]  }
 0x54d   : > { %v13510_v3 = vadd.f32 %v24796_v62, %v13365_v57 }
 0x54e   : > { %v13361_v26 = vmul.f32 %v13353_v45, %v24795_v1  ;;  %v13371_v23 = vadd.f32 %v13363_v37, %v12782_v24  ;;  %v16002_v24 = vunpack.c.l.bf16 %v16037_v46 }
 0x550   : > { %v13369_v14 = vadd.f32 %v13361_v26, %v12780_v54  ;;  %v13516_v41 = vadd.f32 %v24219_v4, %v13371_v23 }
 0x552   : > { %v13514_v43 = vadd.f32 %v24224_v50, %v13369_v14 }
 0x55e   : > { %v18601_v16 = vpop.f32.mrf.mxu0 }
 0x55f   : > { %v13650_v33 = vadd.f32 %v18601_v16, %v13511_v51  ;;  %v18625_v32 = vpop.f32.mrf.mxu1 }
 0x560   : > { %v13617_v55 = vpop.f32.mrf.mxu0 }
 0x561   : > { %v13795_v28 = vadd.f32 %v18625_v32, %v13650_v33  ;;  %v13648_v22 = vadd.f32 %v13617_v55, %v13509_v36  ;;  %v13762_v53 = vpop.f32.mrf.mxu1  ;;  %v16038_v33 = vld [vmem:[%s19659_s16 + $0x78] sm:$0xff]  }
 0x562   : > { %v18602_v11 = vpop.f32.mrf.mxu0 }
 0x563   : > { %v13803_v20 = vmul.f32 %v24244_v29, %v13795_v28  ;;  %v13793_v7 = vadd.f32 %v13762_v53, %v13648_v22  ;;  %v13651_v38 = vadd.f32 %v18602_v11, %v13512_v63  ;;  %v18626_v49 = vpop.f32.mrf.mxu1  ;;  %v16006_v28 = vunpack.c.l.bf16 %v16038_v33 }
 0x564   : > { %v13620_v25 = vpop.f32.mrf.mxu0  ;;  %v16007_v11 = vunpack.c.h.bf16 %v16038_v33 }
 0x565   : > { %v13811_v0 = vadd.f32 %v24251_v35, %v13803_v20  ;;  %v13801_v2 = vmul.f32 %v24244_v29, %v13793_v7  ;;  %v13796_v44 = vadd.f32 %v18626_v49, %v13651_v38  ;;  %v13649_v31 = vadd.f32 %v13620_v25, %v13510_v3  ;;  %v13765_v48 = vpop.f32.mrf.mxu1 }
 0x566   : > { %v18605_v52 = vpop.f32.mrf.mxu0  ;;  %v16003_v49 = vunpack.c.h.bf16 %v16037_v46 }
 0x567   : > { %v13835_v47 = vadd.f32 %v15998_v19, %v13811_v0  ;;  %v13809_v21 = vadd.f32 %v24251_v35, %v13801_v2  ;;  %v13804_v40 = vmul.f32 %v24244_v29, %v13796_v44  ;;  %v13794_v51 = vadd.f32 %v13765_v48, %v13649_v31  ;;  %v18629_v13 = vpop.f32.mrf.mxu1 }
 0x568   : > { %v13654_v45 = vadd.f32 %v18605_v52, %v13515_v10  ;;  %v13633_v30 = vpop.f32.mrf.mxu0 }
 0x569   : > { %v13843_v16 = vmax.f32 %v13835_v47, 0.0  ;;  %v13833_v5 = vadd.f32 %v15994_v42, %v13809_v21  ;;  %v13812_v36 = vadd.f32 %v24251_v35, %v13804_v40  ;;  %v13802_v57 = vmul.f32 %v24244_v29, %v13794_v51  ;;  %v13778_v32 = vpop.f32.mrf.mxu1 }
 0x56a   : > { %v13799_v18 = vadd.f32 %v18629_v13, %v13654_v45  ;;  %v13652_v15 = vadd.f32 %v13633_v30, %v13513_v34  ;;  %v18606_v60 = vpop.f32.mrf.mxu0 }
 0x56b   : > { %13851 = vst [vmem:[%s23314_s10 + $0xd0] sm:$0xff] %v13843_v16  ;;  %v13841_v4 = vmax.f32 %v13833_v5, 0.0  ;;  %v13836_v58 = vadd.f32 %v15999_v61, %v13812_v36  ;;  %v13810_v12 = vadd.f32 %v24251_v35, %v13802_v57  ;;  %v13655_v37 = vadd.f32 %v18606_v60, %v13516_v41  ;;  %v18630_v55 = vpop.f32.mrf.mxu1 }
 0x56c   : > { %v13807_v63 = vmul.f32 %v24244_v29, %v13799_v18  ;;  %v13797_v19 = vadd.f32 %v13778_v32, %v13652_v15  ;;  %v13636_v22 = vpop.f32.mrf.mxu0 }
 0x56d   : > { %13849 = vst [vmem:[%s23314_s10 + $0xc0] sm:$0xff] %v13841_v4  ;;  %v13844_v50 = vmax.f32 %v13836_v58, 0.0  ;;  %v13834_v53 = vadd.f32 %v15995_v39, %v13810_v12  ;;  %v13800_v27 = vadd.f32 %v18630_v55, %v13655_v37  ;;  %v13653_v56 = vadd.f32 %v13636_v22, %v13514_v43  ;;  %v13781_v6 = vpop.f32.mrf.mxu1 }
 0x56e   : > { %v13815_v9 = vadd.f32 %v24251_v35, %v13807_v63  ;;  %v13805_v17 = vmul.f32 %v24244_v29, %v13797_v19 }
 0x56f   : > { %13852 = vst [vmem:[%s23314_s10 + $0xd8] sm:$0xff] %v13844_v50  ;;  %v13842_v1 = vmax.f32 %v13834_v53, 0.0  ;;  %v13808_v26 = vmul.f32 %v24244_v29, %v13800_v27  ;;  %v13798_v62 = vadd.f32 %v13781_v6, %v13653_v56 }
 0x570   : > { %v13839_v3 = vadd.f32 %v16006_v28, %v13815_v9  ;;  %v13813_v20 = vadd.f32 %v24251_v35, %v13805_v17 }
 0x571   : > { %13850 = vst [vmem:[%s23314_s10 + $0xc8] sm:$0xff] %v13842_v1  ;;  %v13816_v7 = vadd.f32 %v24251_v35, %v13808_v26  ;;  %v13806_v38 = vmul.f32 %v24244_v29, %v13798_v62 }
 0x572   : > { %v13847_v59 = vmax.f32 %v13839_v3, 0.0  ;;  %v13837_v54 = vadd.f32 %v16002_v24, %v13813_v20 }
 0x573   : > { %v13840_v8 = vadd.f32 %v16007_v11, %v13816_v7  ;;  %v13814_v23 = vadd.f32 %v24251_v35, %v13806_v38 }
 0x574   : > { %13855 = vst [vmem:[%s23314_s10 + $0xf0] sm:$0xff] %v13847_v59  ;;  %v13845_v42 = vmax.f32 %v13837_v54, 0.0 }
 0x575   : > { %v13848_v25 = vmax.f32 %v13840_v8, 0.0  ;;  %v13838_v0 = vadd.f32 %v16003_v49, %v13814_v23 }
 0x576   : > { %13853 = vst [vmem:[%s23314_s10 + $0xe0] sm:$0xff] %v13845_v42 }
 0x577   : > { %13856 = vst [vmem:[%s23314_s10 + $0xf8] sm:$0xff] %v13848_v25  ;;  %v13846_v2 = vmax.f32 %v13838_v0, 0.0 }
 0x579   : > { %13854 = vst [vmem:[%s23314_s10 + $0xe8] sm:$0xff] %v13846_v2 }
 0x57a PF: > { %s14_s15 = sadd.s32 1, %s19585_s15  }
 0x57b   : > { %p11_p4 = scmp.ge.s32.totalorder %s14_s15, 4  }
 0x57d   :  { %13 = sbr.rel (!%p11_p4) target bundleno = 1 (0x1), region = 82 }

</bundles_post_ra>
